<compile_context>
chip_gen: v7x
topology: tpu7x:2x2x1
jax: 0.10.0
libtpu: 0.0.40
codegen_flags: <defaults>
</compile_context>

<pallas_src>
import functools

import jax
import jax.numpy as jnp
from jax.experimental import pallas as pl
from jax.experimental.pallas import tpu as pltpu


def _downsample_kernel(x_ref, p_ref, w_ref, o_ref, pad_ref, *,
                       padding, kh, kw, cin, cout, hp, w_in, wpad, ho, wo,
                       neg_slope, eps):
    """One batch element per grid step.

    x_ref   : (1, Cin, Hp, 2*W)   NCHW re-view; lanes = 2*W (dense)   (VMEM)
    p_ref   : (W, Wpad)           0.25 pair-sum pooling matrix (+ zero pad cols)
    w_ref   : (Cout*Cin*KH*KW,)   conv weights, OIHW order, scalars   (SMEM)
    o_ref   : (1, Cout, Ho, Wo)   NCHW output block; lanes = Wo       (VMEM)
    pad_ref : (Cin, Hpad, Wpad)   zero-padded pooled+lrelu plane; lanes = Wpad
    """
    f32 = jnp.float32

    # ---- AvgPool2d(2,2): vertical pair-sum on the VPU; horizontal 2:1
    #      pair-average as one tiny MXU matmul with a constant pooling matrix
    #      (which also emits the conv's left/right zero-padding columns). ------
    top = x_ref[0, :, :, pl.ds(0, w_in)].astype(f32)        # even rows (Cin, Hp, W)
    bot = x_ref[0, :, :, pl.ds(w_in, w_in)].astype(f32)     # odd  rows (Cin, Hp, W)
    vsum = (top + bot).reshape(cin * hp, w_in)               # leading-dim collapse: free
    pooled = jnp.dot(vsum, p_ref[...], preferred_element_type=f32)   # (Cin*Hp, Wpad)

    # ---- LeakyReLU(0.2); zeros in the padding columns stay zero --------------
    act = jnp.where(pooled > 0, pooled, neg_slope * pooled)

    # ---- padded activation plane, channel-first (lane dim = Wpad: dense) -----
    if padding > 0:
        zrows = jnp.zeros((cin, padding, wpad), f32)
        pad_ref[:, pl.ds(0, padding), :] = zrows                       # top strip
        pad_ref[:, pl.ds(hp + padding, padding), :] = zrows            # bottom strip
    pad_ref[:, pl.ds(padding, hp), :] = act.reshape(cin, hp, wpad)     # interior

    # ---- Conv2d (stride 1) as direct VPU scalar-broadcast accumulation -------
    # Taps are reloaded from VMEM per output channel (cheap: 3 vld/cycle) so the
    # live accumulator is a single (Ho, Wo) plane regardless of Cout.
    s = jnp.float32(0.0)
    ss = jnp.float32(0.0)
    for o in range(cout):
        acc = jnp.zeros((ho, wo), f32)
        for c in range(cin):
            for i in range(kh):
                for j in range(kw):
                    wij = w_ref[((o * cin + c) * kh + i) * kw + j]     # f32 scalar (SMEM)
                    acc = acc + wij * pad_ref[c, pl.ds(i, ho), pl.ds(j, wo)]
        o_ref[0, o] = acc.astype(o_ref.dtype)   # raw conv; normalized in place below
        s = s + jnp.sum(acc)
        ss = ss + jnp.sum(acc * acc)

    # ---- fused per-sample normalization: one-pass moments, in-place ----------
    # matches torch: mean/std over (C, H, W), std unbiased (n - 1).
    n_el = cout * ho * wo
    mean = s / n_el
    var = (ss - s * mean) / (n_el - 1)
    inv = 1.0 / (jnp.sqrt(var) + eps)
    o_ref[0] = ((o_ref[0].astype(f32) - mean) * inv).astype(o_ref.dtype)
    # Dropout: drop_out == 0 -> nn.Identity (eval-mode dropout is identity too).


def _vmem_limit_bytes():
    """Generation-aware scoped-VMEM request (headroom on v7x, larger on v5e/v6e)."""
    try:
        cap = getattr(pltpu.get_tpu_info(), "vmem_capacity_bytes", 128 * 1024 * 1024)
    except Exception:  # unknown platform / interpret mode
        return 32 * 1024 * 1024
    return int(min(max(cap - 16 * 1024 * 1024, 32 * 1024 * 1024), 100 * 1024 * 1024))


def downsample_forward(x_nchw, weight_oihw, *, stride=1, padding=1,
                       drop_out=0.0, neg_slope=0.2, eps=1e-5):
    """Pallas implementation of downsample.forward(x, weight).

    x_nchw      : (N, Cin, H, W)      float32, PyTorch NCHW
    weight_oihw : (Cout, Cin, KH, KW) float32, PyTorch OIHW
    returns     : (N, Cout, Ho, Wo)   float32, PyTorch NCHW
    """
    del drop_out  # identity (drop_out = 0 / eval semantics); see TODO at top.
    N, Cin, H, W = x_nchw.shape
    Cout, Cin_w, KH, KW = weight_oihw.shape
    assert Cin == Cin_w and H % 2 == 0 and W % 2 == 0
    if stride != 1:
        raise NotImplementedError("downsample_forward: only stride == 1 is supported")
    Hp, Wp = H // 2, W // 2
    Hpad, Wpad = Hp + 2 * padding, Wp + 2 * padding
    Ho, Wo = Hpad - KH + 1, Wpad - KW + 1

    # layout glue only -- pure row-major re-views, no HBM transpose passes:
    #   x: (N, Cin, H, W) -> (N, Cin, Hp, 2*W)   row hp holds rows 2hp, 2hp+1
    #   w: OIHW -> flat (Cout*Cin*KH*KW,)        scalar table for SMEM
    x_view = x_nchw.reshape(N, Cin, Hp, 2 * W)
    w_flat = weight_oihw.reshape(Cout * Cin * KH * KW)

    # 2:1 horizontal average-pool matrix (entries 0.25), with the conv's
    # left/right zero-padding columns folded in as all-zero output columns.
    p_mat = ((jnp.arange(W)[:, None] // 2 + padding) == jnp.arange(Wpad)[None, :]
             ).astype(jnp.float32) * 0.25

    kernel = functools.partial(
        _downsample_kernel, padding=padding, kh=KH, kw=KW, cin=Cin, cout=Cout,
        hp=Hp, w_in=W, wpad=Wpad, ho=Ho, wo=Wo, neg_slope=neg_slope, eps=eps)

    out = pl.pallas_call(
        kernel,
        out_shape=jax.ShapeDtypeStruct((N, Cout, Ho, Wo), x_nchw.dtype),
        grid_spec=pltpu.PrefetchScalarGridSpec(
            num_scalar_prefetch=0,
            grid=(N,),
            in_specs=[
                pl.BlockSpec((1, Cin, Hp, 2 * W), lambda n: (n, 0, 0, 0)),
                pl.BlockSpec((W, Wpad), lambda n: (0, 0)),
                pl.BlockSpec(memory_space=pltpu.MemorySpace.SMEM),
            ],
            out_specs=pl.BlockSpec((1, Cout, Ho, Wo), lambda n: (n, 0, 0, 0)),
            scratch_shapes=[
                pltpu.VMEM((Cin, Hpad, Wpad), jnp.float32),
            ],
        ),
        compiler_params=pltpu.CompilerParams(
            dimension_semantics=("parallel",),          # batch is independent
            vmem_limit_bytes=_vmem_limit_bytes(),
        ),
    )(x_view, p_mat, w_flat)

    return out  # already NCHW (N, Cout, Ho, Wo): no reshape, no transpose


def _reference(x, weight, stride, padding, neg_slope=0.2, eps=1e-5):
    """Pure-JAX reference mirroring the PyTorch forward (for sanity checking)."""
    N, C, H, W = x.shape
    pooled = x.reshape(N, C, H // 2, 2, W // 2, 2).mean(axis=(3, 5))
    lrelu = jnp.where(pooled > 0, pooled, neg_slope * pooled)
    conv = jax.lax.conv_general_dilated(
        lrelu, weight, window_strides=(stride, stride),
        padding=[(padding, padding), (padding, padding)],
        dimension_numbers=("NCHW", "OIHW", "NCHW"))
    mean = conv.mean(axis=(1, 2, 3), keepdims=True)
    std = jnp.std(conv, axis=(1, 2, 3), keepdims=True, ddof=1)
    return (conv - mean) / (std + eps)


if __name__ == "__main__":
    key = jax.random.PRNGKey(0)
    kx, kw = jax.random.split(key)

    # small shapes consistent with the module: NCHW input + OIHW conv weight
    N, Cin, H, W = 2, 4, 16, 16
    Cout, KH, KW = 8, 3, 3
    stride, padding, drop_out = 1, 1, 0.0

    x = jax.random.normal(kx, (N, Cin, H, W), dtype=jnp.float32)
    weight = 0.1 * jax.random.normal(kw, (Cout, Cin, KH, KW), dtype=jnp.float32)

    out = downsample_forward(x, weight, stride=stride, padding=padding,
                             drop_out=drop_out)
    out = jax.block_until_ready(out)

    ref = _reference(x, weight, stride, padding)
    max_err = float(jnp.max(jnp.abs(out - ref)))
    assert out.shape == ref.shape
    assert max_err < 5e-3, f"max abs error too large: {max_err}"

    print("KERNEL_OK")
</pallas_src>

<mosaic_0001>
module attributes {stable_mosaic.version = 11 : i64} {
  func.func @_downsample_kernel(%arg0: i32, %arg1: memref<1x4x8x32xf32, #tpu.memory_space<vmem>>, %arg2: memref<16x10xf32, #tpu.memory_space<vmem>>, %arg3: memref<288xf32, #tpu.memory_space<smem>>, %arg4: memref<1x8x8x8xf32, #tpu.memory_space<vmem>>, %arg5: memref<4x10x10xf32, #tpu.memory_space<vmem>>) attributes {dimension_semantics = [#tpu.dimension_semantics<parallel>], iteration_bounds = array<i64: 2>, scalar_prefetch = 0 : i64, scratch_operands = 1 : i64, tpu.core_type = #tpu.core_type<tc>, window_params = [{transform_indices = @transform_0, window_bounds = array<i64: 1, 4, 8, 32>}, {pipeline_mode = #tpu.pipeline_mode<synchronous>, transform_indices = @transform_1, window_bounds = array<i64: 16, 10>}, {transform_indices = @transform_2, window_bounds = array<i64: 288>}, {transform_indices = @transform_3, window_bounds = array<i64: 1, 8, 8, 8>}]} {
    %c0 = arith.constant 0 : index
    %c0_0 = arith.constant 0 : index
    %c0_1 = arith.constant 0 : index
    %c0_2 = arith.constant 0 : index
    %0 = vector.load %arg1[%c0, %c0_0, %c0_1, %c0_2] : memref<1x4x8x32xf32, #tpu.memory_space<vmem>>, vector<1x4x8x16xf32>
    %1 = vector.shape_cast %0 : vector<1x4x8x16xf32> to vector<4x8x16xf32>
    %c0_3 = arith.constant 0 : index
    %c0_4 = arith.constant 0 : index
    %c0_5 = arith.constant 0 : index
    %c16 = arith.constant 16 : index
    %2 = vector.load %arg1[%c0_3, %c0_4, %c0_5, %c16] : memref<1x4x8x32xf32, #tpu.memory_space<vmem>>, vector<1x4x8x16xf32>
    %3 = vector.shape_cast %2 : vector<1x4x8x16xf32> to vector<4x8x16xf32>
    %4 = arith.addf %1, %3 : vector<4x8x16xf32>
    %5 = vector.shape_cast %4 : vector<4x8x16xf32> to vector<32x16xf32>
    %c0_6 = arith.constant 0 : index
    %c0_7 = arith.constant 0 : index
    %6 = vector.load %arg2[%c0_6, %c0_7] : memref<16x10xf32, #tpu.memory_space<vmem>>, vector<16x10xf32>
    %cst = arith.constant dense<0.000000e+00> : vector<32x10xf32>
    %7 = tpu.matmul %5, %6, %cst {dimension_numbers = #tpu.dot_dimension_numbers<[1], [0], [0], [1], [0, 0, 1, 1], [], []>} : vector<32x16xf32>, vector<16x10xf32>, vector<32x10xf32> -> vector<32x10xf32>
    %cst_8 = arith.constant 0.000000e+00 : f32
    %8 = vector.broadcast %cst_8 : f32 to vector<32x10xf32>
    %9 = arith.cmpf ogt, %7, %8 : vector<32x10xf32>
    %cst_9 = arith.constant 2.000000e-01 : f32
    %10 = vector.broadcast %cst_9 : f32 to vector<32x10xf32>
    %11 = arith.mulf %10, %7 : vector<32x10xf32>
    %12 = arith.select %9, %7, %11 : vector<32x10xi1>, vector<32x10xf32>
    %cst_10 = arith.constant 0.000000e+00 : f32
    %13 = vector.broadcast %cst_10 : f32 to vector<4x1x10xf32>
    %c0_11 = arith.constant 0 : index
    %c0_12 = arith.constant 0 : index
    %c0_13 = arith.constant 0 : index
    %14 = vector.load %arg5[%c0_11, %c0_12, %c0_13] : memref<4x10x10xf32, #tpu.memory_space<vmem>>, vector<4x1x10xf32>
    tpu.vector_store %arg5[%c0_11, %c0_12, %c0_13], %13 {strides = array<i32>} : memref<4x10x10xf32, #tpu.memory_space<vmem>>, vector<4x1x10xf32>,
    %c0_14 = arith.constant 0 : index
    %c9 = arith.constant 9 : index
    %c0_15 = arith.constant 0 : index
    %15 = vector.load %arg5[%c0_14, %c9, %c0_15] : memref<4x10x10xf32, #tpu.memory_space<vmem>>, vector<4x1x10xf32>
    tpu.vector_store %arg5[%c0_14, %c9, %c0_15], %13 {strides = array<i32>} : memref<4x10x10xf32, #tpu.memory_space<vmem>>, vector<4x1x10xf32>,
    %16 = vector.shape_cast %12 : vector<32x10xf32> to vector<4x8x10xf32>
    %c0_16 = arith.constant 0 : index
    %c1 = arith.constant 1 : index
    %c0_17 = arith.constant 0 : index
    %17 = vector.load %arg5[%c0_16, %c1, %c0_17] : memref<4x10x10xf32, #tpu.memory_space<vmem>>, vector<4x8x10xf32>
    tpu.vector_store %arg5[%c0_16, %c1, %c0_17], %16 {strides = array<i32>} : memref<4x10x10xf32, #tpu.memory_space<vmem>>, vector<4x8x10xf32>,
    %cst_18 = arith.constant 0.000000e+00 : f32
    %18 = vector.broadcast %cst_18 : f32 to vector<8x8xf32>
    %c0_19 = arith.constant 0 : index
    %19 = memref.load %arg3[%c0_19] : memref<288xf32, #tpu.memory_space<smem>>
    %c0_20 = arith.constant 0 : index
    %c0_21 = arith.constant 0 : index
    %c0_22 = arith.constant 0 : index
    %20 = vector.load %arg5[%c0_20, %c0_21, %c0_22] : memref<4x10x10xf32, #tpu.memory_space<vmem>>, vector<1x8x8xf32>
    %21 = vector.shape_cast %20 : vector<1x8x8xf32> to vector<8x8xf32>
    %22 = vector.broadcast %19 : f32 to vector<8x8xf32>
    %23 = arith.mulf %22, %21 : vector<8x8xf32>
    %24 = arith.addf %18, %23 : vector<8x8xf32>
    %c1_23 = arith.constant 1 : index
    %25 = memref.load %arg3[%c1_23] : memref<288xf32, #tpu.memory_space<smem>>
    %c0_24 = arith.constant 0 : index
    %c0_25 = arith.constant 0 : index
    %c1_26 = arith.constant 1 : index
    %26 = vector.load %arg5[%c0_24, %c0_25, %c1_26] : memref<4x10x10xf32, #tpu.memory_space<vmem>>, vector<1x8x8xf32>
    %27 = vector.shape_cast %26 : vector<1x8x8xf32> to vector<8x8xf32>
    %28 = vector.broadcast %25 : f32 to vector<8x8xf32>
    %29 = arith.mulf %28, %27 : vector<8x8xf32>
    %30 = arith.addf %24, %29 : vector<8x8xf32>
    %c2 = arith.constant 2 : index
    %31 = memref.load %arg3[%c2] : memref<288xf32, #tpu.memory_space<smem>>
    %c0_27 = arith.constant 0 : index
    %c0_28 = arith.constant 0 : index
    %c2_29 = arith.constant 2 : index
    %32 = vector.load %arg5[%c0_27, %c0_28, %c2_29] : memref<4x10x10xf32, #tpu.memory_space<vmem>>, vector<1x8x8xf32>
    %33 = vector.shape_cast %32 : vector<1x8x8xf32> to vector<8x8xf32>
    %34 = vector.broadcast %31 : f32 to vector<8x8xf32>
    %35 = arith.mulf %34, %33 : vector<8x8xf32>
    %36 = arith.addf %30, %35 : vector<8x8xf32>
    %c3 = arith.constant 3 : index
    %37 = memref.load %arg3[%c3] : memref<288xf32, #tpu.memory_space<smem>>
    %c0_30 = arith.constant 0 : index
    %c1_31 = arith.constant 1 : index
    %c0_32 = arith.constant 0 : index
    %38 = vector.load %arg5[%c0_30, %c1_31, %c0_32] : memref<4x10x10xf32, #tpu.memory_space<vmem>>, vector<1x8x8xf32>
    %39 = vector.shape_cast %38 : vector<1x8x8xf32> to vector<8x8xf32>
    %40 = vector.broadcast %37 : f32 to vector<8x8xf32>
    %41 = arith.mulf %40, %39 : vector<8x8xf32>
    %42 = arith.addf %36, %41 : vector<8x8xf32>
    %c4 = arith.constant 4 : index
    %43 = memref.load %arg3[%c4] : memref<288xf32, #tpu.memory_space<smem>>
    %c0_33 = arith.constant 0 : index
    %c1_34 = arith.constant 1 : index
    %c1_35 = arith.constant 1 : index
    %44 = vector.load %arg5[%c0_33, %c1_34, %c1_35] : memref<4x10x10xf32, #tpu.memory_space<vmem>>, vector<1x8x8xf32>
    %45 = vector.shape_cast %44 : vector<1x8x8xf32> to vector<8x8xf32>
    %46 = vector.broadcast %43 : f32 to vector<8x8xf32>
    %47 = arith.mulf %46, %45 : vector<8x8xf32>
    %48 = arith.addf %42, %47 : vector<8x8xf32>
    %c5 = arith.constant 5 : index
    %49 = memref.load %arg3[%c5] : memref<288xf32, #tpu.memory_space<smem>>
    %c0_36 = arith.constant 0 : index
    %c1_37 = arith.constant 1 : index
    %c2_38 = arith.constant 2 : index
    %50 = vector.load %arg5[%c0_36, %c1_37, %c2_38] : memref<4x10x10xf32, #tpu.memory_space<vmem>>, vector<1x8x8xf32>
    %51 = vector.shape_cast %50 : vector<1x8x8xf32> to vector<8x8xf32>
    %52 = vector.broadcast %49 : f32 to vector<8x8xf32>
    %53 = arith.mulf %52, %51 : vector<8x8xf32>
    %54 = arith.addf %48, %53 : vector<8x8xf32>
    %c6 = arith.constant 6 : index
    %55 = memref.load %arg3[%c6] : memref<288xf32, #tpu.memory_space<smem>>
    %c0_39 = arith.constant 0 : index
    %c2_40 = arith.constant 2 : index
    %c0_41 = arith.constant 0 : index
    %56 = vector.load %arg5[%c0_39, %c2_40, %c0_41] : memref<4x10x10xf32, #tpu.memory_space<vmem>>, vector<1x8x8xf32>
    %57 = vector.shape_cast %56 : vector<1x8x8xf32> to vector<8x8xf32>
    %58 = vector.broadcast %55 : f32 to vector<8x8xf32>
    %59 = arith.mulf %58, %57 : vector<8x8xf32>
    %60 = arith.addf %54, %59 : vector<8x8xf32>
    %c7 = arith.constant 7 : index
    %61 = memref.load %arg3[%c7] : memref<288xf32, #tpu.memory_space<smem>>
    %c0_42 = arith.constant 0 : index
    %c2_43 = arith.constant 2 : index
    %c1_44 = arith.constant 1 : index
    %62 = vector.load %arg5[%c0_42, %c2_43, %c1_44] : memref<4x10x10xf32, #tpu.memory_space<vmem>>, vector<1x8x8xf32>
    %63 = vector.shape_cast %62 : vector<1x8x8xf32> to vector<8x8xf32>
    %64 = vector.broadcast %61 : f32 to vector<8x8xf32>
    %65 = arith.mulf %64, %63 : vector<8x8xf32>
    %66 = arith.addf %60, %65 : vector<8x8xf32>
    %c8 = arith.constant 8 : index
    %67 = memref.load %arg3[%c8] : memref<288xf32, #tpu.memory_space<smem>>
    %c0_45 = arith.constant 0 : index
    %c2_46 = arith.constant 2 : index
    %c2_47 = arith.constant 2 : index
    %68 = vector.load %arg5[%c0_45, %c2_46, %c2_47] : memref<4x10x10xf32, #tpu.memory_space<vmem>>, vector<1x8x8xf32>
    %69 = vector.shape_cast %68 : vector<1x8x8xf32> to vector<8x8xf32>
    %70 = vector.broadcast %67 : f32 to vector<8x8xf32>
    %71 = arith.mulf %70, %69 : vector<8x8xf32>
    %72 = arith.addf %66, %71 : vector<8x8xf32>
    %c9_48 = arith.constant 9 : index
    %73 = memref.load %arg3[%c9_48] : memref<288xf32, #tpu.memory_space<smem>>
    %c1_49 = arith.constant 1 : index
    %c0_50 = arith.constant 0 : index
    %c0_51 = arith.constant 0 : index
    %74 = vector.load %arg5[%c1_49, %c0_50, %c0_51] : memref<4x10x10xf32, #tpu.memory_space<vmem>>, vector<1x8x8xf32>
    %75 = vector.shape_cast %74 : vector<1x8x8xf32> to vector<8x8xf32>
    %76 = vector.broadcast %73 : f32 to vector<8x8xf32>
    %77 = arith.mulf %76, %75 : vector<8x8xf32>
    %78 = arith.addf %72, %77 : vector<8x8xf32>
    %c10 = arith.constant 10 : index
    %79 = memref.load %arg3[%c10] : memref<288xf32, #tpu.memory_space<smem>>
    %c1_52 = arith.constant 1 : index
    %c0_53 = arith.constant 0 : index
    %c1_54 = arith.constant 1 : index
    %80 = vector.load %arg5[%c1_52, %c0_53, %c1_54] : memref<4x10x10xf32, #tpu.memory_space<vmem>>, vector<1x8x8xf32>
    %81 = vector.shape_cast %80 : vector<1x8x8xf32> to vector<8x8xf32>
    %82 = vector.broadcast %79 : f32 to vector<8x8xf32>
    %83 = arith.mulf %82, %81 : vector<8x8xf32>
    %84 = arith.addf %78, %83 : vector<8x8xf32>
    %c11 = arith.constant 11 : index
    %85 = memref.load %arg3[%c11] : memref<288xf32, #tpu.memory_space<smem>>
    %c1_55 = arith.constant 1 : index
    %c0_56 = arith.constant 0 : index
    %c2_57 = arith.constant 2 : index
    %86 = vector.load %arg5[%c1_55, %c0_56, %c2_57] : memref<4x10x10xf32, #tpu.memory_space<vmem>>, vector<1x8x8xf32>
    %87 = vector.shape_cast %86 : vector<1x8x8xf32> to vector<8x8xf32>
    %88 = vector.broadcast %85 : f32 to vector<8x8xf32>
    %89 = arith.mulf %88, %87 : vector<8x8xf32>
    %90 = arith.addf %84, %89 : vector<8x8xf32>
    %c12 = arith.constant 12 : index
    %91 = memref.load %arg3[%c12] : memref<288xf32, #tpu.memory_space<smem>>
    %c1_58 = arith.constant 1 : index
    %c1_59 = arith.constant 1 : index
    %c0_60 = arith.constant 0 : index
    %92 = vector.load %arg5[%c1_58, %c1_59, %c0_60] : memref<4x10x10xf32, #tpu.memory_space<vmem>>, vector<1x8x8xf32>
    %93 = vector.shape_cast %92 : vector<1x8x8xf32> to vector<8x8xf32>
    %94 = vector.broadcast %91 : f32 to vector<8x8xf32>
    %95 = arith.mulf %94, %93 : vector<8x8xf32>
    %96 = arith.addf %90, %95 : vector<8x8xf32>
    %c13 = arith.constant 13 : index
    %97 = memref.load %arg3[%c13] : memref<288xf32, #tpu.memory_space<smem>>
    %c1_61 = arith.constant 1 : index
    %c1_62 = arith.constant 1 : index
    %c1_63 = arith.constant 1 : index
    %98 = vector.load %arg5[%c1_61, %c1_62, %c1_63] : memref<4x10x10xf32, #tpu.memory_space<vmem>>, vector<1x8x8xf32>
    %99 = vector.shape_cast %98 : vector<1x8x8xf32> to vector<8x8xf32>
    %100 = vector.broadcast %97 : f32 to vector<8x8xf32>
    %101 = arith.mulf %100, %99 : vector<8x8xf32>
    %102 = arith.addf %96, %101 : vector<8x8xf32>
    %c14 = arith.constant 14 : index
    %103 = memref.load %arg3[%c14] : memref<288xf32, #tpu.memory_space<smem>>
    %c1_64 = arith.constant 1 : index
    %c1_65 = arith.constant 1 : index
    %c2_66 = arith.constant 2 : index
    %104 = vector.load %arg5[%c1_64, %c1_65, %c2_66] : memref<4x10x10xf32, #tpu.memory_space<vmem>>, vector<1x8x8xf32>
    %105 = vector.shape_cast %104 : vector<1x8x8xf32> to vector<8x8xf32>
    %106 = vector.broadcast %103 : f32 to vector<8x8xf32>
    %107 = arith.mulf %106, %105 : vector<8x8xf32>
    %108 = arith.addf %102, %107 : vector<8x8xf32>
    %c15 = arith.constant 15 : index
    %109 = memref.load %arg3[%c15] : memref<288xf32, #tpu.memory_space<smem>>
    %c1_67 = arith.constant 1 : index
    %c2_68 = arith.constant 2 : index
    %c0_69 = arith.constant 0 : index
    %110 = vector.load %arg5[%c1_67, %c2_68, %c0_69] : memref<4x10x10xf32, #tpu.memory_space<vmem>>, vector<1x8x8xf32>
    %111 = vector.shape_cast %110 : vector<1x8x8xf32> to vector<8x8xf32>
    %112 = vector.broadcast %109 : f32 to vector<8x8xf32>
    %113 = arith.mulf %112, %111 : vector<8x8xf32>
    %114 = arith.addf %108, %113 : vector<8x8xf32>
    %c16_70 = arith.constant 16 : index
    %115 = memref.load %arg3[%c16_70] : memref<288xf32, #tpu.memory_space<smem>>
    %c1_71 = arith.constant 1 : index
    %c2_72 = arith.constant 2 : index
    %c1_73 = arith.constant 1 : index
    %116 = vector.load %arg5[%c1_71, %c2_72, %c1_73] : memref<4x10x10xf32, #tpu.memory_space<vmem>>, vector<1x8x8xf32>
    %117 = vector.shape_cast %116 : vector<1x8x8xf32> to vector<8x8xf32>
    %118 = vector.broadcast %115 : f32 to vector<8x8xf32>
    %119 = arith.mulf %118, %117 : vector<8x8xf32>
    %120 = arith.addf %114, %119 : vector<8x8xf32>
    %c17 = arith.constant 17 : index
    %121 = memref.load %arg3[%c17] : memref<288xf32, #tpu.memory_space<smem>>
    %c1_74 = arith.constant 1 : index
    %c2_75 = arith.constant 2 : index
    %c2_76 = arith.constant 2 : index
    %122 = vector.load %arg5[%c1_74, %c2_75, %c2_76] : memref<4x10x10xf32, #tpu.memory_space<vmem>>, vector<1x8x8xf32>
    %123 = vector.shape_cast %122 : vector<1x8x8xf32> to vector<8x8xf32>
    %124 = vector.broadcast %121 : f32 to vector<8x8xf32>
    %125 = arith.mulf %124, %123 : vector<8x8xf32>
    %126 = arith.addf %120, %125 : vector<8x8xf32>
    %c18 = arith.constant 18 : index
    %127 = memref.load %arg3[%c18] : memref<288xf32, #tpu.memory_space<smem>>
    %c2_77 = arith.constant 2 : index
    %c0_78 = arith.constant 0 : index
    %c0_79 = arith.constant 0 : index
    %128 = vector.load %arg5[%c2_77, %c0_78, %c0_79] : memref<4x10x10xf32, #tpu.memory_space<vmem>>, vector<1x8x8xf32>
    %129 = vector.shape_cast %128 : vector<1x8x8xf32> to vector<8x8xf32>
    %130 = vector.broadcast %127 : f32 to vector<8x8xf32>
    %131 = arith.mulf %130, %129 : vector<8x8xf32>
    %132 = arith.addf %126, %131 : vector<8x8xf32>
    %c19 = arith.constant 19 : index
    %133 = memref.load %arg3[%c19] : memref<288xf32, #tpu.memory_space<smem>>
    %c2_80 = arith.constant 2 : index
    %c0_81 = arith.constant 0 : index
    %c1_82 = arith.constant 1 : index
    %134 = vector.load %arg5[%c2_80, %c0_81, %c1_82] : memref<4x10x10xf32, #tpu.memory_space<vmem>>, vector<1x8x8xf32>
    %135 = vector.shape_cast %134 : vector<1x8x8xf32> to vector<8x8xf32>
    %136 = vector.broadcast %133 : f32 to vector<8x8xf32>
    %137 = arith.mulf %136, %135 : vector<8x8xf32>
    %138 = arith.addf %132, %137 : vector<8x8xf32>
    %c20 = arith.constant 20 : index
    %139 = memref.load %arg3[%c20] : memref<288xf32, #tpu.memory_space<smem>>
    %c2_83 = arith.constant 2 : index
    %c0_84 = arith.constant 0 : index
    %c2_85 = arith.constant 2 : index
    %140 = vector.load %arg5[%c2_83, %c0_84, %c2_85] : memref<4x10x10xf32, #tpu.memory_space<vmem>>, vector<1x8x8xf32>
    %141 = vector.shape_cast %140 : vector<1x8x8xf32> to vector<8x8xf32>
    %142 = vector.broadcast %139 : f32 to vector<8x8xf32>
    %143 = arith.mulf %142, %141 : vector<8x8xf32>
    %144 = arith.addf %138, %143 : vector<8x8xf32>
    %c21 = arith.constant 21 : index
    %145 = memref.load %arg3[%c21] : memref<288xf32, #tpu.memory_space<smem>>
    %c2_86 = arith.constant 2 : index
    %c1_87 = arith.constant 1 : index
    %c0_88 = arith.constant 0 : index
    %146 = vector.load %arg5[%c2_86, %c1_87, %c0_88] : memref<4x10x10xf32, #tpu.memory_space<vmem>>, vector<1x8x8xf32>
    %147 = vector.shape_cast %146 : vector<1x8x8xf32> to vector<8x8xf32>
    %148 = vector.broadcast %145 : f32 to vector<8x8xf32>
    %149 = arith.mulf %148, %147 : vector<8x8xf32>
    %150 = arith.addf %144, %149 : vector<8x8xf32>
    %c22 = arith.constant 22 : index
    %151 = memref.load %arg3[%c22] : memref<288xf32, #tpu.memory_space<smem>>
    %c2_89 = arith.constant 2 : index
    %c1_90 = arith.constant 1 : index
    %c1_91 = arith.constant 1 : index
    %152 = vector.load %arg5[%c2_89, %c1_90, %c1_91] : memref<4x10x10xf32, #tpu.memory_space<vmem>>, vector<1x8x8xf32>
    %153 = vector.shape_cast %152 : vector<1x8x8xf32> to vector<8x8xf32>
    %154 = vector.broadcast %151 : f32 to vector<8x8xf32>
    %155 = arith.mulf %154, %153 : vector<8x8xf32>
    %156 = arith.addf %150, %155 : vector<8x8xf32>
    %c23 = arith.constant 23 : index
    %157 = memref.load %arg3[%c23] : memref<288xf32, #tpu.memory_space<smem>>
    %c2_92 = arith.constant 2 : index
    %c1_93 = arith.constant 1 : index
    %c2_94 = arith.constant 2 : index
    %158 = vector.load %arg5[%c2_92, %c1_93, %c2_94] : memref<4x10x10xf32, #tpu.memory_space<vmem>>, vector<1x8x8xf32>
    %159 = vector.shape_cast %158 : vector<1x8x8xf32> to vector<8x8xf32>
    %160 = vector.broadcast %157 : f32 to vector<8x8xf32>
    %161 = arith.mulf %160, %159 : vector<8x8xf32>
    %162 = arith.addf %156, %161 : vector<8x8xf32>
    %c24 = arith.constant 24 : index
    %163 = memref.load %arg3[%c24] : memref<288xf32, #tpu.memory_space<smem>>
    %c2_95 = arith.constant 2 : index
    %c2_96 = arith.constant 2 : index
    %c0_97 = arith.constant 0 : index
    %164 = vector.load %arg5[%c2_95, %c2_96, %c0_97] : memref<4x10x10xf32, #tpu.memory_space<vmem>>, vector<1x8x8xf32>
    %165 = vector.shape_cast %164 : vector<1x8x8xf32> to vector<8x8xf32>
    %166 = vector.broadcast %163 : f32 to vector<8x8xf32>
    %167 = arith.mulf %166, %165 : vector<8x8xf32>
    %168 = arith.addf %162, %167 : vector<8x8xf32>
    %c25 = arith.constant 25 : index
    %169 = memref.load %arg3[%c25] : memref<288xf32, #tpu.memory_space<smem>>
    %c2_98 = arith.constant 2 : index
    %c2_99 = arith.constant 2 : index
    %c1_100 = arith.constant 1 : index
    %170 = vector.load %arg5[%c2_98, %c2_99, %c1_100] : memref<4x10x10xf32, #tpu.memory_space<vmem>>, vector<1x8x8xf32>
    %171 = vector.shape_cast %170 : vector<1x8x8xf32> to vector<8x8xf32>
    %172 = vector.broadcast %169 : f32 to vector<8x8xf32>
    %173 = arith.mulf %172, %171 : vector<8x8xf32>
    %174 = arith.addf %168, %173 : vector<8x8xf32>
    %c26 = arith.constant 26 : index
    %175 = memref.load %arg3[%c26] : memref<288xf32, #tpu.memory_space<smem>>
    %c2_101 = arith.constant 2 : index
    %c2_102 = arith.constant 2 : index
    %c2_103 = arith.constant 2 : index
    %176 = vector.load %arg5[%c2_101, %c2_102, %c2_103] : memref<4x10x10xf32, #tpu.memory_space<vmem>>, vector<1x8x8xf32>
    %177 = vector.shape_cast %176 : vector<1x8x8xf32> to vector<8x8xf32>
    %178 = vector.broadcast %175 : f32 to vector<8x8xf32>
    %179 = arith.mulf %178, %177 : vector<8x8xf32>
    %180 = arith.addf %174, %179 : vector<8x8xf32>
    %c27 = arith.constant 27 : index
    %181 = memref.load %arg3[%c27] : memref<288xf32, #tpu.memory_space<smem>>
    %c3_104 = arith.constant 3 : index
    %c0_105 = arith.constant 0 : index
    %c0_106 = arith.constant 0 : index
    %182 = vector.load %arg5[%c3_104, %c0_105, %c0_106] : memref<4x10x10xf32, #tpu.memory_space<vmem>>, vector<1x8x8xf32>
    %183 = vector.shape_cast %182 : vector<1x8x8xf32> to vector<8x8xf32>
    %184 = vector.broadcast %181 : f32 to vector<8x8xf32>
    %185 = arith.mulf %184, %183 : vector<8x8xf32>
    %186 = arith.addf %180, %185 : vector<8x8xf32>
    %c28 = arith.constant 28 : index
    %187 = memref.load %arg3[%c28] : memref<288xf32, #tpu.memory_space<smem>>
    %c3_107 = arith.constant 3 : index
    %c0_108 = arith.constant 0 : index
    %c1_109 = arith.constant 1 : index
    %188 = vector.load %arg5[%c3_107, %c0_108, %c1_109] : memref<4x10x10xf32, #tpu.memory_space<vmem>>, vector<1x8x8xf32>
    %189 = vector.shape_cast %188 : vector<1x8x8xf32> to vector<8x8xf32>
    %190 = vector.broadcast %187 : f32 to vector<8x8xf32>
    %191 = arith.mulf %190, %189 : vector<8x8xf32>
    %192 = arith.addf %186, %191 : vector<8x8xf32>
    %c29 = arith.constant 29 : index
    %193 = memref.load %arg3[%c29] : memref<288xf32, #tpu.memory_space<smem>>
    %c3_110 = arith.constant 3 : index
    %c0_111 = arith.constant 0 : index
    %c2_112 = arith.constant 2 : index
    %194 = vector.load %arg5[%c3_110, %c0_111, %c2_112] : memref<4x10x10xf32, #tpu.memory_space<vmem>>, vector<1x8x8xf32>
    %195 = vector.shape_cast %194 : vector<1x8x8xf32> to vector<8x8xf32>
    %196 = vector.broadcast %193 : f32 to vector<8x8xf32>
    %197 = arith.mulf %196, %195 : vector<8x8xf32>
    %198 = arith.addf %192, %197 : vector<8x8xf32>
    %c30 = arith.constant 30 : index
    %199 = memref.load %arg3[%c30] : memref<288xf32, #tpu.memory_space<smem>>
    %c3_113 = arith.constant 3 : index
    %c1_114 = arith.constant 1 : index
    %c0_115 = arith.constant 0 : index
    %200 = vector.load %arg5[%c3_113, %c1_114, %c0_115] : memref<4x10x10xf32, #tpu.memory_space<vmem>>, vector<1x8x8xf32>
    %201 = vector.shape_cast %200 : vector<1x8x8xf32> to vector<8x8xf32>
    %202 = vector.broadcast %199 : f32 to vector<8x8xf32>
    %203 = arith.mulf %202, %201 : vector<8x8xf32>
    %204 = arith.addf %198, %203 : vector<8x8xf32>
    %c31 = arith.constant 31 : index
    %205 = memref.load %arg3[%c31] : memref<288xf32, #tpu.memory_space<smem>>
    %c3_116 = arith.constant 3 : index
    %c1_117 = arith.constant 1 : index
    %c1_118 = arith.constant 1 : index
    %206 = vector.load %arg5[%c3_116, %c1_117, %c1_118] : memref<4x10x10xf32, #tpu.memory_space<vmem>>, vector<1x8x8xf32>
    %207 = vector.shape_cast %206 : vector<1x8x8xf32> to vector<8x8xf32>
    %208 = vector.broadcast %205 : f32 to vector<8x8xf32>
    %209 = arith.mulf %208, %207 : vector<8x8xf32>
    %210 = arith.addf %204, %209 : vector<8x8xf32>
    %c32 = arith.constant 32 : index
    %211 = memref.load %arg3[%c32] : memref<288xf32, #tpu.memory_space<smem>>
    %c3_119 = arith.constant 3 : index
    %c1_120 = arith.constant 1 : index
    %c2_121 = arith.constant 2 : index
    %212 = vector.load %arg5[%c3_119, %c1_120, %c2_121] : memref<4x10x10xf32, #tpu.memory_space<vmem>>, vector<1x8x8xf32>
    %213 = vector.shape_cast %212 : vector<1x8x8xf32> to vector<8x8xf32>
    %214 = vector.broadcast %211 : f32 to vector<8x8xf32>
    %215 = arith.mulf %214, %213 : vector<8x8xf32>
    %216 = arith.addf %210, %215 : vector<8x8xf32>
    %c33 = arith.constant 33 : index
    %217 = memref.load %arg3[%c33] : memref<288xf32, #tpu.memory_space<smem>>
    %c3_122 = arith.constant 3 : index
    %c2_123 = arith.constant 2 : index
    %c0_124 = arith.constant 0 : index
    %218 = vector.load %arg5[%c3_122, %c2_123, %c0_124] : memref<4x10x10xf32, #tpu.memory_space<vmem>>, vector<1x8x8xf32>
    %219 = vector.shape_cast %218 : vector<1x8x8xf32> to vector<8x8xf32>
    %220 = vector.broadcast %217 : f32 to vector<8x8xf32>
    %221 = arith.mulf %220, %219 : vector<8x8xf32>
    %222 = arith.addf %216, %221 : vector<8x8xf32>
    %c34 = arith.constant 34 : index
    %223 = memref.load %arg3[%c34] : memref<288xf32, #tpu.memory_space<smem>>
    %c3_125 = arith.constant 3 : index
    %c2_126 = arith.constant 2 : index
    %c1_127 = arith.constant 1 : index
    %224 = vector.load %arg5[%c3_125, %c2_126, %c1_127] : memref<4x10x10xf32, #tpu.memory_space<vmem>>, vector<1x8x8xf32>
    %225 = vector.shape_cast %224 : vector<1x8x8xf32> to vector<8x8xf32>
    %226 = vector.broadcast %223 : f32 to vector<8x8xf32>
    %227 = arith.mulf %226, %225 : vector<8x8xf32>
    %228 = arith.addf %222, %227 : vector<8x8xf32>
    %c35 = arith.constant 35 : index
    %229 = memref.load %arg3[%c35] : memref<288xf32, #tpu.memory_space<smem>>
    %c3_128 = arith.constant 3 : index
    %c2_129 = arith.constant 2 : index
    %c2_130 = arith.constant 2 : index
    %230 = vector.load %arg5[%c3_128, %c2_129, %c2_130] : memref<4x10x10xf32, #tpu.memory_space<vmem>>, vector<1x8x8xf32>
    %231 = vector.shape_cast %230 : vector<1x8x8xf32> to vector<8x8xf32>
    %232 = vector.broadcast %229 : f32 to vector<8x8xf32>
    %233 = arith.mulf %232, %231 : vector<8x8xf32>
    %234 = arith.addf %228, %233 : vector<8x8xf32>
    %c0_131 = arith.constant 0 : index
    %c0_132 = arith.constant 0 : index
    %c0_133 = arith.constant 0 : index
    %c0_134 = arith.constant 0 : index
    %235 = vector.load %arg4[%c0_131, %c0_132, %c0_133, %c0_134] : memref<1x8x8x8xf32, #tpu.memory_space<vmem>>, vector<1x1x8x8xf32>
    %236 = vector.shape_cast %235 : vector<1x1x8x8xf32> to vector<8x8xf32>
    %237 = vector.shape_cast %234 : vector<8x8xf32> to vector<1x1x8x8xf32>
    tpu.vector_store %arg4[%c0_131, %c0_132, %c0_133, %c0_134], %237 {strides = array<i32>} : memref<1x8x8x8xf32, #tpu.memory_space<vmem>>, vector<1x1x8x8xf32>,
    %238 = vector.shape_cast %234 : vector<8x8xf32> to vector<1x8x8xf32>
    %cst_135 = arith.constant dense<0.000000e+00> : vector<1xf32>
    %239 = vector.multi_reduction <add>, %238, %cst_135 [1, 2] : vector<1x8x8xf32> to vector<1xf32>
    %240 = vector.shape_cast %239 : vector<1xf32> to vector<1x1x1xf32>
    %241 = vector.extract %240[0, 0, 0] : f32 from vector<1x1x1xf32>
    %cst_136 = arith.constant 0.000000e+00 : f32
    %242 = arith.addf %cst_136, %241 : f32
    %243 = arith.mulf %234, %234 : vector<8x8xf32>
    %244 = vector.shape_cast %243 : vector<8x8xf32> to vector<1x8x8xf32>
    %cst_137 = arith.constant dense<0.000000e+00> : vector<1xf32>
    %245 = vector.multi_reduction <add>, %244, %cst_137 [1, 2] : vector<1x8x8xf32> to vector<1xf32>
    %246 = vector.shape_cast %245 : vector<1xf32> to vector<1x1x1xf32>
    %247 = vector.extract %246[0, 0, 0] : f32 from vector<1x1x1xf32>
    %cst_138 = arith.constant 0.000000e+00 : f32
    %248 = arith.addf %cst_138, %247 : f32
    %cst_139 = arith.constant 0.000000e+00 : f32
    %249 = vector.broadcast %cst_139 : f32 to vector<8x8xf32>
    %c36 = arith.constant 36 : index
    %250 = memref.load %arg3[%c36] : memref<288xf32, #tpu.memory_space<smem>>
    %c0_140 = arith.constant 0 : index
    %c0_141 = arith.constant 0 : index
    %c0_142 = arith.constant 0 : index
    %251 = vector.load %arg5[%c0_140, %c0_141, %c0_142] : memref<4x10x10xf32, #tpu.memory_space<vmem>>, vector<1x8x8xf32>
    %252 = vector.shape_cast %251 : vector<1x8x8xf32> to vector<8x8xf32>
    %253 = vector.broadcast %250 : f32 to vector<8x8xf32>
    %254 = arith.mulf %253, %252 : vector<8x8xf32>
    %255 = arith.addf %249, %254 : vector<8x8xf32>
    %c37 = arith.constant 37 : index
    %256 = memref.load %arg3[%c37] : memref<288xf32, #tpu.memory_space<smem>>
    %c0_143 = arith.constant 0 : index
    %c0_144 = arith.constant 0 : index
    %c1_145 = arith.constant 1 : index
    %257 = vector.load %arg5[%c0_143, %c0_144, %c1_145] : memref<4x10x10xf32, #tpu.memory_space<vmem>>, vector<1x8x8xf32>
    %258 = vector.shape_cast %257 : vector<1x8x8xf32> to vector<8x8xf32>
    %259 = vector.broadcast %256 : f32 to vector<8x8xf32>
    %260 = arith.mulf %259, %258 : vector<8x8xf32>
    %261 = arith.addf %255, %260 : vector<8x8xf32>
    %c38 = arith.constant 38 : index
    %262 = memref.load %arg3[%c38] : memref<288xf32, #tpu.memory_space<smem>>
    %c0_146 = arith.constant 0 : index
    %c0_147 = arith.constant 0 : index
    %c2_148 = arith.constant 2 : index
    %263 = vector.load %arg5[%c0_146, %c0_147, %c2_148] : memref<4x10x10xf32, #tpu.memory_space<vmem>>, vector<1x8x8xf32>
    %264 = vector.shape_cast %263 : vector<1x8x8xf32> to vector<8x8xf32>
    %265 = vector.broadcast %262 : f32 to vector<8x8xf32>
    %266 = arith.mulf %265, %264 : vector<8x8xf32>
    %267 = arith.addf %261, %266 : vector<8x8xf32>
    %c39 = arith.constant 39 : index
    %268 = memref.load %arg3[%c39] : memref<288xf32, #tpu.memory_space<smem>>
    %c0_149 = arith.constant 0 : index
    %c1_150 = arith.constant 1 : index
    %c0_151 = arith.constant 0 : index
    %269 = vector.load %arg5[%c0_149, %c1_150, %c0_151] : memref<4x10x10xf32, #tpu.memory_space<vmem>>, vector<1x8x8xf32>
    %270 = vector.shape_cast %269 : vector<1x8x8xf32> to vector<8x8xf32>
    %271 = vector.broadcast %268 : f32 to vector<8x8xf32>
    %272 = arith.mulf %271, %270 : vector<8x8xf32>
    %273 = arith.addf %267, %272 : vector<8x8xf32>
    %c40 = arith.constant 40 : index
    %274 = memref.load %arg3[%c40] : memref<288xf32, #tpu.memory_space<smem>>
    %c0_152 = arith.constant 0 : index
    %c1_153 = arith.constant 1 : index
    %c1_154 = arith.constant 1 : index
    %275 = vector.load %arg5[%c0_152, %c1_153, %c1_154] : memref<4x10x10xf32, #tpu.memory_space<vmem>>, vector<1x8x8xf32>
    %276 = vector.shape_cast %275 : vector<1x8x8xf32> to vector<8x8xf32>
    %277 = vector.broadcast %274 : f32 to vector<8x8xf32>
    %278 = arith.mulf %277, %276 : vector<8x8xf32>
    %279 = arith.addf %273, %278 : vector<8x8xf32>
    %c41 = arith.constant 41 : index
    %280 = memref.load %arg3[%c41] : memref<288xf32, #tpu.memory_space<smem>>
    %c0_155 = arith.constant 0 : index
    %c1_156 = arith.constant 1 : index
    %c2_157 = arith.constant 2 : index
    %281 = vector.load %arg5[%c0_155, %c1_156, %c2_157] : memref<4x10x10xf32, #tpu.memory_space<vmem>>, vector<1x8x8xf32>
    %282 = vector.shape_cast %281 : vector<1x8x8xf32> to vector<8x8xf32>
    %283 = vector.broadcast %280 : f32 to vector<8x8xf32>
    %284 = arith.mulf %283, %282 : vector<8x8xf32>
    %285 = arith.addf %279, %284 : vector<8x8xf32>
    %c42 = arith.constant 42 : index
    %286 = memref.load %arg3[%c42] : memref<288xf32, #tpu.memory_space<smem>>
    %c0_158 = arith.constant 0 : index
    %c2_159 = arith.constant 2 : index
    %c0_160 = arith.constant 0 : index
    %287 = vector.load %arg5[%c0_158, %c2_159, %c0_160] : memref<4x10x10xf32, #tpu.memory_space<vmem>>, vector<1x8x8xf32>
    %288 = vector.shape_cast %287 : vector<1x8x8xf32> to vector<8x8xf32>
    %289 = vector.broadcast %286 : f32 to vector<8x8xf32>
    %290 = arith.mulf %289, %288 : vector<8x8xf32>
    %291 = arith.addf %285, %290 : vector<8x8xf32>
    %c43 = arith.constant 43 : index
    %292 = memref.load %arg3[%c43] : memref<288xf32, #tpu.memory_space<smem>>
    %c0_161 = arith.constant 0 : index
    %c2_162 = arith.constant 2 : index
    %c1_163 = arith.constant 1 : index
    %293 = vector.load %arg5[%c0_161, %c2_162, %c1_163] : memref<4x10x10xf32, #tpu.memory_space<vmem>>, vector<1x8x8xf32>
    %294 = vector.shape_cast %293 : vector<1x8x8xf32> to vector<8x8xf32>
    %295 = vector.broadcast %292 : f32 to vector<8x8xf32>
    %296 = arith.mulf %295, %294 : vector<8x8xf32>
    %297 = arith.addf %291, %296 : vector<8x8xf32>
    %c44 = arith.constant 44 : index
    %298 = memref.load %arg3[%c44] : memref<288xf32, #tpu.memory_space<smem>>
    %c0_164 = arith.constant 0 : index
    %c2_165 = arith.constant 2 : index
    %c2_166 = arith.constant 2 : index
    %299 = vector.load %arg5[%c0_164, %c2_165, %c2_166] : memref<4x10x10xf32, #tpu.memory_space<vmem>>, vector<1x8x8xf32>
    %300 = vector.shape_cast %299 : vector<1x8x8xf32> to vector<8x8xf32>
    %301 = vector.broadcast %298 : f32 to vector<8x8xf32>
    %302 = arith.mulf %301, %300 : vector<8x8xf32>
    %303 = arith.addf %297, %302 : vector<8x8xf32>
    %c45 = arith.constant 45 : index
    %304 = memref.load %arg3[%c45] : memref<288xf32, #tpu.memory_space<smem>>
    %c1_167 = arith.constant 1 : index
    %c0_168 = arith.constant 0 : index
    %c0_169 = arith.constant 0 : index
    %305 = vector.load %arg5[%c1_167, %c0_168, %c0_169] : memref<4x10x10xf32, #tpu.memory_space<vmem>>, vector<1x8x8xf32>
    %306 = vector.shape_cast %305 : vector<1x8x8xf32> to vector<8x8xf32>
    %307 = vector.broadcast %304 : f32 to vector<8x8xf32>
    %308 = arith.mulf %307, %306 : vector<8x8xf32>
    %309 = arith.addf %303, %308 : vector<8x8xf32>
    %c46 = arith.constant 46 : index
    %310 = memref.load %arg3[%c46] : memref<288xf32, #tpu.memory_space<smem>>
    %c1_170 = arith.constant 1 : index
    %c0_171 = arith.constant 0 : index
    %c1_172 = arith.constant 1 : index
    %311 = vector.load %arg5[%c1_170, %c0_171, %c1_172] : memref<4x10x10xf32, #tpu.memory_space<vmem>>, vector<1x8x8xf32>
    %312 = vector.shape_cast %311 : vector<1x8x8xf32> to vector<8x8xf32>
    %313 = vector.broadcast %310 : f32 to vector<8x8xf32>
    %314 = arith.mulf %313, %312 : vector<8x8xf32>
    %315 = arith.addf %309, %314 : vector<8x8xf32>
    %c47 = arith.constant 47 : index
    %316 = memref.load %arg3[%c47] : memref<288xf32, #tpu.memory_space<smem>>
    %c1_173 = arith.constant 1 : index
    %c0_174 = arith.constant 0 : index
    %c2_175 = arith.constant 2 : index
    %317 = vector.load %arg5[%c1_173, %c0_174, %c2_175] : memref<4x10x10xf32, #tpu.memory_space<vmem>>, vector<1x8x8xf32>
    %318 = vector.shape_cast %317 : vector<1x8x8xf32> to vector<8x8xf32>
    %319 = vector.broadcast %316 : f32 to vector<8x8xf32>
    %320 = arith.mulf %319, %318 : vector<8x8xf32>
    %321 = arith.addf %315, %320 : vector<8x8xf32>
    %c48 = arith.constant 48 : index
    %322 = memref.load %arg3[%c48] : memref<288xf32, #tpu.memory_space<smem>>
    %c1_176 = arith.constant 1 : index
    %c1_177 = arith.constant 1 : index
    %c0_178 = arith.constant 0 : index
    %323 = vector.load %arg5[%c1_176, %c1_177, %c0_178] : memref<4x10x10xf32, #tpu.memory_space<vmem>>, vector<1x8x8xf32>
    %324 = vector.shape_cast %323 : vector<1x8x8xf32> to vector<8x8xf32>
    %325 = vector.broadcast %322 : f32 to vector<8x8xf32>
    %326 = arith.mulf %325, %324 : vector<8x8xf32>
    %327 = arith.addf %321, %326 : vector<8x8xf32>
    %c49 = arith.constant 49 : index
    %328 = memref.load %arg3[%c49] : memref<288xf32, #tpu.memory_space<smem>>
    %c1_179 = arith.constant 1 : index
    %c1_180 = arith.constant 1 : index
    %c1_181 = arith.constant 1 : index
    %329 = vector.load %arg5[%c1_179, %c1_180, %c1_181] : memref<4x10x10xf32, #tpu.memory_space<vmem>>, vector<1x8x8xf32>
    %330 = vector.shape_cast %329 : vector<1x8x8xf32> to vector<8x8xf32>
    %331 = vector.broadcast %328 : f32 to vector<8x8xf32>
    %332 = arith.mulf %331, %330 : vector<8x8xf32>
    %333 = arith.addf %327, %332 : vector<8x8xf32>
    %c50 = arith.constant 50 : index
    %334 = memref.load %arg3[%c50] : memref<288xf32, #tpu.memory_space<smem>>
    %c1_182 = arith.constant 1 : index
    %c1_183 = arith.constant 1 : index
    %c2_184 = arith.constant 2 : index
    %335 = vector.load %arg5[%c1_182, %c1_183, %c2_184] : memref<4x10x10xf32, #tpu.memory_space<vmem>>, vector<1x8x8xf32>
    %336 = vector.shape_cast %335 : vector<1x8x8xf32> to vector<8x8xf32>
    %337 = vector.broadcast %334 : f32 to vector<8x8xf32>
    %338 = arith.mulf %337, %336 : vector<8x8xf32>
    %339 = arith.addf %333, %338 : vector<8x8xf32>
    %c51 = arith.constant 51 : index
    %340 = memref.load %arg3[%c51] : memref<288xf32, #tpu.memory_space<smem>>
    %c1_185 = arith.constant 1 : index
    %c2_186 = arith.constant 2 : index
    %c0_187 = arith.constant 0 : index
    %341 = vector.load %arg5[%c1_185, %c2_186, %c0_187] : memref<4x10x10xf32, #tpu.memory_space<vmem>>, vector<1x8x8xf32>
    %342 = vector.shape_cast %341 : vector<1x8x8xf32> to vector<8x8xf32>
    %343 = vector.broadcast %340 : f32 to vector<8x8xf32>
    %344 = arith.mulf %343, %342 : vector<8x8xf32>
    %345 = arith.addf %339, %344 : vector<8x8xf32>
    %c52 = arith.constant 52 : index
    %346 = memref.load %arg3[%c52] : memref<288xf32, #tpu.memory_space<smem>>
    %c1_188 = arith.constant 1 : index
    %c2_189 = arith.constant 2 : index
    %c1_190 = arith.constant 1 : index
    %347 = vector.load %arg5[%c1_188, %c2_189, %c1_190] : memref<4x10x10xf32, #tpu.memory_space<vmem>>, vector<1x8x8xf32>
    %348 = vector.shape_cast %347 : vector<1x8x8xf32> to vector<8x8xf32>
    %349 = vector.broadcast %346 : f32 to vector<8x8xf32>
    %350 = arith.mulf %349, %348 : vector<8x8xf32>
    %351 = arith.addf %345, %350 : vector<8x8xf32>
    %c53 = arith.constant 53 : index
    %352 = memref.load %arg3[%c53] : memref<288xf32, #tpu.memory_space<smem>>
    %c1_191 = arith.constant 1 : index
    %c2_192 = arith.constant 2 : index
    %c2_193 = arith.constant 2 : index
    %353 = vector.load %arg5[%c1_191, %c2_192, %c2_193] : memref<4x10x10xf32, #tpu.memory_space<vmem>>, vector<1x8x8xf32>
    %354 = vector.shape_cast %353 : vector<1x8x8xf32> to vector<8x8xf32>
    %355 = vector.broadcast %352 : f32 to vector<8x8xf32>
    %356 = arith.mulf %355, %354 : vector<8x8xf32>
    %357 = arith.addf %351, %356 : vector<8x8xf32>
    %c54 = arith.constant 54 : index
    %358 = memref.load %arg3[%c54] : memref<288xf32, #tpu.memory_space<smem>>
    %c2_194 = arith.constant 2 : index
    %c0_195 = arith.constant 0 : index
    %c0_196 = arith.constant 0 : index
    %359 = vector.load %arg5[%c2_194, %c0_195, %c0_196] : memref<4x10x10xf32, #tpu.memory_space<vmem>>, vector<1x8x8xf32>
    %360 = vector.shape_cast %359 : vector<1x8x8xf32> to vector<8x8xf32>
    %361 = vector.broadcast %358 : f32 to vector<8x8xf32>
    %362 = arith.mulf %361, %360 : vector<8x8xf32>
    %363 = arith.addf %357, %362 : vector<8x8xf32>
    %c55 = arith.constant 55 : index
    %364 = memref.load %arg3[%c55] : memref<288xf32, #tpu.memory_space<smem>>
    %c2_197 = arith.constant 2 : index
    %c0_198 = arith.constant 0 : index
    %c1_199 = arith.constant 1 : index
    %365 = vector.load %arg5[%c2_197, %c0_198, %c1_199] : memref<4x10x10xf32, #tpu.memory_space<vmem>>, vector<1x8x8xf32>
    %366 = vector.shape_cast %365 : vector<1x8x8xf32> to vector<8x8xf32>
    %367 = vector.broadcast %364 : f32 to vector<8x8xf32>
    %368 = arith.mulf %367, %366 : vector<8x8xf32>
    %369 = arith.addf %363, %368 : vector<8x8xf32>
    %c56 = arith.constant 56 : index
    %370 = memref.load %arg3[%c56] : memref<288xf32, #tpu.memory_space<smem>>
    %c2_200 = arith.constant 2 : index
    %c0_201 = arith.constant 0 : index
    %c2_202 = arith.constant 2 : index
    %371 = vector.load %arg5[%c2_200, %c0_201, %c2_202] : memref<4x10x10xf32, #tpu.memory_space<vmem>>, vector<1x8x8xf32>
    %372 = vector.shape_cast %371 : vector<1x8x8xf32> to vector<8x8xf32>
    %373 = vector.broadcast %370 : f32 to vector<8x8xf32>
    %374 = arith.mulf %373, %372 : vector<8x8xf32>
    %375 = arith.addf %369, %374 : vector<8x8xf32>
    %c57 = arith.constant 57 : index
    %376 = memref.load %arg3[%c57] : memref<288xf32, #tpu.memory_space<smem>>
    %c2_203 = arith.constant 2 : index
    %c1_204 = arith.constant 1 : index
    %c0_205 = arith.constant 0 : index
    %377 = vector.load %arg5[%c2_203, %c1_204, %c0_205] : memref<4x10x10xf32, #tpu.memory_space<vmem>>, vector<1x8x8xf32>
    %378 = vector.shape_cast %377 : vector<1x8x8xf32> to vector<8x8xf32>
    %379 = vector.broadcast %376 : f32 to vector<8x8xf32>
    %380 = arith.mulf %379, %378 : vector<8x8xf32>
    %381 = arith.addf %375, %380 : vector<8x8xf32>
    %c58 = arith.constant 58 : index
    %382 = memref.load %arg3[%c58] : memref<288xf32, #tpu.memory_space<smem>>
    %c2_206 = arith.constant 2 : index
    %c1_207 = arith.constant 1 : index
    %c1_208 = arith.constant 1 : index
    %383 = vector.load %arg5[%c2_206, %c1_207, %c1_208] : memref<4x10x10xf32, #tpu.memory_space<vmem>>, vector<1x8x8xf32>
    %384 = vector.shape_cast %383 : vector<1x8x8xf32> to vector<8x8xf32>
    %385 = vector.broadcast %382 : f32 to vector<8x8xf32>
    %386 = arith.mulf %385, %384 : vector<8x8xf32>
    %387 = arith.addf %381, %386 : vector<8x8xf32>
    %c59 = arith.constant 59 : index
    %388 = memref.load %arg3[%c59] : memref<288xf32, #tpu.memory_space<smem>>
    %c2_209 = arith.constant 2 : index
    %c1_210 = arith.constant 1 : index
    %c2_211 = arith.constant 2 : index
    %389 = vector.load %arg5[%c2_209, %c1_210, %c2_211] : memref<4x10x10xf32, #tpu.memory_space<vmem>>, vector<1x8x8xf32>
    %390 = vector.shape_cast %389 : vector<1x8x8xf32> to vector<8x8xf32>
    %391 = vector.broadcast %388 : f32 to vector<8x8xf32>
    %392 = arith.mulf %391, %390 : vector<8x8xf32>
    %393 = arith.addf %387, %392 : vector<8x8xf32>
    %c60 = arith.constant 60 : index
    %394 = memref.load %arg3[%c60] : memref<288xf32, #tpu.memory_space<smem>>
    %c2_212 = arith.constant 2 : index
    %c2_213 = arith.constant 2 : index
    %c0_214 = arith.constant 0 : index
    %395 = vector.load %arg5[%c2_212, %c2_213, %c0_214] : memref<4x10x10xf32, #tpu.memory_space<vmem>>, vector<1x8x8xf32>
    %396 = vector.shape_cast %395 : vector<1x8x8xf32> to vector<8x8xf32>
    %397 = vector.broadcast %394 : f32 to vector<8x8xf32>
    %398 = arith.mulf %397, %396 : vector<8x8xf32>
    %399 = arith.addf %393, %398 : vector<8x8xf32>
    %c61 = arith.constant 61 : index
    %400 = memref.load %arg3[%c61] : memref<288xf32, #tpu.memory_space<smem>>
    %c2_215 = arith.constant 2 : index
    %c2_216 = arith.constant 2 : index
    %c1_217 = arith.constant 1 : index
    %401 = vector.load %arg5[%c2_215, %c2_216, %c1_217] : memref<4x10x10xf32, #tpu.memory_space<vmem>>, vector<1x8x8xf32>
    %402 = vector.shape_cast %401 : vector<1x8x8xf32> to vector<8x8xf32>
    %403 = vector.broadcast %400 : f32 to vector<8x8xf32>
    %404 = arith.mulf %403, %402 : vector<8x8xf32>
    %405 = arith.addf %399, %404 : vector<8x8xf32>
    %c62 = arith.constant 62 : index
    %406 = memref.load %arg3[%c62] : memref<288xf32, #tpu.memory_space<smem>>
    %c2_218 = arith.constant 2 : index
    %c2_219 = arith.constant 2 : index
    %c2_220 = arith.constant 2 : index
    %407 = vector.load %arg5[%c2_218, %c2_219, %c2_220] : memref<4x10x10xf32, #tpu.memory_space<vmem>>, vector<1x8x8xf32>
    %408 = vector.shape_cast %407 : vector<1x8x8xf32> to vector<8x8xf32>
    %409 = vector.broadcast %406 : f32 to vector<8x8xf32>
    %410 = arith.mulf %409, %408 : vector<8x8xf32>
    %411 = arith.addf %405, %410 : vector<8x8xf32>
    %c63 = arith.constant 63 : index
    %412 = memref.load %arg3[%c63] : memref<288xf32, #tpu.memory_space<smem>>
    %c3_221 = arith.constant 3 : index
    %c0_222 = arith.constant 0 : index
    %c0_223 = arith.constant 0 : index
    %413 = vector.load %arg5[%c3_221, %c0_222, %c0_223] : memref<4x10x10xf32, #tpu.memory_space<vmem>>, vector<1x8x8xf32>
    %414 = vector.shape_cast %413 : vector<1x8x8xf32> to vector<8x8xf32>
    %415 = vector.broadcast %412 : f32 to vector<8x8xf32>
    %416 = arith.mulf %415, %414 : vector<8x8xf32>
    %417 = arith.addf %411, %416 : vector<8x8xf32>
    %c64 = arith.constant 64 : index
    %418 = memref.load %arg3[%c64] : memref<288xf32, #tpu.memory_space<smem>>
    %c3_224 = arith.constant 3 : index
    %c0_225 = arith.constant 0 : index
    %c1_226 = arith.constant 1 : index
    %419 = vector.load %arg5[%c3_224, %c0_225, %c1_226] : memref<4x10x10xf32, #tpu.memory_space<vmem>>, vector<1x8x8xf32>
    %420 = vector.shape_cast %419 : vector<1x8x8xf32> to vector<8x8xf32>
    %421 = vector.broadcast %418 : f32 to vector<8x8xf32>
    %422 = arith.mulf %421, %420 : vector<8x8xf32>
    %423 = arith.addf %417, %422 : vector<8x8xf32>
    %c65 = arith.constant 65 : index
    %424 = memref.load %arg3[%c65] : memref<288xf32, #tpu.memory_space<smem>>
    %c3_227 = arith.constant 3 : index
    %c0_228 = arith.constant 0 : index
    %c2_229 = arith.constant 2 : index
    %425 = vector.load %arg5[%c3_227, %c0_228, %c2_229] : memref<4x10x10xf32, #tpu.memory_space<vmem>>, vector<1x8x8xf32>
    %426 = vector.shape_cast %425 : vector<1x8x8xf32> to vector<8x8xf32>
    %427 = vector.broadcast %424 : f32 to vector<8x8xf32>
    %428 = arith.mulf %427, %426 : vector<8x8xf32>
    %429 = arith.addf %423, %428 : vector<8x8xf32>
    %c66 = arith.constant 66 : index
    %430 = memref.load %arg3[%c66] : memref<288xf32, #tpu.memory_space<smem>>
    %c3_230 = arith.constant 3 : index
    %c1_231 = arith.constant 1 : index
    %c0_232 = arith.constant 0 : index
    %431 = vector.load %arg5[%c3_230, %c1_231, %c0_232] : memref<4x10x10xf32, #tpu.memory_space<vmem>>, vector<1x8x8xf32>
    %432 = vector.shape_cast %431 : vector<1x8x8xf32> to vector<8x8xf32>
    %433 = vector.broadcast %430 : f32 to vector<8x8xf32>
    %434 = arith.mulf %433, %432 : vector<8x8xf32>
    %435 = arith.addf %429, %434 : vector<8x8xf32>
    %c67 = arith.constant 67 : index
    %436 = memref.load %arg3[%c67] : memref<288xf32, #tpu.memory_space<smem>>
    %c3_233 = arith.constant 3 : index
    %c1_234 = arith.constant 1 : index
    %c1_235 = arith.constant 1 : index
    %437 = vector.load %arg5[%c3_233, %c1_234, %c1_235] : memref<4x10x10xf32, #tpu.memory_space<vmem>>, vector<1x8x8xf32>
    %438 = vector.shape_cast %437 : vector<1x8x8xf32> to vector<8x8xf32>
    %439 = vector.broadcast %436 : f32 to vector<8x8xf32>
    %440 = arith.mulf %439, %438 : vector<8x8xf32>
    %441 = arith.addf %435, %440 : vector<8x8xf32>
    %c68 = arith.constant 68 : index
    %442 = memref.load %arg3[%c68] : memref<288xf32, #tpu.memory_space<smem>>
    %c3_236 = arith.constant 3 : index
    %c1_237 = arith.constant 1 : index
    %c2_238 = arith.constant 2 : index
    %443 = vector.load %arg5[%c3_236, %c1_237, %c2_238] : memref<4x10x10xf32, #tpu.memory_space<vmem>>, vector<1x8x8xf32>
    %444 = vector.shape_cast %443 : vector<1x8x8xf32> to vector<8x8xf32>
    %445 = vector.broadcast %442 : f32 to vector<8x8xf32>
    %446 = arith.mulf %445, %444 : vector<8x8xf32>
    %447 = arith.addf %441, %446 : vector<8x8xf32>
    %c69 = arith.constant 69 : index
    %448 = memref.load %arg3[%c69] : memref<288xf32, #tpu.memory_space<smem>>
    %c3_239 = arith.constant 3 : index
    %c2_240 = arith.constant 2 : index
    %c0_241 = arith.constant 0 : index
    %449 = vector.load %arg5[%c3_239, %c2_240, %c0_241] : memref<4x10x10xf32, #tpu.memory_space<vmem>>, vector<1x8x8xf32>
    %450 = vector.shape_cast %449 : vector<1x8x8xf32> to vector<8x8xf32>
    %451 = vector.broadcast %448 : f32 to vector<8x8xf32>
    %452 = arith.mulf %451, %450 : vector<8x8xf32>
    %453 = arith.addf %447, %452 : vector<8x8xf32>
    %c70 = arith.constant 70 : index
    %454 = memref.load %arg3[%c70] : memref<288xf32, #tpu.memory_space<smem>>
    %c3_242 = arith.constant 3 : index
    %c2_243 = arith.constant 2 : index
    %c1_244 = arith.constant 1 : index
    %455 = vector.load %arg5[%c3_242, %c2_243, %c1_244] : memref<4x10x10xf32, #tpu.memory_space<vmem>>, vector<1x8x8xf32>
    %456 = vector.shape_cast %455 : vector<1x8x8xf32> to vector<8x8xf32>
    %457 = vector.broadcast %454 : f32 to vector<8x8xf32>
    %458 = arith.mulf %457, %456 : vector<8x8xf32>
    %459 = arith.addf %453, %458 : vector<8x8xf32>
    %c71 = arith.constant 71 : index
    %460 = memref.load %arg3[%c71] : memref<288xf32, #tpu.memory_space<smem>>
    %c3_245 = arith.constant 3 : index
    %c2_246 = arith.constant 2 : index
    %c2_247 = arith.constant 2 : index
    %461 = vector.load %arg5[%c3_245, %c2_246, %c2_247] : memref<4x10x10xf32, #tpu.memory_space<vmem>>, vector<1x8x8xf32>
    %462 = vector.shape_cast %461 : vector<1x8x8xf32> to vector<8x8xf32>
    %463 = vector.broadcast %460 : f32 to vector<8x8xf32>
    %464 = arith.mulf %463, %462 : vector<8x8xf32>
    %465 = arith.addf %459, %464 : vector<8x8xf32>
    %c0_248 = arith.constant 0 : index
    %c1_249 = arith.constant 1 : index
    %c0_250 = arith.constant 0 : index
    %c0_251 = arith.constant 0 : index
    %466 = vector.load %arg4[%c0_248, %c1_249, %c0_250, %c0_251] : memref<1x8x8x8xf32, #tpu.memory_space<vmem>>, vector<1x1x8x8xf32>
    %467 = vector.shape_cast %466 : vector<1x1x8x8xf32> to vector<8x8xf32>
    %468 = vector.shape_cast %465 : vector<8x8xf32> to vector<1x1x8x8xf32>
    tpu.vector_store %arg4[%c0_248, %c1_249, %c0_250, %c0_251], %468 {strides = array<i32>} : memref<1x8x8x8xf32, #tpu.memory_space<vmem>>, vector<1x1x8x8xf32>,
    %469 = vector.shape_cast %465 : vector<8x8xf32> to vector<1x8x8xf32>
    %cst_252 = arith.constant dense<0.000000e+00> : vector<1xf32>
    %470 = vector.multi_reduction <add>, %469, %cst_252 [1, 2] : vector<1x8x8xf32> to vector<1xf32>
    %471 = vector.shape_cast %470 : vector<1xf32> to vector<1x1x1xf32>
    %472 = vector.extract %471[0, 0, 0] : f32 from vector<1x1x1xf32>
    %473 = arith.addf %242, %472 : f32
    %474 = arith.mulf %465, %465 : vector<8x8xf32>
    %475 = vector.shape_cast %474 : vector<8x8xf32> to vector<1x8x8xf32>
    %cst_253 = arith.constant dense<0.000000e+00> : vector<1xf32>
    %476 = vector.multi_reduction <add>, %475, %cst_253 [1, 2] : vector<1x8x8xf32> to vector<1xf32>
    %477 = vector.shape_cast %476 : vector<1xf32> to vector<1x1x1xf32>
    %478 = vector.extract %477[0, 0, 0] : f32 from vector<1x1x1xf32>
    %479 = arith.addf %248, %478 : f32
    %cst_254 = arith.constant 0.000000e+00 : f32
    %480 = vector.broadcast %cst_254 : f32 to vector<8x8xf32>
    %c72 = arith.constant 72 : index
    %481 = memref.load %arg3[%c72] : memref<288xf32, #tpu.memory_space<smem>>
    %c0_255 = arith.constant 0 : index
    %c0_256 = arith.constant 0 : index
    %c0_257 = arith.constant 0 : index
    %482 = vector.load %arg5[%c0_255, %c0_256, %c0_257] : memref<4x10x10xf32, #tpu.memory_space<vmem>>, vector<1x8x8xf32>
    %483 = vector.shape_cast %482 : vector<1x8x8xf32> to vector<8x8xf32>
    %484 = vector.broadcast %481 : f32 to vector<8x8xf32>
    %485 = arith.mulf %484, %483 : vector<8x8xf32>
    %486 = arith.addf %480, %485 : vector<8x8xf32>
    %c73 = arith.constant 73 : index
    %487 = memref.load %arg3[%c73] : memref<288xf32, #tpu.memory_space<smem>>
    %c0_258 = arith.constant 0 : index
    %c0_259 = arith.constant 0 : index
    %c1_260 = arith.constant 1 : index
    %488 = vector.load %arg5[%c0_258, %c0_259, %c1_260] : memref<4x10x10xf32, #tpu.memory_space<vmem>>, vector<1x8x8xf32>
    %489 = vector.shape_cast %488 : vector<1x8x8xf32> to vector<8x8xf32>
    %490 = vector.broadcast %487 : f32 to vector<8x8xf32>
    %491 = arith.mulf %490, %489 : vector<8x8xf32>
    %492 = arith.addf %486, %491 : vector<8x8xf32>
    %c74 = arith.constant 74 : index
    %493 = memref.load %arg3[%c74] : memref<288xf32, #tpu.memory_space<smem>>
    %c0_261 = arith.constant 0 : index
    %c0_262 = arith.constant 0 : index
    %c2_263 = arith.constant 2 : index
    %494 = vector.load %arg5[%c0_261, %c0_262, %c2_263] : memref<4x10x10xf32, #tpu.memory_space<vmem>>, vector<1x8x8xf32>
    %495 = vector.shape_cast %494 : vector<1x8x8xf32> to vector<8x8xf32>
    %496 = vector.broadcast %493 : f32 to vector<8x8xf32>
    %497 = arith.mulf %496, %495 : vector<8x8xf32>
    %498 = arith.addf %492, %497 : vector<8x8xf32>
    %c75 = arith.constant 75 : index
    %499 = memref.load %arg3[%c75] : memref<288xf32, #tpu.memory_space<smem>>
    %c0_264 = arith.constant 0 : index
    %c1_265 = arith.constant 1 : index
    %c0_266 = arith.constant 0 : index
    %500 = vector.load %arg5[%c0_264, %c1_265, %c0_266] : memref<4x10x10xf32, #tpu.memory_space<vmem>>, vector<1x8x8xf32>
    %501 = vector.shape_cast %500 : vector<1x8x8xf32> to vector<8x8xf32>
    %502 = vector.broadcast %499 : f32 to vector<8x8xf32>
    %503 = arith.mulf %502, %501 : vector<8x8xf32>
    %504 = arith.addf %498, %503 : vector<8x8xf32>
    %c76 = arith.constant 76 : index
    %505 = memref.load %arg3[%c76] : memref<288xf32, #tpu.memory_space<smem>>
    %c0_267 = arith.constant 0 : index
    %c1_268 = arith.constant 1 : index
    %c1_269 = arith.constant 1 : index
    %506 = vector.load %arg5[%c0_267, %c1_268, %c1_269] : memref<4x10x10xf32, #tpu.memory_space<vmem>>, vector<1x8x8xf32>
    %507 = vector.shape_cast %506 : vector<1x8x8xf32> to vector<8x8xf32>
    %508 = vector.broadcast %505 : f32 to vector<8x8xf32>
    %509 = arith.mulf %508, %507 : vector<8x8xf32>
    %510 = arith.addf %504, %509 : vector<8x8xf32>
    %c77 = arith.constant 77 : index
    %511 = memref.load %arg3[%c77] : memref<288xf32, #tpu.memory_space<smem>>
    %c0_270 = arith.constant 0 : index
    %c1_271 = arith.constant 1 : index
    %c2_272 = arith.constant 2 : index
    %512 = vector.load %arg5[%c0_270, %c1_271, %c2_272] : memref<4x10x10xf32, #tpu.memory_space<vmem>>, vector<1x8x8xf32>
    %513 = vector.shape_cast %512 : vector<1x8x8xf32> to vector<8x8xf32>
    %514 = vector.broadcast %511 : f32 to vector<8x8xf32>
    %515 = arith.mulf %514, %513 : vector<8x8xf32>
    %516 = arith.addf %510, %515 : vector<8x8xf32>
    %c78 = arith.constant 78 : index
    %517 = memref.load %arg3[%c78] : memref<288xf32, #tpu.memory_space<smem>>
    %c0_273 = arith.constant 0 : index
    %c2_274 = arith.constant 2 : index
    %c0_275 = arith.constant 0 : index
    %518 = vector.load %arg5[%c0_273, %c2_274, %c0_275] : memref<4x10x10xf32, #tpu.memory_space<vmem>>, vector<1x8x8xf32>
    %519 = vector.shape_cast %518 : vector<1x8x8xf32> to vector<8x8xf32>
    %520 = vector.broadcast %517 : f32 to vector<8x8xf32>
    %521 = arith.mulf %520, %519 : vector<8x8xf32>
    %522 = arith.addf %516, %521 : vector<8x8xf32>
    %c79 = arith.constant 79 : index
    %523 = memref.load %arg3[%c79] : memref<288xf32, #tpu.memory_space<smem>>
    %c0_276 = arith.constant 0 : index
    %c2_277 = arith.constant 2 : index
    %c1_278 = arith.constant 1 : index
    %524 = vector.load %arg5[%c0_276, %c2_277, %c1_278] : memref<4x10x10xf32, #tpu.memory_space<vmem>>, vector<1x8x8xf32>
    %525 = vector.shape_cast %524 : vector<1x8x8xf32> to vector<8x8xf32>
    %526 = vector.broadcast %523 : f32 to vector<8x8xf32>
    %527 = arith.mulf %526, %525 : vector<8x8xf32>
    %528 = arith.addf %522, %527 : vector<8x8xf32>
    %c80 = arith.constant 80 : index
    %529 = memref.load %arg3[%c80] : memref<288xf32, #tpu.memory_space<smem>>
    %c0_279 = arith.constant 0 : index
    %c2_280 = arith.constant 2 : index
    %c2_281 = arith.constant 2 : index
    %530 = vector.load %arg5[%c0_279, %c2_280, %c2_281] : memref<4x10x10xf32, #tpu.memory_space<vmem>>, vector<1x8x8xf32>
    %531 = vector.shape_cast %530 : vector<1x8x8xf32> to vector<8x8xf32>
    %532 = vector.broadcast %529 : f32 to vector<8x8xf32>
    %533 = arith.mulf %532, %531 : vector<8x8xf32>
    %534 = arith.addf %528, %533 : vector<8x8xf32>
    %c81 = arith.constant 81 : index
    %535 = memref.load %arg3[%c81] : memref<288xf32, #tpu.memory_space<smem>>
    %c1_282 = arith.constant 1 : index
    %c0_283 = arith.constant 0 : index
    %c0_284 = arith.constant 0 : index
    %536 = vector.load %arg5[%c1_282, %c0_283, %c0_284] : memref<4x10x10xf32, #tpu.memory_space<vmem>>, vector<1x8x8xf32>
    %537 = vector.shape_cast %536 : vector<1x8x8xf32> to vector<8x8xf32>
    %538 = vector.broadcast %535 : f32 to vector<8x8xf32>
    %539 = arith.mulf %538, %537 : vector<8x8xf32>
    %540 = arith.addf %534, %539 : vector<8x8xf32>
    %c82 = arith.constant 82 : index
    %541 = memref.load %arg3[%c82] : memref<288xf32, #tpu.memory_space<smem>>
    %c1_285 = arith.constant 1 : index
    %c0_286 = arith.constant 0 : index
    %c1_287 = arith.constant 1 : index
    %542 = vector.load %arg5[%c1_285, %c0_286, %c1_287] : memref<4x10x10xf32, #tpu.memory_space<vmem>>, vector<1x8x8xf32>
    %543 = vector.shape_cast %542 : vector<1x8x8xf32> to vector<8x8xf32>
    %544 = vector.broadcast %541 : f32 to vector<8x8xf32>
    %545 = arith.mulf %544, %543 : vector<8x8xf32>
    %546 = arith.addf %540, %545 : vector<8x8xf32>
    %c83 = arith.constant 83 : index
    %547 = memref.load %arg3[%c83] : memref<288xf32, #tpu.memory_space<smem>>
    %c1_288 = arith.constant 1 : index
    %c0_289 = arith.constant 0 : index
    %c2_290 = arith.constant 2 : index
    %548 = vector.load %arg5[%c1_288, %c0_289, %c2_290] : memref<4x10x10xf32, #tpu.memory_space<vmem>>, vector<1x8x8xf32>
    %549 = vector.shape_cast %548 : vector<1x8x8xf32> to vector<8x8xf32>
    %550 = vector.broadcast %547 : f32 to vector<8x8xf32>
    %551 = arith.mulf %550, %549 : vector<8x8xf32>
    %552 = arith.addf %546, %551 : vector<8x8xf32>
    %c84 = arith.constant 84 : index
    %553 = memref.load %arg3[%c84] : memref<288xf32, #tpu.memory_space<smem>>
    %c1_291 = arith.constant 1 : index
    %c1_292 = arith.constant 1 : index
    %c0_293 = arith.constant 0 : index
    %554 = vector.load %arg5[%c1_291, %c1_292, %c0_293] : memref<4x10x10xf32, #tpu.memory_space<vmem>>, vector<1x8x8xf32>
    %555 = vector.shape_cast %554 : vector<1x8x8xf32> to vector<8x8xf32>
    %556 = vector.broadcast %553 : f32 to vector<8x8xf32>
    %557 = arith.mulf %556, %555 : vector<8x8xf32>
    %558 = arith.addf %552, %557 : vector<8x8xf32>
    %c85 = arith.constant 85 : index
    %559 = memref.load %arg3[%c85] : memref<288xf32, #tpu.memory_space<smem>>
    %c1_294 = arith.constant 1 : index
    %c1_295 = arith.constant 1 : index
    %c1_296 = arith.constant 1 : index
    %560 = vector.load %arg5[%c1_294, %c1_295, %c1_296] : memref<4x10x10xf32, #tpu.memory_space<vmem>>, vector<1x8x8xf32>
    %561 = vector.shape_cast %560 : vector<1x8x8xf32> to vector<8x8xf32>
    %562 = vector.broadcast %559 : f32 to vector<8x8xf32>
    %563 = arith.mulf %562, %561 : vector<8x8xf32>
    %564 = arith.addf %558, %563 : vector<8x8xf32>
    %c86 = arith.constant 86 : index
    %565 = memref.load %arg3[%c86] : memref<288xf32, #tpu.memory_space<smem>>
    %c1_297 = arith.constant 1 : index
    %c1_298 = arith.constant 1 : index
    %c2_299 = arith.constant 2 : index
    %566 = vector.load %arg5[%c1_297, %c1_298, %c2_299] : memref<4x10x10xf32, #tpu.memory_space<vmem>>, vector<1x8x8xf32>
    %567 = vector.shape_cast %566 : vector<1x8x8xf32> to vector<8x8xf32>
    %568 = vector.broadcast %565 : f32 to vector<8x8xf32>
    %569 = arith.mulf %568, %567 : vector<8x8xf32>
    %570 = arith.addf %564, %569 : vector<8x8xf32>
    %c87 = arith.constant 87 : index
    %571 = memref.load %arg3[%c87] : memref<288xf32, #tpu.memory_space<smem>>
    %c1_300 = arith.constant 1 : index
    %c2_301 = arith.constant 2 : index
    %c0_302 = arith.constant 0 : index
    %572 = vector.load %arg5[%c1_300, %c2_301, %c0_302] : memref<4x10x10xf32, #tpu.memory_space<vmem>>, vector<1x8x8xf32>
    %573 = vector.shape_cast %572 : vector<1x8x8xf32> to vector<8x8xf32>
    %574 = vector.broadcast %571 : f32 to vector<8x8xf32>
    %575 = arith.mulf %574, %573 : vector<8x8xf32>
    %576 = arith.addf %570, %575 : vector<8x8xf32>
    %c88 = arith.constant 88 : index
    %577 = memref.load %arg3[%c88] : memref<288xf32, #tpu.memory_space<smem>>
    %c1_303 = arith.constant 1 : index
    %c2_304 = arith.constant 2 : index
    %c1_305 = arith.constant 1 : index
    %578 = vector.load %arg5[%c1_303, %c2_304, %c1_305] : memref<4x10x10xf32, #tpu.memory_space<vmem>>, vector<1x8x8xf32>
    %579 = vector.shape_cast %578 : vector<1x8x8xf32> to vector<8x8xf32>
    %580 = vector.broadcast %577 : f32 to vector<8x8xf32>
    %581 = arith.mulf %580, %579 : vector<8x8xf32>
    %582 = arith.addf %576, %581 : vector<8x8xf32>
    %c89 = arith.constant 89 : index
    %583 = memref.load %arg3[%c89] : memref<288xf32, #tpu.memory_space<smem>>
    %c1_306 = arith.constant 1 : index
    %c2_307 = arith.constant 2 : index
    %c2_308 = arith.constant 2 : index
    %584 = vector.load %arg5[%c1_306, %c2_307, %c2_308] : memref<4x10x10xf32, #tpu.memory_space<vmem>>, vector<1x8x8xf32>
    %585 = vector.shape_cast %584 : vector<1x8x8xf32> to vector<8x8xf32>
    %586 = vector.broadcast %583 : f32 to vector<8x8xf32>
    %587 = arith.mulf %586, %585 : vector<8x8xf32>
    %588 = arith.addf %582, %587 : vector<8x8xf32>
    %c90 = arith.constant 90 : index
    %589 = memref.load %arg3[%c90] : memref<288xf32, #tpu.memory_space<smem>>
    %c2_309 = arith.constant 2 : index
    %c0_310 = arith.constant 0 : index
    %c0_311 = arith.constant 0 : index
    %590 = vector.load %arg5[%c2_309, %c0_310, %c0_311] : memref<4x10x10xf32, #tpu.memory_space<vmem>>, vector<1x8x8xf32>
    %591 = vector.shape_cast %590 : vector<1x8x8xf32> to vector<8x8xf32>
    %592 = vector.broadcast %589 : f32 to vector<8x8xf32>
    %593 = arith.mulf %592, %591 : vector<8x8xf32>
    %594 = arith.addf %588, %593 : vector<8x8xf32>
    %c91 = arith.constant 91 : index
    %595 = memref.load %arg3[%c91] : memref<288xf32, #tpu.memory_space<smem>>
    %c2_312 = arith.constant 2 : index
    %c0_313 = arith.constant 0 : index
    %c1_314 = arith.constant 1 : index
    %596 = vector.load %arg5[%c2_312, %c0_313, %c1_314] : memref<4x10x10xf32, #tpu.memory_space<vmem>>, vector<1x8x8xf32>
    %597 = vector.shape_cast %596 : vector<1x8x8xf32> to vector<8x8xf32>
    %598 = vector.broadcast %595 : f32 to vector<8x8xf32>
    %599 = arith.mulf %598, %597 : vector<8x8xf32>
    %600 = arith.addf %594, %599 : vector<8x8xf32>
    %c92 = arith.constant 92 : index
    %601 = memref.load %arg3[%c92] : memref<288xf32, #tpu.memory_space<smem>>
    %c2_315 = arith.constant 2 : index
    %c0_316 = arith.constant 0 : index
    %c2_317 = arith.constant 2 : index
    %602 = vector.load %arg5[%c2_315, %c0_316, %c2_317] : memref<4x10x10xf32, #tpu.memory_space<vmem>>, vector<1x8x8xf32>
    %603 = vector.shape_cast %602 : vector<1x8x8xf32> to vector<8x8xf32>
    %604 = vector.broadcast %601 : f32 to vector<8x8xf32>
    %605 = arith.mulf %604, %603 : vector<8x8xf32>
    %606 = arith.addf %600, %605 : vector<8x8xf32>
    %c93 = arith.constant 93 : index
    %607 = memref.load %arg3[%c93] : memref<288xf32, #tpu.memory_space<smem>>
    %c2_318 = arith.constant 2 : index
    %c1_319 = arith.constant 1 : index
    %c0_320 = arith.constant 0 : index
    %608 = vector.load %arg5[%c2_318, %c1_319, %c0_320] : memref<4x10x10xf32, #tpu.memory_space<vmem>>, vector<1x8x8xf32>
    %609 = vector.shape_cast %608 : vector<1x8x8xf32> to vector<8x8xf32>
    %610 = vector.broadcast %607 : f32 to vector<8x8xf32>
    %611 = arith.mulf %610, %609 : vector<8x8xf32>
    %612 = arith.addf %606, %611 : vector<8x8xf32>
    %c94 = arith.constant 94 : index
    %613 = memref.load %arg3[%c94] : memref<288xf32, #tpu.memory_space<smem>>
    %c2_321 = arith.constant 2 : index
    %c1_322 = arith.constant 1 : index
    %c1_323 = arith.constant 1 : index
    %614 = vector.load %arg5[%c2_321, %c1_322, %c1_323] : memref<4x10x10xf32, #tpu.memory_space<vmem>>, vector<1x8x8xf32>
    %615 = vector.shape_cast %614 : vector<1x8x8xf32> to vector<8x8xf32>
    %616 = vector.broadcast %613 : f32 to vector<8x8xf32>
    %617 = arith.mulf %616, %615 : vector<8x8xf32>
    %618 = arith.addf %612, %617 : vector<8x8xf32>
    %c95 = arith.constant 95 : index
    %619 = memref.load %arg3[%c95] : memref<288xf32, #tpu.memory_space<smem>>
    %c2_324 = arith.constant 2 : index
    %c1_325 = arith.constant 1 : index
    %c2_326 = arith.constant 2 : index
    %620 = vector.load %arg5[%c2_324, %c1_325, %c2_326] : memref<4x10x10xf32, #tpu.memory_space<vmem>>, vector<1x8x8xf32>
    %621 = vector.shape_cast %620 : vector<1x8x8xf32> to vector<8x8xf32>
    %622 = vector.broadcast %619 : f32 to vector<8x8xf32>
    %623 = arith.mulf %622, %621 : vector<8x8xf32>
    %624 = arith.addf %618, %623 : vector<8x8xf32>
    %c96 = arith.constant 96 : index
    %625 = memref.load %arg3[%c96] : memref<288xf32, #tpu.memory_space<smem>>
    %c2_327 = arith.constant 2 : index
    %c2_328 = arith.constant 2 : index
    %c0_329 = arith.constant 0 : index
    %626 = vector.load %arg5[%c2_327, %c2_328, %c0_329] : memref<4x10x10xf32, #tpu.memory_space<vmem>>, vector<1x8x8xf32>
    %627 = vector.shape_cast %626 : vector<1x8x8xf32> to vector<8x8xf32>
    %628 = vector.broadcast %625 : f32 to vector<8x8xf32>
    %629 = arith.mulf %628, %627 : vector<8x8xf32>
    %630 = arith.addf %624, %629 : vector<8x8xf32>
    %c97 = arith.constant 97 : index
    %631 = memref.load %arg3[%c97] : memref<288xf32, #tpu.memory_space<smem>>
    %c2_330 = arith.constant 2 : index
    %c2_331 = arith.constant 2 : index
    %c1_332 = arith.constant 1 : index
    %632 = vector.load %arg5[%c2_330, %c2_331, %c1_332] : memref<4x10x10xf32, #tpu.memory_space<vmem>>, vector<1x8x8xf32>
    %633 = vector.shape_cast %632 : vector<1x8x8xf32> to vector<8x8xf32>
    %634 = vector.broadcast %631 : f32 to vector<8x8xf32>
    %635 = arith.mulf %634, %633 : vector<8x8xf32>
    %636 = arith.addf %630, %635 : vector<8x8xf32>
    %c98 = arith.constant 98 : index
    %637 = memref.load %arg3[%c98] : memref<288xf32, #tpu.memory_space<smem>>
    %c2_333 = arith.constant 2 : index
    %c2_334 = arith.constant 2 : index
    %c2_335 = arith.constant 2 : index
    %638 = vector.load %arg5[%c2_333, %c2_334, %c2_335] : memref<4x10x10xf32, #tpu.memory_space<vmem>>, vector<1x8x8xf32>
    %639 = vector.shape_cast %638 : vector<1x8x8xf32> to vector<8x8xf32>
    %640 = vector.broadcast %637 : f32 to vector<8x8xf32>
    %641 = arith.mulf %640, %639 : vector<8x8xf32>
    %642 = arith.addf %636, %641 : vector<8x8xf32>
    %c99 = arith.constant 99 : index
    %643 = memref.load %arg3[%c99] : memref<288xf32, #tpu.memory_space<smem>>
    %c3_336 = arith.constant 3 : index
    %c0_337 = arith.constant 0 : index
    %c0_338 = arith.constant 0 : index
    %644 = vector.load %arg5[%c3_336, %c0_337, %c0_338] : memref<4x10x10xf32, #tpu.memory_space<vmem>>, vector<1x8x8xf32>
    %645 = vector.shape_cast %644 : vector<1x8x8xf32> to vector<8x8xf32>
    %646 = vector.broadcast %643 : f32 to vector<8x8xf32>
    %647 = arith.mulf %646, %645 : vector<8x8xf32>
    %648 = arith.addf %642, %647 : vector<8x8xf32>
    %c100 = arith.constant 100 : index
    %649 = memref.load %arg3[%c100] : memref<288xf32, #tpu.memory_space<smem>>
    %c3_339 = arith.constant 3 : index
    %c0_340 = arith.constant 0 : index
    %c1_341 = arith.constant 1 : index
    %650 = vector.load %arg5[%c3_339, %c0_340, %c1_341] : memref<4x10x10xf32, #tpu.memory_space<vmem>>, vector<1x8x8xf32>
    %651 = vector.shape_cast %650 : vector<1x8x8xf32> to vector<8x8xf32>
    %652 = vector.broadcast %649 : f32 to vector<8x8xf32>
    %653 = arith.mulf %652, %651 : vector<8x8xf32>
    %654 = arith.addf %648, %653 : vector<8x8xf32>
    %c101 = arith.constant 101 : index
    %655 = memref.load %arg3[%c101] : memref<288xf32, #tpu.memory_space<smem>>
    %c3_342 = arith.constant 3 : index
    %c0_343 = arith.constant 0 : index
    %c2_344 = arith.constant 2 : index
    %656 = vector.load %arg5[%c3_342, %c0_343, %c2_344] : memref<4x10x10xf32, #tpu.memory_space<vmem>>, vector<1x8x8xf32>
    %657 = vector.shape_cast %656 : vector<1x8x8xf32> to vector<8x8xf32>
    %658 = vector.broadcast %655 : f32 to vector<8x8xf32>
    %659 = arith.mulf %658, %657 : vector<8x8xf32>
    %660 = arith.addf %654, %659 : vector<8x8xf32>
    %c102 = arith.constant 102 : index
    %661 = memref.load %arg3[%c102] : memref<288xf32, #tpu.memory_space<smem>>
    %c3_345 = arith.constant 3 : index
    %c1_346 = arith.constant 1 : index
    %c0_347 = arith.constant 0 : index
    %662 = vector.load %arg5[%c3_345, %c1_346, %c0_347] : memref<4x10x10xf32, #tpu.memory_space<vmem>>, vector<1x8x8xf32>
    %663 = vector.shape_cast %662 : vector<1x8x8xf32> to vector<8x8xf32>
    %664 = vector.broadcast %661 : f32 to vector<8x8xf32>
    %665 = arith.mulf %664, %663 : vector<8x8xf32>
    %666 = arith.addf %660, %665 : vector<8x8xf32>
    %c103 = arith.constant 103 : index
    %667 = memref.load %arg3[%c103] : memref<288xf32, #tpu.memory_space<smem>>
    %c3_348 = arith.constant 3 : index
    %c1_349 = arith.constant 1 : index
    %c1_350 = arith.constant 1 : index
    %668 = vector.load %arg5[%c3_348, %c1_349, %c1_350] : memref<4x10x10xf32, #tpu.memory_space<vmem>>, vector<1x8x8xf32>
    %669 = vector.shape_cast %668 : vector<1x8x8xf32> to vector<8x8xf32>
    %670 = vector.broadcast %667 : f32 to vector<8x8xf32>
    %671 = arith.mulf %670, %669 : vector<8x8xf32>
    %672 = arith.addf %666, %671 : vector<8x8xf32>
    %c104 = arith.constant 104 : index
    %673 = memref.load %arg3[%c104] : memref<288xf32, #tpu.memory_space<smem>>
    %c3_351 = arith.constant 3 : index
    %c1_352 = arith.constant 1 : index
    %c2_353 = arith.constant 2 : index
    %674 = vector.load %arg5[%c3_351, %c1_352, %c2_353] : memref<4x10x10xf32, #tpu.memory_space<vmem>>, vector<1x8x8xf32>
    %675 = vector.shape_cast %674 : vector<1x8x8xf32> to vector<8x8xf32>
    %676 = vector.broadcast %673 : f32 to vector<8x8xf32>
    %677 = arith.mulf %676, %675 : vector<8x8xf32>
    %678 = arith.addf %672, %677 : vector<8x8xf32>
    %c105 = arith.constant 105 : index
    %679 = memref.load %arg3[%c105] : memref<288xf32, #tpu.memory_space<smem>>
    %c3_354 = arith.constant 3 : index
    %c2_355 = arith.constant 2 : index
    %c0_356 = arith.constant 0 : index
    %680 = vector.load %arg5[%c3_354, %c2_355, %c0_356] : memref<4x10x10xf32, #tpu.memory_space<vmem>>, vector<1x8x8xf32>
    %681 = vector.shape_cast %680 : vector<1x8x8xf32> to vector<8x8xf32>
    %682 = vector.broadcast %679 : f32 to vector<8x8xf32>
    %683 = arith.mulf %682, %681 : vector<8x8xf32>
    %684 = arith.addf %678, %683 : vector<8x8xf32>
    %c106 = arith.constant 106 : index
    %685 = memref.load %arg3[%c106] : memref<288xf32, #tpu.memory_space<smem>>
    %c3_357 = arith.constant 3 : index
    %c2_358 = arith.constant 2 : index
    %c1_359 = arith.constant 1 : index
    %686 = vector.load %arg5[%c3_357, %c2_358, %c1_359] : memref<4x10x10xf32, #tpu.memory_space<vmem>>, vector<1x8x8xf32>
    %687 = vector.shape_cast %686 : vector<1x8x8xf32> to vector<8x8xf32>
    %688 = vector.broadcast %685 : f32 to vector<8x8xf32>
    %689 = arith.mulf %688, %687 : vector<8x8xf32>
    %690 = arith.addf %684, %689 : vector<8x8xf32>
    %c107 = arith.constant 107 : index
    %691 = memref.load %arg3[%c107] : memref<288xf32, #tpu.memory_space<smem>>
    %c3_360 = arith.constant 3 : index
    %c2_361 = arith.constant 2 : index
    %c2_362 = arith.constant 2 : index
    %692 = vector.load %arg5[%c3_360, %c2_361, %c2_362] : memref<4x10x10xf32, #tpu.memory_space<vmem>>, vector<1x8x8xf32>
    %693 = vector.shape_cast %692 : vector<1x8x8xf32> to vector<8x8xf32>
    %694 = vector.broadcast %691 : f32 to vector<8x8xf32>
    %695 = arith.mulf %694, %693 : vector<8x8xf32>
    %696 = arith.addf %690, %695 : vector<8x8xf32>
    %c0_363 = arith.constant 0 : index
    %c2_364 = arith.constant 2 : index
    %c0_365 = arith.constant 0 : index
    %c0_366 = arith.constant 0 : index
    %697 = vector.load %arg4[%c0_363, %c2_364, %c0_365, %c0_366] : memref<1x8x8x8xf32, #tpu.memory_space<vmem>>, vector<1x1x8x8xf32>
    %698 = vector.shape_cast %697 : vector<1x1x8x8xf32> to vector<8x8xf32>
    %699 = vector.shape_cast %696 : vector<8x8xf32> to vector<1x1x8x8xf32>
    tpu.vector_store %arg4[%c0_363, %c2_364, %c0_365, %c0_366], %699 {strides = array<i32>} : memref<1x8x8x8xf32, #tpu.memory_space<vmem>>, vector<1x1x8x8xf32>,
    %700 = vector.shape_cast %696 : vector<8x8xf32> to vector<1x8x8xf32>
    %cst_367 = arith.constant dense<0.000000e+00> : vector<1xf32>
    %701 = vector.multi_reduction <add>, %700, %cst_367 [1, 2] : vector<1x8x8xf32> to vector<1xf32>
    %702 = vector.shape_cast %701 : vector<1xf32> to vector<1x1x1xf32>
    %703 = vector.extract %702[0, 0, 0] : f32 from vector<1x1x1xf32>
    %704 = arith.addf %473, %703 : f32
    %705 = arith.mulf %696, %696 : vector<8x8xf32>
    %706 = vector.shape_cast %705 : vector<8x8xf32> to vector<1x8x8xf32>
    %cst_368 = arith.constant dense<0.000000e+00> : vector<1xf32>
    %707 = vector.multi_reduction <add>, %706, %cst_368 [1, 2] : vector<1x8x8xf32> to vector<1xf32>
    %708 = vector.shape_cast %707 : vector<1xf32> to vector<1x1x1xf32>
    %709 = vector.extract %708[0, 0, 0] : f32 from vector<1x1x1xf32>
    %710 = arith.addf %479, %709 : f32
    %cst_369 = arith.constant 0.000000e+00 : f32
    %711 = vector.broadcast %cst_369 : f32 to vector<8x8xf32>
    %c108 = arith.constant 108 : index
    %712 = memref.load %arg3[%c108] : memref<288xf32, #tpu.memory_space<smem>>
    %c0_370 = arith.constant 0 : index
    %c0_371 = arith.constant 0 : index
    %c0_372 = arith.constant 0 : index
    %713 = vector.load %arg5[%c0_370, %c0_371, %c0_372] : memref<4x10x10xf32, #tpu.memory_space<vmem>>, vector<1x8x8xf32>
    %714 = vector.shape_cast %713 : vector<1x8x8xf32> to vector<8x8xf32>
    %715 = vector.broadcast %712 : f32 to vector<8x8xf32>
    %716 = arith.mulf %715, %714 : vector<8x8xf32>
    %717 = arith.addf %711, %716 : vector<8x8xf32>
    %c109 = arith.constant 109 : index
    %718 = memref.load %arg3[%c109] : memref<288xf32, #tpu.memory_space<smem>>
    %c0_373 = arith.constant 0 : index
    %c0_374 = arith.constant 0 : index
    %c1_375 = arith.constant 1 : index
    %719 = vector.load %arg5[%c0_373, %c0_374, %c1_375] : memref<4x10x10xf32, #tpu.memory_space<vmem>>, vector<1x8x8xf32>
    %720 = vector.shape_cast %719 : vector<1x8x8xf32> to vector<8x8xf32>
    %721 = vector.broadcast %718 : f32 to vector<8x8xf32>
    %722 = arith.mulf %721, %720 : vector<8x8xf32>
    %723 = arith.addf %717, %722 : vector<8x8xf32>
    %c110 = arith.constant 110 : index
    %724 = memref.load %arg3[%c110] : memref<288xf32, #tpu.memory_space<smem>>
    %c0_376 = arith.constant 0 : index
    %c0_377 = arith.constant 0 : index
    %c2_378 = arith.constant 2 : index
    %725 = vector.load %arg5[%c0_376, %c0_377, %c2_378] : memref<4x10x10xf32, #tpu.memory_space<vmem>>, vector<1x8x8xf32>
    %726 = vector.shape_cast %725 : vector<1x8x8xf32> to vector<8x8xf32>
    %727 = vector.broadcast %724 : f32 to vector<8x8xf32>
    %728 = arith.mulf %727, %726 : vector<8x8xf32>
    %729 = arith.addf %723, %728 : vector<8x8xf32>
    %c111 = arith.constant 111 : index
    %730 = memref.load %arg3[%c111] : memref<288xf32, #tpu.memory_space<smem>>
    %c0_379 = arith.constant 0 : index
    %c1_380 = arith.constant 1 : index
    %c0_381 = arith.constant 0 : index
    %731 = vector.load %arg5[%c0_379, %c1_380, %c0_381] : memref<4x10x10xf32, #tpu.memory_space<vmem>>, vector<1x8x8xf32>
    %732 = vector.shape_cast %731 : vector<1x8x8xf32> to vector<8x8xf32>
    %733 = vector.broadcast %730 : f32 to vector<8x8xf32>
    %734 = arith.mulf %733, %732 : vector<8x8xf32>
    %735 = arith.addf %729, %734 : vector<8x8xf32>
    %c112 = arith.constant 112 : index
    %736 = memref.load %arg3[%c112] : memref<288xf32, #tpu.memory_space<smem>>
    %c0_382 = arith.constant 0 : index
    %c1_383 = arith.constant 1 : index
    %c1_384 = arith.constant 1 : index
    %737 = vector.load %arg5[%c0_382, %c1_383, %c1_384] : memref<4x10x10xf32, #tpu.memory_space<vmem>>, vector<1x8x8xf32>
    %738 = vector.shape_cast %737 : vector<1x8x8xf32> to vector<8x8xf32>
    %739 = vector.broadcast %736 : f32 to vector<8x8xf32>
    %740 = arith.mulf %739, %738 : vector<8x8xf32>
    %741 = arith.addf %735, %740 : vector<8x8xf32>
    %c113 = arith.constant 113 : index
    %742 = memref.load %arg3[%c113] : memref<288xf32, #tpu.memory_space<smem>>
    %c0_385 = arith.constant 0 : index
    %c1_386 = arith.constant 1 : index
    %c2_387 = arith.constant 2 : index
    %743 = vector.load %arg5[%c0_385, %c1_386, %c2_387] : memref<4x10x10xf32, #tpu.memory_space<vmem>>, vector<1x8x8xf32>
    %744 = vector.shape_cast %743 : vector<1x8x8xf32> to vector<8x8xf32>
    %745 = vector.broadcast %742 : f32 to vector<8x8xf32>
    %746 = arith.mulf %745, %744 : vector<8x8xf32>
    %747 = arith.addf %741, %746 : vector<8x8xf32>
    %c114 = arith.constant 114 : index
    %748 = memref.load %arg3[%c114] : memref<288xf32, #tpu.memory_space<smem>>
    %c0_388 = arith.constant 0 : index
    %c2_389 = arith.constant 2 : index
    %c0_390 = arith.constant 0 : index
    %749 = vector.load %arg5[%c0_388, %c2_389, %c0_390] : memref<4x10x10xf32, #tpu.memory_space<vmem>>, vector<1x8x8xf32>
    %750 = vector.shape_cast %749 : vector<1x8x8xf32> to vector<8x8xf32>
    %751 = vector.broadcast %748 : f32 to vector<8x8xf32>
    %752 = arith.mulf %751, %750 : vector<8x8xf32>
    %753 = arith.addf %747, %752 : vector<8x8xf32>
    %c115 = arith.constant 115 : index
    %754 = memref.load %arg3[%c115] : memref<288xf32, #tpu.memory_space<smem>>
    %c0_391 = arith.constant 0 : index
    %c2_392 = arith.constant 2 : index
    %c1_393 = arith.constant 1 : index
    %755 = vector.load %arg5[%c0_391, %c2_392, %c1_393] : memref<4x10x10xf32, #tpu.memory_space<vmem>>, vector<1x8x8xf32>
    %756 = vector.shape_cast %755 : vector<1x8x8xf32> to vector<8x8xf32>
    %757 = vector.broadcast %754 : f32 to vector<8x8xf32>
    %758 = arith.mulf %757, %756 : vector<8x8xf32>
    %759 = arith.addf %753, %758 : vector<8x8xf32>
    %c116 = arith.constant 116 : index
    %760 = memref.load %arg3[%c116] : memref<288xf32, #tpu.memory_space<smem>>
    %c0_394 = arith.constant 0 : index
    %c2_395 = arith.constant 2 : index
    %c2_396 = arith.constant 2 : index
    %761 = vector.load %arg5[%c0_394, %c2_395, %c2_396] : memref<4x10x10xf32, #tpu.memory_space<vmem>>, vector<1x8x8xf32>
    %762 = vector.shape_cast %761 : vector<1x8x8xf32> to vector<8x8xf32>
    %763 = vector.broadcast %760 : f32 to vector<8x8xf32>
    %764 = arith.mulf %763, %762 : vector<8x8xf32>
    %765 = arith.addf %759, %764 : vector<8x8xf32>
    %c117 = arith.constant 117 : index
    %766 = memref.load %arg3[%c117] : memref<288xf32, #tpu.memory_space<smem>>
    %c1_397 = arith.constant 1 : index
    %c0_398 = arith.constant 0 : index
    %c0_399 = arith.constant 0 : index
    %767 = vector.load %arg5[%c1_397, %c0_398, %c0_399] : memref<4x10x10xf32, #tpu.memory_space<vmem>>, vector<1x8x8xf32>
    %768 = vector.shape_cast %767 : vector<1x8x8xf32> to vector<8x8xf32>
    %769 = vector.broadcast %766 : f32 to vector<8x8xf32>
    %770 = arith.mulf %769, %768 : vector<8x8xf32>
    %771 = arith.addf %765, %770 : vector<8x8xf32>
    %c118 = arith.constant 118 : index
    %772 = memref.load %arg3[%c118] : memref<288xf32, #tpu.memory_space<smem>>
    %c1_400 = arith.constant 1 : index
    %c0_401 = arith.constant 0 : index
    %c1_402 = arith.constant 1 : index
    %773 = vector.load %arg5[%c1_400, %c0_401, %c1_402] : memref<4x10x10xf32, #tpu.memory_space<vmem>>, vector<1x8x8xf32>
    %774 = vector.shape_cast %773 : vector<1x8x8xf32> to vector<8x8xf32>
    %775 = vector.broadcast %772 : f32 to vector<8x8xf32>
    %776 = arith.mulf %775, %774 : vector<8x8xf32>
    %777 = arith.addf %771, %776 : vector<8x8xf32>
    %c119 = arith.constant 119 : index
    %778 = memref.load %arg3[%c119] : memref<288xf32, #tpu.memory_space<smem>>
    %c1_403 = arith.constant 1 : index
    %c0_404 = arith.constant 0 : index
    %c2_405 = arith.constant 2 : index
    %779 = vector.load %arg5[%c1_403, %c0_404, %c2_405] : memref<4x10x10xf32, #tpu.memory_space<vmem>>, vector<1x8x8xf32>
    %780 = vector.shape_cast %779 : vector<1x8x8xf32> to vector<8x8xf32>
    %781 = vector.broadcast %778 : f32 to vector<8x8xf32>
    %782 = arith.mulf %781, %780 : vector<8x8xf32>
    %783 = arith.addf %777, %782 : vector<8x8xf32>
    %c120 = arith.constant 120 : index
    %784 = memref.load %arg3[%c120] : memref<288xf32, #tpu.memory_space<smem>>
    %c1_406 = arith.constant 1 : index
    %c1_407 = arith.constant 1 : index
    %c0_408 = arith.constant 0 : index
    %785 = vector.load %arg5[%c1_406, %c1_407, %c0_408] : memref<4x10x10xf32, #tpu.memory_space<vmem>>, vector<1x8x8xf32>
    %786 = vector.shape_cast %785 : vector<1x8x8xf32> to vector<8x8xf32>
    %787 = vector.broadcast %784 : f32 to vector<8x8xf32>
    %788 = arith.mulf %787, %786 : vector<8x8xf32>
    %789 = arith.addf %783, %788 : vector<8x8xf32>
    %c121 = arith.constant 121 : index
    %790 = memref.load %arg3[%c121] : memref<288xf32, #tpu.memory_space<smem>>
    %c1_409 = arith.constant 1 : index
    %c1_410 = arith.constant 1 : index
    %c1_411 = arith.constant 1 : index
    %791 = vector.load %arg5[%c1_409, %c1_410, %c1_411] : memref<4x10x10xf32, #tpu.memory_space<vmem>>, vector<1x8x8xf32>
    %792 = vector.shape_cast %791 : vector<1x8x8xf32> to vector<8x8xf32>
    %793 = vector.broadcast %790 : f32 to vector<8x8xf32>
    %794 = arith.mulf %793, %792 : vector<8x8xf32>
    %795 = arith.addf %789, %794 : vector<8x8xf32>
    %c122 = arith.constant 122 : index
    %796 = memref.load %arg3[%c122] : memref<288xf32, #tpu.memory_space<smem>>
    %c1_412 = arith.constant 1 : index
    %c1_413 = arith.constant 1 : index
    %c2_414 = arith.constant 2 : index
    %797 = vector.load %arg5[%c1_412, %c1_413, %c2_414] : memref<4x10x10xf32, #tpu.memory_space<vmem>>, vector<1x8x8xf32>
    %798 = vector.shape_cast %797 : vector<1x8x8xf32> to vector<8x8xf32>
    %799 = vector.broadcast %796 : f32 to vector<8x8xf32>
    %800 = arith.mulf %799, %798 : vector<8x8xf32>
    %801 = arith.addf %795, %800 : vector<8x8xf32>
    %c123 = arith.constant 123 : index
    %802 = memref.load %arg3[%c123] : memref<288xf32, #tpu.memory_space<smem>>
    %c1_415 = arith.constant 1 : index
    %c2_416 = arith.constant 2 : index
    %c0_417 = arith.constant 0 : index
    %803 = vector.load %arg5[%c1_415, %c2_416, %c0_417] : memref<4x10x10xf32, #tpu.memory_space<vmem>>, vector<1x8x8xf32>
    %804 = vector.shape_cast %803 : vector<1x8x8xf32> to vector<8x8xf32>
    %805 = vector.broadcast %802 : f32 to vector<8x8xf32>
    %806 = arith.mulf %805, %804 : vector<8x8xf32>
    %807 = arith.addf %801, %806 : vector<8x8xf32>
    %c124 = arith.constant 124 : index
    %808 = memref.load %arg3[%c124] : memref<288xf32, #tpu.memory_space<smem>>
    %c1_418 = arith.constant 1 : index
    %c2_419 = arith.constant 2 : index
    %c1_420 = arith.constant 1 : index
    %809 = vector.load %arg5[%c1_418, %c2_419, %c1_420] : memref<4x10x10xf32, #tpu.memory_space<vmem>>, vector<1x8x8xf32>
    %810 = vector.shape_cast %809 : vector<1x8x8xf32> to vector<8x8xf32>
    %811 = vector.broadcast %808 : f32 to vector<8x8xf32>
    %812 = arith.mulf %811, %810 : vector<8x8xf32>
    %813 = arith.addf %807, %812 : vector<8x8xf32>
    %c125 = arith.constant 125 : index
    %814 = memref.load %arg3[%c125] : memref<288xf32, #tpu.memory_space<smem>>
    %c1_421 = arith.constant 1 : index
    %c2_422 = arith.constant 2 : index
    %c2_423 = arith.constant 2 : index
    %815 = vector.load %arg5[%c1_421, %c2_422, %c2_423] : memref<4x10x10xf32, #tpu.memory_space<vmem>>, vector<1x8x8xf32>
    %816 = vector.shape_cast %815 : vector<1x8x8xf32> to vector<8x8xf32>
    %817 = vector.broadcast %814 : f32 to vector<8x8xf32>
    %818 = arith.mulf %817, %816 : vector<8x8xf32>
    %819 = arith.addf %813, %818 : vector<8x8xf32>
    %c126 = arith.constant 126 : index
    %820 = memref.load %arg3[%c126] : memref<288xf32, #tpu.memory_space<smem>>
    %c2_424 = arith.constant 2 : index
    %c0_425 = arith.constant 0 : index
    %c0_426 = arith.constant 0 : index
    %821 = vector.load %arg5[%c2_424, %c0_425, %c0_426] : memref<4x10x10xf32, #tpu.memory_space<vmem>>, vector<1x8x8xf32>
    %822 = vector.shape_cast %821 : vector<1x8x8xf32> to vector<8x8xf32>
    %823 = vector.broadcast %820 : f32 to vector<8x8xf32>
    %824 = arith.mulf %823, %822 : vector<8x8xf32>
    %825 = arith.addf %819, %824 : vector<8x8xf32>
    %c127 = arith.constant 127 : index
    %826 = memref.load %arg3[%c127] : memref<288xf32, #tpu.memory_space<smem>>
    %c2_427 = arith.constant 2 : index
    %c0_428 = arith.constant 0 : index
    %c1_429 = arith.constant 1 : index
    %827 = vector.load %arg5[%c2_427, %c0_428, %c1_429] : memref<4x10x10xf32, #tpu.memory_space<vmem>>, vector<1x8x8xf32>
    %828 = vector.shape_cast %827 : vector<1x8x8xf32> to vector<8x8xf32>
    %829 = vector.broadcast %826 : f32 to vector<8x8xf32>
    %830 = arith.mulf %829, %828 : vector<8x8xf32>
    %831 = arith.addf %825, %830 : vector<8x8xf32>
    %c128 = arith.constant 128 : index
    %832 = memref.load %arg3[%c128] : memref<288xf32, #tpu.memory_space<smem>>
    %c2_430 = arith.constant 2 : index
    %c0_431 = arith.constant 0 : index
    %c2_432 = arith.constant 2 : index
    %833 = vector.load %arg5[%c2_430, %c0_431, %c2_432] : memref<4x10x10xf32, #tpu.memory_space<vmem>>, vector<1x8x8xf32>
    %834 = vector.shape_cast %833 : vector<1x8x8xf32> to vector<8x8xf32>
    %835 = vector.broadcast %832 : f32 to vector<8x8xf32>
    %836 = arith.mulf %835, %834 : vector<8x8xf32>
    %837 = arith.addf %831, %836 : vector<8x8xf32>
    %c129 = arith.constant 129 : index
    %838 = memref.load %arg3[%c129] : memref<288xf32, #tpu.memory_space<smem>>
    %c2_433 = arith.constant 2 : index
    %c1_434 = arith.constant 1 : index
    %c0_435 = arith.constant 0 : index
    %839 = vector.load %arg5[%c2_433, %c1_434, %c0_435] : memref<4x10x10xf32, #tpu.memory_space<vmem>>, vector<1x8x8xf32>
    %840 = vector.shape_cast %839 : vector<1x8x8xf32> to vector<8x8xf32>
    %841 = vector.broadcast %838 : f32 to vector<8x8xf32>
    %842 = arith.mulf %841, %840 : vector<8x8xf32>
    %843 = arith.addf %837, %842 : vector<8x8xf32>
    %c130 = arith.constant 130 : index
    %844 = memref.load %arg3[%c130] : memref<288xf32, #tpu.memory_space<smem>>
    %c2_436 = arith.constant 2 : index
    %c1_437 = arith.constant 1 : index
    %c1_438 = arith.constant 1 : index
    %845 = vector.load %arg5[%c2_436, %c1_437, %c1_438] : memref<4x10x10xf32, #tpu.memory_space<vmem>>, vector<1x8x8xf32>
    %846 = vector.shape_cast %845 : vector<1x8x8xf32> to vector<8x8xf32>
    %847 = vector.broadcast %844 : f32 to vector<8x8xf32>
    %848 = arith.mulf %847, %846 : vector<8x8xf32>
    %849 = arith.addf %843, %848 : vector<8x8xf32>
    %c131 = arith.constant 131 : index
    %850 = memref.load %arg3[%c131] : memref<288xf32, #tpu.memory_space<smem>>
    %c2_439 = arith.constant 2 : index
    %c1_440 = arith.constant 1 : index
    %c2_441 = arith.constant 2 : index
    %851 = vector.load %arg5[%c2_439, %c1_440, %c2_441] : memref<4x10x10xf32, #tpu.memory_space<vmem>>, vector<1x8x8xf32>
    %852 = vector.shape_cast %851 : vector<1x8x8xf32> to vector<8x8xf32>
    %853 = vector.broadcast %850 : f32 to vector<8x8xf32>
    %854 = arith.mulf %853, %852 : vector<8x8xf32>
    %855 = arith.addf %849, %854 : vector<8x8xf32>
    %c132 = arith.constant 132 : index
    %856 = memref.load %arg3[%c132] : memref<288xf32, #tpu.memory_space<smem>>
    %c2_442 = arith.constant 2 : index
    %c2_443 = arith.constant 2 : index
    %c0_444 = arith.constant 0 : index
    %857 = vector.load %arg5[%c2_442, %c2_443, %c0_444] : memref<4x10x10xf32, #tpu.memory_space<vmem>>, vector<1x8x8xf32>
    %858 = vector.shape_cast %857 : vector<1x8x8xf32> to vector<8x8xf32>
    %859 = vector.broadcast %856 : f32 to vector<8x8xf32>
    %860 = arith.mulf %859, %858 : vector<8x8xf32>
    %861 = arith.addf %855, %860 : vector<8x8xf32>
    %c133 = arith.constant 133 : index
    %862 = memref.load %arg3[%c133] : memref<288xf32, #tpu.memory_space<smem>>
    %c2_445 = arith.constant 2 : index
    %c2_446 = arith.constant 2 : index
    %c1_447 = arith.constant 1 : index
    %863 = vector.load %arg5[%c2_445, %c2_446, %c1_447] : memref<4x10x10xf32, #tpu.memory_space<vmem>>, vector<1x8x8xf32>
    %864 = vector.shape_cast %863 : vector<1x8x8xf32> to vector<8x8xf32>
    %865 = vector.broadcast %862 : f32 to vector<8x8xf32>
    %866 = arith.mulf %865, %864 : vector<8x8xf32>
    %867 = arith.addf %861, %866 : vector<8x8xf32>
    %c134 = arith.constant 134 : index
    %868 = memref.load %arg3[%c134] : memref<288xf32, #tpu.memory_space<smem>>
    %c2_448 = arith.constant 2 : index
    %c2_449 = arith.constant 2 : index
    %c2_450 = arith.constant 2 : index
    %869 = vector.load %arg5[%c2_448, %c2_449, %c2_450] : memref<4x10x10xf32, #tpu.memory_space<vmem>>, vector<1x8x8xf32>
    %870 = vector.shape_cast %869 : vector<1x8x8xf32> to vector<8x8xf32>
    %871 = vector.broadcast %868 : f32 to vector<8x8xf32>
    %872 = arith.mulf %871, %870 : vector<8x8xf32>
    %873 = arith.addf %867, %872 : vector<8x8xf32>
    %c135 = arith.constant 135 : index
    %874 = memref.load %arg3[%c135] : memref<288xf32, #tpu.memory_space<smem>>
    %c3_451 = arith.constant 3 : index
    %c0_452 = arith.constant 0 : index
    %c0_453 = arith.constant 0 : index
    %875 = vector.load %arg5[%c3_451, %c0_452, %c0_453] : memref<4x10x10xf32, #tpu.memory_space<vmem>>, vector<1x8x8xf32>
    %876 = vector.shape_cast %875 : vector<1x8x8xf32> to vector<8x8xf32>
    %877 = vector.broadcast %874 : f32 to vector<8x8xf32>
    %878 = arith.mulf %877, %876 : vector<8x8xf32>
    %879 = arith.addf %873, %878 : vector<8x8xf32>
    %c136 = arith.constant 136 : index
    %880 = memref.load %arg3[%c136] : memref<288xf32, #tpu.memory_space<smem>>
    %c3_454 = arith.constant 3 : index
    %c0_455 = arith.constant 0 : index
    %c1_456 = arith.constant 1 : index
    %881 = vector.load %arg5[%c3_454, %c0_455, %c1_456] : memref<4x10x10xf32, #tpu.memory_space<vmem>>, vector<1x8x8xf32>
    %882 = vector.shape_cast %881 : vector<1x8x8xf32> to vector<8x8xf32>
    %883 = vector.broadcast %880 : f32 to vector<8x8xf32>
    %884 = arith.mulf %883, %882 : vector<8x8xf32>
    %885 = arith.addf %879, %884 : vector<8x8xf32>
    %c137 = arith.constant 137 : index
    %886 = memref.load %arg3[%c137] : memref<288xf32, #tpu.memory_space<smem>>
    %c3_457 = arith.constant 3 : index
    %c0_458 = arith.constant 0 : index
    %c2_459 = arith.constant 2 : index
    %887 = vector.load %arg5[%c3_457, %c0_458, %c2_459] : memref<4x10x10xf32, #tpu.memory_space<vmem>>, vector<1x8x8xf32>
    %888 = vector.shape_cast %887 : vector<1x8x8xf32> to vector<8x8xf32>
    %889 = vector.broadcast %886 : f32 to vector<8x8xf32>
    %890 = arith.mulf %889, %888 : vector<8x8xf32>
    %891 = arith.addf %885, %890 : vector<8x8xf32>
    %c138 = arith.constant 138 : index
    %892 = memref.load %arg3[%c138] : memref<288xf32, #tpu.memory_space<smem>>
    %c3_460 = arith.constant 3 : index
    %c1_461 = arith.constant 1 : index
    %c0_462 = arith.constant 0 : index
    %893 = vector.load %arg5[%c3_460, %c1_461, %c0_462] : memref<4x10x10xf32, #tpu.memory_space<vmem>>, vector<1x8x8xf32>
    %894 = vector.shape_cast %893 : vector<1x8x8xf32> to vector<8x8xf32>
    %895 = vector.broadcast %892 : f32 to vector<8x8xf32>
    %896 = arith.mulf %895, %894 : vector<8x8xf32>
    %897 = arith.addf %891, %896 : vector<8x8xf32>
    %c139 = arith.constant 139 : index
    %898 = memref.load %arg3[%c139] : memref<288xf32, #tpu.memory_space<smem>>
    %c3_463 = arith.constant 3 : index
    %c1_464 = arith.constant 1 : index
    %c1_465 = arith.constant 1 : index
    %899 = vector.load %arg5[%c3_463, %c1_464, %c1_465] : memref<4x10x10xf32, #tpu.memory_space<vmem>>, vector<1x8x8xf32>
    %900 = vector.shape_cast %899 : vector<1x8x8xf32> to vector<8x8xf32>
    %901 = vector.broadcast %898 : f32 to vector<8x8xf32>
    %902 = arith.mulf %901, %900 : vector<8x8xf32>
    %903 = arith.addf %897, %902 : vector<8x8xf32>
    %c140 = arith.constant 140 : index
    %904 = memref.load %arg3[%c140] : memref<288xf32, #tpu.memory_space<smem>>
    %c3_466 = arith.constant 3 : index
    %c1_467 = arith.constant 1 : index
    %c2_468 = arith.constant 2 : index
    %905 = vector.load %arg5[%c3_466, %c1_467, %c2_468] : memref<4x10x10xf32, #tpu.memory_space<vmem>>, vector<1x8x8xf32>
    %906 = vector.shape_cast %905 : vector<1x8x8xf32> to vector<8x8xf32>
    %907 = vector.broadcast %904 : f32 to vector<8x8xf32>
    %908 = arith.mulf %907, %906 : vector<8x8xf32>
    %909 = arith.addf %903, %908 : vector<8x8xf32>
    %c141 = arith.constant 141 : index
    %910 = memref.load %arg3[%c141] : memref<288xf32, #tpu.memory_space<smem>>
    %c3_469 = arith.constant 3 : index
    %c2_470 = arith.constant 2 : index
    %c0_471 = arith.constant 0 : index
    %911 = vector.load %arg5[%c3_469, %c2_470, %c0_471] : memref<4x10x10xf32, #tpu.memory_space<vmem>>, vector<1x8x8xf32>
    %912 = vector.shape_cast %911 : vector<1x8x8xf32> to vector<8x8xf32>
    %913 = vector.broadcast %910 : f32 to vector<8x8xf32>
    %914 = arith.mulf %913, %912 : vector<8x8xf32>
    %915 = arith.addf %909, %914 : vector<8x8xf32>
    %c142 = arith.constant 142 : index
    %916 = memref.load %arg3[%c142] : memref<288xf32, #tpu.memory_space<smem>>
    %c3_472 = arith.constant 3 : index
    %c2_473 = arith.constant 2 : index
    %c1_474 = arith.constant 1 : index
    %917 = vector.load %arg5[%c3_472, %c2_473, %c1_474] : memref<4x10x10xf32, #tpu.memory_space<vmem>>, vector<1x8x8xf32>
    %918 = vector.shape_cast %917 : vector<1x8x8xf32> to vector<8x8xf32>
    %919 = vector.broadcast %916 : f32 to vector<8x8xf32>
    %920 = arith.mulf %919, %918 : vector<8x8xf32>
    %921 = arith.addf %915, %920 : vector<8x8xf32>
    %c143 = arith.constant 143 : index
    %922 = memref.load %arg3[%c143] : memref<288xf32, #tpu.memory_space<smem>>
    %c3_475 = arith.constant 3 : index
    %c2_476 = arith.constant 2 : index
    %c2_477 = arith.constant 2 : index
    %923 = vector.load %arg5[%c3_475, %c2_476, %c2_477] : memref<4x10x10xf32, #tpu.memory_space<vmem>>, vector<1x8x8xf32>
    %924 = vector.shape_cast %923 : vector<1x8x8xf32> to vector<8x8xf32>
    %925 = vector.broadcast %922 : f32 to vector<8x8xf32>
    %926 = arith.mulf %925, %924 : vector<8x8xf32>
    %927 = arith.addf %921, %926 : vector<8x8xf32>
    %c0_478 = arith.constant 0 : index
    %c3_479 = arith.constant 3 : index
    %c0_480 = arith.constant 0 : index
    %c0_481 = arith.constant 0 : index
    %928 = vector.load %arg4[%c0_478, %c3_479, %c0_480, %c0_481] : memref<1x8x8x8xf32, #tpu.memory_space<vmem>>, vector<1x1x8x8xf32>
    %929 = vector.shape_cast %928 : vector<1x1x8x8xf32> to vector<8x8xf32>
    %930 = vector.shape_cast %927 : vector<8x8xf32> to vector<1x1x8x8xf32>
    tpu.vector_store %arg4[%c0_478, %c3_479, %c0_480, %c0_481], %930 {strides = array<i32>} : memref<1x8x8x8xf32, #tpu.memory_space<vmem>>, vector<1x1x8x8xf32>,
    %931 = vector.shape_cast %927 : vector<8x8xf32> to vector<1x8x8xf32>
    %cst_482 = arith.constant dense<0.000000e+00> : vector<1xf32>
    %932 = vector.multi_reduction <add>, %931, %cst_482 [1, 2] : vector<1x8x8xf32> to vector<1xf32>
    %933 = vector.shape_cast %932 : vector<1xf32> to vector<1x1x1xf32>
    %934 = vector.extract %933[0, 0, 0] : f32 from vector<1x1x1xf32>
    %935 = arith.addf %704, %934 : f32
    %936 = arith.mulf %927, %927 : vector<8x8xf32>
    %937 = vector.shape_cast %936 : vector<8x8xf32> to vector<1x8x8xf32>
    %cst_483 = arith.constant dense<0.000000e+00> : vector<1xf32>
    %938 = vector.multi_reduction <add>, %937, %cst_483 [1, 2] : vector<1x8x8xf32> to vector<1xf32>
    %939 = vector.shape_cast %938 : vector<1xf32> to vector<1x1x1xf32>
    %940 = vector.extract %939[0, 0, 0] : f32 from vector<1x1x1xf32>
    %941 = arith.addf %710, %940 : f32
    %cst_484 = arith.constant 0.000000e+00 : f32
    %942 = vector.broadcast %cst_484 : f32 to vector<8x8xf32>
    %c144 = arith.constant 144 : index
    %943 = memref.load %arg3[%c144] : memref<288xf32, #tpu.memory_space<smem>>
    %c0_485 = arith.constant 0 : index
    %c0_486 = arith.constant 0 : index
    %c0_487 = arith.constant 0 : index
    %944 = vector.load %arg5[%c0_485, %c0_486, %c0_487] : memref<4x10x10xf32, #tpu.memory_space<vmem>>, vector<1x8x8xf32>
    %945 = vector.shape_cast %944 : vector<1x8x8xf32> to vector<8x8xf32>
    %946 = vector.broadcast %943 : f32 to vector<8x8xf32>
    %947 = arith.mulf %946, %945 : vector<8x8xf32>
    %948 = arith.addf %942, %947 : vector<8x8xf32>
    %c145 = arith.constant 145 : index
    %949 = memref.load %arg3[%c145] : memref<288xf32, #tpu.memory_space<smem>>
    %c0_488 = arith.constant 0 : index
    %c0_489 = arith.constant 0 : index
    %c1_490 = arith.constant 1 : index
    %950 = vector.load %arg5[%c0_488, %c0_489, %c1_490] : memref<4x10x10xf32, #tpu.memory_space<vmem>>, vector<1x8x8xf32>
    %951 = vector.shape_cast %950 : vector<1x8x8xf32> to vector<8x8xf32>
    %952 = vector.broadcast %949 : f32 to vector<8x8xf32>
    %953 = arith.mulf %952, %951 : vector<8x8xf32>
    %954 = arith.addf %948, %953 : vector<8x8xf32>
    %c146 = arith.constant 146 : index
    %955 = memref.load %arg3[%c146] : memref<288xf32, #tpu.memory_space<smem>>
    %c0_491 = arith.constant 0 : index
    %c0_492 = arith.constant 0 : index
    %c2_493 = arith.constant 2 : index
    %956 = vector.load %arg5[%c0_491, %c0_492, %c2_493] : memref<4x10x10xf32, #tpu.memory_space<vmem>>, vector<1x8x8xf32>
    %957 = vector.shape_cast %956 : vector<1x8x8xf32> to vector<8x8xf32>
    %958 = vector.broadcast %955 : f32 to vector<8x8xf32>
    %959 = arith.mulf %958, %957 : vector<8x8xf32>
    %960 = arith.addf %954, %959 : vector<8x8xf32>
    %c147 = arith.constant 147 : index
    %961 = memref.load %arg3[%c147] : memref<288xf32, #tpu.memory_space<smem>>
    %c0_494 = arith.constant 0 : index
    %c1_495 = arith.constant 1 : index
    %c0_496 = arith.constant 0 : index
    %962 = vector.load %arg5[%c0_494, %c1_495, %c0_496] : memref<4x10x10xf32, #tpu.memory_space<vmem>>, vector<1x8x8xf32>
    %963 = vector.shape_cast %962 : vector<1x8x8xf32> to vector<8x8xf32>
    %964 = vector.broadcast %961 : f32 to vector<8x8xf32>
    %965 = arith.mulf %964, %963 : vector<8x8xf32>
    %966 = arith.addf %960, %965 : vector<8x8xf32>
    %c148 = arith.constant 148 : index
    %967 = memref.load %arg3[%c148] : memref<288xf32, #tpu.memory_space<smem>>
    %c0_497 = arith.constant 0 : index
    %c1_498 = arith.constant 1 : index
    %c1_499 = arith.constant 1 : index
    %968 = vector.load %arg5[%c0_497, %c1_498, %c1_499] : memref<4x10x10xf32, #tpu.memory_space<vmem>>, vector<1x8x8xf32>
    %969 = vector.shape_cast %968 : vector<1x8x8xf32> to vector<8x8xf32>
    %970 = vector.broadcast %967 : f32 to vector<8x8xf32>
    %971 = arith.mulf %970, %969 : vector<8x8xf32>
    %972 = arith.addf %966, %971 : vector<8x8xf32>
    %c149 = arith.constant 149 : index
    %973 = memref.load %arg3[%c149] : memref<288xf32, #tpu.memory_space<smem>>
    %c0_500 = arith.constant 0 : index
    %c1_501 = arith.constant 1 : index
    %c2_502 = arith.constant 2 : index
    %974 = vector.load %arg5[%c0_500, %c1_501, %c2_502] : memref<4x10x10xf32, #tpu.memory_space<vmem>>, vector<1x8x8xf32>
    %975 = vector.shape_cast %974 : vector<1x8x8xf32> to vector<8x8xf32>
    %976 = vector.broadcast %973 : f32 to vector<8x8xf32>
    %977 = arith.mulf %976, %975 : vector<8x8xf32>
    %978 = arith.addf %972, %977 : vector<8x8xf32>
    %c150 = arith.constant 150 : index
    %979 = memref.load %arg3[%c150] : memref<288xf32, #tpu.memory_space<smem>>
    %c0_503 = arith.constant 0 : index
    %c2_504 = arith.constant 2 : index
    %c0_505 = arith.constant 0 : index
    %980 = vector.load %arg5[%c0_503, %c2_504, %c0_505] : memref<4x10x10xf32, #tpu.memory_space<vmem>>, vector<1x8x8xf32>
    %981 = vector.shape_cast %980 : vector<1x8x8xf32> to vector<8x8xf32>
    %982 = vector.broadcast %979 : f32 to vector<8x8xf32>
    %983 = arith.mulf %982, %981 : vector<8x8xf32>
    %984 = arith.addf %978, %983 : vector<8x8xf32>
    %c151 = arith.constant 151 : index
    %985 = memref.load %arg3[%c151] : memref<288xf32, #tpu.memory_space<smem>>
    %c0_506 = arith.constant 0 : index
    %c2_507 = arith.constant 2 : index
    %c1_508 = arith.constant 1 : index
    %986 = vector.load %arg5[%c0_506, %c2_507, %c1_508] : memref<4x10x10xf32, #tpu.memory_space<vmem>>, vector<1x8x8xf32>
    %987 = vector.shape_cast %986 : vector<1x8x8xf32> to vector<8x8xf32>
    %988 = vector.broadcast %985 : f32 to vector<8x8xf32>
    %989 = arith.mulf %988, %987 : vector<8x8xf32>
    %990 = arith.addf %984, %989 : vector<8x8xf32>
    %c152 = arith.constant 152 : index
    %991 = memref.load %arg3[%c152] : memref<288xf32, #tpu.memory_space<smem>>
    %c0_509 = arith.constant 0 : index
    %c2_510 = arith.constant 2 : index
    %c2_511 = arith.constant 2 : index
    %992 = vector.load %arg5[%c0_509, %c2_510, %c2_511] : memref<4x10x10xf32, #tpu.memory_space<vmem>>, vector<1x8x8xf32>
    %993 = vector.shape_cast %992 : vector<1x8x8xf32> to vector<8x8xf32>
    %994 = vector.broadcast %991 : f32 to vector<8x8xf32>
    %995 = arith.mulf %994, %993 : vector<8x8xf32>
    %996 = arith.addf %990, %995 : vector<8x8xf32>
    %c153 = arith.constant 153 : index
    %997 = memref.load %arg3[%c153] : memref<288xf32, #tpu.memory_space<smem>>
    %c1_512 = arith.constant 1 : index
    %c0_513 = arith.constant 0 : index
    %c0_514 = arith.constant 0 : index
    %998 = vector.load %arg5[%c1_512, %c0_513, %c0_514] : memref<4x10x10xf32, #tpu.memory_space<vmem>>, vector<1x8x8xf32>
    %999 = vector.shape_cast %998 : vector<1x8x8xf32> to vector<8x8xf32>
    %1000 = vector.broadcast %997 : f32 to vector<8x8xf32>
    %1001 = arith.mulf %1000, %999 : vector<8x8xf32>
    %1002 = arith.addf %996, %1001 : vector<8x8xf32>
    %c154 = arith.constant 154 : index
    %1003 = memref.load %arg3[%c154] : memref<288xf32, #tpu.memory_space<smem>>
    %c1_515 = arith.constant 1 : index
    %c0_516 = arith.constant 0 : index
    %c1_517 = arith.constant 1 : index
    %1004 = vector.load %arg5[%c1_515, %c0_516, %c1_517] : memref<4x10x10xf32, #tpu.memory_space<vmem>>, vector<1x8x8xf32>
    %1005 = vector.shape_cast %1004 : vector<1x8x8xf32> to vector<8x8xf32>
    %1006 = vector.broadcast %1003 : f32 to vector<8x8xf32>
    %1007 = arith.mulf %1006, %1005 : vector<8x8xf32>
    %1008 = arith.addf %1002, %1007 : vector<8x8xf32>
    %c155 = arith.constant 155 : index
    %1009 = memref.load %arg3[%c155] : memref<288xf32, #tpu.memory_space<smem>>
    %c1_518 = arith.constant 1 : index
    %c0_519 = arith.constant 0 : index
    %c2_520 = arith.constant 2 : index
    %1010 = vector.load %arg5[%c1_518, %c0_519, %c2_520] : memref<4x10x10xf32, #tpu.memory_space<vmem>>, vector<1x8x8xf32>
    %1011 = vector.shape_cast %1010 : vector<1x8x8xf32> to vector<8x8xf32>
    %1012 = vector.broadcast %1009 : f32 to vector<8x8xf32>
    %1013 = arith.mulf %1012, %1011 : vector<8x8xf32>
    %1014 = arith.addf %1008, %1013 : vector<8x8xf32>
    %c156 = arith.constant 156 : index
    %1015 = memref.load %arg3[%c156] : memref<288xf32, #tpu.memory_space<smem>>
    %c1_521 = arith.constant 1 : index
    %c1_522 = arith.constant 1 : index
    %c0_523 = arith.constant 0 : index
    %1016 = vector.load %arg5[%c1_521, %c1_522, %c0_523] : memref<4x10x10xf32, #tpu.memory_space<vmem>>, vector<1x8x8xf32>
    %1017 = vector.shape_cast %1016 : vector<1x8x8xf32> to vector<8x8xf32>
    %1018 = vector.broadcast %1015 : f32 to vector<8x8xf32>
    %1019 = arith.mulf %1018, %1017 : vector<8x8xf32>
    %1020 = arith.addf %1014, %1019 : vector<8x8xf32>
    %c157 = arith.constant 157 : index
    %1021 = memref.load %arg3[%c157] : memref<288xf32, #tpu.memory_space<smem>>
    %c1_524 = arith.constant 1 : index
    %c1_525 = arith.constant 1 : index
    %c1_526 = arith.constant 1 : index
    %1022 = vector.load %arg5[%c1_524, %c1_525, %c1_526] : memref<4x10x10xf32, #tpu.memory_space<vmem>>, vector<1x8x8xf32>
    %1023 = vector.shape_cast %1022 : vector<1x8x8xf32> to vector<8x8xf32>
    %1024 = vector.broadcast %1021 : f32 to vector<8x8xf32>
    %1025 = arith.mulf %1024, %1023 : vector<8x8xf32>
    %1026 = arith.addf %1020, %1025 : vector<8x8xf32>
    %c158 = arith.constant 158 : index
    %1027 = memref.load %arg3[%c158] : memref<288xf32, #tpu.memory_space<smem>>
    %c1_527 = arith.constant 1 : index
    %c1_528 = arith.constant 1 : index
    %c2_529 = arith.constant 2 : index
    %1028 = vector.load %arg5[%c1_527, %c1_528, %c2_529] : memref<4x10x10xf32, #tpu.memory_space<vmem>>, vector<1x8x8xf32>
    %1029 = vector.shape_cast %1028 : vector<1x8x8xf32> to vector<8x8xf32>
    %1030 = vector.broadcast %1027 : f32 to vector<8x8xf32>
    %1031 = arith.mulf %1030, %1029 : vector<8x8xf32>
    %1032 = arith.addf %1026, %1031 : vector<8x8xf32>
    %c159 = arith.constant 159 : index
    %1033 = memref.load %arg3[%c159] : memref<288xf32, #tpu.memory_space<smem>>
    %c1_530 = arith.constant 1 : index
    %c2_531 = arith.constant 2 : index
    %c0_532 = arith.constant 0 : index
    %1034 = vector.load %arg5[%c1_530, %c2_531, %c0_532] : memref<4x10x10xf32, #tpu.memory_space<vmem>>, vector<1x8x8xf32>
    %1035 = vector.shape_cast %1034 : vector<1x8x8xf32> to vector<8x8xf32>
    %1036 = vector.broadcast %1033 : f32 to vector<8x8xf32>
    %1037 = arith.mulf %1036, %1035 : vector<8x8xf32>
    %1038 = arith.addf %1032, %1037 : vector<8x8xf32>
    %c160 = arith.constant 160 : index
    %1039 = memref.load %arg3[%c160] : memref<288xf32, #tpu.memory_space<smem>>
    %c1_533 = arith.constant 1 : index
    %c2_534 = arith.constant 2 : index
    %c1_535 = arith.constant 1 : index
    %1040 = vector.load %arg5[%c1_533, %c2_534, %c1_535] : memref<4x10x10xf32, #tpu.memory_space<vmem>>, vector<1x8x8xf32>
    %1041 = vector.shape_cast %1040 : vector<1x8x8xf32> to vector<8x8xf32>
    %1042 = vector.broadcast %1039 : f32 to vector<8x8xf32>
    %1043 = arith.mulf %1042, %1041 : vector<8x8xf32>
    %1044 = arith.addf %1038, %1043 : vector<8x8xf32>
    %c161 = arith.constant 161 : index
    %1045 = memref.load %arg3[%c161] : memref<288xf32, #tpu.memory_space<smem>>
    %c1_536 = arith.constant 1 : index
    %c2_537 = arith.constant 2 : index
    %c2_538 = arith.constant 2 : index
    %1046 = vector.load %arg5[%c1_536, %c2_537, %c2_538] : memref<4x10x10xf32, #tpu.memory_space<vmem>>, vector<1x8x8xf32>
    %1047 = vector.shape_cast %1046 : vector<1x8x8xf32> to vector<8x8xf32>
    %1048 = vector.broadcast %1045 : f32 to vector<8x8xf32>
    %1049 = arith.mulf %1048, %1047 : vector<8x8xf32>
    %1050 = arith.addf %1044, %1049 : vector<8x8xf32>
    %c162 = arith.constant 162 : index
    %1051 = memref.load %arg3[%c162] : memref<288xf32, #tpu.memory_space<smem>>
    %c2_539 = arith.constant 2 : index
    %c0_540 = arith.constant 0 : index
    %c0_541 = arith.constant 0 : index
    %1052 = vector.load %arg5[%c2_539, %c0_540, %c0_541] : memref<4x10x10xf32, #tpu.memory_space<vmem>>, vector<1x8x8xf32>
    %1053 = vector.shape_cast %1052 : vector<1x8x8xf32> to vector<8x8xf32>
    %1054 = vector.broadcast %1051 : f32 to vector<8x8xf32>
    %1055 = arith.mulf %1054, %1053 : vector<8x8xf32>
    %1056 = arith.addf %1050, %1055 : vector<8x8xf32>
    %c163 = arith.constant 163 : index
    %1057 = memref.load %arg3[%c163] : memref<288xf32, #tpu.memory_space<smem>>
    %c2_542 = arith.constant 2 : index
    %c0_543 = arith.constant 0 : index
    %c1_544 = arith.constant 1 : index
    %1058 = vector.load %arg5[%c2_542, %c0_543, %c1_544] : memref<4x10x10xf32, #tpu.memory_space<vmem>>, vector<1x8x8xf32>
    %1059 = vector.shape_cast %1058 : vector<1x8x8xf32> to vector<8x8xf32>
    %1060 = vector.broadcast %1057 : f32 to vector<8x8xf32>
    %1061 = arith.mulf %1060, %1059 : vector<8x8xf32>
    %1062 = arith.addf %1056, %1061 : vector<8x8xf32>
    %c164 = arith.constant 164 : index
    %1063 = memref.load %arg3[%c164] : memref<288xf32, #tpu.memory_space<smem>>
    %c2_545 = arith.constant 2 : index
    %c0_546 = arith.constant 0 : index
    %c2_547 = arith.constant 2 : index
    %1064 = vector.load %arg5[%c2_545, %c0_546, %c2_547] : memref<4x10x10xf32, #tpu.memory_space<vmem>>, vector<1x8x8xf32>
    %1065 = vector.shape_cast %1064 : vector<1x8x8xf32> to vector<8x8xf32>
    %1066 = vector.broadcast %1063 : f32 to vector<8x8xf32>
    %1067 = arith.mulf %1066, %1065 : vector<8x8xf32>
    %1068 = arith.addf %1062, %1067 : vector<8x8xf32>
    %c165 = arith.constant 165 : index
    %1069 = memref.load %arg3[%c165] : memref<288xf32, #tpu.memory_space<smem>>
    %c2_548 = arith.constant 2 : index
    %c1_549 = arith.constant 1 : index
    %c0_550 = arith.constant 0 : index
    %1070 = vector.load %arg5[%c2_548, %c1_549, %c0_550] : memref<4x10x10xf32, #tpu.memory_space<vmem>>, vector<1x8x8xf32>
    %1071 = vector.shape_cast %1070 : vector<1x8x8xf32> to vector<8x8xf32>
    %1072 = vector.broadcast %1069 : f32 to vector<8x8xf32>
    %1073 = arith.mulf %1072, %1071 : vector<8x8xf32>
    %1074 = arith.addf %1068, %1073 : vector<8x8xf32>
    %c166 = arith.constant 166 : index
    %1075 = memref.load %arg3[%c166] : memref<288xf32, #tpu.memory_space<smem>>
    %c2_551 = arith.constant 2 : index
    %c1_552 = arith.constant 1 : index
    %c1_553 = arith.constant 1 : index
    %1076 = vector.load %arg5[%c2_551, %c1_552, %c1_553] : memref<4x10x10xf32, #tpu.memory_space<vmem>>, vector<1x8x8xf32>
    %1077 = vector.shape_cast %1076 : vector<1x8x8xf32> to vector<8x8xf32>
    %1078 = vector.broadcast %1075 : f32 to vector<8x8xf32>
    %1079 = arith.mulf %1078, %1077 : vector<8x8xf32>
    %1080 = arith.addf %1074, %1079 : vector<8x8xf32>
    %c167 = arith.constant 167 : index
    %1081 = memref.load %arg3[%c167] : memref<288xf32, #tpu.memory_space<smem>>
    %c2_554 = arith.constant 2 : index
    %c1_555 = arith.constant 1 : index
    %c2_556 = arith.constant 2 : index
    %1082 = vector.load %arg5[%c2_554, %c1_555, %c2_556] : memref<4x10x10xf32, #tpu.memory_space<vmem>>, vector<1x8x8xf32>
    %1083 = vector.shape_cast %1082 : vector<1x8x8xf32> to vector<8x8xf32>
    %1084 = vector.broadcast %1081 : f32 to vector<8x8xf32>
    %1085 = arith.mulf %1084, %1083 : vector<8x8xf32>
    %1086 = arith.addf %1080, %1085 : vector<8x8xf32>
    %c168 = arith.constant 168 : index
    %1087 = memref.load %arg3[%c168] : memref<288xf32, #tpu.memory_space<smem>>
    %c2_557 = arith.constant 2 : index
    %c2_558 = arith.constant 2 : index
    %c0_559 = arith.constant 0 : index
    %1088 = vector.load %arg5[%c2_557, %c2_558, %c0_559] : memref<4x10x10xf32, #tpu.memory_space<vmem>>, vector<1x8x8xf32>
    %1089 = vector.shape_cast %1088 : vector<1x8x8xf32> to vector<8x8xf32>
    %1090 = vector.broadcast %1087 : f32 to vector<8x8xf32>
    %1091 = arith.mulf %1090, %1089 : vector<8x8xf32>
    %1092 = arith.addf %1086, %1091 : vector<8x8xf32>
    %c169 = arith.constant 169 : index
    %1093 = memref.load %arg3[%c169] : memref<288xf32, #tpu.memory_space<smem>>
    %c2_560 = arith.constant 2 : index
    %c2_561 = arith.constant 2 : index
    %c1_562 = arith.constant 1 : index
    %1094 = vector.load %arg5[%c2_560, %c2_561, %c1_562] : memref<4x10x10xf32, #tpu.memory_space<vmem>>, vector<1x8x8xf32>
    %1095 = vector.shape_cast %1094 : vector<1x8x8xf32> to vector<8x8xf32>
    %1096 = vector.broadcast %1093 : f32 to vector<8x8xf32>
    %1097 = arith.mulf %1096, %1095 : vector<8x8xf32>
    %1098 = arith.addf %1092, %1097 : vector<8x8xf32>
    %c170 = arith.constant 170 : index
    %1099 = memref.load %arg3[%c170] : memref<288xf32, #tpu.memory_space<smem>>
    %c2_563 = arith.constant 2 : index
    %c2_564 = arith.constant 2 : index
    %c2_565 = arith.constant 2 : index
    %1100 = vector.load %arg5[%c2_563, %c2_564, %c2_565] : memref<4x10x10xf32, #tpu.memory_space<vmem>>, vector<1x8x8xf32>
    %1101 = vector.shape_cast %1100 : vector<1x8x8xf32> to vector<8x8xf32>
    %1102 = vector.broadcast %1099 : f32 to vector<8x8xf32>
    %1103 = arith.mulf %1102, %1101 : vector<8x8xf32>
    %1104 = arith.addf %1098, %1103 : vector<8x8xf32>
    %c171 = arith.constant 171 : index
    %1105 = memref.load %arg3[%c171] : memref<288xf32, #tpu.memory_space<smem>>
    %c3_566 = arith.constant 3 : index
    %c0_567 = arith.constant 0 : index
    %c0_568 = arith.constant 0 : index
    %1106 = vector.load %arg5[%c3_566, %c0_567, %c0_568] : memref<4x10x10xf32, #tpu.memory_space<vmem>>, vector<1x8x8xf32>
    %1107 = vector.shape_cast %1106 : vector<1x8x8xf32> to vector<8x8xf32>
    %1108 = vector.broadcast %1105 : f32 to vector<8x8xf32>
    %1109 = arith.mulf %1108, %1107 : vector<8x8xf32>
    %1110 = arith.addf %1104, %1109 : vector<8x8xf32>
    %c172 = arith.constant 172 : index
    %1111 = memref.load %arg3[%c172] : memref<288xf32, #tpu.memory_space<smem>>
    %c3_569 = arith.constant 3 : index
    %c0_570 = arith.constant 0 : index
    %c1_571 = arith.constant 1 : index
    %1112 = vector.load %arg5[%c3_569, %c0_570, %c1_571] : memref<4x10x10xf32, #tpu.memory_space<vmem>>, vector<1x8x8xf32>
    %1113 = vector.shape_cast %1112 : vector<1x8x8xf32> to vector<8x8xf32>
    %1114 = vector.broadcast %1111 : f32 to vector<8x8xf32>
    %1115 = arith.mulf %1114, %1113 : vector<8x8xf32>
    %1116 = arith.addf %1110, %1115 : vector<8x8xf32>
    %c173 = arith.constant 173 : index
    %1117 = memref.load %arg3[%c173] : memref<288xf32, #tpu.memory_space<smem>>
    %c3_572 = arith.constant 3 : index
    %c0_573 = arith.constant 0 : index
    %c2_574 = arith.constant 2 : index
    %1118 = vector.load %arg5[%c3_572, %c0_573, %c2_574] : memref<4x10x10xf32, #tpu.memory_space<vmem>>, vector<1x8x8xf32>
    %1119 = vector.shape_cast %1118 : vector<1x8x8xf32> to vector<8x8xf32>
    %1120 = vector.broadcast %1117 : f32 to vector<8x8xf32>
    %1121 = arith.mulf %1120, %1119 : vector<8x8xf32>
    %1122 = arith.addf %1116, %1121 : vector<8x8xf32>
    %c174 = arith.constant 174 : index
    %1123 = memref.load %arg3[%c174] : memref<288xf32, #tpu.memory_space<smem>>
    %c3_575 = arith.constant 3 : index
    %c1_576 = arith.constant 1 : index
    %c0_577 = arith.constant 0 : index
    %1124 = vector.load %arg5[%c3_575, %c1_576, %c0_577] : memref<4x10x10xf32, #tpu.memory_space<vmem>>, vector<1x8x8xf32>
    %1125 = vector.shape_cast %1124 : vector<1x8x8xf32> to vector<8x8xf32>
    %1126 = vector.broadcast %1123 : f32 to vector<8x8xf32>
    %1127 = arith.mulf %1126, %1125 : vector<8x8xf32>
    %1128 = arith.addf %1122, %1127 : vector<8x8xf32>
    %c175 = arith.constant 175 : index
    %1129 = memref.load %arg3[%c175] : memref<288xf32, #tpu.memory_space<smem>>
    %c3_578 = arith.constant 3 : index
    %c1_579 = arith.constant 1 : index
    %c1_580 = arith.constant 1 : index
    %1130 = vector.load %arg5[%c3_578, %c1_579, %c1_580] : memref<4x10x10xf32, #tpu.memory_space<vmem>>, vector<1x8x8xf32>
    %1131 = vector.shape_cast %1130 : vector<1x8x8xf32> to vector<8x8xf32>
    %1132 = vector.broadcast %1129 : f32 to vector<8x8xf32>
    %1133 = arith.mulf %1132, %1131 : vector<8x8xf32>
    %1134 = arith.addf %1128, %1133 : vector<8x8xf32>
    %c176 = arith.constant 176 : index
    %1135 = memref.load %arg3[%c176] : memref<288xf32, #tpu.memory_space<smem>>
    %c3_581 = arith.constant 3 : index
    %c1_582 = arith.constant 1 : index
    %c2_583 = arith.constant 2 : index
    %1136 = vector.load %arg5[%c3_581, %c1_582, %c2_583] : memref<4x10x10xf32, #tpu.memory_space<vmem>>, vector<1x8x8xf32>
    %1137 = vector.shape_cast %1136 : vector<1x8x8xf32> to vector<8x8xf32>
    %1138 = vector.broadcast %1135 : f32 to vector<8x8xf32>
    %1139 = arith.mulf %1138, %1137 : vector<8x8xf32>
    %1140 = arith.addf %1134, %1139 : vector<8x8xf32>
    %c177 = arith.constant 177 : index
    %1141 = memref.load %arg3[%c177] : memref<288xf32, #tpu.memory_space<smem>>
    %c3_584 = arith.constant 3 : index
    %c2_585 = arith.constant 2 : index
    %c0_586 = arith.constant 0 : index
    %1142 = vector.load %arg5[%c3_584, %c2_585, %c0_586] : memref<4x10x10xf32, #tpu.memory_space<vmem>>, vector<1x8x8xf32>
    %1143 = vector.shape_cast %1142 : vector<1x8x8xf32> to vector<8x8xf32>
    %1144 = vector.broadcast %1141 : f32 to vector<8x8xf32>
    %1145 = arith.mulf %1144, %1143 : vector<8x8xf32>
    %1146 = arith.addf %1140, %1145 : vector<8x8xf32>
    %c178 = arith.constant 178 : index
    %1147 = memref.load %arg3[%c178] : memref<288xf32, #tpu.memory_space<smem>>
    %c3_587 = arith.constant 3 : index
    %c2_588 = arith.constant 2 : index
    %c1_589 = arith.constant 1 : index
    %1148 = vector.load %arg5[%c3_587, %c2_588, %c1_589] : memref<4x10x10xf32, #tpu.memory_space<vmem>>, vector<1x8x8xf32>
    %1149 = vector.shape_cast %1148 : vector<1x8x8xf32> to vector<8x8xf32>
    %1150 = vector.broadcast %1147 : f32 to vector<8x8xf32>
    %1151 = arith.mulf %1150, %1149 : vector<8x8xf32>
    %1152 = arith.addf %1146, %1151 : vector<8x8xf32>
    %c179 = arith.constant 179 : index
    %1153 = memref.load %arg3[%c179] : memref<288xf32, #tpu.memory_space<smem>>
    %c3_590 = arith.constant 3 : index
    %c2_591 = arith.constant 2 : index
    %c2_592 = arith.constant 2 : index
    %1154 = vector.load %arg5[%c3_590, %c2_591, %c2_592] : memref<4x10x10xf32, #tpu.memory_space<vmem>>, vector<1x8x8xf32>
    %1155 = vector.shape_cast %1154 : vector<1x8x8xf32> to vector<8x8xf32>
    %1156 = vector.broadcast %1153 : f32 to vector<8x8xf32>
    %1157 = arith.mulf %1156, %1155 : vector<8x8xf32>
    %1158 = arith.addf %1152, %1157 : vector<8x8xf32>
    %c0_593 = arith.constant 0 : index
    %c4_594 = arith.constant 4 : index
    %c0_595 = arith.constant 0 : index
    %c0_596 = arith.constant 0 : index
    %1159 = vector.load %arg4[%c0_593, %c4_594, %c0_595, %c0_596] : memref<1x8x8x8xf32, #tpu.memory_space<vmem>>, vector<1x1x8x8xf32>
    %1160 = vector.shape_cast %1159 : vector<1x1x8x8xf32> to vector<8x8xf32>
    %1161 = vector.shape_cast %1158 : vector<8x8xf32> to vector<1x1x8x8xf32>
    tpu.vector_store %arg4[%c0_593, %c4_594, %c0_595, %c0_596], %1161 {strides = array<i32>} : memref<1x8x8x8xf32, #tpu.memory_space<vmem>>, vector<1x1x8x8xf32>,
    %1162 = vector.shape_cast %1158 : vector<8x8xf32> to vector<1x8x8xf32>
    %cst_597 = arith.constant dense<0.000000e+00> : vector<1xf32>
    %1163 = vector.multi_reduction <add>, %1162, %cst_597 [1, 2] : vector<1x8x8xf32> to vector<1xf32>
    %1164 = vector.shape_cast %1163 : vector<1xf32> to vector<1x1x1xf32>
    %1165 = vector.extract %1164[0, 0, 0] : f32 from vector<1x1x1xf32>
    %1166 = arith.addf %935, %1165 : f32
    %1167 = arith.mulf %1158, %1158 : vector<8x8xf32>
    %1168 = vector.shape_cast %1167 : vector<8x8xf32> to vector<1x8x8xf32>
    %cst_598 = arith.constant dense<0.000000e+00> : vector<1xf32>
    %1169 = vector.multi_reduction <add>, %1168, %cst_598 [1, 2] : vector<1x8x8xf32> to vector<1xf32>
    %1170 = vector.shape_cast %1169 : vector<1xf32> to vector<1x1x1xf32>
    %1171 = vector.extract %1170[0, 0, 0] : f32 from vector<1x1x1xf32>
    %1172 = arith.addf %941, %1171 : f32
    %cst_599 = arith.constant 0.000000e+00 : f32
    %1173 = vector.broadcast %cst_599 : f32 to vector<8x8xf32>
    %c180 = arith.constant 180 : index
    %1174 = memref.load %arg3[%c180] : memref<288xf32, #tpu.memory_space<smem>>
    %c0_600 = arith.constant 0 : index
    %c0_601 = arith.constant 0 : index
    %c0_602 = arith.constant 0 : index
    %1175 = vector.load %arg5[%c0_600, %c0_601, %c0_602] : memref<4x10x10xf32, #tpu.memory_space<vmem>>, vector<1x8x8xf32>
    %1176 = vector.shape_cast %1175 : vector<1x8x8xf32> to vector<8x8xf32>
    %1177 = vector.broadcast %1174 : f32 to vector<8x8xf32>
    %1178 = arith.mulf %1177, %1176 : vector<8x8xf32>
    %1179 = arith.addf %1173, %1178 : vector<8x8xf32>
    %c181 = arith.constant 181 : index
    %1180 = memref.load %arg3[%c181] : memref<288xf32, #tpu.memory_space<smem>>
    %c0_603 = arith.constant 0 : index
    %c0_604 = arith.constant 0 : index
    %c1_605 = arith.constant 1 : index
    %1181 = vector.load %arg5[%c0_603, %c0_604, %c1_605] : memref<4x10x10xf32, #tpu.memory_space<vmem>>, vector<1x8x8xf32>
    %1182 = vector.shape_cast %1181 : vector<1x8x8xf32> to vector<8x8xf32>
    %1183 = vector.broadcast %1180 : f32 to vector<8x8xf32>
    %1184 = arith.mulf %1183, %1182 : vector<8x8xf32>
    %1185 = arith.addf %1179, %1184 : vector<8x8xf32>
    %c182 = arith.constant 182 : index
    %1186 = memref.load %arg3[%c182] : memref<288xf32, #tpu.memory_space<smem>>
    %c0_606 = arith.constant 0 : index
    %c0_607 = arith.constant 0 : index
    %c2_608 = arith.constant 2 : index
    %1187 = vector.load %arg5[%c0_606, %c0_607, %c2_608] : memref<4x10x10xf32, #tpu.memory_space<vmem>>, vector<1x8x8xf32>
    %1188 = vector.shape_cast %1187 : vector<1x8x8xf32> to vector<8x8xf32>
    %1189 = vector.broadcast %1186 : f32 to vector<8x8xf32>
    %1190 = arith.mulf %1189, %1188 : vector<8x8xf32>
    %1191 = arith.addf %1185, %1190 : vector<8x8xf32>
    %c183 = arith.constant 183 : index
    %1192 = memref.load %arg3[%c183] : memref<288xf32, #tpu.memory_space<smem>>
    %c0_609 = arith.constant 0 : index
    %c1_610 = arith.constant 1 : index
    %c0_611 = arith.constant 0 : index
    %1193 = vector.load %arg5[%c0_609, %c1_610, %c0_611] : memref<4x10x10xf32, #tpu.memory_space<vmem>>, vector<1x8x8xf32>
    %1194 = vector.shape_cast %1193 : vector<1x8x8xf32> to vector<8x8xf32>
    %1195 = vector.broadcast %1192 : f32 to vector<8x8xf32>
    %1196 = arith.mulf %1195, %1194 : vector<8x8xf32>
    %1197 = arith.addf %1191, %1196 : vector<8x8xf32>
    %c184 = arith.constant 184 : index
    %1198 = memref.load %arg3[%c184] : memref<288xf32, #tpu.memory_space<smem>>
    %c0_612 = arith.constant 0 : index
    %c1_613 = arith.constant 1 : index
    %c1_614 = arith.constant 1 : index
    %1199 = vector.load %arg5[%c0_612, %c1_613, %c1_614] : memref<4x10x10xf32, #tpu.memory_space<vmem>>, vector<1x8x8xf32>
    %1200 = vector.shape_cast %1199 : vector<1x8x8xf32> to vector<8x8xf32>
    %1201 = vector.broadcast %1198 : f32 to vector<8x8xf32>
    %1202 = arith.mulf %1201, %1200 : vector<8x8xf32>
    %1203 = arith.addf %1197, %1202 : vector<8x8xf32>
    %c185 = arith.constant 185 : index
    %1204 = memref.load %arg3[%c185] : memref<288xf32, #tpu.memory_space<smem>>
    %c0_615 = arith.constant 0 : index
    %c1_616 = arith.constant 1 : index
    %c2_617 = arith.constant 2 : index
    %1205 = vector.load %arg5[%c0_615, %c1_616, %c2_617] : memref<4x10x10xf32, #tpu.memory_space<vmem>>, vector<1x8x8xf32>
    %1206 = vector.shape_cast %1205 : vector<1x8x8xf32> to vector<8x8xf32>
    %1207 = vector.broadcast %1204 : f32 to vector<8x8xf32>
    %1208 = arith.mulf %1207, %1206 : vector<8x8xf32>
    %1209 = arith.addf %1203, %1208 : vector<8x8xf32>
    %c186 = arith.constant 186 : index
    %1210 = memref.load %arg3[%c186] : memref<288xf32, #tpu.memory_space<smem>>
    %c0_618 = arith.constant 0 : index
    %c2_619 = arith.constant 2 : index
    %c0_620 = arith.constant 0 : index
    %1211 = vector.load %arg5[%c0_618, %c2_619, %c0_620] : memref<4x10x10xf32, #tpu.memory_space<vmem>>, vector<1x8x8xf32>
    %1212 = vector.shape_cast %1211 : vector<1x8x8xf32> to vector<8x8xf32>
    %1213 = vector.broadcast %1210 : f32 to vector<8x8xf32>
    %1214 = arith.mulf %1213, %1212 : vector<8x8xf32>
    %1215 = arith.addf %1209, %1214 : vector<8x8xf32>
    %c187 = arith.constant 187 : index
    %1216 = memref.load %arg3[%c187] : memref<288xf32, #tpu.memory_space<smem>>
    %c0_621 = arith.constant 0 : index
    %c2_622 = arith.constant 2 : index
    %c1_623 = arith.constant 1 : index
    %1217 = vector.load %arg5[%c0_621, %c2_622, %c1_623] : memref<4x10x10xf32, #tpu.memory_space<vmem>>, vector<1x8x8xf32>
    %1218 = vector.shape_cast %1217 : vector<1x8x8xf32> to vector<8x8xf32>
    %1219 = vector.broadcast %1216 : f32 to vector<8x8xf32>
    %1220 = arith.mulf %1219, %1218 : vector<8x8xf32>
    %1221 = arith.addf %1215, %1220 : vector<8x8xf32>
    %c188 = arith.constant 188 : index
    %1222 = memref.load %arg3[%c188] : memref<288xf32, #tpu.memory_space<smem>>
    %c0_624 = arith.constant 0 : index
    %c2_625 = arith.constant 2 : index
    %c2_626 = arith.constant 2 : index
    %1223 = vector.load %arg5[%c0_624, %c2_625, %c2_626] : memref<4x10x10xf32, #tpu.memory_space<vmem>>, vector<1x8x8xf32>
    %1224 = vector.shape_cast %1223 : vector<1x8x8xf32> to vector<8x8xf32>
    %1225 = vector.broadcast %1222 : f32 to vector<8x8xf32>
    %1226 = arith.mulf %1225, %1224 : vector<8x8xf32>
    %1227 = arith.addf %1221, %1226 : vector<8x8xf32>
    %c189 = arith.constant 189 : index
    %1228 = memref.load %arg3[%c189] : memref<288xf32, #tpu.memory_space<smem>>
    %c1_627 = arith.constant 1 : index
    %c0_628 = arith.constant 0 : index
    %c0_629 = arith.constant 0 : index
    %1229 = vector.load %arg5[%c1_627, %c0_628, %c0_629] : memref<4x10x10xf32, #tpu.memory_space<vmem>>, vector<1x8x8xf32>
    %1230 = vector.shape_cast %1229 : vector<1x8x8xf32> to vector<8x8xf32>
    %1231 = vector.broadcast %1228 : f32 to vector<8x8xf32>
    %1232 = arith.mulf %1231, %1230 : vector<8x8xf32>
    %1233 = arith.addf %1227, %1232 : vector<8x8xf32>
    %c190 = arith.constant 190 : index
    %1234 = memref.load %arg3[%c190] : memref<288xf32, #tpu.memory_space<smem>>
    %c1_630 = arith.constant 1 : index
    %c0_631 = arith.constant 0 : index
    %c1_632 = arith.constant 1 : index
    %1235 = vector.load %arg5[%c1_630, %c0_631, %c1_632] : memref<4x10x10xf32, #tpu.memory_space<vmem>>, vector<1x8x8xf32>
    %1236 = vector.shape_cast %1235 : vector<1x8x8xf32> to vector<8x8xf32>
    %1237 = vector.broadcast %1234 : f32 to vector<8x8xf32>
    %1238 = arith.mulf %1237, %1236 : vector<8x8xf32>
    %1239 = arith.addf %1233, %1238 : vector<8x8xf32>
    %c191 = arith.constant 191 : index
    %1240 = memref.load %arg3[%c191] : memref<288xf32, #tpu.memory_space<smem>>
    %c1_633 = arith.constant 1 : index
    %c0_634 = arith.constant 0 : index
    %c2_635 = arith.constant 2 : index
    %1241 = vector.load %arg5[%c1_633, %c0_634, %c2_635] : memref<4x10x10xf32, #tpu.memory_space<vmem>>, vector<1x8x8xf32>
    %1242 = vector.shape_cast %1241 : vector<1x8x8xf32> to vector<8x8xf32>
    %1243 = vector.broadcast %1240 : f32 to vector<8x8xf32>
    %1244 = arith.mulf %1243, %1242 : vector<8x8xf32>
    %1245 = arith.addf %1239, %1244 : vector<8x8xf32>
    %c192 = arith.constant 192 : index
    %1246 = memref.load %arg3[%c192] : memref<288xf32, #tpu.memory_space<smem>>
    %c1_636 = arith.constant 1 : index
    %c1_637 = arith.constant 1 : index
    %c0_638 = arith.constant 0 : index
    %1247 = vector.load %arg5[%c1_636, %c1_637, %c0_638] : memref<4x10x10xf32, #tpu.memory_space<vmem>>, vector<1x8x8xf32>
    %1248 = vector.shape_cast %1247 : vector<1x8x8xf32> to vector<8x8xf32>
    %1249 = vector.broadcast %1246 : f32 to vector<8x8xf32>
    %1250 = arith.mulf %1249, %1248 : vector<8x8xf32>
    %1251 = arith.addf %1245, %1250 : vector<8x8xf32>
    %c193 = arith.constant 193 : index
    %1252 = memref.load %arg3[%c193] : memref<288xf32, #tpu.memory_space<smem>>
    %c1_639 = arith.constant 1 : index
    %c1_640 = arith.constant 1 : index
    %c1_641 = arith.constant 1 : index
    %1253 = vector.load %arg5[%c1_639, %c1_640, %c1_641] : memref<4x10x10xf32, #tpu.memory_space<vmem>>, vector<1x8x8xf32>
    %1254 = vector.shape_cast %1253 : vector<1x8x8xf32> to vector<8x8xf32>
    %1255 = vector.broadcast %1252 : f32 to vector<8x8xf32>
    %1256 = arith.mulf %1255, %1254 : vector<8x8xf32>
    %1257 = arith.addf %1251, %1256 : vector<8x8xf32>
    %c194 = arith.constant 194 : index
    %1258 = memref.load %arg3[%c194] : memref<288xf32, #tpu.memory_space<smem>>
    %c1_642 = arith.constant 1 : index
    %c1_643 = arith.constant 1 : index
    %c2_644 = arith.constant 2 : index
    %1259 = vector.load %arg5[%c1_642, %c1_643, %c2_644] : memref<4x10x10xf32, #tpu.memory_space<vmem>>, vector<1x8x8xf32>
    %1260 = vector.shape_cast %1259 : vector<1x8x8xf32> to vector<8x8xf32>
    %1261 = vector.broadcast %1258 : f32 to vector<8x8xf32>
    %1262 = arith.mulf %1261, %1260 : vector<8x8xf32>
    %1263 = arith.addf %1257, %1262 : vector<8x8xf32>
    %c195 = arith.constant 195 : index
    %1264 = memref.load %arg3[%c195] : memref<288xf32, #tpu.memory_space<smem>>
    %c1_645 = arith.constant 1 : index
    %c2_646 = arith.constant 2 : index
    %c0_647 = arith.constant 0 : index
    %1265 = vector.load %arg5[%c1_645, %c2_646, %c0_647] : memref<4x10x10xf32, #tpu.memory_space<vmem>>, vector<1x8x8xf32>
    %1266 = vector.shape_cast %1265 : vector<1x8x8xf32> to vector<8x8xf32>
    %1267 = vector.broadcast %1264 : f32 to vector<8x8xf32>
    %1268 = arith.mulf %1267, %1266 : vector<8x8xf32>
    %1269 = arith.addf %1263, %1268 : vector<8x8xf32>
    %c196 = arith.constant 196 : index
    %1270 = memref.load %arg3[%c196] : memref<288xf32, #tpu.memory_space<smem>>
    %c1_648 = arith.constant 1 : index
    %c2_649 = arith.constant 2 : index
    %c1_650 = arith.constant 1 : index
    %1271 = vector.load %arg5[%c1_648, %c2_649, %c1_650] : memref<4x10x10xf32, #tpu.memory_space<vmem>>, vector<1x8x8xf32>
    %1272 = vector.shape_cast %1271 : vector<1x8x8xf32> to vector<8x8xf32>
    %1273 = vector.broadcast %1270 : f32 to vector<8x8xf32>
    %1274 = arith.mulf %1273, %1272 : vector<8x8xf32>
    %1275 = arith.addf %1269, %1274 : vector<8x8xf32>
    %c197 = arith.constant 197 : index
    %1276 = memref.load %arg3[%c197] : memref<288xf32, #tpu.memory_space<smem>>
    %c1_651 = arith.constant 1 : index
    %c2_652 = arith.constant 2 : index
    %c2_653 = arith.constant 2 : index
    %1277 = vector.load %arg5[%c1_651, %c2_652, %c2_653] : memref<4x10x10xf32, #tpu.memory_space<vmem>>, vector<1x8x8xf32>
    %1278 = vector.shape_cast %1277 : vector<1x8x8xf32> to vector<8x8xf32>
    %1279 = vector.broadcast %1276 : f32 to vector<8x8xf32>
    %1280 = arith.mulf %1279, %1278 : vector<8x8xf32>
    %1281 = arith.addf %1275, %1280 : vector<8x8xf32>
    %c198 = arith.constant 198 : index
    %1282 = memref.load %arg3[%c198] : memref<288xf32, #tpu.memory_space<smem>>
    %c2_654 = arith.constant 2 : index
    %c0_655 = arith.constant 0 : index
    %c0_656 = arith.constant 0 : index
    %1283 = vector.load %arg5[%c2_654, %c0_655, %c0_656] : memref<4x10x10xf32, #tpu.memory_space<vmem>>, vector<1x8x8xf32>
    %1284 = vector.shape_cast %1283 : vector<1x8x8xf32> to vector<8x8xf32>
    %1285 = vector.broadcast %1282 : f32 to vector<8x8xf32>
    %1286 = arith.mulf %1285, %1284 : vector<8x8xf32>
    %1287 = arith.addf %1281, %1286 : vector<8x8xf32>
    %c199 = arith.constant 199 : index
    %1288 = memref.load %arg3[%c199] : memref<288xf32, #tpu.memory_space<smem>>
    %c2_657 = arith.constant 2 : index
    %c0_658 = arith.constant 0 : index
    %c1_659 = arith.constant 1 : index
    %1289 = vector.load %arg5[%c2_657, %c0_658, %c1_659] : memref<4x10x10xf32, #tpu.memory_space<vmem>>, vector<1x8x8xf32>
    %1290 = vector.shape_cast %1289 : vector<1x8x8xf32> to vector<8x8xf32>
    %1291 = vector.broadcast %1288 : f32 to vector<8x8xf32>
    %1292 = arith.mulf %1291, %1290 : vector<8x8xf32>
    %1293 = arith.addf %1287, %1292 : vector<8x8xf32>
    %c200 = arith.constant 200 : index
    %1294 = memref.load %arg3[%c200] : memref<288xf32, #tpu.memory_space<smem>>
    %c2_660 = arith.constant 2 : index
    %c0_661 = arith.constant 0 : index
    %c2_662 = arith.constant 2 : index
    %1295 = vector.load %arg5[%c2_660, %c0_661, %c2_662] : memref<4x10x10xf32, #tpu.memory_space<vmem>>, vector<1x8x8xf32>
    %1296 = vector.shape_cast %1295 : vector<1x8x8xf32> to vector<8x8xf32>
    %1297 = vector.broadcast %1294 : f32 to vector<8x8xf32>
    %1298 = arith.mulf %1297, %1296 : vector<8x8xf32>
    %1299 = arith.addf %1293, %1298 : vector<8x8xf32>
    %c201 = arith.constant 201 : index
    %1300 = memref.load %arg3[%c201] : memref<288xf32, #tpu.memory_space<smem>>
    %c2_663 = arith.constant 2 : index
    %c1_664 = arith.constant 1 : index
    %c0_665 = arith.constant 0 : index
    %1301 = vector.load %arg5[%c2_663, %c1_664, %c0_665] : memref<4x10x10xf32, #tpu.memory_space<vmem>>, vector<1x8x8xf32>
    %1302 = vector.shape_cast %1301 : vector<1x8x8xf32> to vector<8x8xf32>
    %1303 = vector.broadcast %1300 : f32 to vector<8x8xf32>
    %1304 = arith.mulf %1303, %1302 : vector<8x8xf32>
    %1305 = arith.addf %1299, %1304 : vector<8x8xf32>
    %c202 = arith.constant 202 : index
    %1306 = memref.load %arg3[%c202] : memref<288xf32, #tpu.memory_space<smem>>
    %c2_666 = arith.constant 2 : index
    %c1_667 = arith.constant 1 : index
    %c1_668 = arith.constant 1 : index
    %1307 = vector.load %arg5[%c2_666, %c1_667, %c1_668] : memref<4x10x10xf32, #tpu.memory_space<vmem>>, vector<1x8x8xf32>
    %1308 = vector.shape_cast %1307 : vector<1x8x8xf32> to vector<8x8xf32>
    %1309 = vector.broadcast %1306 : f32 to vector<8x8xf32>
    %1310 = arith.mulf %1309, %1308 : vector<8x8xf32>
    %1311 = arith.addf %1305, %1310 : vector<8x8xf32>
    %c203 = arith.constant 203 : index
    %1312 = memref.load %arg3[%c203] : memref<288xf32, #tpu.memory_space<smem>>
    %c2_669 = arith.constant 2 : index
    %c1_670 = arith.constant 1 : index
    %c2_671 = arith.constant 2 : index
    %1313 = vector.load %arg5[%c2_669, %c1_670, %c2_671] : memref<4x10x10xf32, #tpu.memory_space<vmem>>, vector<1x8x8xf32>
    %1314 = vector.shape_cast %1313 : vector<1x8x8xf32> to vector<8x8xf32>
    %1315 = vector.broadcast %1312 : f32 to vector<8x8xf32>
    %1316 = arith.mulf %1315, %1314 : vector<8x8xf32>
    %1317 = arith.addf %1311, %1316 : vector<8x8xf32>
    %c204 = arith.constant 204 : index
    %1318 = memref.load %arg3[%c204] : memref<288xf32, #tpu.memory_space<smem>>
    %c2_672 = arith.constant 2 : index
    %c2_673 = arith.constant 2 : index
    %c0_674 = arith.constant 0 : index
    %1319 = vector.load %arg5[%c2_672, %c2_673, %c0_674] : memref<4x10x10xf32, #tpu.memory_space<vmem>>, vector<1x8x8xf32>
    %1320 = vector.shape_cast %1319 : vector<1x8x8xf32> to vector<8x8xf32>
    %1321 = vector.broadcast %1318 : f32 to vector<8x8xf32>
    %1322 = arith.mulf %1321, %1320 : vector<8x8xf32>
    %1323 = arith.addf %1317, %1322 : vector<8x8xf32>
    %c205 = arith.constant 205 : index
    %1324 = memref.load %arg3[%c205] : memref<288xf32, #tpu.memory_space<smem>>
    %c2_675 = arith.constant 2 : index
    %c2_676 = arith.constant 2 : index
    %c1_677 = arith.constant 1 : index
    %1325 = vector.load %arg5[%c2_675, %c2_676, %c1_677] : memref<4x10x10xf32, #tpu.memory_space<vmem>>, vector<1x8x8xf32>
    %1326 = vector.shape_cast %1325 : vector<1x8x8xf32> to vector<8x8xf32>
    %1327 = vector.broadcast %1324 : f32 to vector<8x8xf32>
    %1328 = arith.mulf %1327, %1326 : vector<8x8xf32>
    %1329 = arith.addf %1323, %1328 : vector<8x8xf32>
    %c206 = arith.constant 206 : index
    %1330 = memref.load %arg3[%c206] : memref<288xf32, #tpu.memory_space<smem>>
    %c2_678 = arith.constant 2 : index
    %c2_679 = arith.constant 2 : index
    %c2_680 = arith.constant 2 : index
    %1331 = vector.load %arg5[%c2_678, %c2_679, %c2_680] : memref<4x10x10xf32, #tpu.memory_space<vmem>>, vector<1x8x8xf32>
    %1332 = vector.shape_cast %1331 : vector<1x8x8xf32> to vector<8x8xf32>
    %1333 = vector.broadcast %1330 : f32 to vector<8x8xf32>
    %1334 = arith.mulf %1333, %1332 : vector<8x8xf32>
    %1335 = arith.addf %1329, %1334 : vector<8x8xf32>
    %c207 = arith.constant 207 : index
    %1336 = memref.load %arg3[%c207] : memref<288xf32, #tpu.memory_space<smem>>
    %c3_681 = arith.constant 3 : index
    %c0_682 = arith.constant 0 : index
    %c0_683 = arith.constant 0 : index
    %1337 = vector.load %arg5[%c3_681, %c0_682, %c0_683] : memref<4x10x10xf32, #tpu.memory_space<vmem>>, vector<1x8x8xf32>
    %1338 = vector.shape_cast %1337 : vector<1x8x8xf32> to vector<8x8xf32>
    %1339 = vector.broadcast %1336 : f32 to vector<8x8xf32>
    %1340 = arith.mulf %1339, %1338 : vector<8x8xf32>
    %1341 = arith.addf %1335, %1340 : vector<8x8xf32>
    %c208 = arith.constant 208 : index
    %1342 = memref.load %arg3[%c208] : memref<288xf32, #tpu.memory_space<smem>>
    %c3_684 = arith.constant 3 : index
    %c0_685 = arith.constant 0 : index
    %c1_686 = arith.constant 1 : index
    %1343 = vector.load %arg5[%c3_684, %c0_685, %c1_686] : memref<4x10x10xf32, #tpu.memory_space<vmem>>, vector<1x8x8xf32>
    %1344 = vector.shape_cast %1343 : vector<1x8x8xf32> to vector<8x8xf32>
    %1345 = vector.broadcast %1342 : f32 to vector<8x8xf32>
    %1346 = arith.mulf %1345, %1344 : vector<8x8xf32>
    %1347 = arith.addf %1341, %1346 : vector<8x8xf32>
    %c209 = arith.constant 209 : index
    %1348 = memref.load %arg3[%c209] : memref<288xf32, #tpu.memory_space<smem>>
    %c3_687 = arith.constant 3 : index
    %c0_688 = arith.constant 0 : index
    %c2_689 = arith.constant 2 : index
    %1349 = vector.load %arg5[%c3_687, %c0_688, %c2_689] : memref<4x10x10xf32, #tpu.memory_space<vmem>>, vector<1x8x8xf32>
    %1350 = vector.shape_cast %1349 : vector<1x8x8xf32> to vector<8x8xf32>
    %1351 = vector.broadcast %1348 : f32 to vector<8x8xf32>
    %1352 = arith.mulf %1351, %1350 : vector<8x8xf32>
    %1353 = arith.addf %1347, %1352 : vector<8x8xf32>
    %c210 = arith.constant 210 : index
    %1354 = memref.load %arg3[%c210] : memref<288xf32, #tpu.memory_space<smem>>
    %c3_690 = arith.constant 3 : index
    %c1_691 = arith.constant 1 : index
    %c0_692 = arith.constant 0 : index
    %1355 = vector.load %arg5[%c3_690, %c1_691, %c0_692] : memref<4x10x10xf32, #tpu.memory_space<vmem>>, vector<1x8x8xf32>
    %1356 = vector.shape_cast %1355 : vector<1x8x8xf32> to vector<8x8xf32>
    %1357 = vector.broadcast %1354 : f32 to vector<8x8xf32>
    %1358 = arith.mulf %1357, %1356 : vector<8x8xf32>
    %1359 = arith.addf %1353, %1358 : vector<8x8xf32>
    %c211 = arith.constant 211 : index
    %1360 = memref.load %arg3[%c211] : memref<288xf32, #tpu.memory_space<smem>>
    %c3_693 = arith.constant 3 : index
    %c1_694 = arith.constant 1 : index
    %c1_695 = arith.constant 1 : index
    %1361 = vector.load %arg5[%c3_693, %c1_694, %c1_695] : memref<4x10x10xf32, #tpu.memory_space<vmem>>, vector<1x8x8xf32>
    %1362 = vector.shape_cast %1361 : vector<1x8x8xf32> to vector<8x8xf32>
    %1363 = vector.broadcast %1360 : f32 to vector<8x8xf32>
    %1364 = arith.mulf %1363, %1362 : vector<8x8xf32>
    %1365 = arith.addf %1359, %1364 : vector<8x8xf32>
    %c212 = arith.constant 212 : index
    %1366 = memref.load %arg3[%c212] : memref<288xf32, #tpu.memory_space<smem>>
    %c3_696 = arith.constant 3 : index
    %c1_697 = arith.constant 1 : index
    %c2_698 = arith.constant 2 : index
    %1367 = vector.load %arg5[%c3_696, %c1_697, %c2_698] : memref<4x10x10xf32, #tpu.memory_space<vmem>>, vector<1x8x8xf32>
    %1368 = vector.shape_cast %1367 : vector<1x8x8xf32> to vector<8x8xf32>
    %1369 = vector.broadcast %1366 : f32 to vector<8x8xf32>
    %1370 = arith.mulf %1369, %1368 : vector<8x8xf32>
    %1371 = arith.addf %1365, %1370 : vector<8x8xf32>
    %c213 = arith.constant 213 : index
    %1372 = memref.load %arg3[%c213] : memref<288xf32, #tpu.memory_space<smem>>
    %c3_699 = arith.constant 3 : index
    %c2_700 = arith.constant 2 : index
    %c0_701 = arith.constant 0 : index
    %1373 = vector.load %arg5[%c3_699, %c2_700, %c0_701] : memref<4x10x10xf32, #tpu.memory_space<vmem>>, vector<1x8x8xf32>
    %1374 = vector.shape_cast %1373 : vector<1x8x8xf32> to vector<8x8xf32>
    %1375 = vector.broadcast %1372 : f32 to vector<8x8xf32>
    %1376 = arith.mulf %1375, %1374 : vector<8x8xf32>
    %1377 = arith.addf %1371, %1376 : vector<8x8xf32>
    %c214 = arith.constant 214 : index
    %1378 = memref.load %arg3[%c214] : memref<288xf32, #tpu.memory_space<smem>>
    %c3_702 = arith.constant 3 : index
    %c2_703 = arith.constant 2 : index
    %c1_704 = arith.constant 1 : index
    %1379 = vector.load %arg5[%c3_702, %c2_703, %c1_704] : memref<4x10x10xf32, #tpu.memory_space<vmem>>, vector<1x8x8xf32>
    %1380 = vector.shape_cast %1379 : vector<1x8x8xf32> to vector<8x8xf32>
    %1381 = vector.broadcast %1378 : f32 to vector<8x8xf32>
    %1382 = arith.mulf %1381, %1380 : vector<8x8xf32>
    %1383 = arith.addf %1377, %1382 : vector<8x8xf32>
    %c215 = arith.constant 215 : index
    %1384 = memref.load %arg3[%c215] : memref<288xf32, #tpu.memory_space<smem>>
    %c3_705 = arith.constant 3 : index
    %c2_706 = arith.constant 2 : index
    %c2_707 = arith.constant 2 : index
    %1385 = vector.load %arg5[%c3_705, %c2_706, %c2_707] : memref<4x10x10xf32, #tpu.memory_space<vmem>>, vector<1x8x8xf32>
    %1386 = vector.shape_cast %1385 : vector<1x8x8xf32> to vector<8x8xf32>
    %1387 = vector.broadcast %1384 : f32 to vector<8x8xf32>
    %1388 = arith.mulf %1387, %1386 : vector<8x8xf32>
    %1389 = arith.addf %1383, %1388 : vector<8x8xf32>
    %c0_708 = arith.constant 0 : index
    %c5_709 = arith.constant 5 : index
    %c0_710 = arith.constant 0 : index
    %c0_711 = arith.constant 0 : index
    %1390 = vector.load %arg4[%c0_708, %c5_709, %c0_710, %c0_711] : memref<1x8x8x8xf32, #tpu.memory_space<vmem>>, vector<1x1x8x8xf32>
    %1391 = vector.shape_cast %1390 : vector<1x1x8x8xf32> to vector<8x8xf32>
    %1392 = vector.shape_cast %1389 : vector<8x8xf32> to vector<1x1x8x8xf32>
    tpu.vector_store %arg4[%c0_708, %c5_709, %c0_710, %c0_711], %1392 {strides = array<i32>} : memref<1x8x8x8xf32, #tpu.memory_space<vmem>>, vector<1x1x8x8xf32>,
    %1393 = vector.shape_cast %1389 : vector<8x8xf32> to vector<1x8x8xf32>
    %cst_712 = arith.constant dense<0.000000e+00> : vector<1xf32>
    %1394 = vector.multi_reduction <add>, %1393, %cst_712 [1, 2] : vector<1x8x8xf32> to vector<1xf32>
    %1395 = vector.shape_cast %1394 : vector<1xf32> to vector<1x1x1xf32>
    %1396 = vector.extract %1395[0, 0, 0] : f32 from vector<1x1x1xf32>
    %1397 = arith.addf %1166, %1396 : f32
    %1398 = arith.mulf %1389, %1389 : vector<8x8xf32>
    %1399 = vector.shape_cast %1398 : vector<8x8xf32> to vector<1x8x8xf32>
    %cst_713 = arith.constant dense<0.000000e+00> : vector<1xf32>
    %1400 = vector.multi_reduction <add>, %1399, %cst_713 [1, 2] : vector<1x8x8xf32> to vector<1xf32>
    %1401 = vector.shape_cast %1400 : vector<1xf32> to vector<1x1x1xf32>
    %1402 = vector.extract %1401[0, 0, 0] : f32 from vector<1x1x1xf32>
    %1403 = arith.addf %1172, %1402 : f32
    %cst_714 = arith.constant 0.000000e+00 : f32
    %1404 = vector.broadcast %cst_714 : f32 to vector<8x8xf32>
    %c216 = arith.constant 216 : index
    %1405 = memref.load %arg3[%c216] : memref<288xf32, #tpu.memory_space<smem>>
    %c0_715 = arith.constant 0 : index
    %c0_716 = arith.constant 0 : index
    %c0_717 = arith.constant 0 : index
    %1406 = vector.load %arg5[%c0_715, %c0_716, %c0_717] : memref<4x10x10xf32, #tpu.memory_space<vmem>>, vector<1x8x8xf32>
    %1407 = vector.shape_cast %1406 : vector<1x8x8xf32> to vector<8x8xf32>
    %1408 = vector.broadcast %1405 : f32 to vector<8x8xf32>
    %1409 = arith.mulf %1408, %1407 : vector<8x8xf32>
    %1410 = arith.addf %1404, %1409 : vector<8x8xf32>
    %c217 = arith.constant 217 : index
    %1411 = memref.load %arg3[%c217] : memref<288xf32, #tpu.memory_space<smem>>
    %c0_718 = arith.constant 0 : index
    %c0_719 = arith.constant 0 : index
    %c1_720 = arith.constant 1 : index
    %1412 = vector.load %arg5[%c0_718, %c0_719, %c1_720] : memref<4x10x10xf32, #tpu.memory_space<vmem>>, vector<1x8x8xf32>
    %1413 = vector.shape_cast %1412 : vector<1x8x8xf32> to vector<8x8xf32>
    %1414 = vector.broadcast %1411 : f32 to vector<8x8xf32>
    %1415 = arith.mulf %1414, %1413 : vector<8x8xf32>
    %1416 = arith.addf %1410, %1415 : vector<8x8xf32>
    %c218 = arith.constant 218 : index
    %1417 = memref.load %arg3[%c218] : memref<288xf32, #tpu.memory_space<smem>>
    %c0_721 = arith.constant 0 : index
    %c0_722 = arith.constant 0 : index
    %c2_723 = arith.constant 2 : index
    %1418 = vector.load %arg5[%c0_721, %c0_722, %c2_723] : memref<4x10x10xf32, #tpu.memory_space<vmem>>, vector<1x8x8xf32>
    %1419 = vector.shape_cast %1418 : vector<1x8x8xf32> to vector<8x8xf32>
    %1420 = vector.broadcast %1417 : f32 to vector<8x8xf32>
    %1421 = arith.mulf %1420, %1419 : vector<8x8xf32>
    %1422 = arith.addf %1416, %1421 : vector<8x8xf32>
    %c219 = arith.constant 219 : index
    %1423 = memref.load %arg3[%c219] : memref<288xf32, #tpu.memory_space<smem>>
    %c0_724 = arith.constant 0 : index
    %c1_725 = arith.constant 1 : index
    %c0_726 = arith.constant 0 : index
    %1424 = vector.load %arg5[%c0_724, %c1_725, %c0_726] : memref<4x10x10xf32, #tpu.memory_space<vmem>>, vector<1x8x8xf32>
    %1425 = vector.shape_cast %1424 : vector<1x8x8xf32> to vector<8x8xf32>
    %1426 = vector.broadcast %1423 : f32 to vector<8x8xf32>
    %1427 = arith.mulf %1426, %1425 : vector<8x8xf32>
    %1428 = arith.addf %1422, %1427 : vector<8x8xf32>
    %c220 = arith.constant 220 : index
    %1429 = memref.load %arg3[%c220] : memref<288xf32, #tpu.memory_space<smem>>
    %c0_727 = arith.constant 0 : index
    %c1_728 = arith.constant 1 : index
    %c1_729 = arith.constant 1 : index
    %1430 = vector.load %arg5[%c0_727, %c1_728, %c1_729] : memref<4x10x10xf32, #tpu.memory_space<vmem>>, vector<1x8x8xf32>
    %1431 = vector.shape_cast %1430 : vector<1x8x8xf32> to vector<8x8xf32>
    %1432 = vector.broadcast %1429 : f32 to vector<8x8xf32>
    %1433 = arith.mulf %1432, %1431 : vector<8x8xf32>
    %1434 = arith.addf %1428, %1433 : vector<8x8xf32>
    %c221 = arith.constant 221 : index
    %1435 = memref.load %arg3[%c221] : memref<288xf32, #tpu.memory_space<smem>>
    %c0_730 = arith.constant 0 : index
    %c1_731 = arith.constant 1 : index
    %c2_732 = arith.constant 2 : index
    %1436 = vector.load %arg5[%c0_730, %c1_731, %c2_732] : memref<4x10x10xf32, #tpu.memory_space<vmem>>, vector<1x8x8xf32>
    %1437 = vector.shape_cast %1436 : vector<1x8x8xf32> to vector<8x8xf32>
    %1438 = vector.broadcast %1435 : f32 to vector<8x8xf32>
    %1439 = arith.mulf %1438, %1437 : vector<8x8xf32>
    %1440 = arith.addf %1434, %1439 : vector<8x8xf32>
    %c222 = arith.constant 222 : index
    %1441 = memref.load %arg3[%c222] : memref<288xf32, #tpu.memory_space<smem>>
    %c0_733 = arith.constant 0 : index
    %c2_734 = arith.constant 2 : index
    %c0_735 = arith.constant 0 : index
    %1442 = vector.load %arg5[%c0_733, %c2_734, %c0_735] : memref<4x10x10xf32, #tpu.memory_space<vmem>>, vector<1x8x8xf32>
    %1443 = vector.shape_cast %1442 : vector<1x8x8xf32> to vector<8x8xf32>
    %1444 = vector.broadcast %1441 : f32 to vector<8x8xf32>
    %1445 = arith.mulf %1444, %1443 : vector<8x8xf32>
    %1446 = arith.addf %1440, %1445 : vector<8x8xf32>
    %c223 = arith.constant 223 : index
    %1447 = memref.load %arg3[%c223] : memref<288xf32, #tpu.memory_space<smem>>
    %c0_736 = arith.constant 0 : index
    %c2_737 = arith.constant 2 : index
    %c1_738 = arith.constant 1 : index
    %1448 = vector.load %arg5[%c0_736, %c2_737, %c1_738] : memref<4x10x10xf32, #tpu.memory_space<vmem>>, vector<1x8x8xf32>
    %1449 = vector.shape_cast %1448 : vector<1x8x8xf32> to vector<8x8xf32>
    %1450 = vector.broadcast %1447 : f32 to vector<8x8xf32>
    %1451 = arith.mulf %1450, %1449 : vector<8x8xf32>
    %1452 = arith.addf %1446, %1451 : vector<8x8xf32>
    %c224 = arith.constant 224 : index
    %1453 = memref.load %arg3[%c224] : memref<288xf32, #tpu.memory_space<smem>>
    %c0_739 = arith.constant 0 : index
    %c2_740 = arith.constant 2 : index
    %c2_741 = arith.constant 2 : index
    %1454 = vector.load %arg5[%c0_739, %c2_740, %c2_741] : memref<4x10x10xf32, #tpu.memory_space<vmem>>, vector<1x8x8xf32>
    %1455 = vector.shape_cast %1454 : vector<1x8x8xf32> to vector<8x8xf32>
    %1456 = vector.broadcast %1453 : f32 to vector<8x8xf32>
    %1457 = arith.mulf %1456, %1455 : vector<8x8xf32>
    %1458 = arith.addf %1452, %1457 : vector<8x8xf32>
    %c225 = arith.constant 225 : index
    %1459 = memref.load %arg3[%c225] : memref<288xf32, #tpu.memory_space<smem>>
    %c1_742 = arith.constant 1 : index
    %c0_743 = arith.constant 0 : index
    %c0_744 = arith.constant 0 : index
    %1460 = vector.load %arg5[%c1_742, %c0_743, %c0_744] : memref<4x10x10xf32, #tpu.memory_space<vmem>>, vector<1x8x8xf32>
    %1461 = vector.shape_cast %1460 : vector<1x8x8xf32> to vector<8x8xf32>
    %1462 = vector.broadcast %1459 : f32 to vector<8x8xf32>
    %1463 = arith.mulf %1462, %1461 : vector<8x8xf32>
    %1464 = arith.addf %1458, %1463 : vector<8x8xf32>
    %c226 = arith.constant 226 : index
    %1465 = memref.load %arg3[%c226] : memref<288xf32, #tpu.memory_space<smem>>
    %c1_745 = arith.constant 1 : index
    %c0_746 = arith.constant 0 : index
    %c1_747 = arith.constant 1 : index
    %1466 = vector.load %arg5[%c1_745, %c0_746, %c1_747] : memref<4x10x10xf32, #tpu.memory_space<vmem>>, vector<1x8x8xf32>
    %1467 = vector.shape_cast %1466 : vector<1x8x8xf32> to vector<8x8xf32>
    %1468 = vector.broadcast %1465 : f32 to vector<8x8xf32>
    %1469 = arith.mulf %1468, %1467 : vector<8x8xf32>
    %1470 = arith.addf %1464, %1469 : vector<8x8xf32>
    %c227 = arith.constant 227 : index
    %1471 = memref.load %arg3[%c227] : memref<288xf32, #tpu.memory_space<smem>>
    %c1_748 = arith.constant 1 : index
    %c0_749 = arith.constant 0 : index
    %c2_750 = arith.constant 2 : index
    %1472 = vector.load %arg5[%c1_748, %c0_749, %c2_750] : memref<4x10x10xf32, #tpu.memory_space<vmem>>, vector<1x8x8xf32>
    %1473 = vector.shape_cast %1472 : vector<1x8x8xf32> to vector<8x8xf32>
    %1474 = vector.broadcast %1471 : f32 to vector<8x8xf32>
    %1475 = arith.mulf %1474, %1473 : vector<8x8xf32>
    %1476 = arith.addf %1470, %1475 : vector<8x8xf32>
    %c228 = arith.constant 228 : index
    %1477 = memref.load %arg3[%c228] : memref<288xf32, #tpu.memory_space<smem>>
    %c1_751 = arith.constant 1 : index
    %c1_752 = arith.constant 1 : index
    %c0_753 = arith.constant 0 : index
    %1478 = vector.load %arg5[%c1_751, %c1_752, %c0_753] : memref<4x10x10xf32, #tpu.memory_space<vmem>>, vector<1x8x8xf32>
    %1479 = vector.shape_cast %1478 : vector<1x8x8xf32> to vector<8x8xf32>
    %1480 = vector.broadcast %1477 : f32 to vector<8x8xf32>
    %1481 = arith.mulf %1480, %1479 : vector<8x8xf32>
    %1482 = arith.addf %1476, %1481 : vector<8x8xf32>
    %c229 = arith.constant 229 : index
    %1483 = memref.load %arg3[%c229] : memref<288xf32, #tpu.memory_space<smem>>
    %c1_754 = arith.constant 1 : index
    %c1_755 = arith.constant 1 : index
    %c1_756 = arith.constant 1 : index
    %1484 = vector.load %arg5[%c1_754, %c1_755, %c1_756] : memref<4x10x10xf32, #tpu.memory_space<vmem>>, vector<1x8x8xf32>
    %1485 = vector.shape_cast %1484 : vector<1x8x8xf32> to vector<8x8xf32>
    %1486 = vector.broadcast %1483 : f32 to vector<8x8xf32>
    %1487 = arith.mulf %1486, %1485 : vector<8x8xf32>
    %1488 = arith.addf %1482, %1487 : vector<8x8xf32>
    %c230 = arith.constant 230 : index
    %1489 = memref.load %arg3[%c230] : memref<288xf32, #tpu.memory_space<smem>>
    %c1_757 = arith.constant 1 : index
    %c1_758 = arith.constant 1 : index
    %c2_759 = arith.constant 2 : index
    %1490 = vector.load %arg5[%c1_757, %c1_758, %c2_759] : memref<4x10x10xf32, #tpu.memory_space<vmem>>, vector<1x8x8xf32>
    %1491 = vector.shape_cast %1490 : vector<1x8x8xf32> to vector<8x8xf32>
    %1492 = vector.broadcast %1489 : f32 to vector<8x8xf32>
    %1493 = arith.mulf %1492, %1491 : vector<8x8xf32>
    %1494 = arith.addf %1488, %1493 : vector<8x8xf32>
    %c231 = arith.constant 231 : index
    %1495 = memref.load %arg3[%c231] : memref<288xf32, #tpu.memory_space<smem>>
    %c1_760 = arith.constant 1 : index
    %c2_761 = arith.constant 2 : index
    %c0_762 = arith.constant 0 : index
    %1496 = vector.load %arg5[%c1_760, %c2_761, %c0_762] : memref<4x10x10xf32, #tpu.memory_space<vmem>>, vector<1x8x8xf32>
    %1497 = vector.shape_cast %1496 : vector<1x8x8xf32> to vector<8x8xf32>
    %1498 = vector.broadcast %1495 : f32 to vector<8x8xf32>
    %1499 = arith.mulf %1498, %1497 : vector<8x8xf32>
    %1500 = arith.addf %1494, %1499 : vector<8x8xf32>
    %c232 = arith.constant 232 : index
    %1501 = memref.load %arg3[%c232] : memref<288xf32, #tpu.memory_space<smem>>
    %c1_763 = arith.constant 1 : index
    %c2_764 = arith.constant 2 : index
    %c1_765 = arith.constant 1 : index
    %1502 = vector.load %arg5[%c1_763, %c2_764, %c1_765] : memref<4x10x10xf32, #tpu.memory_space<vmem>>, vector<1x8x8xf32>
    %1503 = vector.shape_cast %1502 : vector<1x8x8xf32> to vector<8x8xf32>
    %1504 = vector.broadcast %1501 : f32 to vector<8x8xf32>
    %1505 = arith.mulf %1504, %1503 : vector<8x8xf32>
    %1506 = arith.addf %1500, %1505 : vector<8x8xf32>
    %c233 = arith.constant 233 : index
    %1507 = memref.load %arg3[%c233] : memref<288xf32, #tpu.memory_space<smem>>
    %c1_766 = arith.constant 1 : index
    %c2_767 = arith.constant 2 : index
    %c2_768 = arith.constant 2 : index
    %1508 = vector.load %arg5[%c1_766, %c2_767, %c2_768] : memref<4x10x10xf32, #tpu.memory_space<vmem>>, vector<1x8x8xf32>
    %1509 = vector.shape_cast %1508 : vector<1x8x8xf32> to vector<8x8xf32>
    %1510 = vector.broadcast %1507 : f32 to vector<8x8xf32>
    %1511 = arith.mulf %1510, %1509 : vector<8x8xf32>
    %1512 = arith.addf %1506, %1511 : vector<8x8xf32>
    %c234 = arith.constant 234 : index
    %1513 = memref.load %arg3[%c234] : memref<288xf32, #tpu.memory_space<smem>>
    %c2_769 = arith.constant 2 : index
    %c0_770 = arith.constant 0 : index
    %c0_771 = arith.constant 0 : index
    %1514 = vector.load %arg5[%c2_769, %c0_770, %c0_771] : memref<4x10x10xf32, #tpu.memory_space<vmem>>, vector<1x8x8xf32>
    %1515 = vector.shape_cast %1514 : vector<1x8x8xf32> to vector<8x8xf32>
    %1516 = vector.broadcast %1513 : f32 to vector<8x8xf32>
    %1517 = arith.mulf %1516, %1515 : vector<8x8xf32>
    %1518 = arith.addf %1512, %1517 : vector<8x8xf32>
    %c235 = arith.constant 235 : index
    %1519 = memref.load %arg3[%c235] : memref<288xf32, #tpu.memory_space<smem>>
    %c2_772 = arith.constant 2 : index
    %c0_773 = arith.constant 0 : index
    %c1_774 = arith.constant 1 : index
    %1520 = vector.load %arg5[%c2_772, %c0_773, %c1_774] : memref<4x10x10xf32, #tpu.memory_space<vmem>>, vector<1x8x8xf32>
    %1521 = vector.shape_cast %1520 : vector<1x8x8xf32> to vector<8x8xf32>
    %1522 = vector.broadcast %1519 : f32 to vector<8x8xf32>
    %1523 = arith.mulf %1522, %1521 : vector<8x8xf32>
    %1524 = arith.addf %1518, %1523 : vector<8x8xf32>
    %c236 = arith.constant 236 : index
    %1525 = memref.load %arg3[%c236] : memref<288xf32, #tpu.memory_space<smem>>
    %c2_775 = arith.constant 2 : index
    %c0_776 = arith.constant 0 : index
    %c2_777 = arith.constant 2 : index
    %1526 = vector.load %arg5[%c2_775, %c0_776, %c2_777] : memref<4x10x10xf32, #tpu.memory_space<vmem>>, vector<1x8x8xf32>
    %1527 = vector.shape_cast %1526 : vector<1x8x8xf32> to vector<8x8xf32>
    %1528 = vector.broadcast %1525 : f32 to vector<8x8xf32>
    %1529 = arith.mulf %1528, %1527 : vector<8x8xf32>
    %1530 = arith.addf %1524, %1529 : vector<8x8xf32>
    %c237 = arith.constant 237 : index
    %1531 = memref.load %arg3[%c237] : memref<288xf32, #tpu.memory_space<smem>>
    %c2_778 = arith.constant 2 : index
    %c1_779 = arith.constant 1 : index
    %c0_780 = arith.constant 0 : index
    %1532 = vector.load %arg5[%c2_778, %c1_779, %c0_780] : memref<4x10x10xf32, #tpu.memory_space<vmem>>, vector<1x8x8xf32>
    %1533 = vector.shape_cast %1532 : vector<1x8x8xf32> to vector<8x8xf32>
    %1534 = vector.broadcast %1531 : f32 to vector<8x8xf32>
    %1535 = arith.mulf %1534, %1533 : vector<8x8xf32>
    %1536 = arith.addf %1530, %1535 : vector<8x8xf32>
    %c238 = arith.constant 238 : index
    %1537 = memref.load %arg3[%c238] : memref<288xf32, #tpu.memory_space<smem>>
    %c2_781 = arith.constant 2 : index
    %c1_782 = arith.constant 1 : index
    %c1_783 = arith.constant 1 : index
    %1538 = vector.load %arg5[%c2_781, %c1_782, %c1_783] : memref<4x10x10xf32, #tpu.memory_space<vmem>>, vector<1x8x8xf32>
    %1539 = vector.shape_cast %1538 : vector<1x8x8xf32> to vector<8x8xf32>
    %1540 = vector.broadcast %1537 : f32 to vector<8x8xf32>
    %1541 = arith.mulf %1540, %1539 : vector<8x8xf32>
    %1542 = arith.addf %1536, %1541 : vector<8x8xf32>
    %c239 = arith.constant 239 : index
    %1543 = memref.load %arg3[%c239] : memref<288xf32, #tpu.memory_space<smem>>
    %c2_784 = arith.constant 2 : index
    %c1_785 = arith.constant 1 : index
    %c2_786 = arith.constant 2 : index
    %1544 = vector.load %arg5[%c2_784, %c1_785, %c2_786] : memref<4x10x10xf32, #tpu.memory_space<vmem>>, vector<1x8x8xf32>
    %1545 = vector.shape_cast %1544 : vector<1x8x8xf32> to vector<8x8xf32>
    %1546 = vector.broadcast %1543 : f32 to vector<8x8xf32>
    %1547 = arith.mulf %1546, %1545 : vector<8x8xf32>
    %1548 = arith.addf %1542, %1547 : vector<8x8xf32>
    %c240 = arith.constant 240 : index
    %1549 = memref.load %arg3[%c240] : memref<288xf32, #tpu.memory_space<smem>>
    %c2_787 = arith.constant 2 : index
    %c2_788 = arith.constant 2 : index
    %c0_789 = arith.constant 0 : index
    %1550 = vector.load %arg5[%c2_787, %c2_788, %c0_789] : memref<4x10x10xf32, #tpu.memory_space<vmem>>, vector<1x8x8xf32>
    %1551 = vector.shape_cast %1550 : vector<1x8x8xf32> to vector<8x8xf32>
    %1552 = vector.broadcast %1549 : f32 to vector<8x8xf32>
    %1553 = arith.mulf %1552, %1551 : vector<8x8xf32>
    %1554 = arith.addf %1548, %1553 : vector<8x8xf32>
    %c241 = arith.constant 241 : index
    %1555 = memref.load %arg3[%c241] : memref<288xf32, #tpu.memory_space<smem>>
    %c2_790 = arith.constant 2 : index
    %c2_791 = arith.constant 2 : index
    %c1_792 = arith.constant 1 : index
    %1556 = vector.load %arg5[%c2_790, %c2_791, %c1_792] : memref<4x10x10xf32, #tpu.memory_space<vmem>>, vector<1x8x8xf32>
    %1557 = vector.shape_cast %1556 : vector<1x8x8xf32> to vector<8x8xf32>
    %1558 = vector.broadcast %1555 : f32 to vector<8x8xf32>
    %1559 = arith.mulf %1558, %1557 : vector<8x8xf32>
    %1560 = arith.addf %1554, %1559 : vector<8x8xf32>
    %c242 = arith.constant 242 : index
    %1561 = memref.load %arg3[%c242] : memref<288xf32, #tpu.memory_space<smem>>
    %c2_793 = arith.constant 2 : index
    %c2_794 = arith.constant 2 : index
    %c2_795 = arith.constant 2 : index
    %1562 = vector.load %arg5[%c2_793, %c2_794, %c2_795] : memref<4x10x10xf32, #tpu.memory_space<vmem>>, vector<1x8x8xf32>
    %1563 = vector.shape_cast %1562 : vector<1x8x8xf32> to vector<8x8xf32>
    %1564 = vector.broadcast %1561 : f32 to vector<8x8xf32>
    %1565 = arith.mulf %1564, %1563 : vector<8x8xf32>
    %1566 = arith.addf %1560, %1565 : vector<8x8xf32>
    %c243 = arith.constant 243 : index
    %1567 = memref.load %arg3[%c243] : memref<288xf32, #tpu.memory_space<smem>>
    %c3_796 = arith.constant 3 : index
    %c0_797 = arith.constant 0 : index
    %c0_798 = arith.constant 0 : index
    %1568 = vector.load %arg5[%c3_796, %c0_797, %c0_798] : memref<4x10x10xf32, #tpu.memory_space<vmem>>, vector<1x8x8xf32>
    %1569 = vector.shape_cast %1568 : vector<1x8x8xf32> to vector<8x8xf32>
    %1570 = vector.broadcast %1567 : f32 to vector<8x8xf32>
    %1571 = arith.mulf %1570, %1569 : vector<8x8xf32>
    %1572 = arith.addf %1566, %1571 : vector<8x8xf32>
    %c244 = arith.constant 244 : index
    %1573 = memref.load %arg3[%c244] : memref<288xf32, #tpu.memory_space<smem>>
    %c3_799 = arith.constant 3 : index
    %c0_800 = arith.constant 0 : index
    %c1_801 = arith.constant 1 : index
    %1574 = vector.load %arg5[%c3_799, %c0_800, %c1_801] : memref<4x10x10xf32, #tpu.memory_space<vmem>>, vector<1x8x8xf32>
    %1575 = vector.shape_cast %1574 : vector<1x8x8xf32> to vector<8x8xf32>
    %1576 = vector.broadcast %1573 : f32 to vector<8x8xf32>
    %1577 = arith.mulf %1576, %1575 : vector<8x8xf32>
    %1578 = arith.addf %1572, %1577 : vector<8x8xf32>
    %c245 = arith.constant 245 : index
    %1579 = memref.load %arg3[%c245] : memref<288xf32, #tpu.memory_space<smem>>
    %c3_802 = arith.constant 3 : index
    %c0_803 = arith.constant 0 : index
    %c2_804 = arith.constant 2 : index
    %1580 = vector.load %arg5[%c3_802, %c0_803, %c2_804] : memref<4x10x10xf32, #tpu.memory_space<vmem>>, vector<1x8x8xf32>
    %1581 = vector.shape_cast %1580 : vector<1x8x8xf32> to vector<8x8xf32>
    %1582 = vector.broadcast %1579 : f32 to vector<8x8xf32>
    %1583 = arith.mulf %1582, %1581 : vector<8x8xf32>
    %1584 = arith.addf %1578, %1583 : vector<8x8xf32>
    %c246 = arith.constant 246 : index
    %1585 = memref.load %arg3[%c246] : memref<288xf32, #tpu.memory_space<smem>>
    %c3_805 = arith.constant 3 : index
    %c1_806 = arith.constant 1 : index
    %c0_807 = arith.constant 0 : index
    %1586 = vector.load %arg5[%c3_805, %c1_806, %c0_807] : memref<4x10x10xf32, #tpu.memory_space<vmem>>, vector<1x8x8xf32>
    %1587 = vector.shape_cast %1586 : vector<1x8x8xf32> to vector<8x8xf32>
    %1588 = vector.broadcast %1585 : f32 to vector<8x8xf32>
    %1589 = arith.mulf %1588, %1587 : vector<8x8xf32>
    %1590 = arith.addf %1584, %1589 : vector<8x8xf32>
    %c247 = arith.constant 247 : index
    %1591 = memref.load %arg3[%c247] : memref<288xf32, #tpu.memory_space<smem>>
    %c3_808 = arith.constant 3 : index
    %c1_809 = arith.constant 1 : index
    %c1_810 = arith.constant 1 : index
    %1592 = vector.load %arg5[%c3_808, %c1_809, %c1_810] : memref<4x10x10xf32, #tpu.memory_space<vmem>>, vector<1x8x8xf32>
    %1593 = vector.shape_cast %1592 : vector<1x8x8xf32> to vector<8x8xf32>
    %1594 = vector.broadcast %1591 : f32 to vector<8x8xf32>
    %1595 = arith.mulf %1594, %1593 : vector<8x8xf32>
    %1596 = arith.addf %1590, %1595 : vector<8x8xf32>
    %c248 = arith.constant 248 : index
    %1597 = memref.load %arg3[%c248] : memref<288xf32, #tpu.memory_space<smem>>
    %c3_811 = arith.constant 3 : index
    %c1_812 = arith.constant 1 : index
    %c2_813 = arith.constant 2 : index
    %1598 = vector.load %arg5[%c3_811, %c1_812, %c2_813] : memref<4x10x10xf32, #tpu.memory_space<vmem>>, vector<1x8x8xf32>
    %1599 = vector.shape_cast %1598 : vector<1x8x8xf32> to vector<8x8xf32>
    %1600 = vector.broadcast %1597 : f32 to vector<8x8xf32>
    %1601 = arith.mulf %1600, %1599 : vector<8x8xf32>
    %1602 = arith.addf %1596, %1601 : vector<8x8xf32>
    %c249 = arith.constant 249 : index
    %1603 = memref.load %arg3[%c249] : memref<288xf32, #tpu.memory_space<smem>>
    %c3_814 = arith.constant 3 : index
    %c2_815 = arith.constant 2 : index
    %c0_816 = arith.constant 0 : index
    %1604 = vector.load %arg5[%c3_814, %c2_815, %c0_816] : memref<4x10x10xf32, #tpu.memory_space<vmem>>, vector<1x8x8xf32>
    %1605 = vector.shape_cast %1604 : vector<1x8x8xf32> to vector<8x8xf32>
    %1606 = vector.broadcast %1603 : f32 to vector<8x8xf32>
    %1607 = arith.mulf %1606, %1605 : vector<8x8xf32>
    %1608 = arith.addf %1602, %1607 : vector<8x8xf32>
    %c250 = arith.constant 250 : index
    %1609 = memref.load %arg3[%c250] : memref<288xf32, #tpu.memory_space<smem>>
    %c3_817 = arith.constant 3 : index
    %c2_818 = arith.constant 2 : index
    %c1_819 = arith.constant 1 : index
    %1610 = vector.load %arg5[%c3_817, %c2_818, %c1_819] : memref<4x10x10xf32, #tpu.memory_space<vmem>>, vector<1x8x8xf32>
    %1611 = vector.shape_cast %1610 : vector<1x8x8xf32> to vector<8x8xf32>
    %1612 = vector.broadcast %1609 : f32 to vector<8x8xf32>
    %1613 = arith.mulf %1612, %1611 : vector<8x8xf32>
    %1614 = arith.addf %1608, %1613 : vector<8x8xf32>
    %c251 = arith.constant 251 : index
    %1615 = memref.load %arg3[%c251] : memref<288xf32, #tpu.memory_space<smem>>
    %c3_820 = arith.constant 3 : index
    %c2_821 = arith.constant 2 : index
    %c2_822 = arith.constant 2 : index
    %1616 = vector.load %arg5[%c3_820, %c2_821, %c2_822] : memref<4x10x10xf32, #tpu.memory_space<vmem>>, vector<1x8x8xf32>
    %1617 = vector.shape_cast %1616 : vector<1x8x8xf32> to vector<8x8xf32>
    %1618 = vector.broadcast %1615 : f32 to vector<8x8xf32>
    %1619 = arith.mulf %1618, %1617 : vector<8x8xf32>
    %1620 = arith.addf %1614, %1619 : vector<8x8xf32>
    %c0_823 = arith.constant 0 : index
    %c6_824 = arith.constant 6 : index
    %c0_825 = arith.constant 0 : index
    %c0_826 = arith.constant 0 : index
    %1621 = vector.load %arg4[%c0_823, %c6_824, %c0_825, %c0_826] : memref<1x8x8x8xf32, #tpu.memory_space<vmem>>, vector<1x1x8x8xf32>
    %1622 = vector.shape_cast %1621 : vector<1x1x8x8xf32> to vector<8x8xf32>
    %1623 = vector.shape_cast %1620 : vector<8x8xf32> to vector<1x1x8x8xf32>
    tpu.vector_store %arg4[%c0_823, %c6_824, %c0_825, %c0_826], %1623 {strides = array<i32>} : memref<1x8x8x8xf32, #tpu.memory_space<vmem>>, vector<1x1x8x8xf32>,
    %1624 = vector.shape_cast %1620 : vector<8x8xf32> to vector<1x8x8xf32>
    %cst_827 = arith.constant dense<0.000000e+00> : vector<1xf32>
    %1625 = vector.multi_reduction <add>, %1624, %cst_827 [1, 2] : vector<1x8x8xf32> to vector<1xf32>
    %1626 = vector.shape_cast %1625 : vector<1xf32> to vector<1x1x1xf32>
    %1627 = vector.extract %1626[0, 0, 0] : f32 from vector<1x1x1xf32>
    %1628 = arith.addf %1397, %1627 : f32
    %1629 = arith.mulf %1620, %1620 : vector<8x8xf32>
    %1630 = vector.shape_cast %1629 : vector<8x8xf32> to vector<1x8x8xf32>
    %cst_828 = arith.constant dense<0.000000e+00> : vector<1xf32>
    %1631 = vector.multi_reduction <add>, %1630, %cst_828 [1, 2] : vector<1x8x8xf32> to vector<1xf32>
    %1632 = vector.shape_cast %1631 : vector<1xf32> to vector<1x1x1xf32>
    %1633 = vector.extract %1632[0, 0, 0] : f32 from vector<1x1x1xf32>
    %1634 = arith.addf %1403, %1633 : f32
    %cst_829 = arith.constant 0.000000e+00 : f32
    %1635 = vector.broadcast %cst_829 : f32 to vector<8x8xf32>
    %c252 = arith.constant 252 : index
    %1636 = memref.load %arg3[%c252] : memref<288xf32, #tpu.memory_space<smem>>
    %c0_830 = arith.constant 0 : index
    %c0_831 = arith.constant 0 : index
    %c0_832 = arith.constant 0 : index
    %1637 = vector.load %arg5[%c0_830, %c0_831, %c0_832] : memref<4x10x10xf32, #tpu.memory_space<vmem>>, vector<1x8x8xf32>
    %1638 = vector.shape_cast %1637 : vector<1x8x8xf32> to vector<8x8xf32>
    %1639 = vector.broadcast %1636 : f32 to vector<8x8xf32>
    %1640 = arith.mulf %1639, %1638 : vector<8x8xf32>
    %1641 = arith.addf %1635, %1640 : vector<8x8xf32>
    %c253 = arith.constant 253 : index
    %1642 = memref.load %arg3[%c253] : memref<288xf32, #tpu.memory_space<smem>>
    %c0_833 = arith.constant 0 : index
    %c0_834 = arith.constant 0 : index
    %c1_835 = arith.constant 1 : index
    %1643 = vector.load %arg5[%c0_833, %c0_834, %c1_835] : memref<4x10x10xf32, #tpu.memory_space<vmem>>, vector<1x8x8xf32>
    %1644 = vector.shape_cast %1643 : vector<1x8x8xf32> to vector<8x8xf32>
    %1645 = vector.broadcast %1642 : f32 to vector<8x8xf32>
    %1646 = arith.mulf %1645, %1644 : vector<8x8xf32>
    %1647 = arith.addf %1641, %1646 : vector<8x8xf32>
    %c254 = arith.constant 254 : index
    %1648 = memref.load %arg3[%c254] : memref<288xf32, #tpu.memory_space<smem>>
    %c0_836 = arith.constant 0 : index
    %c0_837 = arith.constant 0 : index
    %c2_838 = arith.constant 2 : index
    %1649 = vector.load %arg5[%c0_836, %c0_837, %c2_838] : memref<4x10x10xf32, #tpu.memory_space<vmem>>, vector<1x8x8xf32>
    %1650 = vector.shape_cast %1649 : vector<1x8x8xf32> to vector<8x8xf32>
    %1651 = vector.broadcast %1648 : f32 to vector<8x8xf32>
    %1652 = arith.mulf %1651, %1650 : vector<8x8xf32>
    %1653 = arith.addf %1647, %1652 : vector<8x8xf32>
    %c255 = arith.constant 255 : index
    %1654 = memref.load %arg3[%c255] : memref<288xf32, #tpu.memory_space<smem>>
    %c0_839 = arith.constant 0 : index
    %c1_840 = arith.constant 1 : index
    %c0_841 = arith.constant 0 : index
    %1655 = vector.load %arg5[%c0_839, %c1_840, %c0_841] : memref<4x10x10xf32, #tpu.memory_space<vmem>>, vector<1x8x8xf32>
    %1656 = vector.shape_cast %1655 : vector<1x8x8xf32> to vector<8x8xf32>
    %1657 = vector.broadcast %1654 : f32 to vector<8x8xf32>
    %1658 = arith.mulf %1657, %1656 : vector<8x8xf32>
    %1659 = arith.addf %1653, %1658 : vector<8x8xf32>
    %c256 = arith.constant 256 : index
    %1660 = memref.load %arg3[%c256] : memref<288xf32, #tpu.memory_space<smem>>
    %c0_842 = arith.constant 0 : index
    %c1_843 = arith.constant 1 : index
    %c1_844 = arith.constant 1 : index
    %1661 = vector.load %arg5[%c0_842, %c1_843, %c1_844] : memref<4x10x10xf32, #tpu.memory_space<vmem>>, vector<1x8x8xf32>
    %1662 = vector.shape_cast %1661 : vector<1x8x8xf32> to vector<8x8xf32>
    %1663 = vector.broadcast %1660 : f32 to vector<8x8xf32>
    %1664 = arith.mulf %1663, %1662 : vector<8x8xf32>
    %1665 = arith.addf %1659, %1664 : vector<8x8xf32>
    %c257 = arith.constant 257 : index
    %1666 = memref.load %arg3[%c257] : memref<288xf32, #tpu.memory_space<smem>>
    %c0_845 = arith.constant 0 : index
    %c1_846 = arith.constant 1 : index
    %c2_847 = arith.constant 2 : index
    %1667 = vector.load %arg5[%c0_845, %c1_846, %c2_847] : memref<4x10x10xf32, #tpu.memory_space<vmem>>, vector<1x8x8xf32>
    %1668 = vector.shape_cast %1667 : vector<1x8x8xf32> to vector<8x8xf32>
    %1669 = vector.broadcast %1666 : f32 to vector<8x8xf32>
    %1670 = arith.mulf %1669, %1668 : vector<8x8xf32>
    %1671 = arith.addf %1665, %1670 : vector<8x8xf32>
    %c258 = arith.constant 258 : index
    %1672 = memref.load %arg3[%c258] : memref<288xf32, #tpu.memory_space<smem>>
    %c0_848 = arith.constant 0 : index
    %c2_849 = arith.constant 2 : index
    %c0_850 = arith.constant 0 : index
    %1673 = vector.load %arg5[%c0_848, %c2_849, %c0_850] : memref<4x10x10xf32, #tpu.memory_space<vmem>>, vector<1x8x8xf32>
    %1674 = vector.shape_cast %1673 : vector<1x8x8xf32> to vector<8x8xf32>
    %1675 = vector.broadcast %1672 : f32 to vector<8x8xf32>
    %1676 = arith.mulf %1675, %1674 : vector<8x8xf32>
    %1677 = arith.addf %1671, %1676 : vector<8x8xf32>
    %c259 = arith.constant 259 : index
    %1678 = memref.load %arg3[%c259] : memref<288xf32, #tpu.memory_space<smem>>
    %c0_851 = arith.constant 0 : index
    %c2_852 = arith.constant 2 : index
    %c1_853 = arith.constant 1 : index
    %1679 = vector.load %arg5[%c0_851, %c2_852, %c1_853] : memref<4x10x10xf32, #tpu.memory_space<vmem>>, vector<1x8x8xf32>
    %1680 = vector.shape_cast %1679 : vector<1x8x8xf32> to vector<8x8xf32>
    %1681 = vector.broadcast %1678 : f32 to vector<8x8xf32>
    %1682 = arith.mulf %1681, %1680 : vector<8x8xf32>
    %1683 = arith.addf %1677, %1682 : vector<8x8xf32>
    %c260 = arith.constant 260 : index
    %1684 = memref.load %arg3[%c260] : memref<288xf32, #tpu.memory_space<smem>>
    %c0_854 = arith.constant 0 : index
    %c2_855 = arith.constant 2 : index
    %c2_856 = arith.constant 2 : index
    %1685 = vector.load %arg5[%c0_854, %c2_855, %c2_856] : memref<4x10x10xf32, #tpu.memory_space<vmem>>, vector<1x8x8xf32>
    %1686 = vector.shape_cast %1685 : vector<1x8x8xf32> to vector<8x8xf32>
    %1687 = vector.broadcast %1684 : f32 to vector<8x8xf32>
    %1688 = arith.mulf %1687, %1686 : vector<8x8xf32>
    %1689 = arith.addf %1683, %1688 : vector<8x8xf32>
    %c261 = arith.constant 261 : index
    %1690 = memref.load %arg3[%c261] : memref<288xf32, #tpu.memory_space<smem>>
    %c1_857 = arith.constant 1 : index
    %c0_858 = arith.constant 0 : index
    %c0_859 = arith.constant 0 : index
    %1691 = vector.load %arg5[%c1_857, %c0_858, %c0_859] : memref<4x10x10xf32, #tpu.memory_space<vmem>>, vector<1x8x8xf32>
    %1692 = vector.shape_cast %1691 : vector<1x8x8xf32> to vector<8x8xf32>
    %1693 = vector.broadcast %1690 : f32 to vector<8x8xf32>
    %1694 = arith.mulf %1693, %1692 : vector<8x8xf32>
    %1695 = arith.addf %1689, %1694 : vector<8x8xf32>
    %c262 = arith.constant 262 : index
    %1696 = memref.load %arg3[%c262] : memref<288xf32, #tpu.memory_space<smem>>
    %c1_860 = arith.constant 1 : index
    %c0_861 = arith.constant 0 : index
    %c1_862 = arith.constant 1 : index
    %1697 = vector.load %arg5[%c1_860, %c0_861, %c1_862] : memref<4x10x10xf32, #tpu.memory_space<vmem>>, vector<1x8x8xf32>
    %1698 = vector.shape_cast %1697 : vector<1x8x8xf32> to vector<8x8xf32>
    %1699 = vector.broadcast %1696 : f32 to vector<8x8xf32>
    %1700 = arith.mulf %1699, %1698 : vector<8x8xf32>
    %1701 = arith.addf %1695, %1700 : vector<8x8xf32>
    %c263 = arith.constant 263 : index
    %1702 = memref.load %arg3[%c263] : memref<288xf32, #tpu.memory_space<smem>>
    %c1_863 = arith.constant 1 : index
    %c0_864 = arith.constant 0 : index
    %c2_865 = arith.constant 2 : index
    %1703 = vector.load %arg5[%c1_863, %c0_864, %c2_865] : memref<4x10x10xf32, #tpu.memory_space<vmem>>, vector<1x8x8xf32>
    %1704 = vector.shape_cast %1703 : vector<1x8x8xf32> to vector<8x8xf32>
    %1705 = vector.broadcast %1702 : f32 to vector<8x8xf32>
    %1706 = arith.mulf %1705, %1704 : vector<8x8xf32>
    %1707 = arith.addf %1701, %1706 : vector<8x8xf32>
    %c264 = arith.constant 264 : index
    %1708 = memref.load %arg3[%c264] : memref<288xf32, #tpu.memory_space<smem>>
    %c1_866 = arith.constant 1 : index
    %c1_867 = arith.constant 1 : index
    %c0_868 = arith.constant 0 : index
    %1709 = vector.load %arg5[%c1_866, %c1_867, %c0_868] : memref<4x10x10xf32, #tpu.memory_space<vmem>>, vector<1x8x8xf32>
    %1710 = vector.shape_cast %1709 : vector<1x8x8xf32> to vector<8x8xf32>
    %1711 = vector.broadcast %1708 : f32 to vector<8x8xf32>
    %1712 = arith.mulf %1711, %1710 : vector<8x8xf32>
    %1713 = arith.addf %1707, %1712 : vector<8x8xf32>
    %c265 = arith.constant 265 : index
    %1714 = memref.load %arg3[%c265] : memref<288xf32, #tpu.memory_space<smem>>
    %c1_869 = arith.constant 1 : index
    %c1_870 = arith.constant 1 : index
    %c1_871 = arith.constant 1 : index
    %1715 = vector.load %arg5[%c1_869, %c1_870, %c1_871] : memref<4x10x10xf32, #tpu.memory_space<vmem>>, vector<1x8x8xf32>
    %1716 = vector.shape_cast %1715 : vector<1x8x8xf32> to vector<8x8xf32>
    %1717 = vector.broadcast %1714 : f32 to vector<8x8xf32>
    %1718 = arith.mulf %1717, %1716 : vector<8x8xf32>
    %1719 = arith.addf %1713, %1718 : vector<8x8xf32>
    %c266 = arith.constant 266 : index
    %1720 = memref.load %arg3[%c266] : memref<288xf32, #tpu.memory_space<smem>>
    %c1_872 = arith.constant 1 : index
    %c1_873 = arith.constant 1 : index
    %c2_874 = arith.constant 2 : index
    %1721 = vector.load %arg5[%c1_872, %c1_873, %c2_874] : memref<4x10x10xf32, #tpu.memory_space<vmem>>, vector<1x8x8xf32>
    %1722 = vector.shape_cast %1721 : vector<1x8x8xf32> to vector<8x8xf32>
    %1723 = vector.broadcast %1720 : f32 to vector<8x8xf32>
    %1724 = arith.mulf %1723, %1722 : vector<8x8xf32>
    %1725 = arith.addf %1719, %1724 : vector<8x8xf32>
    %c267 = arith.constant 267 : index
    %1726 = memref.load %arg3[%c267] : memref<288xf32, #tpu.memory_space<smem>>
    %c1_875 = arith.constant 1 : index
    %c2_876 = arith.constant 2 : index
    %c0_877 = arith.constant 0 : index
    %1727 = vector.load %arg5[%c1_875, %c2_876, %c0_877] : memref<4x10x10xf32, #tpu.memory_space<vmem>>, vector<1x8x8xf32>
    %1728 = vector.shape_cast %1727 : vector<1x8x8xf32> to vector<8x8xf32>
    %1729 = vector.broadcast %1726 : f32 to vector<8x8xf32>
    %1730 = arith.mulf %1729, %1728 : vector<8x8xf32>
    %1731 = arith.addf %1725, %1730 : vector<8x8xf32>
    %c268 = arith.constant 268 : index
    %1732 = memref.load %arg3[%c268] : memref<288xf32, #tpu.memory_space<smem>>
    %c1_878 = arith.constant 1 : index
    %c2_879 = arith.constant 2 : index
    %c1_880 = arith.constant 1 : index
    %1733 = vector.load %arg5[%c1_878, %c2_879, %c1_880] : memref<4x10x10xf32, #tpu.memory_space<vmem>>, vector<1x8x8xf32>
    %1734 = vector.shape_cast %1733 : vector<1x8x8xf32> to vector<8x8xf32>
    %1735 = vector.broadcast %1732 : f32 to vector<8x8xf32>
    %1736 = arith.mulf %1735, %1734 : vector<8x8xf32>
    %1737 = arith.addf %1731, %1736 : vector<8x8xf32>
    %c269 = arith.constant 269 : index
    %1738 = memref.load %arg3[%c269] : memref<288xf32, #tpu.memory_space<smem>>
    %c1_881 = arith.constant 1 : index
    %c2_882 = arith.constant 2 : index
    %c2_883 = arith.constant 2 : index
    %1739 = vector.load %arg5[%c1_881, %c2_882, %c2_883] : memref<4x10x10xf32, #tpu.memory_space<vmem>>, vector<1x8x8xf32>
    %1740 = vector.shape_cast %1739 : vector<1x8x8xf32> to vector<8x8xf32>
    %1741 = vector.broadcast %1738 : f32 to vector<8x8xf32>
    %1742 = arith.mulf %1741, %1740 : vector<8x8xf32>
    %1743 = arith.addf %1737, %1742 : vector<8x8xf32>
    %c270 = arith.constant 270 : index
    %1744 = memref.load %arg3[%c270] : memref<288xf32, #tpu.memory_space<smem>>
    %c2_884 = arith.constant 2 : index
    %c0_885 = arith.constant 0 : index
    %c0_886 = arith.constant 0 : index
    %1745 = vector.load %arg5[%c2_884, %c0_885, %c0_886] : memref<4x10x10xf32, #tpu.memory_space<vmem>>, vector<1x8x8xf32>
    %1746 = vector.shape_cast %1745 : vector<1x8x8xf32> to vector<8x8xf32>
    %1747 = vector.broadcast %1744 : f32 to vector<8x8xf32>
    %1748 = arith.mulf %1747, %1746 : vector<8x8xf32>
    %1749 = arith.addf %1743, %1748 : vector<8x8xf32>
    %c271 = arith.constant 271 : index
    %1750 = memref.load %arg3[%c271] : memref<288xf32, #tpu.memory_space<smem>>
    %c2_887 = arith.constant 2 : index
    %c0_888 = arith.constant 0 : index
    %c1_889 = arith.constant 1 : index
    %1751 = vector.load %arg5[%c2_887, %c0_888, %c1_889] : memref<4x10x10xf32, #tpu.memory_space<vmem>>, vector<1x8x8xf32>
    %1752 = vector.shape_cast %1751 : vector<1x8x8xf32> to vector<8x8xf32>
    %1753 = vector.broadcast %1750 : f32 to vector<8x8xf32>
    %1754 = arith.mulf %1753, %1752 : vector<8x8xf32>
    %1755 = arith.addf %1749, %1754 : vector<8x8xf32>
    %c272 = arith.constant 272 : index
    %1756 = memref.load %arg3[%c272] : memref<288xf32, #tpu.memory_space<smem>>
    %c2_890 = arith.constant 2 : index
    %c0_891 = arith.constant 0 : index
    %c2_892 = arith.constant 2 : index
    %1757 = vector.load %arg5[%c2_890, %c0_891, %c2_892] : memref<4x10x10xf32, #tpu.memory_space<vmem>>, vector<1x8x8xf32>
    %1758 = vector.shape_cast %1757 : vector<1x8x8xf32> to vector<8x8xf32>
    %1759 = vector.broadcast %1756 : f32 to vector<8x8xf32>
    %1760 = arith.mulf %1759, %1758 : vector<8x8xf32>
    %1761 = arith.addf %1755, %1760 : vector<8x8xf32>
    %c273 = arith.constant 273 : index
    %1762 = memref.load %arg3[%c273] : memref<288xf32, #tpu.memory_space<smem>>
    %c2_893 = arith.constant 2 : index
    %c1_894 = arith.constant 1 : index
    %c0_895 = arith.constant 0 : index
    %1763 = vector.load %arg5[%c2_893, %c1_894, %c0_895] : memref<4x10x10xf32, #tpu.memory_space<vmem>>, vector<1x8x8xf32>
    %1764 = vector.shape_cast %1763 : vector<1x8x8xf32> to vector<8x8xf32>
    %1765 = vector.broadcast %1762 : f32 to vector<8x8xf32>
    %1766 = arith.mulf %1765, %1764 : vector<8x8xf32>
    %1767 = arith.addf %1761, %1766 : vector<8x8xf32>
    %c274 = arith.constant 274 : index
    %1768 = memref.load %arg3[%c274] : memref<288xf32, #tpu.memory_space<smem>>
    %c2_896 = arith.constant 2 : index
    %c1_897 = arith.constant 1 : index
    %c1_898 = arith.constant 1 : index
    %1769 = vector.load %arg5[%c2_896, %c1_897, %c1_898] : memref<4x10x10xf32, #tpu.memory_space<vmem>>, vector<1x8x8xf32>
    %1770 = vector.shape_cast %1769 : vector<1x8x8xf32> to vector<8x8xf32>
    %1771 = vector.broadcast %1768 : f32 to vector<8x8xf32>
    %1772 = arith.mulf %1771, %1770 : vector<8x8xf32>
    %1773 = arith.addf %1767, %1772 : vector<8x8xf32>
    %c275 = arith.constant 275 : index
    %1774 = memref.load %arg3[%c275] : memref<288xf32, #tpu.memory_space<smem>>
    %c2_899 = arith.constant 2 : index
    %c1_900 = arith.constant 1 : index
    %c2_901 = arith.constant 2 : index
    %1775 = vector.load %arg5[%c2_899, %c1_900, %c2_901] : memref<4x10x10xf32, #tpu.memory_space<vmem>>, vector<1x8x8xf32>
    %1776 = vector.shape_cast %1775 : vector<1x8x8xf32> to vector<8x8xf32>
    %1777 = vector.broadcast %1774 : f32 to vector<8x8xf32>
    %1778 = arith.mulf %1777, %1776 : vector<8x8xf32>
    %1779 = arith.addf %1773, %1778 : vector<8x8xf32>
    %c276 = arith.constant 276 : index
    %1780 = memref.load %arg3[%c276] : memref<288xf32, #tpu.memory_space<smem>>
    %c2_902 = arith.constant 2 : index
    %c2_903 = arith.constant 2 : index
    %c0_904 = arith.constant 0 : index
    %1781 = vector.load %arg5[%c2_902, %c2_903, %c0_904] : memref<4x10x10xf32, #tpu.memory_space<vmem>>, vector<1x8x8xf32>
    %1782 = vector.shape_cast %1781 : vector<1x8x8xf32> to vector<8x8xf32>
    %1783 = vector.broadcast %1780 : f32 to vector<8x8xf32>
    %1784 = arith.mulf %1783, %1782 : vector<8x8xf32>
    %1785 = arith.addf %1779, %1784 : vector<8x8xf32>
    %c277 = arith.constant 277 : index
    %1786 = memref.load %arg3[%c277] : memref<288xf32, #tpu.memory_space<smem>>
    %c2_905 = arith.constant 2 : index
    %c2_906 = arith.constant 2 : index
    %c1_907 = arith.constant 1 : index
    %1787 = vector.load %arg5[%c2_905, %c2_906, %c1_907] : memref<4x10x10xf32, #tpu.memory_space<vmem>>, vector<1x8x8xf32>
    %1788 = vector.shape_cast %1787 : vector<1x8x8xf32> to vector<8x8xf32>
    %1789 = vector.broadcast %1786 : f32 to vector<8x8xf32>
    %1790 = arith.mulf %1789, %1788 : vector<8x8xf32>
    %1791 = arith.addf %1785, %1790 : vector<8x8xf32>
    %c278 = arith.constant 278 : index
    %1792 = memref.load %arg3[%c278] : memref<288xf32, #tpu.memory_space<smem>>
    %c2_908 = arith.constant 2 : index
    %c2_909 = arith.constant 2 : index
    %c2_910 = arith.constant 2 : index
    %1793 = vector.load %arg5[%c2_908, %c2_909, %c2_910] : memref<4x10x10xf32, #tpu.memory_space<vmem>>, vector<1x8x8xf32>
    %1794 = vector.shape_cast %1793 : vector<1x8x8xf32> to vector<8x8xf32>
    %1795 = vector.broadcast %1792 : f32 to vector<8x8xf32>
    %1796 = arith.mulf %1795, %1794 : vector<8x8xf32>
    %1797 = arith.addf %1791, %1796 : vector<8x8xf32>
    %c279 = arith.constant 279 : index
    %1798 = memref.load %arg3[%c279] : memref<288xf32, #tpu.memory_space<smem>>
    %c3_911 = arith.constant 3 : index
    %c0_912 = arith.constant 0 : index
    %c0_913 = arith.constant 0 : index
    %1799 = vector.load %arg5[%c3_911, %c0_912, %c0_913] : memref<4x10x10xf32, #tpu.memory_space<vmem>>, vector<1x8x8xf32>
    %1800 = vector.shape_cast %1799 : vector<1x8x8xf32> to vector<8x8xf32>
    %1801 = vector.broadcast %1798 : f32 to vector<8x8xf32>
    %1802 = arith.mulf %1801, %1800 : vector<8x8xf32>
    %1803 = arith.addf %1797, %1802 : vector<8x8xf32>
    %c280 = arith.constant 280 : index
    %1804 = memref.load %arg3[%c280] : memref<288xf32, #tpu.memory_space<smem>>
    %c3_914 = arith.constant 3 : index
    %c0_915 = arith.constant 0 : index
    %c1_916 = arith.constant 1 : index
    %1805 = vector.load %arg5[%c3_914, %c0_915, %c1_916] : memref<4x10x10xf32, #tpu.memory_space<vmem>>, vector<1x8x8xf32>
    %1806 = vector.shape_cast %1805 : vector<1x8x8xf32> to vector<8x8xf32>
    %1807 = vector.broadcast %1804 : f32 to vector<8x8xf32>
    %1808 = arith.mulf %1807, %1806 : vector<8x8xf32>
    %1809 = arith.addf %1803, %1808 : vector<8x8xf32>
    %c281 = arith.constant 281 : index
    %1810 = memref.load %arg3[%c281] : memref<288xf32, #tpu.memory_space<smem>>
    %c3_917 = arith.constant 3 : index
    %c0_918 = arith.constant 0 : index
    %c2_919 = arith.constant 2 : index
    %1811 = vector.load %arg5[%c3_917, %c0_918, %c2_919] : memref<4x10x10xf32, #tpu.memory_space<vmem>>, vector<1x8x8xf32>
    %1812 = vector.shape_cast %1811 : vector<1x8x8xf32> to vector<8x8xf32>
    %1813 = vector.broadcast %1810 : f32 to vector<8x8xf32>
    %1814 = arith.mulf %1813, %1812 : vector<8x8xf32>
    %1815 = arith.addf %1809, %1814 : vector<8x8xf32>
    %c282 = arith.constant 282 : index
    %1816 = memref.load %arg3[%c282] : memref<288xf32, #tpu.memory_space<smem>>
    %c3_920 = arith.constant 3 : index
    %c1_921 = arith.constant 1 : index
    %c0_922 = arith.constant 0 : index
    %1817 = vector.load %arg5[%c3_920, %c1_921, %c0_922] : memref<4x10x10xf32, #tpu.memory_space<vmem>>, vector<1x8x8xf32>
    %1818 = vector.shape_cast %1817 : vector<1x8x8xf32> to vector<8x8xf32>
    %1819 = vector.broadcast %1816 : f32 to vector<8x8xf32>
    %1820 = arith.mulf %1819, %1818 : vector<8x8xf32>
    %1821 = arith.addf %1815, %1820 : vector<8x8xf32>
    %c283 = arith.constant 283 : index
    %1822 = memref.load %arg3[%c283] : memref<288xf32, #tpu.memory_space<smem>>
    %c3_923 = arith.constant 3 : index
    %c1_924 = arith.constant 1 : index
    %c1_925 = arith.constant 1 : index
    %1823 = vector.load %arg5[%c3_923, %c1_924, %c1_925] : memref<4x10x10xf32, #tpu.memory_space<vmem>>, vector<1x8x8xf32>
    %1824 = vector.shape_cast %1823 : vector<1x8x8xf32> to vector<8x8xf32>
    %1825 = vector.broadcast %1822 : f32 to vector<8x8xf32>
    %1826 = arith.mulf %1825, %1824 : vector<8x8xf32>
    %1827 = arith.addf %1821, %1826 : vector<8x8xf32>
    %c284 = arith.constant 284 : index
    %1828 = memref.load %arg3[%c284] : memref<288xf32, #tpu.memory_space<smem>>
    %c3_926 = arith.constant 3 : index
    %c1_927 = arith.constant 1 : index
    %c2_928 = arith.constant 2 : index
    %1829 = vector.load %arg5[%c3_926, %c1_927, %c2_928] : memref<4x10x10xf32, #tpu.memory_space<vmem>>, vector<1x8x8xf32>
    %1830 = vector.shape_cast %1829 : vector<1x8x8xf32> to vector<8x8xf32>
    %1831 = vector.broadcast %1828 : f32 to vector<8x8xf32>
    %1832 = arith.mulf %1831, %1830 : vector<8x8xf32>
    %1833 = arith.addf %1827, %1832 : vector<8x8xf32>
    %c285 = arith.constant 285 : index
    %1834 = memref.load %arg3[%c285] : memref<288xf32, #tpu.memory_space<smem>>
    %c3_929 = arith.constant 3 : index
    %c2_930 = arith.constant 2 : index
    %c0_931 = arith.constant 0 : index
    %1835 = vector.load %arg5[%c3_929, %c2_930, %c0_931] : memref<4x10x10xf32, #tpu.memory_space<vmem>>, vector<1x8x8xf32>
    %1836 = vector.shape_cast %1835 : vector<1x8x8xf32> to vector<8x8xf32>
    %1837 = vector.broadcast %1834 : f32 to vector<8x8xf32>
    %1838 = arith.mulf %1837, %1836 : vector<8x8xf32>
    %1839 = arith.addf %1833, %1838 : vector<8x8xf32>
    %c286 = arith.constant 286 : index
    %1840 = memref.load %arg3[%c286] : memref<288xf32, #tpu.memory_space<smem>>
    %c3_932 = arith.constant 3 : index
    %c2_933 = arith.constant 2 : index
    %c1_934 = arith.constant 1 : index
    %1841 = vector.load %arg5[%c3_932, %c2_933, %c1_934] : memref<4x10x10xf32, #tpu.memory_space<vmem>>, vector<1x8x8xf32>
    %1842 = vector.shape_cast %1841 : vector<1x8x8xf32> to vector<8x8xf32>
    %1843 = vector.broadcast %1840 : f32 to vector<8x8xf32>
    %1844 = arith.mulf %1843, %1842 : vector<8x8xf32>
    %1845 = arith.addf %1839, %1844 : vector<8x8xf32>
    %c287 = arith.constant 287 : index
    %1846 = memref.load %arg3[%c287] : memref<288xf32, #tpu.memory_space<smem>>
    %c3_935 = arith.constant 3 : index
    %c2_936 = arith.constant 2 : index
    %c2_937 = arith.constant 2 : index
    %1847 = vector.load %arg5[%c3_935, %c2_936, %c2_937] : memref<4x10x10xf32, #tpu.memory_space<vmem>>, vector<1x8x8xf32>
    %1848 = vector.shape_cast %1847 : vector<1x8x8xf32> to vector<8x8xf32>
    %1849 = vector.broadcast %1846 : f32 to vector<8x8xf32>
    %1850 = arith.mulf %1849, %1848 : vector<8x8xf32>
    %1851 = arith.addf %1845, %1850 : vector<8x8xf32>
    %c0_938 = arith.constant 0 : index
    %c7_939 = arith.constant 7 : index
    %c0_940 = arith.constant 0 : index
    %c0_941 = arith.constant 0 : index
    %1852 = vector.load %arg4[%c0_938, %c7_939, %c0_940, %c0_941] : memref<1x8x8x8xf32, #tpu.memory_space<vmem>>, vector<1x1x8x8xf32>
    %1853 = vector.shape_cast %1852 : vector<1x1x8x8xf32> to vector<8x8xf32>
    %1854 = vector.shape_cast %1851 : vector<8x8xf32> to vector<1x1x8x8xf32>
    tpu.vector_store %arg4[%c0_938, %c7_939, %c0_940, %c0_941], %1854 {strides = array<i32>} : memref<1x8x8x8xf32, #tpu.memory_space<vmem>>, vector<1x1x8x8xf32>,
    %1855 = vector.shape_cast %1851 : vector<8x8xf32> to vector<1x8x8xf32>
    %cst_942 = arith.constant dense<0.000000e+00> : vector<1xf32>
    %1856 = vector.multi_reduction <add>, %1855, %cst_942 [1, 2] : vector<1x8x8xf32> to vector<1xf32>
    %1857 = vector.shape_cast %1856 : vector<1xf32> to vector<1x1x1xf32>
    %1858 = vector.extract %1857[0, 0, 0] : f32 from vector<1x1x1xf32>
    %1859 = arith.addf %1628, %1858 : f32
    %1860 = arith.mulf %1851, %1851 : vector<8x8xf32>
    %1861 = vector.shape_cast %1860 : vector<8x8xf32> to vector<1x8x8xf32>
    %cst_943 = arith.constant dense<0.000000e+00> : vector<1xf32>
    %1862 = vector.multi_reduction <add>, %1861, %cst_943 [1, 2] : vector<1x8x8xf32> to vector<1xf32>
    %1863 = vector.shape_cast %1862 : vector<1xf32> to vector<1x1x1xf32>
    %1864 = vector.extract %1863[0, 0, 0] : f32 from vector<1x1x1xf32>
    %1865 = arith.addf %1634, %1864 : f32
    %cst_944 = arith.constant 5.120000e+02 : f32
    %1866 = arith.divf %1859, %cst_944 : f32
    %1867 = arith.mulf %1859, %1866 : f32
    %1868 = arith.subf %1865, %1867 : f32
    %cst_945 = arith.constant 5.110000e+02 : f32
    %1869 = arith.divf %1868, %cst_945 : f32
    %1870 = math.sqrt %1869 : f32
    %cst_946 = arith.constant 9.99999974E-6 : f32
    %1871 = arith.addf %1870, %cst_946 : f32
    %cst_947 = arith.constant 1.000000e+00 : f32
    %1872 = arith.divf %cst_947, %1871 : f32
    %c0_948 = arith.constant 0 : index
    %c0_949 = arith.constant 0 : index
    %c0_950 = arith.constant 0 : index
    %c0_951 = arith.constant 0 : index
    %1873 = vector.load %arg4[%c0_948, %c0_949, %c0_950, %c0_951] : memref<1x8x8x8xf32, #tpu.memory_space<vmem>>, vector<1x8x8x8xf32>
    %1874 = vector.shape_cast %1873 : vector<1x8x8x8xf32> to vector<8x8x8xf32>
    %1875 = vector.broadcast %1866 : f32 to vector<8x8x8xf32>
    %1876 = arith.subf %1874, %1875 : vector<8x8x8xf32>
    %1877 = vector.broadcast %1872 : f32 to vector<8x8x8xf32>
    %1878 = arith.mulf %1876, %1877 : vector<8x8x8xf32>
    %c0_952 = arith.constant 0 : index
    %c0_953 = arith.constant 0 : index
    %c0_954 = arith.constant 0 : index
    %c0_955 = arith.constant 0 : index
    %1879 = vector.load %arg4[%c0_952, %c0_953, %c0_954, %c0_955] : memref<1x8x8x8xf32, #tpu.memory_space<vmem>>, vector<1x8x8x8xf32>
    %1880 = vector.shape_cast %1879 : vector<1x8x8x8xf32> to vector<8x8x8xf32>
    %1881 = vector.shape_cast %1878 : vector<8x8x8xf32> to vector<1x8x8x8xf32>
    tpu.vector_store %arg4[%c0_952, %c0_953, %c0_954, %c0_955], %1881 {strides = array<i32>} : memref<1x8x8x8xf32, #tpu.memory_space<vmem>>, vector<1x8x8x8xf32>,
    return
  }
  func.func @transform_0(%arg0: i32) -> (i32, i32, i32, i32) {
    %c0_i32 = arith.constant 0 : i32
    %c0_i32_0 = arith.constant 0 : i32
    %c0_i32_1 = arith.constant 0 : i32
    %c0_i32_2 = arith.constant 0 : i32
    return %arg0, %c0_i32, %c0_i32_0, %c0_i32_1 : i32, i32, i32, i32
  }
  func.func @transform_1(%arg0: i32) -> (i32, i32) {
    %c0_i32 = arith.constant 0 : i32
    %c0_i32_0 = arith.constant 0 : i32
    %c0_i32_1 = arith.constant 0 : i32
    return %c0_i32, %c0_i32_0 : i32, i32
  }
  func.func @transform_2(%arg0: i32) -> i32 {
    %c0_i32 = arith.constant 0 : i32
    %c0_i32_0 = arith.constant 0 : i32
    return %c0_i32 : i32
  }
  func.func @transform_3(%arg0: i32) -> (i32, i32, i32, i32) {
    %c0_i32 = arith.constant 0 : i32
    %c0_i32_0 = arith.constant 0 : i32
    %c0_i32_1 = arith.constant 0 : i32
    %c0_i32_2 = arith.constant 0 : i32
    return %arg0, %c0_i32, %c0_i32_0, %c0_i32_1 : i32, i32, i32, i32
  }
}

</mosaic_0001>

<bundles_post_ra>
// kernel: tpu_custom_call.1
= control target key start
LH: loop header
LB: loop body
LE: loop exit
PB: predicated region body
PF: predicated region fallthrough
CT: control target
= control target key end

     0   :  { %s5029_s0 = inlined_call_operand.hbm [shape: f32[2,4,8,32], index: 0, kind: input, shape index: {}]   ;;  %s5030_s1 = inlined_call_operand.hbm [shape: f32[16,10], index: 1, kind: input, shape index: {}]   ;;  %s5031_s2 = inlined_call_operand.vmem [shape: f32[288], index: 2, kind: input, shape index: {}]   ;;  %s5032_s3 = inlined_call_operand.hbm [shape: f32[2,8,8,8], index: 3, kind: output, shape index: {}]  }
   0x1   :  { %5059 = sst [smem:[#allocation59_spill]] %s5029_s0 }
   0x2   :  { %5060 = sst [smem:[#allocation60_spill]] %s5030_s1 }
   0x3   :  { %5061 = sst [smem:[#allocation61_spill]] %s5031_s2 }
   0x4   :  { %5062 = sst [smem:[#allocation62_spill]] %s5032_s3 }
   0x5   :  { %8 = vsyncpa [#allocation4], 0 }
   0x6   :  { %10 = vsyncpa [#allocation4 + $0x1], 0 }
   0x7   :  { %11 = vsyncpa [#allocation8], 0 }
   0x8   :  { %12 = vsyncpa [#allocation6], 0 }
   0x9   :  { %13 = vsyncpa [#allocation5], 0 }
   0xa   :  { %15 = vsyncpa [#allocation5 + $0x1], 0  ;;  %s3408_s12 = smov 0   ;;  %s3410_s13 = smov 0  }
   0xb   :  { %s3412_s14 = smov 0   ;;  %s3414_s15 = smov 0  }
   0xc LB: > { %5063 = sst [smem:[#allocation15_spill]] %s3362_s12  ;;  %s3429_s16 = sadd.s32 4294967295, %s3374_s15   ;;  %s3374_s15 = sphi %s3414_s15, %s5195_s15   ;;  %s3370_s14 = sphi %s3412_s14, %s5198_s14   ;;  %s3366_s13 = sphi %s3410_s13, %s5197_s13   ;;  %s3362_s12 = sphi %s3408_s12, %s5196_s12  }
   0xd   : > { %5064 = sst [smem:[#allocation16_spill]] %s3366_s13  ;;  %s2751_s17 = sadd.s32 4294967294, %s3374_s15  }
   0xe   : > { %5065 = sst [smem:[#allocation17_spill]] %s3370_s14  ;;  %p41_p0 = scmp.ne.s32.totalorder %s3366_s13, %s3362_s12 }
   0xf   : > { %5066 = sst [smem:[#allocation18_spill]] %s3374_s15  ;;  %p5033_p1 = scmp.eq.s32.totalorder %s3429_s16, 0 }
  0x10   : > { %5067 = sst [smem:[#allocation19_spill]] %s3429_s16  ;;  %p113_p3 = scmp.eq.s32.totalorder %s2751_s17, 1 }
  0x11   : > { %p3438_p4 = por %p5033_p1, %p41_p0  ;;  %p2752_p5 = scmp.ge.s32.totalorder %s3374_s15, 1 }
  0x12   : > { %p3443_p6 = por %p113_p3, %p41_p0  ;;  %p120_p7 = scmp.lt.s32.totalorder %s3374_s15, 3 }
  0x13   : > { %s5068_s18 = scalar_select %p3438_p4, 1, 0 }
  0x14   : > { %s5069_s19 = scalar_select %p3443_p6, 1, 0 }
  0x15   : > { %p3448_p8 = pnand %p2752_p5, %p120_p7  ;;  %s3376_s21 = smov [#allocation7]  }
  0x16   : > { %5070 = sst [smem:[#allocation20_spill]] %s5069_s19  ;;  %s132_s22 = sshll.u32 %s3376_s21, 4  ;;  %s133_s22 = int_to_ptr.vmem [resolvable:$true] %s132_s22 }
  0x17   : > { %s5071_s20 = scalar_select %p3448_p8, 1, 0 }
  0x18   : > { %p3139_p9 = pneg %p3448_p8  ;;  %s5072_s2 = sld [smem:[#allocation61_spill]] }
  0x19   : > { %s5074_s1 = sld [smem:[#allocation60_spill]] }
  0x1a   : > { %p3460_p11 = pnand %p3139_p9, %p5033_p1 }
  0x1c   : > { %p3229_p13 = pneg %p3460_p11 }
  0x1e   : > { %s146_s25 = sshll.u32 %s5072_s2, 4  ;;  %s3464_s25 = int_to_ptr.vmem [resolvable:$true] %s146_s25 }
  0x1f   : > { %s3227_s29 = scalar_lea.hbm %s5074_s1, 256 }
  0x20   : > { %p3228_p12 = scmp.ne.s32.totalorder %s5074_s1, %s3227_s29  ;;  %p3234_p5 = scmp.lt.u32.totalorder %s3227_s29, %s5074_s1 }
  0x22   : > { %p3230_p0 = pnand %p3229_p13, %p3228_p12 }
  0x24   : > { %p3231_p3 = pneg %p3230_p0 }
  0x26   : > { %p3236_p7 = pnand %p3234_p5, %p3231_p3 }
  0x28   : > { %3239 = shalt.err (!%p3236_p7)
}
  0x29   : > { %s3240_s7 = scalar_lea.vmem %s133_s22, 256  ;;  %p3248_p2 = scmp.lt.s32.totalorder %s133_s22, %s133_s22 }
  0x2a   : > { %p3241_p9 = scmp.ne.s32.totalorder %s133_s22, %s3240_s7  ;;  %p3249_p6 = scmp.lt.s32.totalorder %s3240_s7, %s3240_s7 }
  0x2c   : > { %p3243_p10 = pnand %p3241_p9, %p3229_p13  ;;  %p3250_p4 = por %p3249_p6, %p3248_p2 }
  0x2e   : > { %p3244_p1 = pneg %p3243_p10 }
  0x30   : > { %p3251_p8 = pnand %p3250_p4, %p3244_p1 }
  0x32   : > { %3254 = shalt.err (!%p3251_p8)
}
  0x33   : > { %s3377_s8 = smov 128   ;;  %s3378_s9 = smov 8  }
  0x34   : > { %3142 = dma.hbm_to_vmem [thread:$0]  (!%p3460_p11), %s5074_s1, 256, %s133_s22, [#allocation8], %s3377_s8, %s3377_s8, %s3378_s9  }
  0x35   : > { %s3255_s17 = scalar_lea.vmem %s3464_s25, 48  ;;  %s3262_s21 = scalar_lea.vmem %s3464_s25, 64 }
  0x36   : > { %p3256_p2 = scmp.ne.s32.totalorder %s3464_s25, %s3255_s17  ;;  %p3263_p6 = scmp.lt.s32.totalorder %s3464_s25, %s3464_s25 }
  0x37   : > { %p3264_p8 = scmp.lt.s32.totalorder %s3262_s21, %s3255_s17 }
  0x38   : > { %p3258_p1 = pnand %p3256_p2, %p3229_p13 }
  0x39   : > { %p3265_p10 = por %p3264_p8, %p3263_p6 }
  0x3a   : > { %p3259_p4 = pneg %p3258_p1 }
  0x3c   : > { %p3266_p12 = pnand %p3265_p10, %p3259_p4 }
  0x3e   : > { %3269 = shalt.err (!%p3266_p12)
}
  0x3f   : > { %s3379_s23 = smov [#allocation9]   ;;  %s3503_s22 = sadd.s32 1, %s3374_s15  }
  0x40   : > { %3145 = dma.vmem_to_smem (!%p3460_p11), %s3464_s25, 48, %s3379_s23, [#allocation6]  }
  0x41   : > { %5075 = sst [smem:[#allocation21_spill]] %s3503_s22  ;;  %s28_s24 = sadd.s32 1, %s3370_s14 }
  0x42   : > { %s25_s27 = ssub.s32 %s3374_s15, %s3503_s22  ;;  %p35_p13 = scmp.ne.s32.totalorder %s3370_s14, %s3366_s13 }
  0x43   : > { %p26_p0 = scmp.eq.s32.totalorder %s25_s27, 0  ;;  %p36_p3 = scmp.eq.s32.totalorder %s3374_s15, 0 }
  0x44   : > { %p5076_p5 = scmp.eq.s32.totalorder %s3429_s16, 1  ;;  %p3156_p9 = scmp.lt.s32.totalorder %s3374_s15, 2 }
  0x45   : > { %s3519_s28 = scalar_select %p26_p0, %s3370_s14, %s28_s24  }
  0x46   : > { %p3513_p7 = por %p5076_p5, %p35_p13  ;;  %p37_p2 = por %p36_p3, %p35_p13 }
  0x47   : > { %5079 = sst [smem:[#allocation23_spill]] %s3519_s28  ;;  %s157_s29 = sand.u32 1, %s3370_s14  }
  0x48   : > { %s5077_s26 = scalar_select %p3513_p7, 1, 0 }
  0x49   : > { %s2756_s30 = sshll.u32 %s157_s29, 5  ;;  %s3067_s25 = sshll.u32 %s3374_s15, 9 }
  0x4a   : > { %5078 = sst [smem:[#allocation22_spill]] %s5077_s26  ;;  %s5080_s0 = sld [smem:[#allocation59_spill]] }
  0x4b   : > { %s161_s7 = scalar_lea.vmem [#allocation3], %s2756_s30  ;;  %p3530_p11 = pnand %p3156_p9, %p37_p2 }
  0x4c   : > { %s168_s10 = sshll.u32 %s161_s7, 4  ;;  %s3534_s17 = scalar_lea.sflag [#allocation4], %s157_s29  ;;  %s3528_s10 = int_to_ptr.vmem [resolvable:$true] %s168_s10 }
  0x4d   : > { %p3272_p4 = pneg %p3530_p11 }
  0x50   : > { %s3526_s6 = scalar_lea.hbm %s5080_s0, %s3067_s25  ;;  %s3275_s27 = scalar_lea.hbm %s5080_s0, 1024 }
  0x51   : > { %s3270_s21 = scalar_lea.hbm %s3526_s6, 512  ;;  %p3276_p10 = scmp.lt.u32.totalorder %s3526_s6, %s5080_s0 }
  0x52   : > { %p3271_p1 = scmp.ne.s32.totalorder %s3526_s6, %s3270_s21  ;;  %p3277_p12 = scmp.lt.u32.totalorder %s3275_s27, %s3270_s21 }
  0x53   : > { %p3279_p0 = scmp.lt.u32.totalorder %s3270_s21, %s3526_s6 }
  0x54   : > { %p3273_p6 = pnand %p3272_p4, %p3271_p1  ;;  %p3278_p13 = por %p3277_p12, %p3276_p10 }
  0x56   : > { %p3274_p8 = pneg %p3273_p6  ;;  %p3280_p3 = por %p3279_p0, %p3278_p13 }
  0x58   : > { %p3281_p5 = pnand %p3280_p3, %p3274_p8 }
  0x5a   : > { %3284 = shalt.err (!%p3281_p5)
}
  0x5b   : > { %s3285_s29 = scalar_lea.vmem %s3528_s10, 512  ;;  %s3380_s4 = smov [#allocation3]  }
  0x5c   : > { %p3286_p9 = scmp.ne.s32.totalorder %s3528_s10, %s3285_s29  ;;  %s3290_s5 = sshll.u32 %s3380_s4, 4  ;;  %s3291_s5 = int_to_ptr.vmem [resolvable:$false] %s3290_s5 }
  0x5d   : > { %s3292_s7 = scalar_lea.vmem %s3291_s5, 1024  ;;  %p3293_p6 = scmp.lt.s32.totalorder %s3528_s10, %s3291_s5 }
  0x5e   : > { %p3288_p2 = pnand %p3286_p9, %p3272_p4  ;;  %p3294_p10 = scmp.lt.s32.totalorder %s3292_s7, %s3285_s29 }
  0x60   : > { %p3289_p1 = pneg %p3288_p2  ;;  %p3295_p12 = por %p3294_p10, %p3293_p6 }
  0x62   : > { %p3296_p13 = pnand %p3295_p12, %p3289_p1 }
  0x64   : > { %3299 = shalt.err (!%p3296_p13)
}
  0x65   : > { %3149 = dma.hbm_to_vmem [thread:$0]  (!%p3530_p11), %s3526_s6, 512, %s3528_s10, %s3534_s17, %s3377_s8, %s3377_s8, %s3378_s9  }
  0x66   : > { %p5082_p4 = scmp.ne.s32.totalorder %s5071_s20, 0 }
  0x68   : > { %180 = sbr.rel (%p5082_p4) target bundleno = 1349 (0x545), region = 32 }
  0x6f   : > { %s3568_s21 = sand.u32 1, %s3366_s13   ;;  %p5083_p8 = scmp.ne.s32.totalorder %s5068_s18, 0 }
  0x70   : > { %s2760_s23 = sshll.u32 %s3568_s21, 5  ;;  %s183_s24 = scalar_lea.sflag [#allocation4], %s3568_s21 }
  0x71   : > { %s186_s27 = scalar_lea.vmem [#allocation3], %s2760_s23 }
  0x72   : > { %3345 = dma.done.wait (%p5083_p8), %s183_s24, 512  }
  0x73   : > { %3347 = vsyncadd (%p5083_p8), %s183_s24, 4294966784  ;;  %p5084_p0 = scmp.eq.s32.totalorder %s3429_s16, 0 }
  0x75   : > { %3349 = dma.done.wait (%p5084_p0), [#allocation8], 256   ;;  %p5085_p11 = pmov %p5084_p0 }
  0x76   : > { %p5086_p3 = pmov %p5084_p0 }
  0x77   : > { %3351 = vsyncadd (%p5085_p11), [#allocation8], 4294967040 }
  0x78   : > { %3353 = dma.done.wait (%p5086_p3), [#allocation6], 48   ;;  %p5087_p5 = pmov %p5084_p0 }
  0x7a   : > { %3355 = vsyncadd (%p5087_p5), [#allocation6], 4294967248 }
  0x7b   : > { %199 = sfence }
  0x7c   : > { %v218_v0 = vld [vmem:[%s186_s27] sm:$0xff]  ;;  %v220_v1 = vld [vmem:[%s186_s27 + $0x10] sm:$0xff]  ;;  %s3381_s20 = smov 112   ;;  %v243_v3 = vld [vmem:[#allocation7 + $0x8] sm:$0xff]  ;;  %vm244_vm0 = vcmask 130048   ;;  %vm354_vm1 = vcmask 73728  }
  0x7d   : > { %226 = vrot.lane.b32.xlu0 %v218_v0, %s3381_s20  ;;  %230 = vrot.lane.b32.xlu1 %v220_v1, %s3381_s20  ;;  %v242_v2 = vld [vmem:[#allocation7] sm:$0xff]  ;;  %v219_v4 = vld [vmem:[%s186_s27 + $0x8] sm:$0xff]  ;;  %v221_v5 = vld [vmem:[%s186_s27 + $0x18] sm:$0xff]  ;;  %v3382_v15 = vmov 0.0   ;;  %vm363_vm2 = vcmask 80896   ;;  %s2778_s18 = sld [smem:[#allocation9 + $0xb]] }
  0x7e   : > { %v3085_v6 = vpack.c.bf16 %v243_v3, %v242_v2  ;;  %356 = vst.msk [vmem:[#allocation2 + $0x10] sm:$0x1] %vm354_vm1, %v3382_v15  ;;  %355 = vst.msk [vmem:[#allocation2] sm:$0x1] %vm354_vm1, %v3382_v15  ;;  %s2777_s8 = sld [smem:[#allocation9 + $0xa]]  ;;  %s2781_s9 = sld [smem:[#allocation9 + $0xe]] }
  0x7f   : > { %357 = vst.msk [vmem:[#allocation2 + $0x20] sm:$0x1] %vm354_vm1, %v3382_v15  ;;  %358 = vst.msk [vmem:[#allocation2 + $0x30] sm:$0x1] %vm354_vm1, %v3382_v15  ;;  %s2780_s6 = sld [smem:[#allocation9 + $0xd]]  ;;  %s2784_s10 = sld [smem:[#allocation9 + $0x11]] }
  0x80   : > { %3086 = vmatprep.subr.bf16.mxu0 %v3085_v6  ;;  %3089 = vmatprep.subr.bf16.mxu1 %v3085_v6  ;;  %359 = vst.msk [vmem:[#allocation2 + $0x9] sm:$0x1] %vm354_vm1, %v3382_v15  ;;  %360 = vst.msk [vmem:[#allocation2 + $0x19] sm:$0x1] %vm354_vm1, %v3382_v15  ;;  %s2783_s11 = sld [smem:[#allocation9 + $0x10]]  ;;  %s2796_s17 = sld [smem:[#allocation9 + $0x1d]] }
  0x81   : > { %228 = vrot.lane.b32.xlu0 %v219_v4, %s3381_s20  ;;  %232 = vrot.lane.b32.xlu1 %v221_v5, %s3381_s20  ;;  %361 = vst.msk [vmem:[#allocation2 + $0x29] sm:$0x1] %vm354_vm1, %v3382_v15  ;;  %362 = vst.msk [vmem:[#allocation2 + $0x39] sm:$0x1] %vm354_vm1, %v3382_v15  ;;  %s2795_s30 = sld [smem:[#allocation9 + $0x1c]]  ;;  %s5036_s25 = smov 126  }
  0x82   : > { %3088 = vmatpush3.bf16.msra.mxu0 %v3085_v6  ;;  %3090 = vmatpush3.bf16.msra.mxu1 %v3085_v6  ;;  %s5038_s29 = smov 127   ;;  %s2799_s4 = sld [smem:[#allocation9 + $0x20]]  ;;  %vm623_vm7 = vcmask 64512  }
  0x83   : > { %v446_v28 = vstv %s2778_s18  ;;  %s2798_s5 = sld [smem:[#allocation9 + $0x1f]]  ;;  %s2802_s7 = sld [smem:[#allocation9 + $0x23]] }
  0x84   : > { %v438_v29 = vstv %s2777_s8  ;;  %v467_v34 = vstv %s2781_s9  ;;  %s2801_s23 = sld [smem:[#allocation9 + $0x22]]  ;;  %s2814_s24 = sld [smem:[#allocation9 + $0x2f]] }
  0x85   : > { %v459_v35 = vstv %s2780_s6  ;;  %v488_v39 = vstv %s2784_s10  ;;  %s2813_s27 = sld [smem:[#allocation9 + $0x2e]]  ;;  %s2817_s20 = sld [smem:[#allocation9 + $0x32]] }
  0x86   : > { %v480_v40 = vstv %s2783_s11  ;;  %v574_v44 = vstv %s2796_s17  ;;  %s2816_s18 = sld [smem:[#allocation9 + $0x31]]  ;;  %s2820_s8 = sld [smem:[#allocation9 + $0x35]] }
  0x87   : > { %v566_v45 = vstv %s2795_s30  ;;  %s2819_s9 = sld [smem:[#allocation9 + $0x34]]  ;;  %s2832_s6 = sld [smem:[#allocation9 + $0x41]] }
  0x88   : > { %v595_v49 = vstv %s2799_s4  ;;  %s2831_s10 = sld [smem:[#allocation9 + $0x40]]  ;;  %s2835_s11 = sld [smem:[#allocation9 + $0x44]] }
  0x89   : > { %v587_v50 = vstv %s2798_s5  ;;  %v616_v54 = vstv %s2802_s7  ;;  %s2834_s17 = sld [smem:[#allocation9 + $0x43]]  ;;  %s2838_s30 = sld [smem:[#allocation9 + $0x47]] }
  0x8a   : > { %v608_v55 = vstv %s2801_s23  ;;  %v725_v58 = vstv %s2814_s24  ;;  %s2837_s4 = sld [smem:[#allocation9 + $0x46]]  ;;  %s2851_s5 = sld [smem:[#allocation9 + $0x53]] }
  0x8b   : > { %v717_v59 = vstv %s2813_s27  ;;  %v746_v62 = vstv %s2817_s20  ;;  %s2850_s7 = sld [smem:[#allocation9 + $0x52]]  ;;  %s2854_s23 = sld [smem:[#allocation9 + $0x56]] }
  0x8c   : > { %v738_v63 = vstv %s2816_s18  ;;  %v767_v2 = vstv %s2820_s8  ;;  %s2853_s24 = sld [smem:[#allocation9 + $0x55]]  ;;  %s2857_s27 = sld [smem:[#allocation9 + $0x59]] }
  0x8d   : > { %v759_v3 = vstv %s2819_s9  ;;  %v851_v6 = vstv %s2832_s6  ;;  %s2856_s20 = sld [smem:[#allocation9 + $0x58]]  ;;  %s2888_s18 = sld [smem:[#allocation9 + $0x77]] }
  0x8e   : > { %s2887_s8 = sld [smem:[#allocation9 + $0x76]]  ;;  %s2925_s9 = sld [smem:[#allocation9 + $0x9b]] }
  0x8f   : > { %s2924_s6 = sld [smem:[#allocation9 + $0x9a]]  ;;  %s5119_s1 = smov 127  }
  0x90   : > { %v885_v15 = vstv %s2837_s4  ;;  %s2999_s4 = sld [smem:[#allocation9 + $0xe3]]  ;;  %s4088_s0 = sld [smem:[#allocation9 + $0x12]] }
  0x91   : > { %s4092_s2 = sld [smem:[#allocation9 + $0x2a]]  ;;  %s4107_s28 = sld [smem:[#allocation9 + $0x61]] }
  0x92   : > { %s4114_s14 = sld [smem:[#allocation9 + $0x15]]  ;;  %s4116_s13 = sld [smem:[#allocation9 + $0x18]] }
  0x93   : > { %s4137_s22 = sld [smem:[#allocation9 + $0x39]]  ;;  %s4141_s15 = sld [smem:[#allocation9 + $0x85]] }
  0x94   : > { %s4143_s19 = sld [smem:[#allocation9 + $0xca]]  ;;  %s4149_s12 = sld [smem:[#allocation9 + $0x3c]] }
  0x95   : > { %s4151_s26 = sld [smem:[#allocation9 + $0x3f]]  ;;  %s4183_s3 = sld [smem:[#allocation9 + $0x112]] }
  0x96   : > { %s4195_s16 = sld [smem:[#allocation9 + $0x6c]] }
  0xef   : > { %v227_v7 = vpop.permute.xlu0 %226  ;;  %v231_v8 = vpop.permute.xlu1 %230 }
  0xf0   : > { %v238_v9 = vadd.f32 %v227_v7, %v218_v0  ;;  %v240_v10 = vadd.f32 %v231_v8, %v220_v1  ;;  %v843_v7 = vstv %s2831_s10  ;;  %s2962_s10 = sld [smem:[#allocation9 + $0xbf]] }
  0xf2   : > { %3079 = vmatprep.mubr.msk.f32.mxu0 %vm244_vm0, %v238_v9  ;;  %3082 = vmatprep.mubr.msk.f32.mxu1 %vm244_vm0, %v240_v10  ;;  %v872_v10 = vstv %s2835_s11  ;;  %s2961_s11 = sld [smem:[#allocation9 + $0xbe]] }
  0xf3   : > { %v229_v11 = vpop.permute.xlu0 %228  ;;  %v233_v12 = vpop.permute.xlu1 %232 }
  0xf4   : > { %v239_v13 = vadd.f32 %v229_v11, %v219_v4  ;;  %v241_v14 = vadd.f32 %v233_v12, %v221_v5  ;;  %v864_v11 = vstv %s2834_s17  ;;  %s2891_s17 = sld [smem:[#allocation9 + $0x7a]] }
  0xf6   : > { %3080 = vmatmul.mubr.msk.f32.vlgmr.msra.gmra.mrb[0].mxu0 %vm244_vm0, %v239_v13  ;;  %3083 = vmatmul.mubr.msk.f32.vlgmr.msra.gmra.mrb[0].mxu1 %vm244_vm0, %v241_v14  ;;  %v893_v14 = vstv %s2838_s30  ;;  %s2890_s30 = sld [smem:[#allocation9 + $0x79]] }
 0x1c9   : > { %v3081_v16 = vpop.f32.mrb[0].mxu0  ;;  %v3084_v17 = vpop.f32.mrb[0].mxu1 }
 0x1ca   : > { %vm343_vm3 = vcmp.gt.f32.partialorder %v3081_v16, 0.0  ;;  %v347_v18 = vmul.f32 0.2, %v3081_v16  ;;  %v323_v19 = vpop.f32.mrb[1].mxu0  ;;  %vm345_vm4 = vcmp.gt.f32.partialorder %v3084_v17, 0.0  ;;  %v333_v20 = vpop.f32.mrb[1].mxu1 }
 0x1cb   : > { %vm342_vm5 = vcmp.gt.f32.partialorder %v323_v19, 0.0  ;;  %v346_v21 = vmul.f32 0.2, %v323_v19  ;;  %v349_v22 = vmul.f32 0.2, %v3084_v17  ;;  %vm344_vm6 = vcmp.gt.f32.partialorder %v333_v20, 0.0 }
 0x1cc   : > { %v351_v23 = vsel %vm343_vm3, %v3081_v16, %v347_v18  ;;  %v348_v24 = vmul.f32 0.2, %v333_v20  ;;  %v1002_v18 = vstv %s2851_s5  ;;  %s2998_s5 = sld [smem:[#allocation9 + $0xe2]] }
 0x1cd   : > { %365 = vst.msk [vmem:[#allocation2 + $0x11] sm:$0xff] %vm363_vm2, %v351_v23  ;;  %v350_v25 = vsel %vm342_vm5, %v323_v19, %v346_v21  ;;  %v353_v26 = vsel %vm345_vm4, %v3084_v17, %v349_v22  ;;  %v994_v19 = vstv %s2850_s7  ;;  %v1023_v22 = vstv %s2854_s23  ;;  %s2928_s7 = sld [smem:[#allocation9 + $0x9e]]  ;;  %s2927_s23 = sld [smem:[#allocation9 + $0x9d]] }
 0x1ce   : > { %364 = vst.msk [vmem:[#allocation2 + $0x1] sm:$0xff] %vm363_vm2, %v350_v25  ;;  %367 = vst.msk [vmem:[#allocation2 + $0x31] sm:$0xff] %vm363_vm2, %v353_v26  ;;  %v352_v27 = vsel %vm344_vm6, %v333_v20, %v348_v24  ;;  %v1015_v23 = vstv %s2853_s24  ;;  %v1044_v26 = vstv %s2857_s27  ;;  %s3036_s24 = sld [smem:[#allocation9 + $0x107]]  ;;  %s3035_s27 = sld [smem:[#allocation9 + $0x106]] }
 0x1cf   : > { %366 = vst.msk [vmem:[#allocation2 + $0x21] sm:$0xff] %vm363_vm2, %v352_v27  ;;  %v1036_v27 = vstv %s2856_s20  ;;  %s2965_s20 = sld [smem:[#allocation9 + $0xc2]] }
 0x1d4   : > { %v3588_v30 = vld [vmem:[#allocation2 + $0x10] sm:$0xff] }
 0x1d5   : > { %v447_v31 = vmul.f32 %v446_v28, %v3588_v30  ;;  %v439_v32 = vmul.f32 %v438_v29, %v3588_v30  ;;  %v3592_v33 = vld [vmem:[#allocation2 + $0x11] sm:$0xff]  ;;  %v726_v60 = vmul.f32 %v725_v58, %v3588_v30  ;;  %v718_v61 = vmul.f32 %v717_v59, %v3588_v30 }
 0x1d6   : > { %v468_v36 = vmul.f32 %v467_v34, %v3592_v33  ;;  %v460_v37 = vmul.f32 %v459_v35, %v3592_v33  ;;  %v3598_v38 = vld [vmem:[#allocation2 + $0x12] sm:$0xff]  ;;  %v747_v0 = vmul.f32 %v746_v62, %v3592_v33  ;;  %v739_v1 = vmul.f32 %v738_v63, %v3592_v33 }
 0x1d7   : > { %449 = vrot.lane.b32.xlu1 %v447_v31, %s5036_s25  ;;  %441 = vrot.lane.b32.xlu0 %v439_v32, %s5038_s29  ;;  %v489_v41 = vmul.f32 %v488_v39, %v3598_v38  ;;  %v481_v42 = vmul.f32 %v480_v40, %v3598_v38  ;;  %v3604_v43 = vld [vmem:[#allocation2 + $0x30] sm:$0xff]  ;;  %v768_v4 = vmul.f32 %v767_v2, %v3598_v38  ;;  %v1279_v31 = vstv %s2888_s18  ;;  %s2964_s18 = sld [smem:[#allocation9 + $0xc1]] }
 0x1d8   : > { %v575_v46 = vmul.f32 %v574_v44, %v3604_v43  ;;  %v567_v47 = vmul.f32 %v566_v45, %v3604_v43  ;;  %v582_v48 = vld [vmem:[#allocation2 + $0x31] sm:$0xff]  ;;  %v760_v5 = vmul.f32 %v759_v3, %v3598_v38  ;;  %v852_v8 = vmul.f32 %v851_v6, %v3604_v43 }
 0x1d9   : > { %v596_v51 = vmul.f32 %v595_v49, %v582_v48  ;;  %v588_v52 = vmul.f32 %v587_v50, %v582_v48  ;;  %v603_v53 = vld [vmem:[#allocation2 + $0x32] sm:$0xff]  ;;  %v844_v9 = vmul.f32 %v843_v7, %v3604_v43  ;;  %v873_v12 = vmul.f32 %v872_v10, %v582_v48 }
 0x1da   : > { %v617_v56 = vmul.f32 %v616_v54, %v603_v53  ;;  %v609_v57 = vmul.f32 %v608_v55, %v603_v53  ;;  %v865_v13 = vmul.f32 %v864_v11, %v582_v48  ;;  %v894_v16 = vmul.f32 %v893_v14, %v603_v53 }
 0x1db   : > { %470 = vrot.lane.b32.xlu1 %v468_v36, %s5036_s25  ;;  %462 = vrot.lane.b32.xlu0 %v460_v37, %s5038_s29  ;;  %v886_v17 = vmul.f32 %v885_v15, %v603_v53  ;;  %v1003_v20 = vmul.f32 %v1002_v18, %v3588_v30  ;;  %v995_v21 = vmul.f32 %v994_v19, %v3588_v30  ;;  %v1271_v32 = vstv %s2887_s8  ;;  %s2894_s8 = sld [smem:[#allocation9 + $0x7d]] }
 0x1dc   : > { %v1024_v24 = vmul.f32 %v1023_v22, %v3592_v33  ;;  %v1016_v25 = vmul.f32 %v1015_v23, %v3592_v33  ;;  %v1045_v28 = vmul.f32 %v1044_v26, %v3598_v38  ;;  %v1037_v29 = vmul.f32 %v1036_v27, %v3598_v38 }
 0x1dd   : > { %v1280_v34 = vmul.f32 %v1279_v31, %v3588_v30  ;;  %v1272_v35 = vmul.f32 %v1271_v32, %v3588_v30  ;;  %v1556_v36 = vstv %s2925_s9  ;;  %v1548_v37 = vstv %s2924_s6  ;;  %s2893_s9 = sld [smem:[#allocation9 + $0x7c]]  ;;  %s3002_s6 = sld [smem:[#allocation9 + $0xe6]]  ;;  %v3710_v32 = vld [vmem:[#allocation2] sm:$0xff] }
 0x1de   : > { %v1557_v39 = vmul.f32 %v1556_v36, %v3588_v30  ;;  %v1549_v40 = vmul.f32 %v1548_v37, %v3588_v30  ;;  %v2110_v50 = vstv %s2999_s4  ;;  %v1577_v54 = vstv %s2928_s7  ;;  %s3038_s4 = sld [smem:[#allocation9 + $0x109]]  ;;  %s2967_s7 = sld [smem:[#allocation9 + $0xc4]] }
 0x1df   : > { %491 = vrot.lane.b32.xlu1 %v489_v41, %s5036_s25  ;;  %483 = vrot.lane.b32.xlu0 %v481_v42, %s5038_s29  ;;  %v1833_v41 = vstv %s2962_s10  ;;  %v1825_v42 = vstv %s2961_s11  ;;  %s3001_s10 = sld [smem:[#allocation9 + $0xe5]]  ;;  %s2931_s11 = sld [smem:[#allocation9 + $0xa1]] }
 0x1e0   : > { %v1834_v44 = vmul.f32 %v1833_v41, %v3588_v30  ;;  %v1826_v45 = vmul.f32 %v1825_v42, %v3588_v30  ;;  %v1569_v55 = vstv %s2927_s23  ;;  %v2387_v58 = vstv %s3036_s24  ;;  %s3041_s23 = sld [smem:[#allocation9 + $0x10c]]  ;;  %s2968_s24 = sld [smem:[#allocation9 + $0xc5]] }
 0x1e1   : > { %v2379_v59 = vstv %s3035_s27  ;;  %v1854_v62 = vstv %s2965_s20  ;;  %v1846_v63 = vstv %s2964_s18  ;;  %v1321_v2 = vstv %s2894_s8  ;;  %s3042_s27 = sld [smem:[#allocation9 + $0x10d]]  ;;  %s3005_s20 = sld [smem:[#allocation9 + $0xe9]] }
 0x1e2   : > { %s2868_s18 = sld [smem:[#allocation9 + $0x64]]  ;;  %s2769_s8 = sld [smem:[#allocation9 + $0x2]] }
 0x1e3   : > { %577 = vrot.lane.b32.xlu1 %v575_v46, %s5036_s25  ;;  %569 = vrot.lane.b32.xlu0 %v567_v47, %s5038_s29  ;;  %v1300_v46 = vstv %s2891_s17  ;;  %v1292_v47 = vstv %s2890_s30  ;;  %s2930_s17 = sld [smem:[#allocation9 + $0xa0]]  ;;  %s3039_s30 = sld [smem:[#allocation9 + $0x10a]] }
 0x1e4   : > { %v1301_v48 = vmul.f32 %v1300_v46, %v3592_v33  ;;  %v1293_v49 = vmul.f32 %v1292_v47, %v3592_v33  ;;  %v1313_v3 = vstv %s2893_s9  ;;  %v2400_v14 = vstv %s3038_s4  ;;  %s2772_s9 = sld [smem:[#allocation9 + $0x5]]  ;;  %v3730_v46 = vld [vmem:[#allocation2 + $0x2] sm:$0xff]  ;;  %s2790_s4 = sld [smem:[#allocation9 + $0x17]] }
 0x1e5   : > { %v2123_v6 = vstv %s3001_s10  ;;  %v1867_v18 = vstv %s2967_s7  ;;  %s2775_s10 = sld [smem:[#allocation9 + $0x8]]  ;;  %s2793_s7 = sld [smem:[#allocation9 + $0x1a]] }
 0x1e6   : > { %v1875_v22 = vstv %s2968_s24  ;;  %s2805_s24 = sld [smem:[#allocation9 + $0x26]] }
 0x1e7   : > { %598 = vrot.lane.b32.xlu1 %v596_v51, %s5036_s25  ;;  %590 = vrot.lane.b32.xlu0 %v588_v52, %s5038_s29  ;;  %v2102_v51 = vstv %s2998_s5  ;;  %v2111_v52 = vmul.f32 %v2110_v50, %v3588_v30  ;;  %s3004_s5 = sld [smem:[#allocation9 + $0xe8]]  ;;  %v1876_v23 = vmul.f32 %v1875_v22, %v3598_v38 }
 0x1e8   : > { %v2103_v53 = vmul.f32 %v2102_v51, %v3588_v30  ;;  %v1120_v31 = vstv %s2868_s18  ;;  %s2804_s18 = sld [smem:[#allocation9 + $0x25]] }
 0x1e9   : > { %v1590_v10 = vstv %s2930_s17  ;;  %v1121_v37 = vmul.f32 %v1120_v31, %v3604_v43  ;;  %s2787_s17 = sld [smem:[#allocation9 + $0x14]] }
 0x1eb   : > { %619 = vrot.lane.b32.xlu1 %v617_v56, %s5036_s25  ;;  %611 = vrot.lane.b32.xlu0 %v609_v57, %s5038_s29  ;;  %v1578_v56 = vmul.f32 %v1577_v54, %v3592_v33  ;;  %v1570_v57 = vmul.f32 %v1569_v55, %v3592_v33  ;;  %v424_v47 = vstv %s2775_s10  ;;  %s2810_s10 = sld [smem:[#allocation9 + $0x2b]] }
 0x1ec   : > { %v425_v51 = vmul.f32 %v424_v47, %v3730_v46 }
 0x1ef   : > { %728 = vrot.lane.b32.xlu1 %v726_v60, %s5036_s25  ;;  %720 = vrot.lane.b32.xlu0 %v718_v61, %s5038_s29  ;;  %v2388_v60 = vmul.f32 %v2387_v58, %v3588_v30  ;;  %v2380_v61 = vmul.f32 %v2379_v59, %v3588_v30  ;;  %v1322_v30 = vmul.f32 %v1321_v2, %v3598_v38  ;;  %v510_v54 = vstv %s2787_s17  ;;  %s2822_s17 = sld [smem:[#allocation9 + $0x37]] }
 0x1f3   : > { %749 = vrot.lane.b32.xlu1 %v747_v0, %s5036_s25  ;;  %741 = vrot.lane.b32.xlu0 %v739_v1, %s5038_s29  ;;  %v1855_v0 = vmul.f32 %v1854_v62, %v3592_v33  ;;  %v1847_v1 = vmul.f32 %v1846_v63, %v3592_v33 }
 0x1f7   : > { %770 = vrot.lane.b32.xlu1 %v768_v4, %s5036_s25  ;;  %762 = vrot.lane.b32.xlu0 %v760_v5, %s5038_s29  ;;  %v1314_v4 = vmul.f32 %v1313_v3, %v3598_v38  ;;  %v2131_v5 = vstv %s3002_s6  ;;  %s2768_s6 = sld [smem:[#allocation9 + $0x1]]  ;;  %v3760_v3 = vld [vmem:[#allocation2 + $0x22] sm:$0xff] }
 0x1f8   : > { %v2132_v7 = vmul.f32 %v2131_v5, %v3592_v33 }
 0x1fb   : > { %854 = vrot.lane.b32.xlu1 %v852_v8, %s5036_s25  ;;  %846 = vrot.lane.b32.xlu0 %v844_v9, %s5038_s29  ;;  %v2124_v8 = vmul.f32 %v2123_v6, %v3592_v33  ;;  %v1598_v9 = vstv %s2931_s11  ;;  %s2771_s11 = sld [smem:[#allocation9 + $0x4]] }
 0x1fc   : > { %v1599_v11 = vmul.f32 %v1598_v9, %v3598_v38  ;;  %v662_v9 = vstv %s2805_s24  ;;  %s2841_s24 = sld [smem:[#allocation9 + $0x49]] }
 0x1fd   : > { %v374_v41 = vstv %s2768_s6  ;;  %s2823_s6 = sld [smem:[#allocation9 + $0x38]] }
 0x1fe   : > { %v375_v43 = vmul.f32 %v374_v41, %v3710_v32  ;;  %v780_v41 = vstv %s2822_s17  ;;  %s2953_s17 = sld [smem:[#allocation9 + $0xb6]] }
 0x1ff   : > { %875 = vrot.lane.b32.xlu1 %v873_v12, %s5036_s25  ;;  %867 = vrot.lane.b32.xlu0 %v865_v13, %s5038_s29  ;;  %v1591_v12 = vmul.f32 %v1590_v10, %v3598_v38  ;;  %v2408_v13 = vstv %s3039_s30  ;;  %s2774_s30 = sld [smem:[#allocation9 + $0x7]] }
 0x200   : > { %v2409_v15 = vmul.f32 %v2408_v13, %v3592_v33  ;;  %v663_v13 = vmul.f32 %v662_v9, %v3710_v32 }
 0x203   : > { %896 = vrot.lane.b32.xlu1 %v894_v16, %s5036_s25  ;;  %888 = vrot.lane.b32.xlu0 %v886_v17, %s5038_s29  ;;  %v2401_v16 = vmul.f32 %v2400_v14, %v3592_v33  ;;  %v2144_v17 = vstv %s3004_s5  ;;  %s2786_s5 = sld [smem:[#allocation9 + $0x13]] }
 0x204   : > { %v2145_v19 = vmul.f32 %v2144_v17, %v3598_v38 }
 0x205   : > { %v416_v55 = vstv %s2774_s30  ;;  %s2829_s30 = sld [smem:[#allocation9 + $0x3e]] }
 0x206   : > { %v417_v59 = vmul.f32 %v416_v55, %v3730_v46 }
 0x207   : > { %1005 = vrot.lane.b32.xlu1 %v1003_v20, %s5036_s25  ;;  %997 = vrot.lane.b32.xlu0 %v995_v21, %s5038_s29  ;;  %v1868_v20 = vmul.f32 %v1867_v18, %v3598_v38  ;;  %v2421_v21 = vstv %s3041_s23  ;;  %s2789_s23 = sld [smem:[#allocation9 + $0x16]] }
 0x208   : > { %v2422_v33 = vmul.f32 %v2421_v21, %v3598_v38 }
 0x209   : > { %v502_v62 = vstv %s2786_s5  ;;  %s2842_s5 = sld [smem:[#allocation9 + $0x4a]] }
 0x20b   : > { %1026 = vrot.lane.b32.xlu1 %v1024_v24, %s5036_s25  ;;  %1018 = vrot.lane.b32.xlu0 %v1016_v25, %s5038_s29  ;;  %v2429_v24 = vstv %s3042_s27  ;;  %v2152_v25 = vstv %s3005_s20  ;;  %s2792_s27 = sld [smem:[#allocation9 + $0x19]] }
 0x20c   : > { %s2808_s20 = sld [smem:[#allocation9 + $0x29]] }
 0x20f   : > { %1047 = vrot.lane.b32.xlu1 %v1045_v28, %s5036_s25  ;;  %1039 = vrot.lane.b32.xlu0 %v1037_v29, %s5038_s29  ;;  %v2430_v28 = vmul.f32 %v2429_v24, %v3598_v38  ;;  %v2153_v29 = vmul.f32 %v2152_v25, %v3598_v38  ;;  %v403_v38 = vstv %s2772_s9  ;;  %s2807_s9 = sld [smem:[#allocation9 + $0x28]] }
 0x211   : > { %v544_v10 = vstv %s2792_s27  ;;  %s2848_s27 = sld [smem:[#allocation9 + $0x50]] }
 0x212   : > { %v545_v14 = vmul.f32 %v544_v10, %v3760_v3 }
 0x213   : > { %1282 = vrot.lane.b32.xlu1 %v1280_v34, %s5036_s25  ;;  %1274 = vrot.lane.b32.xlu0 %v1272_v35, %s5038_s29  ;;  %v382_v34 = vstv %s2769_s8  ;;  %s2811_s8 = sld [smem:[#allocation9 + $0x2c]] }
 0x215   : > { %v675_v22 = vstv %s2807_s9  ;;  %s2915_s9 = sld [smem:[#allocation9 + $0x91]] }
 0x217   : > { %1559 = vrot.lane.b32.xlu1 %v1557_v39, %s5036_s25  ;;  %1551 = vrot.lane.b32.xlu0 %v1549_v40, %s5038_s29  ;;  %v383_v39 = vmul.f32 %v382_v34, %v3710_v32  ;;  %v3720_v40 = vld [vmem:[#allocation2 + $0x1] sm:$0xff] }
 0x218   : > { %v676_v25 = vmul.f32 %v675_v22, %v3720_v40 }
 0x219   : > { %v704_v21 = vstv %s2811_s8  ;;  %s2847_s8 = sld [smem:[#allocation9 + $0x4f]] }
 0x21a   : > { %v705_v24 = vmul.f32 %v704_v21, %v3730_v46 }
 0x21b   : > { %1836 = vrot.lane.b32.xlu1 %v1834_v44, %s5036_s25  ;;  %1828 = vrot.lane.b32.xlu0 %v1826_v45, %s5038_s29  ;;  %v404_v45 = vmul.f32 %v403_v38, %v3720_v40 }
 0x21f   : > { %1303 = vrot.lane.b32.xlu1 %v1301_v48, %s5036_s25  ;;  %1295 = vrot.lane.b32.xlu0 %v1293_v49, %s5038_s29  ;;  %v395_v48 = vstv %s2771_s11  ;;  %s2826_s11 = sld [smem:[#allocation9 + $0x3b]] }
 0x223   : > { %2113 = vrot.lane.b32.xlu1 %v2111_v52, %s5036_s25  ;;  %2105 = vrot.lane.b32.xlu0 %v2103_v53, %s5038_s29  ;;  %v396_v52 = vmul.f32 %v395_v48, %v3720_v40  ;;  %v3740_v53 = vld [vmem:[#allocation2 + $0x20] sm:$0xff] }
 0x224   : > { %v511_v58 = vmul.f32 %v510_v54, %v3740_v53  ;;  %v503_v2 = vmul.f32 %v502_v62, %v3740_v53  ;;  %v781_v48 = vmul.f32 %v780_v41, %v3740_v53 }
 0x225   : > { %v809_v38 = vstv %s2826_s11  ;;  %s2879_s11 = sld [smem:[#allocation9 + $0x6e]] }
 0x227   : > { %1580 = vrot.lane.b32.xlu1 %v1578_v56, %s5036_s25  ;;  %1572 = vrot.lane.b32.xlu0 %v1570_v57, %s5038_s29 }
 0x22b   : > { %2390 = vrot.lane.b32.xlu1 %v2388_v60, %s5036_s25  ;;  %2382 = vrot.lane.b32.xlu0 %v2380_v61, %s5038_s29  ;;  %v3750_v60 = vld [vmem:[#allocation2 + $0x21] sm:$0xff]  ;;  %v531_v61 = vstv %s2790_s4  ;;  %s2825_s4 = sld [smem:[#allocation9 + $0x3a]] }
 0x22c   : > { %v810_v47 = vmul.f32 %v809_v38, %v3750_v60  ;;  %v1485_v38 = vstv %s2915_s9  ;;  %s2955_s9 = sld [smem:[#allocation9 + $0xb8]] }
 0x22f   : > { %1857 = vrot.lane.b32.xlu1 %v1855_v0, %s5036_s25  ;;  %1849 = vrot.lane.b32.xlu0 %v1847_v1, %s5038_s29  ;;  %v532_v1 = vmul.f32 %v531_v61, %v3750_v60  ;;  %v939_v61 = vstv %s2842_s5  ;;  %s2881_s5 = sld [smem:[#allocation9 + $0x70]] }
 0x233   : > { %1324 = vrot.lane.b32.xlu1 %v1322_v30, %s5036_s25  ;;  %1316 = vrot.lane.b32.xlu0 %v1314_v4, %s5038_s29  ;;  %v552_v30 = vstv %s2793_s7  ;;  %v523_v4 = vstv %s2789_s23  ;;  %s2828_s7 = sld [smem:[#allocation9 + $0x3d]] }
 0x234   : > { %s2845_s23 = sld [smem:[#allocation9 + $0x4d]] }
 0x237   : > { %2134 = vrot.lane.b32.xlu1 %v2132_v7, %s5036_s25  ;;  %2126 = vrot.lane.b32.xlu0 %v2124_v8, %s5038_s29  ;;  %v553_v7 = vmul.f32 %v552_v30, %v3760_v3  ;;  %v524_v8 = vmul.f32 %v523_v4, %v3750_v60  ;;  %v940_v30 = vmul.f32 %v939_v61, %v3710_v32 }
 0x239   : > { %v822_v62 = vstv %s2828_s7  ;;  %s2990_s7 = sld [smem:[#allocation9 + $0xda]] }
 0x23a   : > { %v823_v4 = vmul.f32 %v822_v62, %v3760_v3 }
 0x23b   : > { %1601 = vrot.lane.b32.xlu1 %v1599_v11, %s5036_s25  ;;  %1593 = vrot.lane.b32.xlu0 %v1591_v12, %s5038_s29 }
 0x23f   : > { %2411 = vrot.lane.b32.xlu1 %v2409_v15, %s5036_s25  ;;  %2403 = vrot.lane.b32.xlu0 %v2401_v16, %s5038_s29  ;;  %v683_v15 = vstv %s2808_s20  ;;  %v654_v16 = vstv %s2804_s18  ;;  %s2844_s20 = sld [smem:[#allocation9 + $0x4c]]  ;;  %s2878_s18 = sld [smem:[#allocation9 + $0x6d]] }
 0x243   : > { %2147 = vrot.lane.b32.xlu1 %v2145_v19, %s5038_s29  ;;  %1870 = vrot.lane.b32.xlu0 %v1868_v20, %s5038_s29  ;;  %v684_v19 = vmul.f32 %v683_v15, %v3720_v40  ;;  %v655_v20 = vmul.f32 %v654_v16, %v3710_v32  ;;  %v981_v15 = vstv %s2848_s27  ;;  %s2918_s27 = sld [smem:[#allocation9 + $0x94]] }
 0x244   : > { %v982_v21 = vmul.f32 %v981_v15, %v3730_v46 }
 0x245   : > { %v952_v16 = vstv %s2844_s20  ;;  %s3027_s20 = sld [smem:[#allocation9 + $0xfe]] }
 0x246   : > { %v953_v22 = vmul.f32 %v952_v16, %v3720_v40 }
 0x247   : > { %2424 = vrot.lane.b32.xlu1 %v2422_v33, %s5038_s29  ;;  %1878 = vrot.lane.b32.xlu0 %v1876_v23, %s5036_s25 }
 0x249   : > { %v3704_v26 = vpop.permute.xlu1 %449  ;;  %v3706_v27 = vpop.permute.xlu0 %441 }
 0x24b   : > { %2432 = vrot.lane.b32.xlu1 %v2430_v28, %s5036_s25  ;;  %2155 = vrot.lane.b32.xlu0 %v2153_v29, %s5036_s25  ;;  %v788_v28 = vstv %s2823_s6  ;;  %v696_v29 = vstv %s2810_s10  ;;  %s2859_s6 = sld [smem:[#allocation9 + $0x5b]]  ;;  %s2952_s10 = sld [smem:[#allocation9 + $0xb5]] }
 0x24d   : > { %v3714_v35 = vpop.permute.xlu1 %470  ;;  %v3716_v36 = vpop.permute.xlu0 %462 }
 0x24f   : > { %1123 = vrot.lane.b32.xlu0 %v1121_v37, %s5038_s29  ;;  %385 = vrot.lane.b32.xlu1 %v383_v39, %s5036_s25  ;;  %v789_v37 = vmul.f32 %v788_v28, %v3740_v53  ;;  %v697_v39 = vmul.f32 %v696_v29, %v3730_v46 }
 0x251   : > { %v3724_v42 = vpop.permute.xlu1 %491  ;;  %v3726_v44 = vpop.permute.xlu0 %483  ;;  %v1057_v41 = vstv %s2859_s6  ;;  %s2885_s6 = sld [smem:[#allocation9 + $0x74]] }
 0x253   : > { %406 = vrot.lane.b32.xlu1 %v404_v45, %s5036_s25  ;;  %377 = vrot.lane.b32.xlu0 %v375_v43, %s5038_s29 }
 0x255   : > { %v3734_v49 = vpop.permute.xlu1 %577  ;;  %v3736_v50 = vpop.permute.xlu0 %569 }
 0x257   : > { %427 = vrot.lane.b32.xlu1 %v425_v51, %s5036_s25  ;;  %398 = vrot.lane.b32.xlu0 %v396_v52, %s5038_s29  ;;  %v830_v51 = vstv %s2829_s30  ;;  %v801_v52 = vstv %s2825_s4  ;;  %s2916_s30 = sld [smem:[#allocation9 + $0x92]]  ;;  %s2882_s4 = sld [smem:[#allocation9 + $0x71]] }
 0x259   : > { %v3744_v56 = vpop.permute.xlu1 %598  ;;  %v3746_v57 = vpop.permute.xlu0 %590 }
 0x25b   : > { %513 = vrot.lane.b32.xlu1 %v511_v58, %s5036_s25  ;;  %419 = vrot.lane.b32.xlu0 %v417_v59, %s5038_s29  ;;  %v831_v58 = vmul.f32 %v830_v51, %v3760_v3  ;;  %v802_v59 = vmul.f32 %v801_v52, %v3750_v60  ;;  %v1486_v51 = vmul.f32 %v1485_v38, %v3710_v32  ;;  %v2047_v38 = vstv %s2990_s7  ;;  %s3029_s7 = sld [smem:[#allocation9 + $0x100]] }
 0x25c   : > { %v1058_v52 = vmul.f32 %v1057_v41, %v3740_v53 }
 0x25d   : > { %v3754_v63 = vpop.permute.xlu1 %619  ;;  %v3756_v0 = vpop.permute.xlu0 %611 }
 0x25f   : > { %534 = vrot.lane.b32.xlu1 %v532_v1, %s5036_s25  ;;  %505 = vrot.lane.b32.xlu0 %v503_v2, %s5038_s29 }
 0x261   : > { %v3764_v5 = vpop.permute.xlu1 %728  ;;  %v3766_v6 = vpop.permute.xlu0 %720 }
 0x263   : > { %555 = vrot.lane.b32.xlu1 %v553_v7, %s5036_s25  ;;  %526 = vrot.lane.b32.xlu0 %v524_v8, %s5038_s29  ;;  %v960_v7 = vstv %s2845_s23  ;;  %v931_v8 = vstv %s2841_s24  ;;  %s2989_s23 = sld [smem:[#allocation9 + $0xd9]]  ;;  %s2919_s24 = sld [smem:[#allocation9 + $0x95]] }
 0x265   : > { %v3772_v11 = vpop.permute.xlu1 %749  ;;  %v3774_v12 = vpop.permute.xlu0 %741 }
 0x267   : > { %665 = vrot.lane.b32.xlu1 %v663_v13, %s5036_s25  ;;  %547 = vrot.lane.b32.xlu0 %v545_v14, %s5038_s29  ;;  %v961_v13 = vmul.f32 %v960_v7, %v3720_v40  ;;  %v932_v14 = vmul.f32 %v931_v8, %v3710_v32  ;;  %v1770_v7 = vstv %s2953_s17  ;;  %v1493_v8 = vstv %s2916_s30  ;;  %s2992_s17 = sld [smem:[#allocation9 + $0xdc]]  ;;  %s2922_s30 = sld [smem:[#allocation9 + $0x98]] }
 0x268   : > { %v1771_v15 = vmul.f32 %v1770_v7, %v3710_v32  ;;  %v1494_v16 = vmul.f32 %v1493_v8, %v3710_v32 }
 0x269   : > { %v3780_v17 = vpop.permute.xlu1 %770  ;;  %v3782_v18 = vpop.permute.xlu0 %762  ;;  %v2039_v41 = vstv %s2989_s23  ;;  %s2959_s23 = sld [smem:[#allocation9 + $0xbc]] }
 0x26b   : > { %686 = vrot.lane.b32.xlu1 %v684_v19, %s5036_s25  ;;  %657 = vrot.lane.b32.xlu0 %v655_v20, %s5038_s29 }
 0x26d   : > { %v3788_v33 = vpop.permute.xlu1 %854  ;;  %v3790_v23 = vpop.permute.xlu0 %846 }
 0x26f   : > { %707 = vrot.lane.b32.xlu1 %v705_v24, %s5036_s25  ;;  %678 = vrot.lane.b32.xlu0 %v676_v25, %s5038_s29  ;;  %v1208_v24 = vstv %s2878_s18  ;;  %v973_v25 = vstv %s2847_s8  ;;  %s3026_s18 = sld [smem:[#allocation9 + $0xfd]]  ;;  %s2956_s8 = sld [smem:[#allocation9 + $0xb9]] }
 0x271   : > { %v3796_v31 = vpop.permute.xlu1 %875  ;;  %v3798_v34 = vpop.permute.xlu0 %867 }
 0x273   : > { %791 = vrot.lane.b32.xlu1 %v789_v37, %s5036_s25  ;;  %699 = vrot.lane.b32.xlu0 %v697_v39, %s5038_s29  ;;  %v1209_v37 = vmul.f32 %v1208_v24, %v3710_v32  ;;  %v974_v39 = vmul.f32 %v973_v25, %v3730_v46 }
 0x275   : > { %v3804_v45 = vpop.permute.xlu1 %896  ;;  %v3806_v43 = vpop.permute.xlu0 %888 }
 0x277   : > { %812 = vrot.lane.b32.xlu1 %v810_v47, %s5036_s25  ;;  %783 = vrot.lane.b32.xlu0 %v781_v48, %s5038_s29 }
 0x279   : > { %v3812_v54 = vpop.permute.xlu1 %1005  ;;  %v3814_v55 = vpop.permute.xlu0 %997 }
 0x27b   : > { %833 = vrot.lane.b32.xlu1 %v831_v58, %s5036_s25  ;;  %804 = vrot.lane.b32.xlu0 %v802_v59, %s5038_s29  ;;  %v1762_v58 = vstv %s2952_s10  ;;  %v1216_v59 = vstv %s2879_s11  ;;  %s2884_s10 = sld [smem:[#allocation9 + $0x73]]  ;;  %s2993_s11 = sld [smem:[#allocation9 + $0xdd]] }
 0x27d   : > { %v3820_v1 = vpop.permute.xlu1 %1026  ;;  %v3822_v2 = vpop.permute.xlu0 %1018 }
 0x27f   : > { %942 = vrot.lane.b32.xlu1 %v940_v30, %s5036_s25  ;;  %825 = vrot.lane.b32.xlu0 %v823_v4, %s5038_s29  ;;  %v1763_v30 = vmul.f32 %v1762_v58, %v3710_v32  ;;  %v1217_v4 = vmul.f32 %v1216_v59, %v3710_v32  ;;  %v2048_v58 = vmul.f32 %v2047_v38, %v3710_v32 }
 0x280   : > { %v2040_v59 = vmul.f32 %v2039_v41, %v3710_v32 }
 0x281   : > { %v3828_v9 = vpop.permute.xlu1 %1047  ;;  %v3830_v10 = vpop.permute.xlu0 %1039 }
 0x283   : > { %963 = vrot.lane.b32.xlu1 %v961_v13, %s5036_s25  ;;  %934 = vrot.lane.b32.xlu0 %v932_v14, %s5038_s29 }
 0x285   : > { %v3836_v19 = vpop.permute.xlu1 %1282  ;;  %v3838_v20 = vpop.permute.xlu0 %1274 }
 0x287   : > { %984 = vrot.lane.b32.xlu1 %v982_v21, %s5036_s25  ;;  %955 = vrot.lane.b32.xlu0 %v953_v22, %s5038_s29  ;;  %v1237_v21 = vstv %s2882_s4  ;;  %v1229_v22 = vstv %s2881_s5  ;;  %s2921_s4 = sld [smem:[#allocation9 + $0x97]]  ;;  %s3030_s5 = sld [smem:[#allocation9 + $0x101]] }
 0x289   : > { %v3844_v28 = vpop.permute.xlu1 %1559  ;;  %v3846_v29 = vpop.permute.xlu0 %1551 }
 0x28a   : > { %5088 = vst [vmem:[#allocation24_spill] sm:$0xff] %v3844_v28  ;;  %5089 = vst [vmem:[#allocation25_spill] sm:$0xff] %v3846_v29  ;;  %v4294_v29 = vld [vmem:[#allocation2 + $0x30] sm:$0xff] }
 0x28b   : > { %1211 = vrot.lane.b32.xlu1 %v1209_v37, %s5038_s29  ;;  %976 = vrot.lane.b32.xlu0 %v974_v39, %s5038_s29  ;;  %v1238_v37 = vmul.f32 %v1237_v21, %v3720_v40  ;;  %v1230_v39 = vmul.f32 %v1229_v22, %v3720_v40  ;;  %v2324_v21 = vstv %s3027_s20  ;;  %v2316_v22 = vstv %s3026_s18  ;;  %s2995_s20 = sld [smem:[#allocation9 + $0xdf]]  ;;  %s368_s18 = sld [smem:[#allocation9]] }
 0x28c   : > { %v2325_v38 = vmul.f32 %v2324_v21, %v3710_v32  ;;  %v2317_v41 = vmul.f32 %v2316_v22, %v3710_v32  ;;  %v1250_v21 = vstv %s2884_s10  ;;  %s3956_s10 = sld [smem:[#allocation9 + $0x7f]] }
 0x28d   : > { %v3852_v47 = vpop.permute.xlu1 %1836  ;;  %v3854_v48 = vpop.permute.xlu0 %1828 }
 0x28e   : > { %5090 = vst [vmem:[#allocation26_spill] sm:$0xff] %v3852_v47  ;;  %5091 = vst [vmem:[#allocation27_spill] sm:$0xff] %v3854_v48 }
 0x28f   : > { %1488 = vrot.lane.b32.xlu1 %v1486_v51, %s5038_s29  ;;  %1060 = vrot.lane.b32.xlu0 %v1058_v52, %s5038_s29 }
 0x291   : > { %v3860_v61 = vpop.permute.xlu1 %1303  ;;  %v3862_v62 = vpop.permute.xlu0 %1295 }
 0x292   : > { %5092 = vst [vmem:[#allocation28_spill] sm:$0xff] %v3860_v61  ;;  %5093 = vst [vmem:[#allocation29_spill] sm:$0xff] %v3862_v62 }
 0x293   : > { %1765 = vrot.lane.b32.xlu1 %v1763_v30, %s5038_s29  ;;  %1219 = vrot.lane.b32.xlu0 %v1217_v4, %s5036_s25  ;;  %v1514_v30 = vstv %s2919_s24  ;;  %v1506_v4 = vstv %s2918_s27  ;;  %s2958_s24 = sld [smem:[#allocation9 + $0xbb]]  ;;  %s2996_s27 = sld [smem:[#allocation9 + $0xe0]] }
 0x295   : > { %v3868_v13 = vpop.permute.xlu1 %2113  ;;  %v3870_v14 = vpop.permute.xlu0 %2105 }
 0x296   : > { %5094 = vst [vmem:[#allocation30_spill] sm:$0xff] %v3868_v13  ;;  %5095 = vst [vmem:[#allocation31_spill] sm:$0xff] %v3870_v14  ;;  %v1334_v13 = vstv %s3956_s10  ;;  %s4028_s10 = sld [smem:[#allocation9 + $0xc8]] }
 0x297   : > { %1773 = vrot.lane.b32.xlu1 %v1771_v15, %s5036_s25  ;;  %1496 = vrot.lane.b32.xlu0 %v1494_v16, %s5036_s25  ;;  %v1515_v15 = vmul.f32 %v1514_v30, %v3720_v40  ;;  %v1507_v16 = vmul.f32 %v1506_v4, %v3720_v40 }
 0x299   : > { %v3876_v24 = vpop.permute.xlu1 %1580  ;;  %v3878_v25 = vpop.permute.xlu0 %1572 }
 0x29a   : > { %5096 = vst [vmem:[#allocation32_spill] sm:$0xff] %v3876_v24  ;;  %5097 = vst [vmem:[#allocation33_spill] sm:$0xff] %v3878_v25 }
 0x29b   : > { %1240 = vrot.lane.b32.xlu1 %v1238_v37, %s5036_s25  ;;  %1232 = vrot.lane.b32.xlu0 %v1230_v39, %s5038_s29 }
 0x29c   : > { %v1896_v48 = vstv %s4028_s10  ;;  %s4098_s10 = sld [smem:[#allocation9 + $0x9c]] }
 0x29d   : > { %v3884_v51 = vpop.permute.xlu1 %2390  ;;  %v3886_v52 = vpop.permute.xlu0 %2382 }
 0x29e   : > { %5098 = vst [vmem:[#allocation34_spill] sm:$0xff] %v3884_v51  ;;  %5099 = vst [vmem:[#allocation35_spill] sm:$0xff] %v3886_v52  ;;  %v1258_v51 = vstv %s2885_s6  ;;  %v1535_v52 = vstv %s2922_s30  ;;  %s3954_s6 = sld [smem:[#allocation9 + $0x3]]  ;;  %s3968_s30 = sld [smem:[#allocation9 + $0x80]] }
 0x29f   : > { %2050 = vrot.lane.b32.xlu1 %v2048_v58, %s5036_s25  ;;  %2042 = vrot.lane.b32.xlu0 %v2040_v59, %s5038_s29  ;;  %v1791_v58 = vstv %s2956_s8  ;;  %v1783_v59 = vstv %s2955_s9  ;;  %s3033_s8 = sld [smem:[#allocation9 + $0x104]]  ;;  %s3032_s9 = sld [smem:[#allocation9 + $0x103]] }
 0x2a1   : > { %v3892_v7 = vpop.permute.xlu1 %1857  ;;  %v3894_v8 = vpop.permute.xlu0 %1849 }
 0x2a2   : > { %5100 = vst [vmem:[#allocation36_spill] sm:$0xff] %v3892_v7  ;;  %5101 = vst [vmem:[#allocation37_spill] sm:$0xff] %v3894_v8  ;;  %5122 = sst [smem:[#allocation56_spill]] %s4098_s10  ;;  %s4197_s10 = sld [smem:[#allocation9 + $0x4e]] }
 0x2a3   : > { %1517 = vrot.lane.b32.xlu1 %v1515_v15, %s5036_s25  ;;  %1509 = vrot.lane.b32.xlu0 %v1507_v16, %s5038_s29  ;;  %v1792_v15 = vmul.f32 %v1791_v58, %v3720_v40  ;;  %v1784_v16 = vmul.f32 %v1783_v59, %v3720_v40  ;;  %v2060_v58 = vstv %s2992_s17  ;;  %s3966_s17 = sld [smem:[#allocation9 + $0xa3]] }
 0x2a4   : > { %v2061_v7 = vmul.f32 %v2060_v58, %v3720_v40  ;;  %v391_v8 = vstv %s3954_s6  ;;  %v1342_v47 = vstv %s3968_s30  ;;  %s4026_s6 = sld [smem:[#allocation9 + $0xa6]]  ;;  %s4036_s30 = sld [smem:[#allocation9 + $0x33]] }
 0x2a5   : > { %v3900_v37 = vpop.permute.xlu1 %1324  ;;  %v3902_v39 = vpop.permute.xlu0 %1316 }
 0x2a6   : > { %5102 = vst [vmem:[#allocation38_spill] sm:$0xff] %v3900_v37  ;;  %5103 = vst [vmem:[#allocation39_spill] sm:$0xff] %v3902_v39  ;;  %v1897_v39 = vmul.f32 %v1896_v48, %v3740_v53  ;;  %v4120_v48 = vld [vmem:[#allocation2 + $0x12] sm:$0xff] }
 0x2a7   : > { %2327 = vrot.lane.b32.xlu1 %v2325_v38, %s5036_s25  ;;  %2319 = vrot.lane.b32.xlu0 %v2317_v41, %s5038_s29  ;;  %v1259_v41 = vmul.f32 %v1258_v51, %v3730_v46  ;;  %v1527_v51 = vstv %s2921_s4  ;;  %s3972_s4 = sld [smem:[#allocation9 + $0x6]] }
 0x2a9   : > { %v3908_v30 = vpop.permute.xlu1 %2134  ;;  %v3910_v4 = vpop.permute.xlu0 %2126  ;;  %v1611_v14 = vstv %s3966_s17  ;;  %s4032_s17 = sld [smem:[#allocation9 + $0x30]] }
 0x2aa   : > { %5104 = vst [vmem:[#allocation40_spill] sm:$0xff] %v3908_v30  ;;  %5105 = vst [vmem:[#allocation41_spill] sm:$0xff] %v3910_v4  ;;  %v1251_v30 = vmul.f32 %v1250_v21, %v3730_v46  ;;  %v2068_v4 = vstv %s2993_s11  ;;  %s3958_s11 = sld [smem:[#allocation9 + $0x5c]] }
 0x2ab   : > { %1794 = vrot.lane.b32.xlu1 %v1792_v15, %s5036_s25  ;;  %1786 = vrot.lane.b32.xlu0 %v1784_v16, %s5038_s29  ;;  %v2069_v16 = vmul.f32 %v2068_v4, %v3720_v40  ;;  %v2337_v4 = vstv %s3029_s7  ;;  %s3982_s7 = sld [smem:[#allocation9 + $0x5e]] }
 0x2ad   : > { %v3916_v22 = vpop.permute.xlu1 %1601  ;;  %v3918_v38 = vpop.permute.xlu0 %1593 }
 0x2ae   : > { %5106 = vst [vmem:[#allocation42_spill] sm:$0xff] %v3916_v22  ;;  %5107 = vst [vmem:[#allocation43_spill] sm:$0xff] %v3918_v38 }
 0x2af   : > { %1261 = vrot.lane.b32.xlu1 %v1259_v41, %s5036_s25  ;;  %1253 = vrot.lane.b32.xlu0 %v1251_v30, %s5038_s29  ;;  %v1536_v30 = vmul.f32 %v1535_v52, %v3730_v46  ;;  %v1812_v52 = vstv %s2959_s23  ;;  %s3989_s23 = sld [smem:[#allocation9 + $0x9]] }
 0x2b0   : > { %v1065_v38 = vstv %s3958_s11  ;;  %s4030_s11 = sld [smem:[#allocation9 + $0xf]] }
 0x2b1   : > { %v3924_v59 = vpop.permute.xlu1 %2411  ;;  %v3926_v15 = vpop.permute.xlu0 %2403  ;;  %v1078_v24 = vstv %s3982_s7  ;;  %s4051_s7 = sld [smem:[#allocation9 + $0x27]] }
 0x2b2   : > { %5108 = vst [vmem:[#allocation44_spill] sm:$0xff] %v3924_v59  ;;  %5109 = vst [vmem:[#allocation45_spill] sm:$0xff] %v3926_v15  ;;  %v1528_v59 = vmul.f32 %v1527_v51, %v3730_v46  ;;  %v2345_v15 = vstv %s3030_s5  ;;  %s3980_s5 = sld [smem:[#allocation9 + $0xa4]] }
 0x2b3   : > { %2071 = vrot.lane.b32.xlu1 %v2069_v16, %s5036_s25  ;;  %2063 = vrot.lane.b32.xlu0 %v2061_v7, %s5038_s29  ;;  %v2346_v7 = vmul.f32 %v2345_v15, %v3720_v40  ;;  %v2089_v15 = vstv %s2996_s27  ;;  %s3995_s27 = sld [smem:[#allocation9 + $0xc7]] }
 0x2b5   : > { %v3932_v21 = vpop.permute.xlu1 %2147  ;;  %v3934_v41 = vpop.permute.xlu0 %1870 }
 0x2b6   : > { %5110 = vst [vmem:[#allocation46_spill] sm:$0xff] %v3932_v21  ;;  %5111 = vst [vmem:[#allocation47_spill] sm:$0xff] %v3934_v41  ;;  %v2338_v21 = vmul.f32 %v2337_v4, %v3720_v40  ;;  %v1804_v41 = vstv %s2958_s24  ;;  %v2081_v4 = vstv %s2995_s20  ;;  %s3993_s24 = sld [smem:[#allocation9 + $0x82]]  ;;  %s4007_s20 = sld [smem:[#allocation9 + $0xeb]]  ;;  %v476_v25 = vstv %s4030_s11 }
 0x2b7   : > { %1538 = vrot.lane.b32.xlu1 %v1536_v30, %s5036_s25  ;;  %1530 = vrot.lane.b32.xlu0 %v1528_v59, %s5038_s29  ;;  %v1813_v30 = vmul.f32 %v1812_v52, %v3730_v46  ;;  %v2090_v52 = vmul.f32 %v2089_v15, %v3730_v46  ;;  %s4105_s11 = sld [smem:[#allocation9 + $0x110]] }
 0x2b9   : > { %v3940_v58 = vpop.permute.xlu1 %2424  ;;  %v3942_v16 = vpop.permute.xlu0 %1878 }
 0x2ba   : > { %5112 = vst [vmem:[#allocation48_spill] sm:$0xff] %v3940_v58  ;;  %5113 = vst [vmem:[#allocation49_spill] sm:$0xff] %v3942_v16  ;;  %v1805_v58 = vmul.f32 %v1804_v41, %v3730_v46  ;;  %v2082_v41 = vmul.f32 %v2081_v4, %v3730_v46  ;;  %v2358_v16 = vstv %s3032_s9  ;;  %s4022_s9 = sld [smem:[#allocation9 + $0x24]] }
 0x2bb   : > { %2348 = vrot.lane.b32.xlu1 %v2346_v7, %s5036_s25  ;;  %2340 = vrot.lane.b32.xlu0 %v2338_v21, %s5038_s29 }
 0x2bd   : > { %v3948_v51 = vpop.permute.xlu1 %2432  ;;  %v3950_v59 = vpop.permute.xlu0 %2155 }
 0x2be   : > { %5114 = vst [vmem:[#allocation50_spill] sm:$0xff] %v3948_v51  ;;  %5115 = vst [vmem:[#allocation51_spill] sm:$0xff] %v3950_v59  ;;  %v370_v51 = vstv %s368_s18  ;;  %v2366_v59 = vstv %s3033_s8  ;;  %s4009_s18 = sld [smem:[#allocation9 + $0x5f]]  ;;  %s4011_s8 = sld [smem:[#allocation9 + $0xc]] }
 0x2bf   : > { %1815 = vrot.lane.b32.xlu1 %v1813_v30, %s5036_s25  ;;  %1807 = vrot.lane.b32.xlu0 %v1805_v58, %s5038_s29  ;;  %v371_v58 = vmul.f32 %v370_v51, %v3710_v32  ;;  %v2367_v4 = vmul.f32 %v2366_v59, %v3730_v46  ;;  %v392_v59 = vmul.f32 %v391_v8, %v3720_v40  ;;  %v412_v8 = vstv %s3972_s4  ;;  %s4038_s4 = sld [smem:[#allocation9 + $0x54]] }
 0x2c1   : > { %v3962_v21 = vpop.permute.xlu0 %1123  ;;  %v386_v7 = vpop.permute.xlu1 %385 }
 0x2c2   : > { %5116 = vst [vmem:[#allocation52_spill] sm:$0xff] %v3962_v21  ;;  %v2359_v21 = vmul.f32 %v2358_v16, %v3730_v46 }
 0x2c3   : > { %2092 = vrot.lane.b32.xlu1 %v2090_v52, %s5036_s25  ;;  %2084 = vrot.lane.b32.xlu0 %v2082_v41, %s5038_s29  ;;  %v1335_v41 = vmul.f32 %v1334_v13, %v3740_v53 }
 0x2c5   : > { %v407_v30 = vpop.permute.xlu1 %406  ;;  %v378_v15 = vpop.permute.xlu0 %377 }
 0x2c6   : > { %v380_v22 = vadd.f32 %v378_v15, %v371_v58  ;;  %v1066_v58 = vmul.f32 %v1065_v38, %v3740_v53 }
 0x2c7   : > { %2369 = vrot.lane.b32.xlu1 %v2367_v4, %s5036_s25  ;;  %2361 = vrot.lane.b32.xlu0 %v2359_v21, %s5038_s29  ;;  %v1612_v21 = vmul.f32 %v1611_v14, %v3740_v53 }
 0x2c8   : > { %v388_v51 = vadd.f32 %v386_v7, %v380_v22  ;;  %v1343_v7 = vmul.f32 %v1342_v47, %v3740_v53 }
 0x2c9   : > { %v428_v52 = vpop.permute.xlu1 %427  ;;  %v399_v16 = vpop.permute.xlu0 %398 }
 0x2ca   : > { %v393_v15 = vadd.f32 %v392_v59, %v388_v51  ;;  %v413_v51 = vmul.f32 %v412_v8, %v3730_v46  ;;  %v1619_v59 = vstv %s3980_s5  ;;  %v1355_v8 = vstv %s3993_s24  ;;  %s4043_s5 = sld [smem:[#allocation9 + $0x1e]]  ;;  %s4057_s24 = sld [smem:[#allocation9 + $0x83]] }
 0x2cb   : > { %1337 = vrot.lane.b32.xlu1 %v1335_v41, %s5038_s29  ;;  %1068 = vrot.lane.b32.xlu0 %v1066_v58, %s5036_s25  ;;  %v1620_v41 = vmul.f32 %v1619_v59, %v3740_v53  ;;  %v1079_v58 = vmul.f32 %v1078_v24, %v3750_v60  ;;  %v4040_v24 = vld [vmem:[#allocation2 + $0x10] sm:$0xff] }
 0x2cc   : > { %v401_v13 = vadd.f32 %v399_v16, %v393_v15  ;;  %v434_v16 = vstv %s3989_s23  ;;  %s4055_s23 = sld [smem:[#allocation9 + $0x10f]] }
 0x2cd   : > { %v4000_v22 = vpop.permute.xlu1 %513  ;;  %v420_v38 = vpop.permute.xlu0 %419 }
 0x2ce   : > { %v409_v4 = vadd.f32 %v407_v30, %v401_v13  ;;  %v1888_v13 = vstv %s3995_s27  ;;  %s4060_s27 = sld [smem:[#allocation9 + $0x21]] }
 0x2cf   : > { %1614 = vrot.lane.b32.xlu1 %v1612_v21, %s5038_s29  ;;  %1345 = vrot.lane.b32.xlu0 %v1343_v7, %s5036_s25  ;;  %v1889_v59 = vmul.f32 %v1888_v13, %v3740_v53 }
 0x2d0   : > { %v414_v14 = vadd.f32 %v413_v51, %v409_v4  ;;  %v1356_v51 = vmul.f32 %v1355_v8, %v3750_v60 }
 0x2d1   : > { %v4016_v47 = vpop.permute.xlu1 %534  ;;  %v4018_v30 = vpop.permute.xlu0 %505 }
 0x2d2   : > { %v422_v15 = vadd.f32 %v420_v38, %v414_v14  ;;  %v435_v38 = vmul.f32 %v4040_v24, %v434_v16  ;;  %v2442_v61 = vstv %s4055_s23  ;;  %s4127_s23 = sld [smem:[#allocation9 + $0x2d]] }
 0x2d3   : > { %1622 = vrot.lane.b32.xlu1 %v1620_v41, %s5036_s25  ;;  %1081 = vrot.lane.b32.xlu0 %v1079_v58, %s5038_s29  ;;  %v2165_v41 = vstv %s4007_s20  ;;  %v1086_v58 = vstv %s4009_s18  ;;  %s4062_s25 = sld [smem:[#allocation9 + $0x57]]  ;;  %s4067_s20 = sld [smem:[#allocation9 + $0x42]] }
 0x2d4   : > { %v430_v21 = vadd.f32 %v428_v52, %v422_v15  ;;  %v455_v52 = vstv %s4011_s8  ;;  %s4069_s18 = sld [smem:[#allocation9 + $0x45]]  ;;  %v2166_v13 = vmul.f32 %v2165_v41, %v3740_v53  ;;  %s4082_s8 = sld [smem:[#allocation9 + $0xa7]]  ;;  %v5125_v41 = vstv %s4036_s30 }
 0x2d5   : > { %v4045_v7 = vpop.permute.xlu1 %555  ;;  %v4047_v4 = vpop.permute.xlu0 %526  ;;  %s4325_s30 = sld [smem:[#allocation9 + $0xb7]] }
 0x2d6   : > { %v436_v14 = vadd.f32 %v435_v38, %v430_v21  ;;  %v1087_v38 = vmul.f32 %v1086_v58, %v3750_v60  ;;  %v650_v21 = vstv %s4022_s9  ;;  %s5120_s9 = smov 126   ;;  %v671_v58 = vstv %s4051_s7  ;;  %s4124_s7 = sld [smem:[#allocation9 + $0x1b]] }
 0x2d7   : > { %1358 = vrot.lane.b32.xlu1 %v1356_v51, %s5038_s29  ;;  %1891 = vrot.lane.b32.xlu0 %v1889_v59, %s5038_s29  ;;  %v4076_v51 = vld [vmem:[#allocation2 + $0x11] sm:$0xff]  ;;  %s4084_s29 = sld [smem:[#allocation9 + $0xec]] }
 0x2d8   : > { %v444_v16 = vadd.f32 %v3706_v27, %v436_v14  ;;  %v456_v59 = vmul.f32 %v4076_v51, %v455_v52  ;;  %v1632_v14 = vstv %s4026_s6  ;;  %s4096_s6 = sld [smem:[#allocation9 + $0x78]] }
 0x2d9   : > { %5117 = sst [smem:[#allocation53_spill]] %s4067_s20  ;;  %v666_v15 = vpop.permute.xlu1 %665  ;;  %v4071_v8 = vpop.permute.xlu0 %547  ;;  %s4232_s20 = sld [smem:[#allocation9 + $0x88]] }
 0x2da   : > { %5118 = sst [smem:[#allocation54_spill]] %s4069_s18  ;;  %v452_v27 = vadd.f32 %v3704_v26, %v444_v16  ;;  %v651_v16 = vmul.f32 %v650_v21, %v3710_v32  ;;  %v1099_v21 = vstv %s4107_s28  ;;  %s4177_s28 = sld [smem:[#allocation9 + $0xcb]] }
 0x2db   : > { %2168 = vrot.lane.b32.xlu1 %v2166_v13, %s5119_s1  ;;  %1089 = vrot.lane.b32.xlu0 %v1087_v38, %s5120_s9  ;;  %v1633_v38 = vmul.f32 %v1632_v14, %v3750_v60  ;;  %s4226_s18 = sld [smem:[#allocation9 + $0x5a]] }
 0x2dc   : > { %v457_v52 = vadd.f32 %v456_v59, %v452_v27  ;;  %v1363_v59 = vstv %s4057_s24  ;;  %v477_v27 = vmul.f32 %v4120_v48, %v476_v25  ;;  %v2443_v25 = vmul.f32 %v2442_v61, %v3740_v53  ;;  %s4135_s24 = sld [smem:[#allocation9 + $0x36]] }
 0x2dd   : > { %v687_v37 = vpop.permute.xlu1 %686  ;;  %v658_v13 = vpop.permute.xlu0 %657  ;;  %v692_v61 = vstv %s4092_s2  ;;  %s4164_s2 = sld [smem:[#allocation9 + $0x62]]  ;;  %v5126_v62 = vstv %s4124_s7  ;;  %s4431_s7 = sld [smem:[#allocation9 + $0x116]] }
 0x2de   : > { %5121 = sst [smem:[#allocation55_spill]] %s4096_s6  ;;  %v465_v26 = vadd.f32 %v3716_v36, %v457_v52  ;;  %v660_v28 = vadd.f32 %v658_v13, %v651_v16  ;;  %v672_v52 = vmul.f32 %v671_v58, %v3720_v40  ;;  %v2173_v58 = vstv %s4084_s29  ;;  %s4169_s29 = sld [smem:[#allocation9 + $0x48]] }
 0x2df   : > { %1635 = vrot.lane.b32.xlu1 %v1633_v38, %s5119_s1  ;;  %1899 = vrot.lane.b32.xlu0 %v1897_v39, %s5120_s9  ;;  %s4208_s6 = sld [smem:[#allocation9 + $0xaa]]  ;;  %v1397_v32 = vstv %s4232_s20  ;;  %s4425_s20 = sld [smem:[#allocation9 + $0xfc]] }
 0x2e0   : > { %v473_v36 = vadd.f32 %v3714_v35, %v465_v26  ;;  %v668_v14 = vadd.f32 %v666_v15, %v660_v28  ;;  %v1364_v35 = vmul.f32 %v1363_v59, %v3750_v60  ;;  %v1640_v15 = vstv %s4082_s8  ;;  %s4171_s8 = sld [smem:[#allocation9 + $0xa9]] }
 0x2e1   : > { %v4131_v39 = vpop.permute.xlu1 %707  ;;  %v679_v38 = vpop.permute.xlu0 %678  ;;  %v498_v26 = vstv %s4088_s0  ;;  %v1641_v16 = vmul.f32 %v1640_v15, %v3750_v60  ;;  %s4162_s0 = sld [smem:[#allocation9 + $0xee]]  ;;  %v519_v15 = vstv %s4114_s14 }
 0x2e2   : > { %v478_v40 = vadd.f32 %v477_v27, %v473_v36  ;;  %v673_v28 = vadd.f32 %v672_v52, %v668_v14  ;;  %s4185_s14 = sld [smem:[#allocation9 + $0x86]]  ;;  %v1909_v27 = vstv %s4143_s19  ;;  %s4224_s19 = sld [smem:[#allocation9 + $0x90]] }
 0x2e3   : > { %2445 = vrot.lane.b32.xlu1 %v2443_v25, %s5119_s1  ;;  %1366 = vrot.lane.b32.xlu0 %v1364_v35, %s5120_s9  ;;  %v2174_v25 = vmul.f32 %v2173_v58, %v3740_v53  ;;  %v2450_v35 = vstv %s4105_s11  ;;  %v540_v58 = vstv %s4116_s13  ;;  %s4179_s11 = sld [smem:[#allocation9 + $0x4b]]  ;;  %s4280_s13 = sld [smem:[#allocation9 + $0xac]] }
 0x2e4   : > { %v486_v36 = vadd.f32 %v3726_v44, %v478_v40  ;;  %v681_v14 = vadd.f32 %v679_v38, %v673_v28  ;;  %v499_v44 = vmul.f32 %v498_v26, %v3740_v53  ;;  %v693_v28 = vmul.f32 %v692_v61, %v3730_v46 }
 0x2e5   : > { %v4156_v52 = vpop.permute.xlu1 %791  ;;  %v700_v13 = vpop.permute.xlu0 %699  ;;  %v713_v26 = vstv %s4127_s23  ;;  %s4206_s23 = sld [smem:[#allocation9 + $0x51]] }
 0x2e6   : > { %v494_v38 = vadd.f32 %v3724_v42, %v486_v36  ;;  %v689_v40 = vadd.f32 %v687_v37, %v681_v14  ;;  %v2451_v14 = vmul.f32 %v2450_v35, %v3740_v53  ;;  %v1653_v53 = vstv %s4171_s8  ;;  %s4254_s8 = sld [smem:[#allocation9 + $0x65]] }
 0x2e7   : > { %1643 = vrot.lane.b32.xlu1 %v1641_v16, %s5120_s9  ;;  %2176 = vrot.lane.b32.xlu0 %v2174_v25, %s5120_s9  ;;  %v1100_v25 = vmul.f32 %v1099_v21, %v3760_v3  ;;  %v756_v37 = vmul.f32 %v4120_v48, %v5125_v41 }
 0x2e8   : > { %v500_v42 = vadd.f32 %v499_v44, %v494_v38  ;;  %v694_v46 = vadd.f32 %v693_v28, %v689_v40  ;;  %v1376_v28 = vstv %s4141_s15  ;;  %s4214_s15 = sld [smem:[#allocation9 + $0xef]] }
 0x2e9   : > { %v4187_v61 = vpop.permute.xlu1 %812  ;;  %v4190_v36 = vpop.permute.xlu0 %783 }
 0x2ea   : > { %v508_v38 = vadd.f32 %v4018_v30, %v500_v42  ;;  %v702_v40 = vadd.f32 %v700_v13, %v694_v46  ;;  %v520_v30 = vmul.f32 %v519_v15, %v3750_v60  ;;  %v714_v13 = vmul.f32 %v4040_v24, %v713_v26  ;;  %v4228_v26 = vld [vmem:[#allocation2 + $0x21] sm:$0xff] }
 0x2eb   : > { %2453 = vrot.lane.b32.xlu1 %v2451_v14, %s5120_s9  ;;  %1102 = vrot.lane.b32.xlu0 %v1100_v25, %s5119_s1  ;;  %v1377_v14 = vmul.f32 %v1376_v28, %v3760_v3  ;;  %v2186_v25 = vstv %s4162_s0  ;;  %s4238_s0 = sld [smem:[#allocation9 + $0xcd]] }
 0x2ec   : > { %v516_v21 = vadd.f32 %v4000_v22, %v508_v38  ;;  %v710_v35 = vadd.f32 %v4131_v39, %v702_v40  ;;  %v1910_v22 = vmul.f32 %v1909_v27, %v3750_v60  ;;  %v1107_v38 = vstv %s4164_s2  ;;  %s4240_s2 = sld [smem:[#allocation9 + $0xb4]] }
 0x2ed   : > { %v4216_v42 = vpop.permute.xlu1 %833  ;;  %v4218_v46 = vpop.permute.xlu0 %804  ;;  %v927_v40 = vstv %s4169_s29  ;;  %v1917_v60 = vstv %s4177_s28  ;;  %v948_v27 = vstv %s4179_s11  ;;  %s4252_s29 = sld [smem:[#allocation9 + $0x113]]  ;;  %s4274_s28 = sld [smem:[#allocation9 + $0x6f]] }
 0x2ee   : > { %v521_v39 = vadd.f32 %v520_v30, %v516_v21  ;;  %v715_v15 = vadd.f32 %v714_v13, %v710_v35  ;;  %v2463_v30 = vstv %s4183_s3  ;;  %v1384_v13 = vstv %s4185_s14  ;;  %s4266_s3 = sld [smem:[#allocation9 + $0xf1]]  ;;  %s4305_s11 = sld [smem:[#allocation9 + $0x93]] }
 0x2ef   : > { %1379 = vrot.lane.b32.xlu1 %v1377_v14, %s5119_s1  ;;  %1912 = vrot.lane.b32.xlu0 %v1910_v22, %s5119_s1  ;;  %v2187_v14 = vmul.f32 %v2186_v25, %v4228_v26  ;;  %v1108_v22 = vmul.f32 %v1107_v38, %v3760_v3  ;;  %v4264_v25 = vld [vmem:[#allocation2 + $0x22] sm:$0xff]  ;;  %s4443_s14 = sld [smem:[#allocation9 + $0xd0]] }
 0x2f0   : > { %v529_v28 = vadd.f32 %v4047_v4, %v521_v39  ;;  %v723_v21 = vadd.f32 %v3766_v6, %v715_v15  ;;  %v5123_v4 = vstv %s4032_s17  ;;  %v541_v15 = vmul.f32 %v540_v58, %v3760_v3  ;;  %s4272_s17 = sld [smem:[#allocation9 + $0xce]]  ;;  %v4283_v38 = vld [vmem:[#allocation2 + $0x21] sm:$0xff] }
 0x2f1   : > { %v943_v35 = vpop.permute.xlu1 %942  ;;  %v4246_v59 = vpop.permute.xlu0 %825  ;;  %v735_v6 = vmul.f32 %v4076_v51, %v5123_v4  ;;  %v1661_v4 = vstv %s4208_s6  ;;  %5124 = vst [vmem:[#allocation57_spill] sm:$0xff] %v4283_v38  ;;  %s4303_s6 = sld [smem:[#allocation9 + $0x89]] }
 0x2f2   : > { %v537_v39 = vadd.f32 %v4016_v47, %v529_v28  ;;  %v731_v16 = vadd.f32 %v3764_v5, %v723_v21  ;;  %v4276_v5 = vld [vmem:[#allocation2] sm:$0xff]  ;;  %v2194_v28 = vstv %s4214_s15 }
 0x2f3   : > { %2189 = vrot.lane.b32.xlu1 %v2187_v14, %s5119_s1  ;;  %1110 = vrot.lane.b32.xlu0 %v1108_v22, %s5120_s9  ;;  %v928_v58 = vmul.f32 %v4276_v5, %v927_v40  ;;  %v1654_v22 = vmul.f32 %v1653_v53, %v4264_v25  ;;  %v563_v53 = vmul.f32 %v4294_v29, %v5126_v62  ;;  %v4309_v62 = vld [vmem:[#allocation2 + $0x1] sm:$0xff] }
 0x2f4   : > { %v542_v47 = vadd.f32 %v541_v15, %v537_v39  ;;  %v736_v3 = vadd.f32 %v735_v6, %v731_v16  ;;  %v1918_v39 = vmul.f32 %v4283_v38, %v1917_v60  ;;  %v1930_v60 = vstv %s4238_s0  ;;  %s4476_s0 = sld [smem:[#allocation9 + $0x7b]] }
 0x2f5   : > { %v964_v21 = vpop.permute.xlu1 %963  ;;  %v935_v14 = vpop.permute.xlu0 %934 }
 0x2f6   : > { %v550_v15 = vadd.f32 %v4071_v8, %v542_v47  ;;  %v744_v40 = vadd.f32 %v3774_v12, %v736_v3  ;;  %v937_v44 = vadd.f32 %v935_v14, %v928_v58  ;;  %v949_v3 = vmul.f32 %v4309_v62, %v948_v27 }
 0x2f7   : > { %1656 = vrot.lane.b32.xlu1 %v1654_v22, %s5119_s1  ;;  %1920 = vrot.lane.b32.xlu0 %v1918_v39, %s5120_s9  ;;  %v2464_v22 = vmul.f32 %v2463_v30, %v4228_v26  ;;  %v4315_v39 = vld [vmem:[#allocation2 + $0x22] sm:$0xff] }
 0x2f8   : > { %v558_v12 = vadd.f32 %v4045_v7, %v550_v15  ;;  %v752_v41 = vadd.f32 %v3772_v11, %v744_v40  ;;  %v945_v47 = vadd.f32 %v943_v35, %v937_v44  ;;  %5127 = vst [vmem:[#allocation58_spill] sm:$0xff] %v4315_v39  ;;  %v1385_v6 = vmul.f32 %v4315_v39, %v1384_v13 }
 0x2f9   : > { %v4312_v58 = vpop.permute.xlu1 %984  ;;  %v956_v14 = vpop.permute.xlu0 %955  ;;  %v2207_v40 = vstv %s4266_s3  ;;  %s4504_s3 = sld [smem:[#allocation9 + $0x9f]] }
 0x2fa   : > { %v564_v44 = vadd.f32 %v563_v53, %v558_v12  ;;  %v757_v35 = vadd.f32 %v756_v37, %v752_v41  ;;  %v950_v15 = vadd.f32 %v949_v3, %v945_v47  ;;  %v4330_v53 = vld [vmem:[#allocation2 + $0x31] sm:$0xff]  ;;  %v5128_v37 = vstv %s4043_s5  ;;  %v4335_v41 = vld [vmem:[#allocation2 + $0x20] sm:$0xff]  ;;  %s4354_s5 = sld [smem:[#allocation9 + $0xd8]] }
 0x2fb   : > { %2466 = vrot.lane.b32.xlu1 %v2464_v22, %s5119_s1  ;;  %1387 = vrot.lane.b32.xlu0 %v1385_v6, %s5120_s9  ;;  %v584_v12 = vmul.f32 %v4330_v53, %v5128_v37  ;;  %v5129_v6 = vstv %s4135_s24  ;;  %v1662_v22 = vmul.f32 %v1661_v4, %v4264_v25  ;;  %v5130_v37 = vstv %s4197_s10  ;;  %s2763_s10 = sshll.u32 %s3568_s21, 6  ;;  %s4434_s24 = sld [smem:[#allocation9 + $0xdb]] }
 0x2fc   : > { %v572_v30 = vadd.f32 %v3736_v50, %v564_v44  ;;  %v765_v13 = vadd.f32 %v3782_v18, %v757_v35  ;;  %v958_v7 = vadd.f32 %v956_v14, %v950_v15  ;;  %v777_v47 = vmul.f32 %v4335_v41, %v5129_v6  ;;  %v4344_v15 = vld [vmem:[#allocation2 + $0x2] sm:$0xff]  ;;  %v4349_v6 = vld [vmem:[#allocation2 + $0x30] sm:$0xff]  ;;  %s4463_s15 = scalar_lea.vmem [#allocation10], %s2763_s10  ;;  %s4579_s10 = sld [smem:[#allocation9 + $0xb0]] }
 0x2fd   : > { %v1212_v3 = vpop.permute.xlu1 %1211  ;;  %v977_v50 = vpop.permute.xlu0 %976  ;;  %v2195_v18 = vmul.f32 %v2194_v28, %v4228_v26  ;;  %v970_v11 = vmul.f32 %v4344_v15, %v5130_v37  ;;  %v5131_v28 = vstv %s4060_s27  ;;  %v5132_v37 = vstv %s4038_s4  ;;  %s4412_s4 = sld [smem:[#allocation9 + $0x72]]  ;;  %s4417_s27 = sld [smem:[#allocation9 + $0x67]] }
 0x2fe   : > { %v580_v14 = vadd.f32 %v3734_v49, %v572_v30  ;;  %v773_v44 = vadd.f32 %v3780_v17, %v765_v13  ;;  %v966_v35 = vadd.f32 %v964_v21, %v958_v7  ;;  %v1502_v49 = vstv %s4305_s11  ;;  %v4357_v17 = vld [vmem:[#allocation2 + $0x32] sm:$0xff]  ;;  %s4540_s11 = sld [smem:[#allocation9 + $0xc3]] }
 0x2ff   : > { %1664 = vrot.lane.b32.xlu1 %v1662_v22, %s5120_s9  ;;  %2197 = vrot.lane.b32.xlu0 %v2195_v18, %s5120_s9  ;;  %v605_v21 = vmul.f32 %v4357_v17, %v5131_v28  ;;  %v4365_v22 = vmul.f32 %v4076_v51, %v5132_v37  ;;  %v5133_v18 = vstv %s4137_s22  ;;  %v1398_v16 = vmul.f32 %v1397_v32, %v4349_v6  ;;  %s4392_s22 = sld [smem:[#allocation9 + $0x115]] }
 0x300   : > { %v585_v7 = vadd.f32 %v584_v12, %v580_v14  ;;  %v778_v30 = vadd.f32 %v777_v47, %v773_v44  ;;  %v971_v13 = vadd.f32 %v970_v11, %v966_v35  ;;  %v798_v4 = vmul.f32 %v4283_v38, %v5133_v18 }
 0x301   : > { %v1489_v27 = vpop.permute.xlu1 %1488  ;;  %v4370_v8 = vpop.permute.xlu0 %1060  ;;  %v1931_v28 = vmul.f32 %v1930_v60, %v4264_v25  ;;  %v5134_v47 = vstv %s4195_s16  ;;  %v5135_v35 = vstv %s4149_s12  ;;  %v5136_v18 = vstv %s4206_s23  ;;  %s4394_s16 = sld [smem:[#allocation9 + $0xf2]]  ;;  %s4410_s12 = sld [smem:[#allocation9 + $0xad]] }
 0x302   : > { %v593_v12 = vadd.f32 %v3746_v57, %v585_v7  ;;  %v786_v11 = vadd.f32 %v4190_v36, %v778_v30  ;;  %v1205_v14 = vmul.f32 %v4276_v5, %v5134_v47  ;;  %v979_v44 = vadd.f32 %v977_v50, %v971_v13  ;;  %s4445_s23 = sld [smem:[#allocation9 + $0x96]] }
 0x303   : > { %v819_v37 = vmul.f32 %v4315_v39, %v5135_v35  ;;  %v991_v38 = vmul.f32 %v4040_v24, %v5136_v18  ;;  %v5137_v32 = vstv %s4224_s19  ;;  %1400 = vrot.lane.b32.xlu1 %v1398_v16, %s5119_s1  ;;  %1933 = vrot.lane.b32.xlu0 %v1931_v28, %s5119_s1  ;;  %v1779_v57 = vstv %s4325_s30  ;;  %s4474_s19 = sld [smem:[#allocation9 + $0xc0]]  ;;  %s5150_s30 = sld [smem:[#allocation54_spill]] }
 0x304   : > { %v1482_v60 = vmul.f32 %v4276_v5, %v5137_v32  ;;  %v794_v36 = vadd.f32 %v4156_v52, %v786_v11  ;;  %v1214_v50 = vadd.f32 %v1212_v3, %v1205_v14  ;;  %v987_v7 = vadd.f32 %v4312_v58, %v979_v44 }
 0x305   : > { %v601_v30 = vadd.f32 %v3744_v56, %v593_v12  ;;  %v5138_v13 = vstv %s4240_s2  ;;  %v1766_v16 = vpop.permute.xlu1 %1765  ;;  %v1220_v28 = vpop.permute.xlu0 %1219  ;;  %v5139_v35 = vstv %s4252_s29  ;;  %v5140_v32 = vstv %s4254_s8  ;;  %s5147_s2 = sld [smem:[#allocation53_spill]]  ;;  %s4498_s29 = sld [smem:[#allocation9 + $0x68]] }
 0x306   : > { %v1759_v47 = vmul.f32 %v4276_v5, %v5138_v13  ;;  %v2472_v18 = vmul.f32 %v5139_v35, %v4228_v26  ;;  %v1129_v39 = vmul.f32 %v4294_v29, %v5140_v32  ;;  %v2208_v52 = vmul.f32 %v2207_v40, %v4264_v25  ;;  %s4502_s8 = sld [smem:[#allocation9 + $0xe4]] }
 0x307   : > { %v799_v56 = vadd.f32 %v798_v4, %v794_v36  ;;  %v992_v58 = vadd.f32 %v991_v38, %v987_v7  ;;  %v1222_v3 = vadd.f32 %v1220_v28, %v1214_v50  ;;  %v5141_v12 = vstv %s4274_s28  ;;  %s4523_s28 = sld [smem:[#allocation9 + $0xba]] }
 0x308   : > { %v1226_v11 = vmul.f32 %v4309_v62, %v5141_v12  ;;  %v1491_v14 = vadd.f32 %v1489_v27, %v1482_v60  ;;  %2474 = vrot.lane.b32.xlu1 %v2472_v18, %s5120_s9  ;;  %1131 = vrot.lane.b32.xlu0 %v1129_v39, %s5120_s9  ;;  %v5142_v26 = vstv %s4272_s17  ;;  %v2035_v44 = vstv %s4354_s5  ;;  %s4521_s17 = sld [smem:[#allocation9 + $0xf4]]  ;;  %s4548_s5 = sld [smem:[#allocation9 + $0x75]] }
 0x309   : > { %v1939_v40 = vmul.f32 %v5142_v26, %v4264_v25  ;;  %v606_v13 = vadd.f32 %v605_v21, %v601_v30  ;;  %v807_v38 = vadd.f32 %v4218_v46, %v799_v56  ;;  %v1000_v4 = vadd.f32 %v3814_v55, %v992_v58  ;;  %v1774_v27 = vpop.permute.xlu1 %1773  ;;  %v1497_v60 = vpop.permute.xlu0 %1496 }
 0x30a   : > { %v1768_v36 = vadd.f32 %v1766_v16, %v1759_v47  ;;  %v1227_v50 = vadd.f32 %v1226_v11, %v1222_v3  ;;  %v1503_v39 = vmul.f32 %v4309_v62, %v1502_v49  ;;  %v1780_v7 = vmul.f32 %v4309_v62, %v1779_v57 }
 0x30b   : > { %v614_v21 = vadd.f32 %v3756_v0, %v606_v13  ;;  %v815_v46 = vadd.f32 %v4187_v61, %v807_v38  ;;  %v1008_v55 = vadd.f32 %v3812_v54, %v1000_v4  ;;  %v1499_v47 = vadd.f32 %v1497_v60, %v1491_v14 }
 0x30c   : > { %v1776_v30 = vadd.f32 %v1774_v27, %v1768_v36  ;;  %2210 = vrot.lane.b32.xlu1 %v2208_v52, %s5119_s1  ;;  %1941 = vrot.lane.b32.xlu0 %v1939_v40, %s5120_s9  ;;  %v2484_v49 = vstv %s4392_s22  ;;  %v2215_v57 = vstv %s4394_s16  ;;  %s4550_s22 = sld [smem:[#allocation9 + $0xaf]]  ;;  %s4555_s16 = sld [smem:[#allocation9 + $0x8c]] }
 0x30d   : > { %v4448_v0 = vadd.f32 %v3754_v63, %v614_v21  ;;  %v820_v54 = vadd.f32 %v819_v37, %v815_v46  ;;  %v1013_v61 = vadd.f32 %v4365_v22, %v1008_v55  ;;  %v1504_v16 = vadd.f32 %v1503_v39, %v1499_v47  ;;  %v1241_v35 = vpop.permute.xlu1 %1240  ;;  %v1233_v18 = vpop.permute.xlu0 %1232  ;;  %v4496_v46 = vld [vmem:[#allocation2 + $0x31] sm:$0xff] }
 0x30e   : > { %v4451_v28 = vadd.f32 %v1780_v7, %v1776_v30  ;;  %v5143_v32 = vstv %s4280_s13  ;;  %v5144_v56 = vstv %s4303_s6  ;;  %v1682_v63 = vstv %s4410_s12  ;;  %s4527_s13 = sld [smem:[#allocation9 + $0xd1]]  ;;  %s4535_s6 = sld [smem:[#allocation9 + $0xe7]] }
 0x30f   : > { %v1675_v52 = vmul.f32 %v5143_v32, %v4349_v6  ;;  %v1406_v58 = vmul.f32 %v5144_v56, %v4349_v6  ;;  %v1246_v3 = vstv %s4412_s4  ;;  %624 = vst.msk [vmem:[%s4463_s15] sm:$0xff] %vm623_vm7, %v4448_v0  ;;  %v828_v22 = vadd.f32 %v4246_v59, %v820_v54  ;;  %s4561_s12 = sld [smem:[#allocation9 + $0x10b]]  ;;  %s4565_s4 = sld [smem:[#allocation9 + $0x99]] }
 0x310   : > { %v1021_v37 = vadd.f32 %v3822_v2, %v1013_v61  ;;  %v1235_v12 = vadd.f32 %v1233_v18, %v1227_v50  ;;  %v1141_v11 = vstv %s4417_s27  ;;  %v5145_v14 = vstv %s4062_s25  ;;  %s4494_s25 = sld [smem:[#allocation9 + $0xff]]  ;;  %s4570_s27 = sld [smem:[#allocation9 + $0x118]] }
 0x311   : > { %v1033_v26 = vmul.f32 %v4120_v48, %v5145_v14  ;;  %v5146_v40 = vstv %s4151_s26  ;;  %1677 = vrot.lane.b32.xlu1 %v1675_v52, %s5119_s1  ;;  %1408 = vrot.lane.b32.xlu0 %v1406_v58, %s5120_s9  ;;  %v2036_v2 = vmul.f32 %v4276_v5, %v2035_v44  ;;  %v2312_v59 = vstv %s4425_s20  ;;  %v2051_v27 = vpop.permute.xlu1 %2050  ;;  %v2043_v60 = vpop.permute.xlu0 %2042  ;;  %s4491_s26 = sld [smem:[#allocation9 + $0x8b]]  ;;  %s4572_s20 = sld [smem:[#allocation9 + $0xf5]] }
 0x312   : > { %v840_v13 = vmul.f32 %v4294_v29, %v5146_v40  ;;  %v836_v38 = vadd.f32 %v4216_v42, %v828_v22  ;;  %v1029_v4 = vadd.f32 %v3820_v1, %v1021_v37  ;;  %v1243_v36 = vadd.f32 %v1241_v35, %v1235_v12 }
 0x313   : > { %v1247_v50 = vmul.f32 %v4344_v15, %v1246_v3  ;;  %v2485_v39 = vmul.f32 %v2484_v49, %v4264_v25  ;;  %v2216_v29 = vmul.f32 %v2215_v57, %v4264_v25  ;;  %v2492_v7 = vstv %s4431_s7  ;;  %s4582_s7 = sld [smem:[#allocation9 + $0xde]] }
 0x314   : > { %v2056_v44 = vstv %s4434_s24  ;;  %v841_v42 = vadd.f32 %v840_v13, %v836_v38  ;;  %v1034_v1 = vadd.f32 %v1033_v26, %v1029_v4  ;;  %v2045_v21 = vadd.f32 %v2043_v60, %v2036_v2  ;;  %s4588_s24 = sld [smem:[#allocation9 + $0x6a]] }
 0x315   : > { %v4500_v55 = vadd.f32 %v1247_v50, %v1243_v36  ;;  %2487 = vrot.lane.b32.xlu1 %v2485_v39, %s5119_s1  ;;  %2218 = vrot.lane.b32.xlu0 %v2216_v29, %s5120_s9  ;;  %v1951_v30 = vstv %s4443_s14  ;;  %v1523_v47 = vstv %s4445_s23  ;;  %v2057_v61 = vmul.f32 %v4309_v62, %v2056_v44  ;;  %v1518_v56 = vpop.permute.xlu1 %1517  ;;  %v1510_v58 = vpop.permute.xlu0 %1509  ;;  %s4590_s14 = sld [smem:[#allocation9 + $0xbd]]  ;;  %s4596_s23 = sld [smem:[#allocation9 + $0x119]] }
 0x316   : > { %v849_v49 = vadd.f32 %v3790_v23, %v841_v42  ;;  %v1042_v57 = vadd.f32 %v3830_v10, %v1034_v1  ;;  %v2053_v54 = vadd.f32 %v2051_v27, %v2045_v21  ;;  %v5148_v35 = vstv %s5147_s2  ;;  %s4609_s2 = sld [smem:[#allocation9 + $0x8e]] }
 0x317   : > { %v861_v18 = vmul.f32 %v4330_v53, %v5148_v35  ;;  %v5149_v32 = vstv %s4226_s18  ;;  %v1683_v3 = vmul.f32 %v1682_v63, %v4349_v6  ;;  %v1142_v22 = vmul.f32 %v1141_v11, %v4496_v46  ;;  %s4533_s18 = sld [smem:[#allocation9 + $0x108]] }
 0x318   : > { %v1054_v52 = vmul.f32 %v4335_v41, %v5149_v32  ;;  %v857_v23 = vadd.f32 %v3788_v33, %v849_v49  ;;  %v1050_v10 = vadd.f32 %v3828_v9, %v1042_v57  ;;  %v1512_v37 = vadd.f32 %v1510_v58, %v1504_v16 }
 0x319   : > { %v4529_v53 = vadd.f32 %v2057_v61, %v2053_v54  ;;  %v1842_v12 = vstv %s4474_s19  ;;  %v1309_v14 = vstv %s4476_s0  ;;  %1685 = vrot.lane.b32.xlu1 %v1683_v3, %s5120_s9  ;;  %1144 = vrot.lane.b32.xlu0 %v1142_v22, %s5119_s1  ;;  %v2313_v33 = vmul.f32 %v4276_v5, %v2312_v59  ;;  %v2328_v26 = vpop.permute.xlu1 %2327  ;;  %v2320_v40 = vpop.permute.xlu0 %2319  ;;  %s4718_s0 = sld [smem:[#allocation9 + $0xc6]]  ;;  %s4764_s19 = sld [smem:[#allocation9 + $0x11c]] }
 0x31a   : > { %v862_v9 = vadd.f32 %v861_v18, %v857_v23  ;;  %v4542_v16 = vadd.f32 %v1054_v52, %v1050_v10  ;;  %v1520_v63 = vadd.f32 %v1518_v56, %v1512_v37  ;;  %v1524_v11 = vmul.f32 %v4344_v15, %v1523_v47 }
 0x31b   : > { %v2493_v13 = vmul.f32 %v2492_v7, %v4264_v25  ;;  %v1952_v2 = vmul.f32 %v1951_v30, %v4349_v6  ;;  %v1418_v38 = vstv %s4491_s26  ;;  %v2333_v5 = vstv %s4494_s25  ;;  %s4598_s26 = sld [smem:[#allocation9 + $0xd3]]  ;;  %s4602_s25 = sld [smem:[#allocation9 + $0xe1]] }
 0x31c   : > { %v870_v59 = vadd.f32 %v3798_v34, %v862_v9  ;;  %v2322_v4 = vadd.f32 %v2320_v40, %v2313_v33  ;;  %v1149_v36 = vstv %s4498_s29  ;;  %v4557_v50 = vadd.f32 %v1524_v11, %v1520_v63  ;;  %s4611_s29 = sld [smem:[#allocation9 + $0x6b]] }
 0x31d   : > { %v2119_v27 = vstv %s4502_s8  ;;  %v1586_v25 = vstv %s4504_s3  ;;  %2495 = vrot.lane.b32.xlu1 %v2493_v13, %s5120_s9  ;;  %1954 = vrot.lane.b32.xlu0 %v1952_v2, %s5119_s1  ;;  %v2334_v29 = vmul.f32 %v4309_v62, %v2333_v5  ;;  %v1795_v44 = vpop.permute.xlu1 %1794  ;;  %v1787_v42 = vpop.permute.xlu0 %1786  ;;  %v1419_v1 = vmul.f32 %v1418_v38, %v4496_v46  ;;  %s4742_s3 = sld [smem:[#allocation9 + $0xa5]]  ;;  %s4766_s8 = sld [smem:[#allocation9 + $0xea]] }
 0x31e   : > { %v5151_v60 = vstv %s5150_s30  ;;  %v2330_v39 = vadd.f32 %v2328_v26, %v2322_v4  ;;  %v878_v7 = vadd.f32 %v3796_v31, %v870_v59  ;;  %v1150_v21 = vmul.f32 %v1149_v36, %v4496_v46  ;;  %s4640_s30 = sld [smem:[#allocation9 + $0xd4]] }
 0x31f   : > { %v882_v34 = vmul.f32 %v4357_v17, %v5151_v60  ;;  %v2228_v30 = vstv %s4521_s17  ;;  %v1800_v17 = vstv %s4523_s28  ;;  %v1789_v47 = vadd.f32 %v1787_v42, %v4451_v28  ;;  %s4624_s17 = sld [smem:[#allocation9 + $0x102]]  ;;  %s4626_s28 = sld [smem:[#allocation9 + $0x105]] }
 0x320   : > { %v1959_v62 = vstv %s4527_s13  ;;  %v4586_v49 = vadd.f32 %v2334_v29, %v2330_v39  ;;  %v2396_v57 = vstv %s4533_s18  ;;  %v2140_v54 = vstv %s4535_s6  ;;  %s4631_s13 = sld [smem:[#allocation9 + $0xf7]]  ;;  %s4791_s18 = sld [smem:[#allocation9 + $0xfb]] }
 0x321   : > { %v883_v31 = vadd.f32 %v882_v34, %v878_v7  ;;  %1421 = vrot.lane.b32.xlu1 %v1419_v1, %s5119_s1  ;;  %1152 = vrot.lane.b32.xlu0 %v1150_v21, %s5120_s9  ;;  %v1863_v28 = vstv %s4540_s11  ;;  %v1797_v61 = vadd.f32 %v1795_v44, %v1789_v47  ;;  %v1801_v35 = vmul.f32 %v4344_v15, %v1800_v17  ;;  %v1262_v32 = vpop.permute.xlu1 %1261  ;;  %v1254_v56 = vpop.permute.xlu0 %1253  ;;  %s4793_s11 = sld [smem:[#allocation9 + $0xfa]]  ;;  %s4829_s6 = sld [smem:[#allocation9 + $0x11e]] }
 0x322   : > { %v1267_v52 = vstv %s4548_s5  ;;  %v2229_v58 = vmul.f32 %v2228_v30, %v4349_v6  ;;  %v1960_v3 = vmul.f32 %v1959_v62, %v4349_v6  ;;  %v1695_v22 = vstv %s4550_s22  ;;  %s4642_s5 = sld [smem:[#allocation9 + $0x7e]]  ;;  %s4647_s22 = sld [smem:[#allocation9 + $0xb2]] }
 0x323   : > { %v891_v18 = vadd.f32 %v3806_v43, %v883_v31  ;;  %v1256_v23 = vadd.f32 %v1254_v56, %v4500_v55  ;;  %v1426_v10 = vstv %s4555_s16  ;;  %v4615_v43 = vadd.f32 %v1801_v35, %v1797_v61  ;;  %s5152_s16 = sld [smem:[#allocation55_spill]]  ;;  %v4671_v35 = vld [vmem:[#allocation2 + $0x32] sm:$0xff] }
 0x324   : > { %v2417_v33 = vstv %s4561_s12  ;;  %v1544_v9 = vstv %s4565_s4  ;;  %v1268_v55 = vmul.f32 %v4040_v24, %v1267_v52  ;;  %v2505_v11 = vstv %s4570_s27  ;;  %s4653_s4 = sld [smem:[#allocation9 + $0x8f]]  ;;  %s4655_s27 = sld [smem:[#allocation9 + $0xa2]] }
 0x325   : > { %v4618_v37 = vadd.f32 %v3804_v45, %v891_v18  ;;  %2231 = vrot.lane.b32.xlu1 %v2229_v58, %s5119_s1  ;;  %1962 = vrot.lane.b32.xlu0 %v1960_v3, %s5120_s9  ;;  %v1264_v63 = vadd.f32 %v1262_v32, %v1256_v23  ;;  %v2236_v45 = vstv %s4572_s20  ;;  %v2072_v26 = vpop.permute.xlu1 %2071  ;;  %v2064_v40 = vpop.permute.xlu0 %2063  ;;  %v1696_v13 = vmul.f32 %v1695_v22, %v4496_v46  ;;  %s4664_s20 = sld [smem:[#allocation9 + $0x11b]]  ;;  %s4855_s12 = sld [smem:[#allocation9 + $0x84]] }
 0x326   : > { %v1427_v2 = vmul.f32 %v1426_v10, %v4496_v46  ;;  %v1703_v38 = vstv %s4579_s10  ;;  %v2077_v5 = vstv %s4582_s7  ;;  %v2066_v4 = vadd.f32 %v2064_v40, %v4529_v53  ;;  %s4677_s10 = sld [smem:[#allocation9 + $0xf8]]  ;;  %s4679_s7 = sld [smem:[#allocation9 + $0x5d]] }
 0x327   : > { %2839 = vst.msk [vmem:[%s4463_s15 + $0x8] sm:$0xff] %vm623_vm7, %v4618_v37  ;;  %v1269_v59 = vadd.f32 %v1268_v55, %v1264_v63  ;;  %v1162_v36 = vstv %s4588_s24  ;;  %v1821_v60 = vstv %s4590_s14  ;;  %v2513_v34 = vstv %s4596_s23  ;;  %s4687_s24 = sld [smem:[#allocation9 + $0xd6]]  ;;  %s5154_s23 = sld [smem:[#allocation56_spill]] }
 0x328   : > { %v1972_v39 = vstv %s4598_s26  ;;  %v2074_v53 = vadd.f32 %v2072_v26, %v2066_v4  ;;  %v2078_v7 = vmul.f32 %v4344_v15, %v2077_v5  ;;  %v2098_v44 = vstv %s4602_s25  ;;  %v5155_v26 = vld [vmem:[#allocation29_spill] sm:$0xff]  ;;  %s4699_s26 = sld [smem:[#allocation9 + $0xb3]]  ;;  %v5157_v4 = vld [vmem:[#allocation28_spill] sm:$0xff]  ;;  %s4738_s14 = sld [smem:[#allocation9 + $0xd7]] }
 0x329   : > { %1698 = vrot.lane.b32.xlu1 %v1696_v13, %s5119_s1  ;;  %1429 = vrot.lane.b32.xlu0 %v1427_v2, %s5120_s9  ;;  %v1277_v29 = vadd.f32 %v3838_v20, %v1269_v59  ;;  %v1539_v42 = vpop.permute.xlu1 %1538  ;;  %v1531_v1 = vpop.permute.xlu0 %1530  ;;  %v2506_v21 = vmul.f32 %v2505_v11, %v4349_v6  ;;  %v2237_v30 = vmul.f32 %v2236_v45, %v4349_v6  ;;  %v1439_v17 = vstv %s4609_s2  ;;  %s4701_s2 = sld [smem:[#allocation9 + $0x81]]  ;;  %s4804_s25 = sld [smem:[#allocation9 + $0x10e]] }
 0x32a   : > { %v1170_v47 = vstv %s4611_s29  ;;  %v5153_v62 = vstv %s5152_s16  ;;  %v1533_v61 = vadd.f32 %v1531_v1, %v4557_v50  ;;  %v2079_v18 = vadd.f32 %v2078_v7, %v2074_v53  ;;  %s4813_s29 = sld [smem:[#allocation9 + $0x60]] }
 0x32b   : > { %v1289_v20 = vmul.f32 %v4076_v51, %v5153_v62  ;;  %v1285_v31 = vadd.f32 %v3836_v19, %v1277_v29  ;;  %v2354_v32 = vstv %s4624_s17  ;;  %v2375_v52 = vstv %s4626_s28  ;;  %s4819_s17 = sld [smem:[#allocation9 + $0x11f]]  ;;  %s4840_s28 = sld [smem:[#allocation9 + $0xc9]] }
 0x32c   : > { %v1545_v50 = vmul.f32 %v4040_v24, %v1544_v9  ;;  %v1541_v56 = vadd.f32 %v1539_v42, %v1533_v61  ;;  %v2249_v58 = vstv %s4631_s13  ;;  %v1704_v23 = vmul.f32 %v1703_v38, %v4496_v46  ;;  %v5156_v38 = vld [vmem:[#allocation25_spill] sm:$0xff]  ;;  %s3009_s13 = sld [smem:[#allocation9 + $0xed]]  ;;  %s4880_s16 = sld [smem:[#allocation9 + $0xf0]] }
 0x32d   : > { %2508 = vrot.lane.b32.xlu1 %v2506_v21, %s5119_s1  ;;  %2239 = vrot.lane.b32.xlu0 %v2237_v30, %s5120_s9  ;;  %v1290_v19 = vadd.f32 %v1289_v20, %v1285_v31  ;;  %v2349_v3 = vpop.permute.xlu1 %2348  ;;  %v2341_v22 = vpop.permute.xlu0 %2340  ;;  %v1163_v10 = vmul.f32 %v1162_v36, %v4671_v35  ;;  %v1980_v55 = vstv %s4640_s30  ;;  %v1330_v63 = vstv %s4642_s5  ;;  %v5159_v30 = vld [vmem:[#allocation24_spill] sm:$0xff]  ;;  %s4868_s30 = sld [smem:[#allocation9 + $0xa8]]  ;;  %s3046_s5 = sld [smem:[#allocation9 + $0x111]] }
 0x32e   : > { %v1546_v11 = vadd.f32 %v1545_v50, %v1541_v56  ;;  %v2343_v45 = vadd.f32 %v2341_v22, %v4586_v49  ;;  %v1716_v9 = vstv %s4647_s22  ;;  %v1310_v40 = vmul.f32 %v4120_v48, %v1309_v14  ;;  %s2867_s22 = sld [smem:[#allocation9 + $0x63]] }
 0x32f   : > { %v1298_v24 = vadd.f32 %v5155_v26, %v1290_v19  ;;  %v1447_v13 = vstv %s4653_s4  ;;  %v1607_v2 = vstv %s4655_s27  ;;  %v2355_v59 = vmul.f32 %v4344_v15, %v2354_v32  ;;  %v5160_v19 = vld [vmem:[#allocation39_spill] sm:$0xff]  ;;  %v5161_v26 = vld [vmem:[#allocation38_spill] sm:$0xff]  ;;  %s4882_s4 = sld [smem:[#allocation9 + $0xab]]  ;;  %s4890_s27 = sld [smem:[#allocation9 + $0x114]] }
 0x330   : > { %v1554_v5 = vadd.f32 %v5156_v38, %v1546_v11  ;;  %v2351_v49 = vadd.f32 %v2349_v3, %v2343_v45  ;;  %v5158_v36 = vstv %s5154_s23  ;;  %v2514_v42 = vmul.f32 %v2513_v34, %v4349_v6  ;;  %v3218_v34 = vld [vmem:[#allocation2 + $0x10] sm:$0xff]  ;;  %s2944_s23 = sld [smem:[#allocation9 + $0xae]] }
 0x331   : > { %1706 = vrot.lane.b32.xlu1 %v1704_v23, %s5120_s9  ;;  %1165 = vrot.lane.b32.xlu0 %v1163_v10, %s5119_s1  ;;  %v1306_v14 = vadd.f32 %v5157_v4, %v1298_v24  ;;  %v1566_v29 = vmul.f32 %v4076_v51, %v5158_v36  ;;  %v1816_v53 = vpop.permute.xlu1 %1815  ;;  %v1808_v7 = vpop.permute.xlu0 %1807  ;;  %v1973_v1 = vmul.f32 %v1972_v39, %v4496_v46  ;;  %v2526_v21 = vstv %s4664_s20  ;;  %v5164_v4 = vld [vmem:[#allocation32_spill] sm:$0xff]  ;;  %s4892_s20 = sld [smem:[#allocation9 + $0x66]] }
 0x332   : > { %v1562_v62 = vadd.f32 %v5159_v30, %v1554_v5  ;;  %v1810_v20 = vadd.f32 %v1808_v7, %v4615_v43  ;;  %v2356_v31 = vadd.f32 %v2355_v59, %v2351_v49  ;;  %v2257_v51 = vstv %s4677_s10  ;;  %s2978_s10 = sld [smem:[#allocation9 + $0xcf]] }
 0x333   : > { %v1311_v61 = vadd.f32 %v1310_v40, %v1306_v14  ;;  %v1074_v15 = vstv %s4679_s7  ;;  %v1822_v39 = vmul.f32 %v3218_v34, %v1821_v60  ;;  %v1440_v3 = vmul.f32 %v1439_v17, %v4671_v35  ;;  %v5162_v60 = vld [vmem:[#allocation33_spill] sm:$0xff]  ;;  %s2907_s7 = sld [smem:[#allocation9 + $0x8a]] }
 0x334   : > { %v1567_v6 = vadd.f32 %v1566_v29, %v1562_v62  ;;  %v1818_v32 = vadd.f32 %v1816_v53, %v1810_v20  ;;  %v1171_v22 = vmul.f32 %v1170_v47, %v4671_v35  ;;  %v1331_v23 = vmul.f32 %v4335_v41, %v1330_v63 }
 0x335   : > { %2516 = vrot.lane.b32.xlu1 %v2514_v42, %s5120_s9  ;;  %1975 = vrot.lane.b32.xlu0 %v1973_v1, %s5119_s1  ;;  %v1319_v43 = vadd.f32 %v5160_v19, %v1311_v61  ;;  %v2093_v50 = vpop.permute.xlu1 %2092  ;;  %v2085_v56 = vpop.permute.xlu0 %2084  ;;  %v1993_v10 = vstv %s4687_s24  ;;  %v1587_v38 = vmul.f32 %v4120_v48, %v1586_v25  ;;  %v2099_v5 = vmul.f32 %v3218_v34, %v2098_v44  ;;  %v3219_v25 = vld [vmem:[#allocation2 + $0x11] sm:$0xff]  ;;  %v5165_v42 = vld [vmem:[#allocation26_spill] sm:$0xff]  ;;  %s3015_s24 = sld [smem:[#allocation9 + $0xf3]] }
 0x336   : > { %v1823_v11 = vadd.f32 %v1822_v39, %v1818_v32  ;;  %v2087_v45 = vadd.f32 %v2085_v56, %v2079_v18  ;;  %v1575_v40 = vadd.f32 %v5162_v60, %v1567_v6  ;;  %v1724_v17 = vstv %s4699_s26  ;;  %v5163_v18 = vld [vmem:[#allocation27_spill] sm:$0xff]  ;;  %s3052_s26 = sld [smem:[#allocation9 + $0x117]] }
 0x337   : > { %v1327_v24 = vadd.f32 %v5161_v26, %v1319_v43  ;;  %v1351_v47 = vstv %s4701_s2  ;;  %v1843_v44 = vmul.f32 %v3219_v25, %v1842_v12  ;;  %v2120_v14 = vmul.f32 %v3219_v25, %v2119_v27  ;;  %v5167_v39 = vld [vmem:[#allocation43_spill] sm:$0xff]  ;;  %s2873_s2 = sld [smem:[#allocation9 + $0x69]] }
 0x338   : > { %v1831_v63 = vadd.f32 %v5163_v18, %v1823_v11  ;;  %v2095_v49 = vadd.f32 %v2093_v50, %v2087_v45  ;;  %v1583_v48 = vadd.f32 %v5164_v4, %v1575_v40  ;;  %v2250_v53 = vmul.f32 %v2249_v58, %v4496_v46  ;;  %v5168_v50 = vld [vmem:[#allocation57_spill] sm:$0xff]  ;;  %v5172_v40 = vld [vmem:[#allocation35_spill] sm:$0xff] }
 0x339   : > { %1442 = vrot.lane.b32.xlu1 %v1440_v3, %s5119_s1  ;;  %1173 = vrot.lane.b32.xlu0 %v1171_v22, %s5120_s9  ;;  %v1332_v59 = vadd.f32 %v1331_v23, %v1327_v24  ;;  %v2370_v36 = vpop.permute.xlu1 %2369  ;;  %v2362_v29 = vpop.permute.xlu0 %2361  ;;  %v1981_v7 = vmul.f32 %v1980_v55, %v4496_v46  ;;  %v2397_v61 = vmul.f32 %v3219_v25, %v2396_v57  ;;  %v1884_v58 = vstv %s4718_s0  ;;  %v5169_v3 = vld [vmem:[#allocation30_spill] sm:$0xff]  ;;  %s2981_s0 = sld [smem:[#allocation9 + $0xd2]] }
 0x33a   : > { %v1839_v1 = vadd.f32 %v5165_v42, %v1831_v63  ;;  %v2100_v30 = vadd.f32 %v2099_v5, %v2095_v49  ;;  %v2364_v62 = vadd.f32 %v2362_v29, %v2356_v31  ;;  %v1588_v20 = vadd.f32 %v1587_v38, %v1583_v48  ;;  %v5166_v31 = vld [vmem:[#allocation31_spill] sm:$0xff]  ;;  %v5173_v48 = vld [vmem:[#allocation36_spill] sm:$0xff] }
 0x33b   : > { %v1063_v12 = vadd.f32 %v4370_v8, %v4542_v16  ;;  %v2376_v27 = vmul.f32 %v3218_v34, %v2375_v52  ;;  %v4770_v8 = vld [vmem:[#allocation2 + $0x12] sm:$0xff]  ;;  %v1717_v19 = vmul.f32 %v1716_v9, %v4671_v35  ;;  %v1448_v43 = vmul.f32 %v1447_v13, %v4671_v35  ;;  %v5170_v9 = vld [vmem:[#allocation42_spill] sm:$0xff] }
 0x33c   : > { %v1844_v55 = vadd.f32 %v1843_v44, %v1839_v1  ;;  %v2108_v6 = vadd.f32 %v5166_v31, %v2100_v30  ;;  %v2372_v57 = vadd.f32 %v2370_v36, %v2364_v62  ;;  %v1596_v32 = vadd.f32 %v5167_v39, %v1588_v20  ;;  %v5171_v13 = vld [vmem:[#allocation37_spill] sm:$0xff]  ;;  %v5174_v44 = vld [vmem:[#allocation34_spill] sm:$0xff] }
 0x33d   : > { %2252 = vrot.lane.b32.xlu1 %v2250_v53, %s5119_s1  ;;  %1983 = vrot.lane.b32.xlu0 %v1981_v7, %s5120_s9  ;;  %v1864_v16 = vmul.f32 %v4770_v8, %v1863_v28  ;;  %v1338_v52 = vpop.permute.xlu1 %1337  ;;  %v1069_v34 = vpop.permute.xlu0 %1068  ;;  %v1075_v56 = vmul.f32 %v5168_v50, %v1074_v15  ;;  %v1608_v28 = vmul.f32 %v4335_v41, %v1607_v2  ;;  %v2001_v15 = vstv %s4738_s14  ;;  %v5175_v53 = vld [vmem:[#allocation41_spill] sm:$0xff]  ;;  %s2910_s14 = sld [smem:[#allocation9 + $0x8d]] }
 0x33e   : > { %v2116_v22 = vadd.f32 %v5169_v3, %v2108_v6  ;;  %v2377_v23 = vadd.f32 %v2376_v27, %v2372_v57  ;;  %v1340_v11 = vadd.f32 %v1338_v52, %v1332_v59  ;;  %v1071_v45 = vadd.f32 %v1069_v34, %v1063_v12  ;;  %v5177_v57 = vld [vmem:[#allocation47_spill] sm:$0xff]  ;;  %v5178_v52 = vld [vmem:[#allocation45_spill] sm:$0xff]  ;;  %v5180_v3 = vld [vmem:[#allocation46_spill] sm:$0xff] }
 0x33f   : > { %v1604_v26 = vadd.f32 %v5170_v9, %v1596_v32  ;;  %v1852_v24 = vadd.f32 %v5171_v13, %v1844_v55  ;;  %v1628_v18 = vstv %s4742_s3  ;;  %v2527_v2 = vmul.f32 %v2526_v21, %v4496_v46  ;;  %s3018_s3 = sld [smem:[#allocation9 + $0xf6]] }
 0x340   : > { %v2121_v60 = vadd.f32 %v2120_v14, %v2116_v22  ;;  %v2385_v38 = vadd.f32 %v5172_v40, %v2377_v23  ;;  %v1076_v5 = vadd.f32 %v1075_v56, %v1071_v45  ;;  %v2258_v4 = vmul.f32 %v2257_v51, %v4496_v46 }
 0x341   : > { %1719 = vrot.lane.b32.xlu1 %v1717_v19, %s5119_s1  ;;  %1450 = vrot.lane.b32.xlu0 %v1448_v43, %s5120_s9  ;;  %v1615_v63 = vpop.permute.xlu1 %1614  ;;  %v1609_v49 = vadd.f32 %v1608_v28, %v1604_v26  ;;  %v1346_v59 = vpop.permute.xlu0 %1345  ;;  %v1860_v25 = vadd.f32 %v5173_v48, %v1852_v24  ;;  %v1352_v29 = vmul.f32 %v5168_v50, %v1351_v47  ;;  %v2534_v51 = vstv %s4764_s19  ;;  %v5176_v47 = vld [vmem:[#allocation40_spill] sm:$0xff]  ;;  %s2947_s19 = sld [smem:[#allocation9 + $0xb1]] }
 0x342   : > { %v2393_v14 = vadd.f32 %v5174_v44, %v2385_v38  ;;  %v1348_v36 = vadd.f32 %v1346_v59, %v1340_v11  ;;  %v2129_v7 = vadd.f32 %v5175_v53, %v2121_v60  ;;  %v2161_v1 = vstv %s4766_s8  ;;  %v5181_v11 = vld [vmem:[#allocation44_spill] sm:$0xff]  ;;  %v5184_v53 = vld [vmem:[#allocation50_spill] sm:$0xff]  ;;  %s3055_s8 = sld [smem:[#allocation9 + $0x11a]] }
 0x343   : > { %v1617_v42 = vadd.f32 %v1615_v63, %v1609_v49  ;;  %v1865_v21 = vadd.f32 %v1864_v16, %v1860_v25  ;;  %v2141_v30 = vmul.f32 %v4770_v8, %v2140_v54  ;;  %v1994_v31 = vmul.f32 %v1993_v10, %v4671_v35  ;;  %v5179_v10 = vld [vmem:[#allocation49_spill] sm:$0xff]  ;;  %v5183_v49 = vld [vmem:[#allocation48_spill] sm:$0xff] }
 0x344   : > { %v2398_v62 = vadd.f32 %v2397_v61, %v2393_v14  ;;  %v1353_v20 = vadd.f32 %v1352_v29, %v1348_v36  ;;  %v2137_v12 = vadd.f32 %v5176_v47, %v2129_v7  ;;  %v1725_v6 = vmul.f32 %v1724_v17, %v4671_v35 }
 0x345   : > { %2529 = vrot.lane.b32.xlu1 %v2527_v2, %s5119_s1  ;;  %2260 = vrot.lane.b32.xlu0 %v2258_v4, %s5120_s9  ;;  %v1623_v27 = vpop.permute.xlu1 %1622  ;;  %v1082_v55 = vpop.permute.xlu0 %1081  ;;  %v1873_v54 = vadd.f32 %v5177_v57, %v1865_v21  ;;  %v1629_v61 = vmul.f32 %v5168_v50, %v1628_v18  ;;  %v1885_v17 = vmul.f32 %v4335_v41, %v1884_v58  ;;  %v2278_v43 = vstv %s4791_s18  ;;  %s2984_s18 = sld [smem:[#allocation9 + $0xd5]] }
 0x346   : > { %v1625_v39 = vadd.f32 %v1623_v27, %v1617_v42  ;;  %v1084_v32 = vadd.f32 %v1082_v55, %v1076_v5  ;;  %v2142_v16 = vadd.f32 %v2141_v30, %v2137_v12  ;;  %v2406_v34 = vadd.f32 %v5178_v52, %v2398_v62  ;;  %v5185_v42 = vld [vmem:[#allocation58_spill] sm:$0xff] }
 0x347   : > { %v1881_v19 = vadd.f32 %v5179_v10, %v1873_v54  ;;  %v2270_v56 = vstv %s4793_s11  ;;  %v2418_v50 = vmul.f32 %v4770_v8, %v2417_v33  ;;  %v2002_v13 = vmul.f32 %v2001_v15, %v4671_v35  ;;  %v5182_v33 = vld [vmem:[#allocation51_spill] sm:$0xff]  ;;  %s3021_s11 = sld [smem:[#allocation9 + $0xf9]] }
 0x348   : > { %v2150_v22 = vadd.f32 %v5180_v3, %v2142_v16  ;;  %v1630_v23 = vadd.f32 %v1629_v61, %v1625_v39  ;;  %v2414_v45 = vadd.f32 %v5181_v11, %v2406_v34  ;;  %v2535_v58 = vmul.f32 %v2534_v51, %v4496_v46  ;;  %v3221_v55 = vld [vmem:[#allocation2 + $0x21] sm:$0xff] }
 0x349   : > { %1996 = vrot.lane.b32.xlu1 %v1994_v31, %s5119_s1  ;;  %1727 = vrot.lane.b32.xlu0 %v1725_v6, %s5120_s9  ;;  %v1359_v28 = vpop.permute.xlu1 %1358  ;;  %v1886_v9 = vadd.f32 %v1885_v17, %v1881_v19  ;;  %v1892_v26 = vpop.permute.xlu0 %1891  ;;  %v2438_v24 = vstv %s4804_s25  ;;  %v2162_v40 = vmul.f32 %v4335_v41, %v2161_v1  ;;  %v1095_v18 = vstv %s4813_s29  ;;  %s3058_s25 = sld [smem:[#allocation9 + $0x11d]] }
 0x34a   : > { %v1361_v60 = vadd.f32 %v1359_v28, %v1353_v20  ;;  %v2158_v8 = vadd.f32 %v5182_v33, %v2150_v22  ;;  %v2419_v38 = vadd.f32 %v2418_v50, %v2414_v45  ;;  %v2555_v63 = vstv %s4819_s17  ;;  %v3222_v50 = vld [vmem:[#allocation2 + $0x21] sm:$0xff] }
 0x34b   : > { %v1894_v5 = vadd.f32 %v1892_v26, %v1886_v9  ;;  %v2279_v48 = vmul.f32 %v2278_v43, %v4671_v35  ;;  %v2271_v25 = vmul.f32 %v2270_v56, %v4671_v35  ;;  %v2547_v44 = vstv %s4829_s6  ;;  %v4877_v22 = vld [vmem:[#allocation2 + $0x22] sm:$0xff] }
 0x34c   : > { %v2163_v15 = vadd.f32 %v2162_v40, %v2158_v8  ;;  %v2427_v59 = vadd.f32 %v5183_v49, %v2419_v38  ;;  %v2439_v14 = vmul.f32 %v4335_v41, %v2438_v24  ;;  %v1096_v21 = vmul.f32 %v5185_v42, %v1095_v18 }
 0x34d   : > { %2004 = vrot.lane.b32.xlu1 %v2002_v13, %s5120_s9  ;;  %2537 = vrot.lane.b32.xlu0 %v2535_v58, %s5120_s9  ;;  %v2169_v2 = vpop.permute.xlu1 %2168  ;;  %v1090_v4 = vpop.permute.xlu0 %1089  ;;  %v1905_v51 = vstv %s4840_s28  ;;  %v2556_v41 = vmul.f32 %v2555_v63, %v4671_v35  ;;  %v2548_v47 = vmul.f32 %v2547_v44, %v4671_v35  ;;  %v1372_v6 = vstv %s4855_s12 }
 0x34e   : > { %v2171_v36 = vadd.f32 %v2169_v2, %v2163_v15  ;;  %v1092_v29 = vadd.f32 %v1090_v4, %v1084_v32  ;;  %v2435_v7 = vadd.f32 %v5184_v53, %v2427_v59  ;;  %v1906_v31 = vmul.f32 %v3221_v55, %v1905_v51 }
 0x34f   : > { %v1373_v16 = vmul.f32 %v5185_v42, %v1372_v6  ;;  %v2182_v52 = vstv %s3009_s13  ;;  %v1649_v34 = vstv %s4868_s30  ;;  %v2459_v11 = vstv %s3046_s5 }
 0x350   : > { %v2440_v1 = vadd.f32 %v2439_v14, %v2435_v7  ;;  %v1097_v30 = vadd.f32 %v1096_v21, %v1092_v29  ;;  %v2183_v3 = vmul.f32 %v3222_v50, %v2182_v52  ;;  %v2460_v58 = vmul.f32 %v3222_v50, %v2459_v11  ;;  %v4885_v7 = vld [vmem:[#allocation2 + $0x30] sm:$0xff] }
 0x351   : > { %2281 = vrot.lane.b32.xlu1 %v2279_v48, %s5120_s9  ;;  %2273 = vrot.lane.b32.xlu0 %v2271_v25, %s5119_s1  ;;  %v1636_v62 = vpop.permute.xlu1 %1635  ;;  %v1900_v20 = vpop.permute.xlu0 %1899  ;;  %v1116_v25 = vstv %s2867_s22  ;;  %v2203_v21 = vstv %s4880_s16  ;;  %v902_v52 = vsel %vm623_vm7, %v4618_v37, 0.0 }
 0x352   : > { %v1638_v12 = vadd.f32 %v1636_v62, %v1630_v23  ;;  %v1902_v27 = vadd.f32 %v1900_v20, %v1894_v5  ;;  %v1650_v23 = vmul.f32 %v4877_v22, %v1649_v34  ;;  %v1670_v51 = vstv %s4882_s4 }
 0x353   : > { %v2204_v6 = vmul.f32 %v4877_v22, %v2203_v21  ;;  %v2480_v34 = vstv %s4890_s27  ;;  %v2501_v21 = vstv %s3052_s26 }
 0x354   : > { %v1907_v57 = vadd.f32 %v1906_v31, %v1902_v27  ;;  %v625_v27 = vsel %vm623_vm7, %v4448_v0, 0.0 }
 0x355   : > { %2558 = vrot.lane.b32.xlu1 %v2556_v41, %s5120_s9  ;;  %2550 = vrot.lane.b32.xlu0 %v2548_v47, %s5119_s1  ;;  %v2446_v54 = vpop.permute.xlu1 %2445  ;;  %v1367_v61 = vpop.permute.xlu0 %1366  ;;  %s2975_s1 = sld [smem:[#allocation9 + $0xcc]]  ;;  %s2904_s9 = sld [smem:[#allocation9 + $0x87]]  ;;  %v3225_v41 = vld [vmem:[#allocation2 + $0x30] sm:$0xff] }
 0x356   : > { %v2448_v39 = vadd.f32 %v2446_v54, %v2440_v1  ;;  %v1369_v32 = vadd.f32 %v1367_v61, %v1361_v60  ;;  %v1117_v47 = vmul.f32 %v3225_v41, %v1116_v25  ;;  %v1691_v25 = vstv %s2944_s23 }
 0x358   : > { %v1374_v10 = vadd.f32 %v1373_v16, %v1369_v32 }
 0x359   : > { %v1644_v19 = vpop.permute.xlu1 %1643  ;;  %v2177_v17 = vpop.permute.xlu0 %2176 }
 0x35a   : > { %v1646_v43 = vadd.f32 %v1644_v19, %v1638_v12  ;;  %v2179_v56 = vadd.f32 %v2177_v17, %v2171_v36  ;;  %v5186_v19 = vld [vmem:[#allocation52_spill] sm:$0xff] }
 0x35b   : > { %v1926_v18 = vstv %s2975_s1  ;;  %v1393_v2 = vstv %s2904_s9 }
 0x35c   : > { %v2184_v45 = vadd.f32 %v2183_v3, %v2179_v56  ;;  %v1651_v28 = vadd.f32 %v1650_v23, %v1646_v43  ;;  %v1927_v59 = vmul.f32 %v4877_v22, %v1926_v18  ;;  %v1394_v42 = vmul.f32 %v4885_v7, %v1393_v2 }
 0x35d   : > { %v2454_v9 = vpop.permute.xlu1 %2453  ;;  %v1103_v26 = vpop.permute.xlu0 %1102  ;;  %v2481_v23 = vmul.f32 %v4877_v22, %v2480_v34 }
 0x35e   : > { %v2456_v13 = vadd.f32 %v2454_v9, %v2448_v39  ;;  %v1105_v36 = vadd.f32 %v1103_v26, %v1097_v30 }
 0x360   : > { %v2461_v24 = vadd.f32 %v2460_v58, %v2456_v13 }
 0x361   : > { %v1380_v60 = vpop.permute.xlu1 %1379  ;;  %v1913_v40 = vpop.permute.xlu0 %1912 }
 0x362   : > { %v1915_v33 = vadd.f32 %v1913_v40, %v1907_v57  ;;  %v1382_v4 = vadd.f32 %v1380_v60, %v1374_v10  ;;  %v1671_v57 = vmul.f32 %v4885_v7, %v1670_v51  ;;  %v1137_v10 = vstv %s4892_s20 }
 0x363   : > { %v1138_v11 = vmul.f32 %v1137_v10, %v4496_v46  ;;  %v1414_v40 = vstv %s2907_s7  ;;  %v1435_v10 = vstv %s2910_s14 }
 0x364   : > { %v1415_v22 = vmul.f32 %v1414_v40, %v4496_v46 }
 0x365   : > { %v2190_v8 = vpop.permute.xlu1 %2189  ;;  %v1111_v38 = vpop.permute.xlu0 %1110 }
 0x366   : > { %v2192_v5 = vadd.f32 %v2190_v8, %v2184_v45  ;;  %v1113_v1 = vadd.f32 %v1111_v38, %v1105_v36  ;;  %v1947_v45 = vstv %s2978_s10 }
 0x367   : > { %v1948_v60 = vmul.f32 %v4885_v7, %v1947_v45 }
 0x368   : > { %v1118_v54 = vadd.f32 %v1117_v47, %v1113_v1  ;;  %v2502_v47 = vmul.f32 %v4885_v7, %v2501_v21 }
 0x369   : > { %v1657_v15 = vpop.permute.xlu1 %1656  ;;  %v1921_v63 = vpop.permute.xlu0 %1920 }
 0x36a   : > { %v1923_v49 = vadd.f32 %v1921_v63, %v1915_v33  ;;  %v1659_v62 = vadd.f32 %v1657_v15, %v1651_v28  ;;  %v1126_v17 = vadd.f32 %v5186_v19, %v1118_v54  ;;  %v2224_v15 = vstv %s3015_s24 }
 0x36b   : > { %v1968_v54 = vstv %s2981_s0 }
 0x36c   : > { %v1928_v48 = vadd.f32 %v1927_v59, %v1923_v49  ;;  %v1969_v34 = vmul.f32 %v1968_v54, %v4496_v46 }
 0x36d   : > { %v2467_v44 = vpop.permute.xlu1 %2466  ;;  %v1388_v14 = vpop.permute.xlu0 %1387 }
 0x36e   : > { %v2469_v29 = vadd.f32 %v2467_v44, %v2461_v24  ;;  %v1390_v53 = vadd.f32 %v1388_v14, %v1382_v4 }
 0x370   : > { %v1395_v20 = vadd.f32 %v1394_v42, %v1390_v53  ;;  %v1692_v42 = vmul.f32 %v1691_v25, %v4496_v46 }
 0x371   : > { %v1665_v12 = vpop.permute.xlu1 %1664  ;;  %v2198_v30 = vpop.permute.xlu0 %2197 }
 0x372   : > { %v1667_v55 = vadd.f32 %v1665_v12, %v1659_v62  ;;  %v2200_v31 = vadd.f32 %v2198_v30, %v2192_v5  ;;  %v1158_v12 = vstv %s2873_s2 }
 0x374   : > { %626 = vadd.xlane.f32.xlu0 %v625_v27  ;;  %v2205_v61 = vadd.f32 %v2204_v6, %v2200_v31  ;;  %v1672_v39 = vadd.f32 %v1671_v57, %v1667_v55  ;;  %v1159_v57 = vmul.f32 %v1158_v12, %v4671_v35 }
 0x375   : > { %v1401_v32 = vpop.permute.xlu1 %1400  ;;  %v1934_v16 = vpop.permute.xlu0 %1933 }
 0x376   : > { %v1936_v28 = vadd.f32 %v1934_v16, %v1928_v48  ;;  %v1403_v33 = vadd.f32 %v1401_v32, %v1395_v20  ;;  %v2225_v48 = vmul.f32 %v4885_v7, %v2224_v15 }
 0x378   : > { %903 = vadd.xlane.f32.xlu0 %v902_v52 }
 0x37a   : > { %v2475_v43 = vpop.permute.xlu1 %2474  ;;  %v1132_v56 = vpop.permute.xlu0 %1131 }
 0x37b   : > { %v2477_v50 = vadd.f32 %v2475_v43, %v2469_v29  ;;  %v1134_v3 = vadd.f32 %v1132_v56, %v1126_v17 }
 0x37d   : > { %v2482_v9 = vadd.f32 %v2481_v23, %v2477_v50  ;;  %v1139_v26 = vadd.f32 %v1138_v11, %v1134_v3  ;;  %v1436_v50 = vmul.f32 %v1435_v10, %v4671_v35  ;;  %v2245_v3 = vstv %s3018_s3 }
 0x37e   : > { %v2211_v13 = vpop.permute.xlu1 %2210  ;;  %v1942_v58 = vpop.permute.xlu0 %1941 }
 0x37f   : > { %v1944_v24 = vadd.f32 %v1942_v58, %v1936_v28  ;;  %v2213_v63 = vadd.f32 %v2211_v13, %v2205_v61  ;;  %v1712_v13 = vstv %s2947_s19 }
 0x381   : > { %v1949_v8 = vadd.f32 %v1948_v60, %v1944_v24 }
 0x383   : > { %v1678_v38 = vpop.permute.xlu1 %1677  ;;  %v1409_v5 = vpop.permute.xlu0 %1408 }
 0x384   : > { %v1411_v18 = vadd.f32 %v1409_v5, %v1403_v33  ;;  %v1680_v44 = vadd.f32 %v1678_v38, %v1672_v39  ;;  %v2522_v38 = vstv %s3055_s8 }
 0x386   : > { %v1416_v49 = vadd.f32 %v1415_v22, %v1411_v18 }
 0x387   : > { %v2488_v59 = vpop.permute.xlu1 %2487  ;;  %v2219_v2 = vpop.permute.xlu0 %2218 }
 0x388   : > { %v2221_v4 = vadd.f32 %v2219_v2, %v2213_v63  ;;  %v2490_v51 = vadd.f32 %v2488_v59, %v2482_v9 }
 0x38a   : > { %v2226_v14 = vadd.f32 %v2225_v48, %v2221_v4 }
 0x38b   : > { %v1686_v36 = vpop.permute.xlu1 %1685  ;;  %v1145_v29 = vpop.permute.xlu0 %1144 }
 0x38c   : > { %v1688_v53 = vadd.f32 %v1686_v36, %v1680_v44  ;;  %v1147_v30 = vadd.f32 %v1145_v29, %v1139_v26  ;;  %v2246_v26 = vmul.f32 %v2245_v3, %v4496_v46  ;;  %v1989_v44 = vstv %s2984_s18 }
 0x38d   : > { %v1990_v21 = vmul.f32 %v1989_v44, %v4671_v35 }
 0x38e   : > { %v1693_v1 = vadd.f32 %v1692_v42, %v1688_v53 }
 0x38f   : > { %v2496_v62 = vpop.permute.xlu1 %2495  ;;  %v1955_v20 = vpop.permute.xlu0 %1954 }
 0x390   : > { %v2498_v41 = vadd.f32 %v2496_v62, %v2490_v51  ;;  %v1957_v61 = vadd.f32 %v1955_v20, %v1949_v8  ;;  %v1713_v8 = vmul.f32 %v1712_v13, %v4671_v35 }
 0x392   : > { %v2503_v27 = vadd.f32 %v2502_v47, %v2498_v41  ;;  %v2266_v47 = vstv %s3021_s11 }
 0x393   : > { %v1422_v55 = vpop.permute.xlu1 %1421  ;;  %v1153_v31 = vpop.permute.xlu0 %1152 }
 0x394   : > { %v1155_v6 = vadd.f32 %v1153_v31, %v1147_v30  ;;  %v1424_v7 = vadd.f32 %v1422_v55, %v1416_v49  ;;  %v3226_v49 = vld [vmem:[#allocation2 + $0x31] sm:$0xff] }
 0x395   : > { %v2523_v59 = vmul.f32 %v3226_v49, %v2522_v38 }
 0x396   : > { %v1160_v39 = vadd.f32 %v1159_v57, %v1155_v6  ;;  %v2267_v57 = vmul.f32 %v2266_v47, %v4671_v35 }
 0x397   : > { %v2232_v32 = vpop.permute.xlu1 %2231  ;;  %v1963_v16 = vpop.permute.xlu0 %1962 }
 0x398   : > { %v1965_v52 = vadd.f32 %v1963_v16, %v1957_v61  ;;  %v2234_v23 = vadd.f32 %v2232_v32, %v2226_v14 }
 0x39a   : > { %v1970_v19 = vadd.f32 %v1969_v34, %v1965_v52  ;;  %v2543_v34 = vstv %s3058_s25 }
 0x39b   : > { %v1699_v17 = vpop.permute.xlu1 %1698  ;;  %v1430_v43 = vpop.permute.xlu0 %1429 }
 0x39c   : > { %v1432_v56 = vadd.f32 %v1430_v43, %v1424_v7  ;;  %v1701_v58 = vadd.f32 %v1699_v17, %v1693_v1 }
 0x39e   : > { %v1437_v11 = vadd.f32 %v1436_v50, %v1432_v56 }
 0x39f   : > { %v2509_v45 = vpop.permute.xlu1 %2508  ;;  %v2240_v28 = vpop.permute.xlu0 %2239 }
 0x3a0   : > { %v2242_v9 = vadd.f32 %v2240_v28, %v2234_v23  ;;  %v2511_v5 = vadd.f32 %v2509_v45, %v2503_v27 }
 0x3a2   : > { %v2247_v24 = vadd.f32 %v2246_v26, %v2242_v9  ;;  %v636_v26 = vmul.f32 %v4448_v0, %v4448_v0 }
 0x3a3   : > { %v1707_v60 = vpop.permute.xlu1 %1706  ;;  %v1166_v40 = vpop.permute.xlu0 %1165 }
 0x3a4   : > { %v1709_v33 = vadd.f32 %v1707_v60, %v1701_v58  ;;  %v1168_v2 = vadd.f32 %v1166_v40, %v1160_v39  ;;  %v637_v40 = vsel %vm623_vm7, %v636_v26, 0.0 }
 0x3a6   : > { %v1714_v18 = vadd.f32 %v1713_v8, %v1709_v33  ;;  %v913_v33 = vmul.f32 %v4618_v37, %v4618_v37 }
 0x3a7   : > { %v2517_v22 = vpop.permute.xlu1 %2516  ;;  %v1976_v15 = vpop.permute.xlu0 %1975 }
 0x3a8   : > { %v2519_v63 = vadd.f32 %v2517_v22, %v2511_v5  ;;  %v1978_v14 = vadd.f32 %v1976_v15, %v1970_v19  ;;  %v914_v22 = vsel %vm623_vm7, %v913_v33, 0.0 }
 0x3aa   : > { %v2524_v46 = vadd.f32 %v2523_v59, %v2519_v63 }
 0x3ab   : > { %v1443_v4 = vpop.permute.xlu1 %1442  ;;  %v1174_v48 = vpop.permute.xlu0 %1173 }
 0x3ac   : > { %v4915_v25 = vadd.f32 %v1174_v48, %v1168_v2  ;;  %v1445_v51 = vadd.f32 %v1443_v4, %v1437_v11  ;;  %v2544_v11 = vmul.f32 %v2543_v34, %v4671_v35 }
 0x3ae   : > { %2876 = vst.msk [vmem:[%s4463_s15 + $0x10] sm:$0xff] %vm623_vm7, %v4915_v25  ;;  %v1179_v36 = vsel %vm623_vm7, %v4915_v25, 0.0  ;;  %v1190_v63 = vmul.f32 %v4915_v25, %v4915_v25 }
 0x3af   : > { %v2253_v29 = vpop.permute.xlu1 %2252  ;;  %v1984_v53 = vpop.permute.xlu0 %1983  ;;  %1180 = vadd.xlane.f32.xlu0 %v1179_v36 }
 0x3b0   : > { %v1986_v42 = vadd.f32 %v1984_v53, %v1978_v14  ;;  %v2255_v12 = vadd.f32 %v2253_v29, %v2247_v24  ;;  %v1191_v49 = vsel %vm623_vm7, %v1190_v63, 0.0 }
 0x3b2   : > { %v1991_v1 = vadd.f32 %v1990_v21, %v1986_v42 }
 0x3b3   : > { %v1720_v62 = vpop.permute.xlu1 %1719  ;;  %v1451_v20 = vpop.permute.xlu0 %1450 }
 0x3b4   : > { %v1453_v41 = vadd.f32 %v1451_v20, %v1445_v51  ;;  %v1722_v54 = vadd.f32 %v1720_v62, %v1714_v18 }
 0x3b6   : > { %2913 = vst.msk [vmem:[%s4463_s15 + $0x18] sm:$0xff] %vm623_vm7, %v1453_v41  ;;  %v1456_v30 = vsel %vm623_vm7, %v1453_v41, 0.0  ;;  %v1467_v27 = vmul.f32 %v1453_v41, %v1453_v41 }
 0x3b7   : > { %v2530_v55 = vpop.permute.xlu1 %2529  ;;  %v2261_v31 = vpop.permute.xlu0 %2260  ;;  %1457 = vadd.xlane.f32.xlu0 %v1456_v30 }
 0x3b8   : > { %v2263_v6 = vadd.f32 %v2261_v31, %v2255_v12  ;;  %v1468_v61 = vsel %vm623_vm7, %v1467_v27, 0.0  ;;  %v2532_v10 = vadd.f32 %v2530_v55, %v2524_v46 }
 0x3ba   : > { %v2268_v39 = vadd.f32 %v2267_v57, %v2263_v6 }
 0x3bb   : > { %v1997_v32 = vpop.permute.xlu1 %1996  ;;  %v1728_v16 = vpop.permute.xlu0 %1727  ;;  %1469 = vadd.xlane.f32.xlu0 %v1468_v61 }
 0x3bc   : > { %v1730_v52 = vadd.f32 %v1728_v16, %v1722_v54  ;;  %v1999_v7 = vadd.f32 %v1997_v32, %v1991_v1 }
 0x3be   : > { %2950 = vst.msk [vmem:[%s4463_s15 + $0x20] sm:$0xff] %vm623_vm7, %v1730_v52  ;;  %v1733_v19 = vsel %vm623_vm7, %v1730_v52, 0.0  ;;  %v1744_v17 = vmul.f32 %v1730_v52, %v1730_v52 }
 0x3bf   : > { %v2005_v43 = vpop.permute.xlu1 %2004  ;;  %1734 = vadd.xlane.f32.xlu1 %v1733_v19  ;;  %v2538_v56 = vpop.permute.xlu0 %2537 }
 0x3c0   : > { %v2007_v50 = vadd.f32 %v2005_v43, %v1999_v7  ;;  %v2540_v3 = vadd.f32 %v2538_v56, %v2532_v10  ;;  %v1745_v23 = vsel %vm623_vm7, %v1744_v17, 0.0 }
 0x3c1   : > { %1746 = vadd.xlane.f32.xlu0 %v1745_v23 }
 0x3c2   : > { %2987 = vst.msk [vmem:[%s4463_s15 + $0x28] sm:$0xff] %vm623_vm7, %v2007_v50  ;;  %v2010_v45 = vsel %vm623_vm7, %v2007_v50, 0.0  ;;  %v2021_v28 = vmul.f32 %v2007_v50, %v2007_v50  ;;  %v2545_v9 = vadd.f32 %v2544_v11, %v2540_v3 }
 0x3c3   : > { %v2282_v13 = vpop.permute.xlu1 %2281  ;;  %2011 = vadd.xlane.f32.xlu1 %v2010_v45  ;;  %v2274_v58 = vpop.permute.xlu0 %2273 }
 0x3c4   : > { %v2276_v24 = vadd.f32 %v2274_v58, %v2268_v39  ;;  %v2022_v60 = vsel %vm623_vm7, %v2021_v28, 0.0 }
 0x3c5   : > { %2023 = vadd.xlane.f32.xlu0 %v2022_v60 }
 0x3c6   : > { %v2284_v35 = vadd.f32 %v2282_v13, %v2276_v24 }
 0x3c7   : > { %v2551_v8 = vpop.permute.xlu0 %2550  ;;  %638 = vadd.xlane.f32.xlu1 %v637_v40  ;;  %v2559_v5 = vpop.permute.xlu1 %2558 }
 0x3c8   : > { %3024 = vst.msk [vmem:[%s4463_s15 + $0x30] sm:$0xff] %vm623_vm7, %v2284_v35  ;;  %v2553_v38 = vadd.f32 %v2551_v8, %v2545_v9  ;;  %v2298_v0 = vmul.f32 %v2284_v35, %v2284_v35  ;;  %v2287_v2 = vsel %vm623_vm7, %v2284_v35, 0.0 }
 0x3ca   : > { %v2561_v18 = vadd.f32 %v2559_v5, %v2553_v38  ;;  %v2299_v15 = vsel %vm623_vm7, %v2298_v0, 0.0 }
 0x3cb   : > { %915 = vadd.xlane.f32.xlu1 %v914_v22  ;;  %2300 = vadd.xlane.f32.xlu0 %v2299_v15 }
 0x3cc   : > { %3061 = vst.msk [vmem:[%s4463_s15 + $0x38] sm:$0xff] %vm623_vm7, %v2561_v18  ;;  %v2575_v37 = vmul.f32 %v2561_v18, %v2561_v18  ;;  %v2564_v46 = vsel %vm623_vm7, %v2561_v18, 0.0 }
 0x3ce   : > { %v2576_v59 = vsel %vm623_vm7, %v2575_v37, 0.0 }
 0x3cf   : > { %1192 = vadd.xlane.f32.xlu1 %v1191_v49  ;;  %2577 = vadd.xlane.f32.xlu0 %v2576_v59 }
 0x3d3   : > { %2288 = vadd.xlane.f32.xlu1 %v2287_v2 }
 0x3d7   : > { %2565 = vadd.xlane.f32.xlu1 %v2564_v46 }
 0x401   : > { %v627_v4 = vpop.xlane.xlu0 %626 }
 0x402   : > { %v628_v48 = vrot.slane %v627_v4, 4 }
 0x404   : > { %v629_v25 = vadd.f32 %v628_v48, %v627_v4 }
 0x405   : > { %v904_v53 = vpop.xlane.xlu0 %903 }
 0x406   : > { %v630_v44 = vrot.slane %v629_v25, 2  ;;  %v905_v51 = vrot.slane %v904_v53, 4 }
 0x408   : > { %v631_v14 = vadd.f32 %v630_v44, %v629_v25  ;;  %v906_v20 = vadd.f32 %v905_v51, %v904_v53 }
 0x40a   : > { %v632_v36 = vrot.slane %v631_v14, 1  ;;  %v907_v30 = vrot.slane %v906_v20, 2 }
 0x40c   : > { %v633_v29 = vadd.f32 %v632_v36, %v631_v14  ;;  %v908_v61 = vadd.f32 %v907_v30, %v906_v20 }
 0x40e   : > { %3091 = vpush %v633_v29  ;;  %v909_v3 = vrot.slane %v908_v61, 1 }
 0x410   : > { %v910_v0 = vadd.f32 %v909_v3, %v908_v61 }
 0x43c   : > { %v1181_v42 = vpop.xlane.xlu0 %1180 }
 0x43d   : > { %v1182_v41 = vrot.slane %v1181_v42, 4 }
 0x43f   : > { %v1183_v27 = vadd.f32 %v1182_v41, %v1181_v42  ;;  %s3092_s29 = spop %3091 }
 0x441   : > { %v1184_v39 = vrot.slane %v1183_v27, 2 }
 0x443   : > { %v1185_v45 = vadd.f32 %v1184_v39, %v1183_v27 }
 0x444   : > { %v1458_v21 = vpop.xlane.xlu0 %1457 }
 0x445   : > { %v1459_v55 = vrot.slane %v1458_v21, 4  ;;  %v1186_v15 = vrot.slane %v1185_v45, 1 }
 0x447   : > { %v1460_v52 = vadd.f32 %v1459_v55, %v1458_v21  ;;  %v1187_v53 = vadd.f32 %v1186_v15, %v1185_v45  ;;  %v2608_v15 = vld [vmem:[%s4463_s15] sm:$0xff] }
 0x448   : > { %v1470_v1 = vpop.xlane.xlu0 %1469 }
 0x449   : > { %v1471_v31 = vrot.slane %v1470_v1, 4  ;;  %v1461_v28 = vrot.slane %v1460_v52, 2 }
 0x44b   : > { %v1472_v10 = vadd.f32 %v1471_v31, %v1470_v1  ;;  %v1462_v59 = vadd.f32 %v1461_v28, %v1460_v52 }
 0x44c   : > { %v1735_v62 = vpop.xlane.xlu1 %1734 }
 0x44d   : > { %v1736_v32 = vrot.slane %v1735_v62, 4  ;;  %v1473_v58 = vrot.slane %v1472_v10, 2 }
 0x44e   : > { %v1747_v47 = vpop.xlane.xlu0 %1746 }
 0x44f   : > { %v1748_v16 = vrot.slane %v1747_v47, 4  ;;  %v1737_v23 = vadd.f32 %v1736_v32, %v1735_v62  ;;  %v1474_v25 = vadd.f32 %v1473_v58, %v1472_v10 }
 0x450   : > { %v2012_v12 = vpop.xlane.xlu1 %2011 }
 0x451   : > { %v2013_v7 = vrot.slane %v2012_v12, 4  ;;  %v1749_v11 = vadd.f32 %v1748_v16, %v1747_v47  ;;  %v1738_v5 = vrot.slane %v1737_v23, 2  ;;  %v1463_v47 = vrot.slane %v1462_v59, 1 }
 0x452   : > { %v2024_v6 = vpop.xlane.xlu0 %2023 }
 0x453   : > { %v2025_v19 = vrot.slane %v2024_v6, 4  ;;  %v2014_v24 = vadd.f32 %v2013_v7, %v2012_v12  ;;  %v1750_v18 = vrot.slane %v1749_v11, 2  ;;  %v1739_v42 = vadd.f32 %v1738_v5, %v1737_v23 }
 0x454   : > { %v639_v57 = vpop.xlane.xlu1 %638  ;;  %v1475_v12 = vrot.slane %v1474_v25, 1 }
 0x455   : > { %v640_v54 = vrot.slane %v639_v57, 4  ;;  %v2026_v60 = vadd.f32 %v2025_v19, %v2024_v6  ;;  %v2015_v2 = vrot.slane %v2014_v24, 2  ;;  %v1751_v21 = vadd.f32 %v1750_v18, %v1749_v11 }
 0x456   : > { %v1476_v10 = vadd.f32 %v1475_v12, %v1474_v25 }
 0x457   : > { %v641_v34 = vadd.f32 %v640_v54, %v639_v57  ;;  %v2027_v46 = vrot.slane %v2026_v60, 2  ;;  %v2016_v30 = vadd.f32 %v2015_v2, %v2014_v24  ;;  %v1740_v54 = vrot.slane %v1739_v42, 1 }
 0x458   : > { %v916_v17 = vpop.xlane.xlu1 %915  ;;  %v2301_v43 = vpop.xlane.xlu0 %2300  ;;  %v1752_v61 = vrot.slane %v1751_v21, 1 }
 0x459   : > { %v642_v56 = vrot.slane %v641_v34, 2  ;;  %v917_v50 = vrot.slane %v916_v17, 4  ;;  %v2302_v26 = vrot.slane %v2301_v43, 4  ;;  %v2028_v27 = vadd.f32 %v2027_v46, %v2026_v60  ;;  %v2613_v46 = vld [vmem:[%s4463_s15 + $0x28] sm:$0xff] }
 0x45a   : > { %v2017_v7 = vrot.slane %v2016_v30, 1  ;;  %v1753_v23 = vadd.f32 %v1752_v61, %v1751_v21 }
 0x45b   : > { %v918_v9 = vadd.f32 %v917_v50, %v916_v17  ;;  %v643_v13 = vadd.f32 %v642_v56, %v641_v34  ;;  %v2303_v63 = vadd.f32 %v2302_v26, %v2301_v43  ;;  %v1464_v34 = vadd.f32 %v1463_v47, %v1462_v59  ;;  %v2612_v59 = vld [vmem:[%s4463_s15 + $0x20] sm:$0xff] }
 0x45c   : > { %v1193_v35 = vpop.xlane.xlu1 %1192  ;;  %v2578_v40 = vpop.xlane.xlu0 %2577  ;;  %v2029_v43 = vrot.slane %v2028_v27, 1  ;;  %v1741_v50 = vadd.f32 %v1740_v54, %v1739_v42  ;;  %v2018_v45 = vadd.f32 %v2017_v7, %v2016_v30 }
 0x45d   : > { %v919_v33 = vrot.slane %v918_v9, 2  ;;  %v1194_v8 = vrot.slane %v1193_v35, 4  ;;  %v2579_v38 = vrot.slane %v2578_v40, 4  ;;  %v644_v22 = vrot.slane %v643_v13, 1 }
 0x45e   : > { %v2304_v51 = vrot.slane %v2303_v63, 2 }
 0x45f   : > { %v1195_v37 = vadd.f32 %v1194_v8, %v1193_v35  ;;  %v920_v49 = vadd.f32 %v919_v33, %v918_v9  ;;  %v645_v48 = vadd.f32 %v644_v22, %v643_v13  ;;  %v2580_v14 = vadd.f32 %v2579_v38, %v2578_v40 }
 0x460   : > { %v2289_v4 = vpop.xlane.xlu1 %2288  ;;  %v2305_v52 = vadd.f32 %v2304_v51, %v2303_v63  ;;  %v2030_v9 = vadd.f32 %v2029_v43, %v2028_v27  ;;  %v2609_v63 = vld [vmem:[%s4463_s15 + $0x8] sm:$0xff] }
 0x461   : > { %v1196_v44 = vrot.slane %v1195_v37, 2  ;;  %v2290_v36 = vrot.slane %v2289_v4, 4  ;;  %v921_v29 = vrot.slane %v920_v49, 1  ;;  %3093 = vpush %v645_v48  ;;  %v2581_v55 = vrot.slane %v2580_v14, 2  ;;  %v2615_v48 = vld [vmem:[%s4463_s15 + $0x38] sm:$0xff] }
 0x462   : > { %3095 = vpush %v910_v0  ;;  %v2306_v11 = vrot.slane %v2305_v52, 1 }
 0x463   : > { %v2291_v1 = vadd.f32 %v2290_v36, %v2289_v4  ;;  %v922_v62 = vadd.f32 %v921_v29, %v920_v49  ;;  %v1197_v20 = vadd.f32 %v1196_v44, %v1195_v37  ;;  %v2582_v19 = vadd.f32 %v2581_v55, %v2580_v14  ;;  %v2610_v37 = vld [vmem:[%s4463_s15 + $0x10] sm:$0xff]  ;;  %v2611_v49 = vld [vmem:[%s4463_s15 + $0x18] sm:$0xff] }
 0x464   : > { %v2566_v41 = vpop.xlane.xlu1 %2565  ;;  %v2307_v58 = vadd.f32 %v2306_v11, %v2305_v52  ;;  %v2614_v4 = vld [vmem:[%s4463_s15 + $0x30] sm:$0xff] }
 0x465   : > { %v2292_v31 = vrot.slane %v2291_v1, 2  ;;  %v2567_v6 = vrot.slane %v2566_v41, 4  ;;  %3097 = vpush %v922_v62  ;;  %v1198_v57 = vrot.slane %v1197_v20, 1  ;;  %v2583_v13 = vrot.slane %v2582_v19, 1 }
 0x466   : > { %3099 = vpush %v1187_v53 }
 0x467   : > { %v2568_v39 = vadd.f32 %v2567_v6, %v2566_v41  ;;  %v1199_v32 = vadd.f32 %v1198_v57, %v1197_v20  ;;  %v2293_v16 = vadd.f32 %v2292_v31, %v2291_v1  ;;  %v2584_v60 = vadd.f32 %v2583_v13, %v2582_v19 }
 0x469   : > { %v2569_v17 = vrot.slane %v2568_v39, 2  ;;  %3101 = vpush %v1199_v32  ;;  %v2294_v56 = vrot.slane %v2293_v16, 1 }
 0x46a   : > { %3103 = vpush %v1464_v34 }
 0x46b   : > { %v2570_v3 = vadd.f32 %v2569_v17, %v2568_v39  ;;  %3105 = vpush %v1476_v10  ;;  %v2295_v28 = vadd.f32 %v2294_v56, %v2293_v16 }
 0x46c   : > { %3107 = vpush %v1741_v50 }
 0x46d   : > { %3109 = vpush %v1753_v23  ;;  %v2571_v26 = vrot.slane %v2570_v3, 1 }
 0x46e   : > { %3111 = vpush %v2018_v45 }
 0x46f   : > { %3113 = vpush %v2030_v9  ;;  %v2572_v24 = vadd.f32 %v2571_v26, %v2570_v3 }
 0x470   : > { %3115 = vpush %v2295_v28 }
 0x471   : > { %3117 = vpush %v2307_v58 }
 0x472   : > { %3119 = vpush %v2572_v24 }
 0x473   : > { %3121 = vpush %v2584_v60 }
 0x492   : > { %s3094_s17 = spop %3093 }
 0x493   : > { %s3096_s6 = spop %3095 }
 0x494   : > { %s912_s13 = sadd.f32 %s3096_s6, %s3092_s29 }
 0x496   : > { %s3098_s28 = spop %3097 }
 0x497   : > { %s3100_s12 = spop %3099  ;;  %s924_s30 = sadd.f32 %s3098_s28, %s3094_s17 }
 0x498   : > { %s1189_s5 = sadd.f32 %s3100_s12, %s912_s13  ;;  %s5187_s13 = sld [smem:[#allocation19_spill]] }
 0x49a   : > { %s3102_s1 = spop %3101 }
 0x49b   : > { %s1201_s9 = sadd.f32 %s3102_s1, %s924_s30  ;;  %s3104_s22 = spop %3103 }
 0x49c   : > { %s1466_s16 = sadd.f32 %s3104_s22, %s1189_s5  ;;  %s3106_s4 = spop %3105 }
 0x49d   : > { %s1478_s27 = sadd.f32 %s3106_s4, %s1201_s9  ;;  %s3108_s20 = spop %3107 }
 0x49e   : > { %s1743_s10 = sadd.f32 %s3108_s20, %s1466_s16  ;;  %s3110_s7 = spop %3109 }
 0x49f   : > { %s1755_s24 = sadd.f32 %s3110_s7, %s1478_s27  ;;  %s3112_s23 = spop %3111 }
 0x4a0   : > { %s2020_s26 = sadd.f32 %s3112_s23, %s1743_s10  ;;  %s3114_s2 = spop %3113 }
 0x4a1   : > { %s2032_s0 = sadd.f32 %s3114_s2, %s1755_s24  ;;  %s3116_s14 = spop %3115 }
 0x4a2   : > { %s2297_s3 = sadd.f32 %s3116_s14, %s2020_s26  ;;  %s3118_s19 = spop %3117 }
 0x4a3   : > { %s2309_s8 = sadd.f32 %s3118_s19, %s2032_s0  ;;  %s3120_s18 = spop %3119 }
 0x4a4   : > { %s2574_s11 = sadd.f32 %s3120_s18, %s2297_s3  ;;  %s3122_s29 = spop %3121 }
 0x4a5   : > { %s2586_s6 = sadd.f32 %s3122_s29, %s2309_s8  ;;  %s3068_s1 = sshll.u32 %s5187_s13, 10 }
 0x4a6   : > { %s2589_s25 = smul.f32 0.001953125, %s2574_s11  ;;  %s2656_s9 = sshll.u32 %s4463_s15, 4  ;;  %s4969_s9 = int_to_ptr.vmem [resolvable:$true] %s2656_s9 }
 0x4a7   : > { %s5188_s27 = sld [smem:[#allocation62_spill]]  ;;  %s2643_s7 = scalar_lea.sflag [#allocation5], %s3568_s21 }
 0x4a8   : > { %s2590_s17 = smul.f32 %s2589_s25, %s2574_s11  ;;  %v2616_v22 = vstv %s2589_s25  ;;  %s3300_s24 = scalar_lea.vmem %s4969_s9, 1024 }
 0x4a9   : > { %v2617_v2 = vsub.f32 %v2608_v15, %v2616_v22  ;;  %v2618_v25 = vsub.f32 %v2609_v63, %v2616_v22  ;;  %v2619_v44 = vsub.f32 %v2610_v37, %v2616_v22  ;;  %v2620_v14 = vsub.f32 %v2611_v49, %v2616_v22  ;;  %p3301_p9 = scmp.ne.s32.totalorder %s4969_s9, %s3300_s24  ;;  %s3385_s23 = smov [#allocation10]  }
 0x4aa   : > { %s2591_s28 = ssub.f32 %s2586_s6, %s2590_s17  ;;  %v2621_v36 = vsub.f32 %v2612_v59, %v2616_v22  ;;  %v2622_v29 = vsub.f32 %v2613_v46, %v2616_v22  ;;  %v2623_v53 = vsub.f32 %v2614_v4, %v2616_v22  ;;  %v2624_v42 = vsub.f32 %v2615_v48, %v2616_v22  ;;  %s3304_s26 = sshll.u32 %s3385_s23, 4  ;;  %s3305_s26 = int_to_ptr.vmem [resolvable:$false] %s3304_s26 }
 0x4ab   : > { %p3302_p2 = pnand %p3301_p9, %p3513_p7  ;;  %s3306_s2 = scalar_lea.vmem %s3305_s26, 2048 }
 0x4ac   : > { %s2594_s12 = smul.f32 0.0019569471, %s2591_s28  ;;  %p3307_p6 = scmp.lt.s32.totalorder %s4969_s9, %s3305_s26 }
 0x4ad   : > { %s4967_s20 = scalar_lea.hbm %s5188_s27, %s3068_s1  ;;  %p3303_p1 = pneg %p3302_p2 }
 0x4ae   : > { %v2595_v35 = vstv %s2594_s12  ;;  %p3308_p10 = scmp.lt.s32.totalorder %s3306_s2, %s3300_s24 }
 0x4af   : > { %3202 = vrsqrt.f32 %v2595_v35  ;;  %vm2598_vm8 = vcmp.eq.f32.partialorder %v2595_v35, inf  ;;  %v2601_v8 = vand.u32 2147483648, %v2595_v35  ;;  %vm2600_vm9 = vcmp.eq.f32.partialorder %v2595_v35, 0.0 }
 0x4b0   : > { %p3309_p12 = por %p3308_p10, %p3307_p6 }
 0x4b2   : > { %p3310_p13 = pnand %p3309_p12, %p3303_p1 }
 0x4b9   : > { %v3203_v40 = vpop.eup %3202 }
 0x4ba   : > { %v2597_v33 = vmul.f32 %v3203_v40, %v2595_v35 }
 0x4bc   : > { %v2599_v38 = vsel %vm2598_vm8, %v2595_v35, %v2597_v33 }
 0x4bd   : > { %v2602_v0 = vsel %vm2600_vm9, %v2601_v8, %v2599_v38 }
 0x4be   : > { %3123 = vpush %v2602_v0 }
 0x4ef   : > { %s3124_s30 = spop %3123 }
 0x4f0   : > { %s2604_s5 = sadd.f32 1e-05, %s3124_s30 }
 0x4f2   : > { %v2605_v5 = vstv %s2604_s5 }
 0x4f3   : > { %3204 = vrcp.f32 %v2605_v5 }
 0x4fd   : > { %v3205_v18 = vpop.eup %3204 }
 0x4fe   : > { %3125 = vpush %v3205_v18 }
 0x52f   : > { %s3126_s22 = spop %3125 }
 0x530   : > { %v2625_v21 = vstv %s3126_s22 }
 0x531   : > { %v2626_v51 = vmul.f32 %v2625_v21, %v2617_v2  ;;  %v2627_v1 = vmul.f32 %v2625_v21, %v2618_v25  ;;  %v2628_v62 = vmul.f32 %v2625_v21, %v2619_v44  ;;  %v2629_v20 = vmul.f32 %v2625_v21, %v2620_v14 }
 0x532   : > { %v2630_v41 = vmul.f32 %v2625_v21, %v2621_v36  ;;  %v2631_v47 = vmul.f32 %v2625_v21, %v2622_v29  ;;  %v2632_v12 = vmul.f32 %v2625_v21, %v2623_v53  ;;  %v2633_v30 = vmul.f32 %v2625_v21, %v2624_v42 }
 0x533   : > { %2634 = vst.msk [vmem:[%s4463_s15] sm:$0xff] %vm623_vm7, %v2626_v51  ;;  %2635 = vst.msk [vmem:[%s4463_s15 + $0x8] sm:$0xff] %vm623_vm7, %v2627_v1 }
 0x534   : > { %2636 = vst.msk [vmem:[%s4463_s15 + $0x10] sm:$0xff] %vm623_vm7, %v2628_v62  ;;  %2637 = vst.msk [vmem:[%s4463_s15 + $0x18] sm:$0xff] %vm623_vm7, %v2629_v20 }
 0x535   : > { %2638 = vst.msk [vmem:[%s4463_s15 + $0x20] sm:$0xff] %vm623_vm7, %v2630_v41  ;;  %2639 = vst.msk [vmem:[%s4463_s15 + $0x28] sm:$0xff] %vm623_vm7, %v2631_v47 }
 0x536   : > { %2640 = vst.msk [vmem:[%s4463_s15 + $0x30] sm:$0xff] %vm623_vm7, %v2632_v12  ;;  %2641 = vst.msk [vmem:[%s4463_s15 + $0x38] sm:$0xff] %vm623_vm7, %v2633_v30 }
 0x537   : > { %3313 = shalt.err (!%p3310_p13)
}
 0x538   : > { %s3314_s15 = scalar_lea.hbm %s4967_s20, 1024  ;;  %s3318_s3 = scalar_lea.hbm %s5188_s27, 2048 }
 0x539   : > { %p3315_p4 = scmp.ne.s32.totalorder %s4967_s20, %s3314_s15  ;;  %p3319_p11 = scmp.lt.u32.totalorder %s4967_s20, %s5188_s27 }
 0x53a   : > { %p3320_p3 = scmp.lt.u32.totalorder %s3318_s3, %s3314_s15  ;;  %p3322_p9 = scmp.lt.u32.totalorder %s3314_s15, %s4967_s20 }
 0x53b   : > { %p3316_p8 = pnand %p3315_p4, %p3513_p7 }
 0x53c   : > { %p3321_p5 = por %p3320_p3, %p3319_p11 }
 0x53d   : > { %p3317_p0 = pneg %p3316_p8 }
 0x53e   : > { %p3323_p2 = por %p3322_p9, %p3321_p5 }
 0x540   : > { %p3324_p1 = pnand %p3323_p2, %p3317_p0 }
 0x542   : > { %3327 = shalt.err (!%p3324_p1)
}
 0x543   : > { %s3386_s18 = smov 128   ;;  %s3387_s11 = smov 8  }
 0x544   : > { %3137 = dma.vmem_to_hbm [thread:$0]  (%p3513_p7), %s4969_s9, 1024, %s4967_s20, %s2643_s7, %s3386_s18, %s3386_s18, %s3387_s11  }
 0x545 PF: > { %s5190_s25 = sld [smem:[#allocation15_spill]]  ;;  %s5191_s29 = sld [smem:[#allocation20_spill]] }
 0x546   : > { %s5192_s17 = sld [smem:[#allocation18_spill]] }
 0x54b   : > { %s2671_s6 = sand.u32 1, %s5190_s25   ;;  %p5193_p6 = scmp.ne.s32.totalorder %s5191_s29, 0 }
 0x54c   : > { %p5194_p10 = scmp.ge.s32.totalorder %s5192_s17, 2  ;;  %s2672_s28 = scalar_lea.sflag [#allocation5], %s2671_s6 }
 0x54e   : > { %p3151_p12 = pnand %p5194_p10, %p5193_p6 }
 0x550   : > { %3357 = dma.done.wait (!%p3151_p12), %s2672_s28, 1024  }
 0x551   : > { %3359 = vsyncadd (!%p3151_p12), %s2672_s28, 4294966272  ;;  %s5195_s15 = sld [smem:[#allocation21_spill]]  ;;  %s5196_s12 = sld [smem:[#allocation16_spill]] }
 0x552   : > { %s5197_s13 = sld [smem:[#allocation17_spill]]  ;;  %s5198_s14 = sld [smem:[#allocation23_spill]] }
 0x557   : > { %p18_p13 = scmp.ge.s32.totalorder %s5195_s15, 4  }
 0x559   :  { %20 = sbr.rel (!%p18_p13) target bundleno = 12 (0xc), region = 96 }
 0x560   :  { %2677 = vsyncpa [#allocation4], 1 }
 0x561   :  { %2679 = vsyncpa [#allocation4 + $0x1], 1 }
 0x562   :  { %2680 = vsyncpa [#allocation8], 1 }
 0x563   :  { %2681 = vsyncpa [#allocation5], 1 }
 0x564   :  { %2683 = vsyncpa [#allocation5 + $0x1], 1 }
 0x565   :  { %2684 = vsyncpa [#allocation6], 1 }
 0x566   :  { %2686 = vsyncpa [#allocation6 + $0x1], 1 }

</bundles_post_ra>
